<compile_context>
chip_gen: v7x
topology: tpu7x:2x2x1
jax: 0.10.0
libtpu: 0.0.40
codegen_flags: <defaults>
</compile_context>

<pallas_src>
import math

import numpy as np
import jax
import jax.numpy as jnp
from jax.experimental import pallas as pl
from jax.experimental.pallas import tpu as pltpu

F32 = jnp.float32
BF16 = jnp.bfloat16
_REF_PREC = jax.lax.Precision.HIGHEST   # reference only; kernels use bf16 MXU

_COMPILER_PARAMS = pltpu.CompilerParams(
    dimension_semantics=("parallel",),          # batch grid axis -> megacore
    vmem_limit_bytes=32 * 1024 * 1024,
)


# ----------------------------- Pallas kernels ------------------------------ #

def _taps_matmul(src_ref, w_ref, offsets, r_core, w_base=0):
    """Sum of shifted-slab matmuls: conv over the padded-flat layout.

    src_ref : (r_tot, cin)  guarded padded-flat activation (f32)
    w_ref   : (n_taps_total, cin, cout) bf16 per-tap weights
    Returns f32 (r_core, cout) accumulator (bias / activation applied by caller).
    """
    acc = None
    for t, off in enumerate(offsets):
        xt = src_ref[off:off + r_core, :].astype(BF16)
        part = jnp.dot(xt, w_ref[w_base + t], preferred_element_type=F32)
        acc = part if acc is None else acc + part
    return acc


def _make_conv_kernel(offsets, r_core, prelu):
    """Single conv layer (optionally + PReLU) over a guarded padded-flat input."""
    offsets = tuple(int(o) for o in offsets)
    if prelu:
        def kernel(x_ref, w_ref, b_ref, a_ref, o_ref):
            y = _taps_matmul(x_ref, w_ref, offsets, r_core) + b_ref[...]
            o_ref[...] = jnp.where(y >= 0.0, y, a_ref[...] * y)
    else:
        def kernel(x_ref, w_ref, b_ref, o_ref):
            o_ref[...] = _taps_matmul(x_ref, w_ref, offsets, r_core) + b_ref[...]
    return kernel


def _make_convblock_kernel(offsets, r_core, guard, n_layers, n_taps):
    """8 fused conv3x3+PReLU layers + residual, activations VMEM-resident."""
    offsets = tuple(int(o) for o in offsets)

    def kernel(x_ref, w_ref, b_ref, a_ref, m_ref, o_ref, buf0, buf1):
        # Zero the ping-pong buffers once per image so guard/ring rows are 0.
        zero = jnp.zeros(buf0.shape, F32)
        buf0[...] = zero
        buf1[...] = zero
        mask = m_ref[...]                              # (r_core, 1) ring mask
        src = x_ref                                    # guarded, ring already 0
        for l in range(n_layers):
            y = _taps_matmul(src, w_ref, offsets, r_core, w_base=l * n_taps)
            y = y + b_ref[l]                           # f32 epilogue
            y = jnp.where(y >= 0.0, y, a_ref[l] * y)   # PReLU
            y = y * mask                               # keep pad ring at zero
            if l < n_layers - 1:
                dst = buf0 if (l % 2 == 0) else buf1
                dst[guard:guard + r_core, :] = y
                src = dst
            else:
                # residual: convblock(feat) + feat  (ring of feat is zero)
                o_ref[...] = y + x_ref[guard:guard + r_core, :]
    return kernel


def _bilinear_kernel(x_ref, ah_ref, m_ref, o_ref):
    # out = Ah @ X @ (Aw^T (x) diag(channel scales))  -- fused row+col resize.
    y = jnp.dot(ah_ref[...], x_ref[...], preferred_element_type=F32)
    o_ref[...] = jnp.dot(y, m_ref[...], preferred_element_type=F32)


# ------------------------------ pallas wrappers ----------------------------- #

def _run_single_conv(x_flat, w_taps, bias, alpha, r_core, offsets, prelu):
    n, r_tot, cin = x_flat.shape
    k, _, cout = w_taps.shape
    kernel = _make_conv_kernel(offsets, r_core, prelu)
    args = [x_flat, w_taps.astype(BF16), bias.reshape(1, cout).astype(F32)]
    in_specs = [
        pl.BlockSpec((None, r_tot, cin), lambda i: (i, 0, 0)),
        pl.BlockSpec((k, cin, cout), lambda i: (0, 0, 0)),
        pl.BlockSpec((1, cout), lambda i: (0, 0)),
    ]
    if prelu:
        args.append(alpha.reshape(1, cout).astype(F32))
        in_specs.append(pl.BlockSpec((1, cout), lambda i: (0, 0)))
    return pl.pallas_call(
        kernel,
        grid=(n,),
        in_specs=in_specs,
        out_specs=pl.BlockSpec((None, r_core, cout), lambda i: (i, 0, 0)),
        out_shape=jax.ShapeDtypeStruct((n, r_core, cout), F32),
        compiler_params=_COMPILER_PARAMS,
    )(*args)


def _run_convblock(feat_flat, w_stack, b_stack, a_stack, ring_mask,
                   r_core, guard, offsets):
    n, r_tot, c = feat_flat.shape
    n_layers = b_stack.shape[0]
    n_taps = len(offsets)
    kernel = _make_convblock_kernel(offsets, r_core, guard, n_layers, n_taps)
    return pl.pallas_call(
        kernel,
        grid=(n,),
        in_specs=[
            pl.BlockSpec((None, r_tot, c), lambda i: (i, 0, 0)),
            pl.BlockSpec(w_stack.shape, lambda i: (0, 0, 0)),
            pl.BlockSpec(b_stack.shape, lambda i: (0, 0, 0)),
            pl.BlockSpec(a_stack.shape, lambda i: (0, 0, 0)),
            pl.BlockSpec(ring_mask.shape, lambda i: (0, 0)),
        ],
        out_specs=pl.BlockSpec((None, r_core, c), lambda i: (i, 0, 0)),
        out_shape=jax.ShapeDtypeStruct((n, r_core, c), F32),
        scratch_shapes=[pltpu.VMEM((r_tot, c), F32),
                        pltpu.VMEM((r_tot, c), F32)],
        compiler_params=_COMPILER_PARAMS,
    )(feat_flat, w_stack.astype(BF16), b_stack.astype(F32),
      a_stack.astype(F32), ring_mask)


def _run_bilinear(x3d, ah, m):
    n, h_in, wc_in = x3d.shape
    h_out, wc_out = ah.shape[0], m.shape[1]
    return pl.pallas_call(
        _bilinear_kernel,
        grid=(n,),
        in_specs=[
            pl.BlockSpec((None, h_in, wc_in), lambda i: (i, 0, 0)),
            pl.BlockSpec(ah.shape, lambda i: (0, 0)),
            pl.BlockSpec(m.shape, lambda i: (0, 0)),
        ],
        out_specs=pl.BlockSpec((None, h_out, wc_out), lambda i: (i, 0, 0)),
        out_shape=jax.ShapeDtypeStruct((n, h_out, wc_out), F32),
        compiler_params=_COMPILER_PARAMS,
    )(x3d, ah, m)


# --------------------------- layout / weight prep --------------------------- #

def _space_to_depth2(x_nhwc):
    # (N,H,W,C) -> (N,H/2,W/2,4C), channel order (row_phase, col_phase, ci)
    n, h, w, c = x_nhwc.shape
    x = x_nhwc.reshape(n, h // 2, 2, w // 2, 2, c)
    x = jnp.transpose(x, (0, 1, 3, 2, 4, 5))
    return x.reshape(n, h // 2, w // 2, 4 * c)


def _pad_ring_flatten(x_nhwc, guard_lo, guard_hi):
    # spatial zero ring of 1 -> flatten pixels -> add guard rows (for slab shifts)
    n, h, w, c = x_nhwc.shape
    xp = jnp.pad(x_nhwc, ((0, 0), (1, 1), (1, 1), (0, 0)))
    flat = xp.reshape(n, (h + 2) * (w + 2), c)
    return jnp.pad(flat, ((0, 0), (guard_lo, guard_hi), (0, 0)))


def _conv3x3_tap_weights(w_oihw):
    # (Cout, Cin, 3, 3) -> (9, Cin, Cout), tap index = kh*3 + kw
    wt = jnp.transpose(w_oihw, (2, 3, 1, 0))
    return wt.reshape(9, w_oihw.shape[1], w_oihw.shape[0])


_KMAP = {(0, 1): 0, (1, 0): 1, (1, 1): 2}   # (window_pos, phase) -> kernel idx


def _phase_conv_weights(w_oihw):
    # stride-2 3x3 conv -> 2x2-window conv over the space-to-depth input.
    cout, cin = w_oihw.shape[0], w_oihw.shape[1]
    wt = jnp.transpose(w_oihw, (2, 3, 1, 0))            # (kh, kw, Cin, Cout)
    zero = jnp.zeros((cin, cout), w_oihw.dtype)
    taps = []
    for a in range(2):
        for b in range(2):
            blocks = []
            for pr in range(2):
                for pc in range(2):
                    t = _KMAP.get((a, pr))
                    u = _KMAP.get((b, pc))
                    blocks.append(zero if (t is None or u is None) else wt[t, u])
            taps.append(jnp.concatenate(blocks, axis=0))  # (4*Cin, Cout)
    return jnp.stack(taps, axis=0)                        # (4, 4*Cin, Cout)


def _deconv_phase_weights(w_iohw):
    # ConvTranspose2d(k=4,s=2,p=1) -> 9-tap conv emitting 4 sub-pixel phases
    # as 4*Cout fused channels (no zero-dilated buffer, wide lane store).
    cin, cout = w_iohw.shape[0], w_iohw.shape[1]
    zero = jnp.zeros((cin, cout), w_iohw.dtype)
    taps = []
    for t in range(3):
        for u in range(3):
            cols = []
            for r in range(2):
                for s in range(2):
                    ky = r + 3 - 2 * t
                    kx = s + 3 - 2 * u
                    if 0 <= ky <= 3 and 0 <= kx <= 3:
                        cols.append(w_iohw[:, :, ky, kx])
                    else:
                        cols.append(zero)
            taps.append(jnp.concatenate(cols, axis=1))    # (Cin, 4*Cout)
    return jnp.stack(taps, axis=0)                         # (9, Cin, 4*Cout)


def _bilinear_matrix_np(in_size, factor):
    # F.interpolate(mode='bilinear', align_corners=False) as a linear operator.
    out_size = int(math.floor(in_size * factor))
    a = np.zeros((out_size, in_size), np.float32)
    for o in range(out_size):
        src = (o + 0.5) / factor - 0.5
        src = max(src, 0.0)
        i0 = int(math.floor(src))
        i1 = min(i0 + 1, in_size - 1)
        lam = src - i0
        a[o, i0] += 1.0 - lam
        a[o, i1] += lam
    return a


# ------------------------------- conv layers -------------------------------- #

def _strided_conv_prelu(x_nhwc, w_oihw, bias, alpha):
    """Conv2d(k=3, s=2, p=1) + PReLU via phase decomposition (no HBM im2col)."""
    n, h, w, _ = x_nhwc.shape
    hg, wg = h // 2, w // 2
    hp, wp = hg + 2, wg + 2
    r_core = hp * wp
    xs = _space_to_depth2(x_nhwc)                        # (n, hg, wg, 4*cin)
    x_flat = _pad_ring_flatten(xs, 0, wp + 1)            # (n, r_core + wp + 1, 4*cin)
    offsets = [a * wp + b for a in range(2) for b in range(2)]
    w_taps = _phase_conv_weights(w_oihw)                 # (4, 4*cin, cout)
    out = _run_single_conv(x_flat, w_taps, bias, alpha, r_core, offsets, prelu=True)
    cout = w_oihw.shape[0]
    return out.reshape(n, hp, wp, cout)[:, :hg, :wg, :]


# ------------------------------ IFBlock module ------------------------------ #

def init_ifblock_params(key, in_planes, c=64):
    ks = list(jax.random.split(key, 32))
    it = iter(ks)

    def conv_params(cin, cout, k=3):
        w = jax.random.normal(next(it), (cout, cin, k, k), F32) * 0.05
        b = jax.random.normal(next(it), (cout,), F32) * 0.05
        a = jnp.full((cout,), 0.25, F32)                 # PReLU default init
        return dict(w=w, b=b, a=a)

    return {
        "conv0_0": conv_params(in_planes, c // 2),
        "conv0_1": conv_params(c // 2, c),
        "convblock": [conv_params(c, c) for _ in range(8)],
        "lastconv_w": jax.random.normal(next(it), (c, 5, 4, 4), F32) * 0.05,
        "lastconv_b": jax.random.normal(next(it), (5,), F32) * 0.05,
    }


def ifblock_forward(params, x_nchw, flow_nchw=None, scale=1):
    p = params
    x = x_nchw
    if flow_nchw is not None:
        x = jnp.concatenate([x, flow_nchw], axis=1)
    x = jnp.transpose(x, (0, 2, 3, 1)).astype(F32)       # NCHW -> NHWC

    # conv0: two stride-2 conv+PReLU layers
    feat = _strided_conv_prelu(x, p["conv0_0"]["w"], p["conv0_0"]["b"],
                               p["conv0_0"]["a"])
    feat = _strided_conv_prelu(feat, p["conv0_1"]["w"], p["conv0_1"]["b"],
                               p["conv0_1"]["a"])

    n, h4, w4, c = feat.shape
    h4p, w4p = h4 + 2, w4 + 2
    guard = w4p + 1
    r_core = h4p * w4p
    offsets = [guard + (t - 1) * w4p + (u - 1) for t in range(3) for u in range(3)]

    # fused 8-layer convblock + residual (single pallas_call, VMEM-resident)
    w_stack = jnp.concatenate(
        [_conv3x3_tap_weights(cp["w"]) for cp in p["convblock"]], axis=0)  # (72,c,c)
    b_stack = jnp.stack([cp["b"].reshape(1, c) for cp in p["convblock"]], axis=0)
    a_stack = jnp.stack([cp["a"].reshape(1, c) for cp in p["convblock"]], axis=0)
    ring = np.zeros((h4p, w4p, 1), np.float32)
    ring[1:1 + h4, 1:1 + w4, :] = 1.0
    ring_mask = jnp.asarray(ring.reshape(r_core, 1))
    feat_flat = _pad_ring_flatten(feat, guard, guard)
    hblk = _run_convblock(feat_flat, w_stack, b_stack, a_stack, ring_mask,
                          r_core, guard, offsets)        # (n, r_core, c), ring = 0

    # lastconv: ConvTranspose2d(c, 5, 4, 2, 1) phase-split (20 fused channels)
    h_flat = jnp.pad(hblk, ((0, 0), (guard, guard), (0, 0)))
    w_last = _deconv_phase_weights(p["lastconv_w"])      # (9, c, 20)
    b_last = jnp.tile(p["lastconv_b"], 4)                # (20,)
    tmp = _run_single_conv(h_flat, w_last, b_last, None, r_core, offsets,
                           prelu=False)                  # (n, r_core, 20)
    tmp = tmp.reshape(n, h4p, w4p, 4, 5)[:, 1:1 + h4, 1:1 + w4]
    tmp = tmp.reshape(n, h4, w4, 2, 2, 5)
    tmp = jnp.transpose(tmp, (0, 1, 3, 2, 4, 5)).reshape(n, 2 * h4, 2 * w4, 5)

    # bilinear upsample (align_corners=False) fused with the flow scaling
    f = float(scale * 2)
    h2, w2 = 2 * h4, 2 * w4
    ah = _bilinear_matrix_np(h2, f)                      # (ho, h2)
    aw = _bilinear_matrix_np(w2, f)                      # (wo, w2)
    svec = np.array([scale * 2.0] * 4 + [1.0], np.float32)
    m_kron = np.kron(aw.T, np.diag(svec)).astype(np.float32)   # (w2*5, wo*5)
    ho, wo = ah.shape[0], aw.shape[0]
    up = _run_bilinear(tmp.reshape(n, h2, w2 * 5),
                       jnp.asarray(ah), jnp.asarray(m_kron))
    up = up.reshape(n, ho, wo, 5)
    flow = up[..., :4]                                   # already scaled by scale*2
    mask = up[..., 4:5]
    return (jnp.transpose(flow, (0, 3, 1, 2)),           # NHWC -> NCHW
            jnp.transpose(mask, (0, 3, 1, 2)))


# --------------------------- pure-JAX reference ----------------------------- #

def _ref_conv_prelu(x, w, b, a, stride):
    y = jax.lax.conv_general_dilated(
        x, jnp.transpose(w, (2, 3, 1, 0)), (stride, stride), ((1, 1), (1, 1)),
        dimension_numbers=("NHWC", "HWIO", "NHWC"), precision=_REF_PREC)
    y = y + b.reshape(1, 1, 1, -1)
    return jnp.where(y >= 0, y, a.reshape(1, 1, 1, -1) * y)


def ifblock_reference(params, x_nchw, flow_nchw=None, scale=1):
    x = x_nchw
    if flow_nchw is not None:
        x = jnp.concatenate([x, flow_nchw], axis=1)
    x = jnp.transpose(x, (0, 2, 3, 1)).astype(F32)
    p = params
    feat = _ref_conv_prelu(x, p["conv0_0"]["w"], p["conv0_0"]["b"],
                           p["conv0_0"]["a"], 2)
    feat = _ref_conv_prelu(feat, p["conv0_1"]["w"], p["conv0_1"]["b"],
                           p["conv0_1"]["a"], 2)
    h = feat
    for i in range(8):
        cp = p["convblock"][i]
        h = _ref_conv_prelu(h, cp["w"], cp["b"], cp["a"], 1)
    h = h + feat
    wflip = p["lastconv_w"][:, :, ::-1, ::-1]
    rhs = jnp.transpose(wflip, (2, 3, 0, 1))
    tmp = jax.lax.conv_general_dilated(
        h, rhs, (1, 1), ((2, 2), (2, 2)), lhs_dilation=(2, 2),
        dimension_numbers=("NHWC", "HWIO", "NHWC"), precision=_REF_PREC)
    tmp = tmp + p["lastconv_b"].reshape(1, 1, 1, -1)
    f = float(scale * 2)
    ah = jnp.asarray(_bilinear_matrix_np(tmp.shape[1], f))
    aw = jnp.asarray(_bilinear_matrix_np(tmp.shape[2], f))
    up = jnp.einsum("oh,nhwc->nowc", ah, tmp, precision=_REF_PREC)
    up = jnp.einsum("pw,nowc->nopc", aw, up, precision=_REF_PREC)
    flow = up[..., :4] * (scale * 2.0)
    mask = up[..., 4:5]
    return (jnp.transpose(flow, (0, 3, 1, 2)),
            jnp.transpose(mask, (0, 3, 1, 2)))


# ---------------------------------- main ------------------------------------ #

if __name__ == "__main__":
    key = jax.random.PRNGKey(0)
    kx, kp = jax.random.split(key)

    in_planes, c = 8, 16
    N, H, W = 2, 16, 16
    x = jax.random.normal(kx, (N, in_planes, H, W), F32)
    params = init_ifblock_params(kp, in_planes, c)

    fwd = jax.jit(lambda prm, inp: ifblock_forward(prm, inp, None, 1))
    flow, mask = fwd(params, x)
    flow = jax.block_until_ready(flow)
    mask = jax.block_until_ready(mask)

    assert flow.shape == (N, 4, H, W), flow.shape
    assert mask.shape == (N, 1, H, W), mask.shape
    assert bool(jnp.isfinite(flow).all()) and bool(jnp.isfinite(mask).all())

    flow_ref, mask_ref = ifblock_reference(params, x, None, 1)
    err_f = float(jnp.max(jnp.abs(flow - flow_ref)))
    err_m = float(jnp.max(jnp.abs(mask - mask_ref)))
    if not (bool(jnp.allclose(flow, flow_ref, atol=2e-2, rtol=1e-1)) and
            bool(jnp.allclose(mask, mask_ref, atol=2e-2, rtol=1e-1))):
        raise AssertionError(f"mismatch vs reference: flow {err_f}, mask {err_m}")

    print("KERNEL_OK")
</pallas_src>

<mosaic_0001>
module attributes {stable_mosaic.version = 11 : i64} {
  func.func @kernel(%arg0: i32, %arg1: memref<1x111x32xf32, #tpu.memory_space<vmem>>, %arg2: memref<4x32x8xbf16, #tpu.memory_space<vmem>>, %arg3: memref<1x8xf32, #tpu.memory_space<vmem>>, %arg4: memref<1x8xf32, #tpu.memory_space<vmem>>, %arg5: memref<1x100x8xf32, #tpu.memory_space<vmem>>) attributes {dimension_semantics = [#tpu.dimension_semantics<parallel>], iteration_bounds = array<i64: 2>, scalar_prefetch = 0 : i64, scratch_operands = 0 : i64, tpu.core_type = #tpu.core_type<tc>, window_params = [{transform_indices = @transform_0, window_bounds = array<i64: 1, 111, 32>}, {pipeline_mode = #tpu.pipeline_mode<synchronous>, transform_indices = @transform_1, window_bounds = array<i64: 4, 32, 8>}, {pipeline_mode = #tpu.pipeline_mode<synchronous>, transform_indices = @transform_2, window_bounds = array<i64: 1, 8>}, {pipeline_mode = #tpu.pipeline_mode<synchronous>, transform_indices = @transform_3, window_bounds = array<i64: 1, 8>}, {transform_indices = @transform_4, window_bounds = array<i64: 1, 100, 8>}]} {
    %c0 = arith.constant 0 : index
    %c0_0 = arith.constant 0 : index
    %c0_1 = arith.constant 0 : index
    %0 = vector.load %arg1[%c0, %c0_0, %c0_1] : memref<1x111x32xf32, #tpu.memory_space<vmem>>, vector<1x100x32xf32>
    %1 = vector.shape_cast %0 : vector<1x100x32xf32> to vector<100x32xf32>
    %2 = arith.truncf %1 : vector<100x32xf32> to vector<100x32xbf16>
    %c0_2 = arith.constant 0 : index
    %c0_3 = arith.constant 0 : index
    %c0_4 = arith.constant 0 : index
    %3 = vector.load %arg2[%c0_2, %c0_3, %c0_4] : memref<4x32x8xbf16, #tpu.memory_space<vmem>>, vector<1x32x8xbf16>
    %4 = vector.shape_cast %3 : vector<1x32x8xbf16> to vector<32x8xbf16>
    %cst = arith.constant dense<0.000000e+00> : vector<100x8xf32>
    %5 = tpu.matmul %2, %4, %cst {dimension_numbers = #tpu.dot_dimension_numbers<[1], [0], [0], [1], [0, 0, 1, 1], [], []>} : vector<100x32xbf16>, vector<32x8xbf16>, vector<100x8xf32> -> vector<100x8xf32>
    %c0_5 = arith.constant 0 : index
    %c1 = arith.constant 1 : index
    %c0_6 = arith.constant 0 : index
    %6 = vector.load %arg1[%c0_5, %c1, %c0_6] : memref<1x111x32xf32, #tpu.memory_space<vmem>>, vector<1x100x32xf32>
    %7 = vector.shape_cast %6 : vector<1x100x32xf32> to vector<100x32xf32>
    %8 = arith.truncf %7 : vector<100x32xf32> to vector<100x32xbf16>
    %c1_7 = arith.constant 1 : index
    %c0_8 = arith.constant 0 : index
    %c0_9 = arith.constant 0 : index
    %9 = vector.load %arg2[%c1_7, %c0_8, %c0_9] : memref<4x32x8xbf16, #tpu.memory_space<vmem>>, vector<1x32x8xbf16>
    %10 = vector.shape_cast %9 : vector<1x32x8xbf16> to vector<32x8xbf16>
    %cst_10 = arith.constant dense<0.000000e+00> : vector<100x8xf32>
    %11 = tpu.matmul %8, %10, %cst_10 {dimension_numbers = #tpu.dot_dimension_numbers<[1], [0], [0], [1], [0, 0, 1, 1], [], []>} : vector<100x32xbf16>, vector<32x8xbf16>, vector<100x8xf32> -> vector<100x8xf32>
    %12 = arith.addf %5, %11 : vector<100x8xf32>
    %c0_11 = arith.constant 0 : index
    %c10 = arith.constant 10 : index
    %c0_12 = arith.constant 0 : index
    %13 = vector.load %arg1[%c0_11, %c10, %c0_12] : memref<1x111x32xf32, #tpu.memory_space<vmem>>, vector<1x100x32xf32>
    %14 = vector.shape_cast %13 : vector<1x100x32xf32> to vector<100x32xf32>
    %15 = arith.truncf %14 : vector<100x32xf32> to vector<100x32xbf16>
    %c2 = arith.constant 2 : index
    %c0_13 = arith.constant 0 : index
    %c0_14 = arith.constant 0 : index
    %16 = vector.load %arg2[%c2, %c0_13, %c0_14] : memref<4x32x8xbf16, #tpu.memory_space<vmem>>, vector<1x32x8xbf16>
    %17 = vector.shape_cast %16 : vector<1x32x8xbf16> to vector<32x8xbf16>
    %cst_15 = arith.constant dense<0.000000e+00> : vector<100x8xf32>
    %18 = tpu.matmul %15, %17, %cst_15 {dimension_numbers = #tpu.dot_dimension_numbers<[1], [0], [0], [1], [0, 0, 1, 1], [], []>} : vector<100x32xbf16>, vector<32x8xbf16>, vector<100x8xf32> -> vector<100x8xf32>
    %19 = arith.addf %12, %18 : vector<100x8xf32>
    %c0_16 = arith.constant 0 : index
    %c11 = arith.constant 11 : index
    %c0_17 = arith.constant 0 : index
    %20 = vector.load %arg1[%c0_16, %c11, %c0_17] : memref<1x111x32xf32, #tpu.memory_space<vmem>>, vector<1x100x32xf32>
    %21 = vector.shape_cast %20 : vector<1x100x32xf32> to vector<100x32xf32>
    %22 = arith.truncf %21 : vector<100x32xf32> to vector<100x32xbf16>
    %c3 = arith.constant 3 : index
    %c0_18 = arith.constant 0 : index
    %c0_19 = arith.constant 0 : index
    %23 = vector.load %arg2[%c3, %c0_18, %c0_19] : memref<4x32x8xbf16, #tpu.memory_space<vmem>>, vector<1x32x8xbf16>
    %24 = vector.shape_cast %23 : vector<1x32x8xbf16> to vector<32x8xbf16>
    %cst_20 = arith.constant dense<0.000000e+00> : vector<100x8xf32>
    %25 = tpu.matmul %22, %24, %cst_20 {dimension_numbers = #tpu.dot_dimension_numbers<[1], [0], [0], [1], [0, 0, 1, 1], [], []>} : vector<100x32xbf16>, vector<32x8xbf16>, vector<100x8xf32> -> vector<100x8xf32>
    %26 = arith.addf %19, %25 : vector<100x8xf32>
    %c0_21 = arith.constant 0 : index
    %c0_22 = arith.constant 0 : index
    %27 = vector.load %arg3[%c0_21, %c0_22] : memref<1x8xf32, #tpu.memory_space<vmem>>, vector<1x8xf32>
    %28 = vector.broadcast %27 : vector<1x8xf32> to vector<100x8xf32>
    %29 = arith.addf %26, %28 : vector<100x8xf32>
    %cst_23 = arith.constant 0.000000e+00 : f32
    %30 = vector.broadcast %cst_23 : f32 to vector<100x8xf32>
    %31 = arith.cmpf oge, %29, %30 : vector<100x8xf32>
    %c0_24 = arith.constant 0 : index
    %c0_25 = arith.constant 0 : index
    %32 = vector.load %arg4[%c0_24, %c0_25] : memref<1x8xf32, #tpu.memory_space<vmem>>, vector<1x8xf32>
    %33 = vector.broadcast %32 : vector<1x8xf32> to vector<100x8xf32>
    %34 = arith.mulf %33, %29 : vector<100x8xf32>
    %35 = arith.select %31, %29, %34 : vector<100x8xi1>, vector<100x8xf32>
    %c0_26 = arith.constant 0 : index
    %c0_27 = arith.constant 0 : index
    %c0_28 = arith.constant 0 : index
    %36 = vector.load %arg5[%c0_26, %c0_27, %c0_28] : memref<1x100x8xf32, #tpu.memory_space<vmem>>, vector<1x100x8xf32>
    %37 = vector.shape_cast %36 : vector<1x100x8xf32> to vector<100x8xf32>
    %38 = vector.shape_cast %35 : vector<100x8xf32> to vector<1x100x8xf32>
    tpu.vector_store %arg5[%c0_26, %c0_27, %c0_28], %38 {strides = array<i32>} : memref<1x100x8xf32, #tpu.memory_space<vmem>>, vector<1x100x8xf32>,
    return
  }
  func.func @transform_0(%arg0: i32) -> (i32, i32, i32) {
    %c0_i32 = arith.constant 0 : i32
    %c0_i32_0 = arith.constant 0 : i32
    %c0_i32_1 = arith.constant 0 : i32
    return %arg0, %c0_i32, %c0_i32_0 : i32, i32, i32
  }
  func.func @transform_1(%arg0: i32) -> (i32, i32, i32) {
    %c0_i32 = arith.constant 0 : i32
    %c0_i32_0 = arith.constant 0 : i32
    %c0_i32_1 = arith.constant 0 : i32
    %c0_i32_2 = arith.constant 0 : i32
    return %c0_i32, %c0_i32_0, %c0_i32_1 : i32, i32, i32
  }
  func.func @transform_2(%arg0: i32) -> (i32, i32) {
    %c0_i32 = arith.constant 0 : i32
    %c0_i32_0 = arith.constant 0 : i32
    %c0_i32_1 = arith.constant 0 : i32
    return %c0_i32, %c0_i32_0 : i32, i32
  }
  func.func @transform_3(%arg0: i32) -> (i32, i32) {
    %c0_i32 = arith.constant 0 : i32
    %c0_i32_0 = arith.constant 0 : i32
    %c0_i32_1 = arith.constant 0 : i32
    return %c0_i32, %c0_i32_0 : i32, i32
  }
  func.func @transform_4(%arg0: i32) -> (i32, i32, i32) {
    %c0_i32 = arith.constant 0 : i32
    %c0_i32_0 = arith.constant 0 : i32
    %c0_i32_1 = arith.constant 0 : i32
    return %arg0, %c0_i32, %c0_i32_0 : i32, i32, i32
  }
}

module attributes {stable_mosaic.version = 11 : i64} {
  func.func @kernel(%arg0: i32, %arg1: memref<1x43x32xf32, #tpu.memory_space<vmem>>, %arg2: memref<4x32x16xbf16, #tpu.memory_space<vmem>>, %arg3: memref<1x16xf32, #tpu.memory_space<vmem>>, %arg4: memref<1x16xf32, #tpu.memory_space<vmem>>, %arg5: memref<1x36x16xf32, #tpu.memory_space<vmem>>) attributes {dimension_semantics = [#tpu.dimension_semantics<parallel>], iteration_bounds = array<i64: 2>, scalar_prefetch = 0 : i64, scratch_operands = 0 : i64, tpu.core_type = #tpu.core_type<tc>, window_params = [{transform_indices = @transform_0, window_bounds = array<i64: 1, 43, 32>}, {pipeline_mode = #tpu.pipeline_mode<synchronous>, transform_indices = @transform_1, window_bounds = array<i64: 4, 32, 16>}, {pipeline_mode = #tpu.pipeline_mode<synchronous>, transform_indices = @transform_2, window_bounds = array<i64: 1, 16>}, {pipeline_mode = #tpu.pipeline_mode<synchronous>, transform_indices = @transform_3, window_bounds = array<i64: 1, 16>}, {transform_indices = @transform_4, window_bounds = array<i64: 1, 36, 16>}]} {
    %c0 = arith.constant 0 : index
    %c0_0 = arith.constant 0 : index
    %c0_1 = arith.constant 0 : index
    %0 = vector.load %arg1[%c0, %c0_0, %c0_1] : memref<1x43x32xf32, #tpu.memory_space<vmem>>, vector<1x36x32xf32>
    %1 = vector.shape_cast %0 : vector<1x36x32xf32> to vector<36x32xf32>
    %2 = arith.truncf %1 : vector<36x32xf32> to vector<36x32xbf16>
    %c0_2 = arith.constant 0 : index
    %c0_3 = arith.constant 0 : index
    %c0_4 = arith.constant 0 : index
    %3 = vector.load %arg2[%c0_2, %c0_3, %c0_4] : memref<4x32x16xbf16, #tpu.memory_space<vmem>>, vector<1x32x16xbf16>
    %4 = vector.shape_cast %3 : vector<1x32x16xbf16> to vector<32x16xbf16>
    %cst = arith.constant dense<0.000000e+00> : vector<36x16xf32>
    %5 = tpu.matmul %2, %4, %cst {dimension_numbers = #tpu.dot_dimension_numbers<[1], [0], [0], [1], [0, 0, 1, 1], [], []>} : vector<36x32xbf16>, vector<32x16xbf16>, vector<36x16xf32> -> vector<36x16xf32>
    %c0_5 = arith.constant 0 : index
    %c1 = arith.constant 1 : index
    %c0_6 = arith.constant 0 : index
    %6 = vector.load %arg1[%c0_5, %c1, %c0_6] : memref<1x43x32xf32, #tpu.memory_space<vmem>>, vector<1x36x32xf32>
    %7 = vector.shape_cast %6 : vector<1x36x32xf32> to vector<36x32xf32>
    %8 = arith.truncf %7 : vector<36x32xf32> to vector<36x32xbf16>
    %c1_7 = arith.constant 1 : index
    %c0_8 = arith.constant 0 : index
    %c0_9 = arith.constant 0 : index
    %9 = vector.load %arg2[%c1_7, %c0_8, %c0_9] : memref<4x32x16xbf16, #tpu.memory_space<vmem>>, vector<1x32x16xbf16>
    %10 = vector.shape_cast %9 : vector<1x32x16xbf16> to vector<32x16xbf16>
    %cst_10 = arith.constant dense<0.000000e+00> : vector<36x16xf32>
    %11 = tpu.matmul %8, %10, %cst_10 {dimension_numbers = #tpu.dot_dimension_numbers<[1], [0], [0], [1], [0, 0, 1, 1], [], []>} : vector<36x32xbf16>, vector<32x16xbf16>, vector<36x16xf32> -> vector<36x16xf32>
    %12 = arith.addf %5, %11 : vector<36x16xf32>
    %c0_11 = arith.constant 0 : index
    %c6 = arith.constant 6 : index
    %c0_12 = arith.constant 0 : index
    %13 = vector.load %arg1[%c0_11, %c6, %c0_12] : memref<1x43x32xf32, #tpu.memory_space<vmem>>, vector<1x36x32xf32>
    %14 = vector.shape_cast %13 : vector<1x36x32xf32> to vector<36x32xf32>
    %15 = arith.truncf %14 : vector<36x32xf32> to vector<36x32xbf16>
    %c2 = arith.constant 2 : index
    %c0_13 = arith.constant 0 : index
    %c0_14 = arith.constant 0 : index
    %16 = vector.load %arg2[%c2, %c0_13, %c0_14] : memref<4x32x16xbf16, #tpu.memory_space<vmem>>, vector<1x32x16xbf16>
    %17 = vector.shape_cast %16 : vector<1x32x16xbf16> to vector<32x16xbf16>
    %cst_15 = arith.constant dense<0.000000e+00> : vector<36x16xf32>
    %18 = tpu.matmul %15, %17, %cst_15 {dimension_numbers = #tpu.dot_dimension_numbers<[1], [0], [0], [1], [0, 0, 1, 1], [], []>} : vector<36x32xbf16>, vector<32x16xbf16>, vector<36x16xf32> -> vector<36x16xf32>
    %19 = arith.addf %12, %18 : vector<36x16xf32>
    %c0_16 = arith.constant 0 : index
    %c7 = arith.constant 7 : index
    %c0_17 = arith.constant 0 : index
    %20 = vector.load %arg1[%c0_16, %c7, %c0_17] : memref<1x43x32xf32, #tpu.memory_space<vmem>>, vector<1x36x32xf32>
    %21 = vector.shape_cast %20 : vector<1x36x32xf32> to vector<36x32xf32>
    %22 = arith.truncf %21 : vector<36x32xf32> to vector<36x32xbf16>
    %c3 = arith.constant 3 : index
    %c0_18 = arith.constant 0 : index
    %c0_19 = arith.constant 0 : index
    %23 = vector.load %arg2[%c3, %c0_18, %c0_19] : memref<4x32x16xbf16, #tpu.memory_space<vmem>>, vector<1x32x16xbf16>
    %24 = vector.shape_cast %23 : vector<1x32x16xbf16> to vector<32x16xbf16>
    %cst_20 = arith.constant dense<0.000000e+00> : vector<36x16xf32>
    %25 = tpu.matmul %22, %24, %cst_20 {dimension_numbers = #tpu.dot_dimension_numbers<[1], [0], [0], [1], [0, 0, 1, 1], [], []>} : vector<36x32xbf16>, vector<32x16xbf16>, vector<36x16xf32> -> vector<36x16xf32>
    %26 = arith.addf %19, %25 : vector<36x16xf32>
    %c0_21 = arith.constant 0 : index
    %c0_22 = arith.constant 0 : index
    %27 = vector.load %arg3[%c0_21, %c0_22] : memref<1x16xf32, #tpu.memory_space<vmem>>, vector<1x16xf32>
    %28 = vector.broadcast %27 : vector<1x16xf32> to vector<36x16xf32>
    %29 = arith.addf %26, %28 : vector<36x16xf32>
    %cst_23 = arith.constant 0.000000e+00 : f32
    %30 = vector.broadcast %cst_23 : f32 to vector<36x16xf32>
    %31 = arith.cmpf oge, %29, %30 : vector<36x16xf32>
    %c0_24 = arith.constant 0 : index
    %c0_25 = arith.constant 0 : index
    %32 = vector.load %arg4[%c0_24, %c0_25] : memref<1x16xf32, #tpu.memory_space<vmem>>, vector<1x16xf32>
    %33 = vector.broadcast %32 : vector<1x16xf32> to vector<36x16xf32>
    %34 = arith.mulf %33, %29 : vector<36x16xf32>
    %35 = arith.select %31, %29, %34 : vector<36x16xi1>, vector<36x16xf32>
    %c0_26 = arith.constant 0 : index
    %c0_27 = arith.constant 0 : index
    %c0_28 = arith.constant 0 : index
    %36 = vector.load %arg5[%c0_26, %c0_27, %c0_28] : memref<1x36x16xf32, #tpu.memory_space<vmem>>, vector<1x36x16xf32>
    %37 = vector.shape_cast %36 : vector<1x36x16xf32> to vector<36x16xf32>
    %38 = vector.shape_cast %35 : vector<36x16xf32> to vector<1x36x16xf32>
    tpu.vector_store %arg5[%c0_26, %c0_27, %c0_28], %38 {strides = array<i32>} : memref<1x36x16xf32, #tpu.memory_space<vmem>>, vector<1x36x16xf32>,
    return
  }
  func.func @transform_0(%arg0: i32) -> (i32, i32, i32) {
    %c0_i32 = arith.constant 0 : i32
    %c0_i32_0 = arith.constant 0 : i32
    %c0_i32_1 = arith.constant 0 : i32
    return %arg0, %c0_i32, %c0_i32_0 : i32, i32, i32
  }
  func.func @transform_1(%arg0: i32) -> (i32, i32, i32) {
    %c0_i32 = arith.constant 0 : i32
    %c0_i32_0 = arith.constant 0 : i32
    %c0_i32_1 = arith.constant 0 : i32
    %c0_i32_2 = arith.constant 0 : i32
    return %c0_i32, %c0_i32_0, %c0_i32_1 : i32, i32, i32
  }
  func.func @transform_2(%arg0: i32) -> (i32, i32) {
    %c0_i32 = arith.constant 0 : i32
    %c0_i32_0 = arith.constant 0 : i32
    %c0_i32_1 = arith.constant 0 : i32
    return %c0_i32, %c0_i32_0 : i32, i32
  }
  func.func @transform_3(%arg0: i32) -> (i32, i32) {
    %c0_i32 = arith.constant 0 : i32
    %c0_i32_0 = arith.constant 0 : i32
    %c0_i32_1 = arith.constant 0 : i32
    return %c0_i32, %c0_i32_0 : i32, i32
  }
  func.func @transform_4(%arg0: i32) -> (i32, i32, i32) {
    %c0_i32 = arith.constant 0 : i32
    %c0_i32_0 = arith.constant 0 : i32
    %c0_i32_1 = arith.constant 0 : i32
    return %arg0, %c0_i32, %c0_i32_0 : i32, i32, i32
  }
}

module attributes {stable_mosaic.version = 11 : i64} {
  func.func @kernel(%arg0: i32, %arg1: memref<1x50x16xf32, #tpu.memory_space<vmem>>, %arg2: memref<72x16x16xbf16, #tpu.memory_space<vmem>>, %arg3: memref<8x1x16xf32, #tpu.memory_space<vmem>>, %arg4: memref<8x1x16xf32, #tpu.memory_space<vmem>>, %arg5: memref<36x1xf32, #tpu.memory_space<vmem>>, %arg6: memref<1x36x16xf32, #tpu.memory_space<vmem>>, %arg7: memref<50x16xf32, #tpu.memory_space<vmem>>, %arg8: memref<50x16xf32, #tpu.memory_space<vmem>>) attributes {dimension_semantics = [#tpu.dimension_semantics<parallel>], iteration_bounds = array<i64: 2>, scalar_prefetch = 0 : i64, scratch_operands = 2 : i64, tpu.core_type = #tpu.core_type<tc>, window_params = [{transform_indices = @transform_0, window_bounds = array<i64: 1, 50, 16>}, {pipeline_mode = #tpu.pipeline_mode<synchronous>, transform_indices = @transform_1, window_bounds = array<i64: 72, 16, 16>}, {pipeline_mode = #tpu.pipeline_mode<synchronous>, transform_indices = @transform_2, window_bounds = array<i64: 8, 1, 16>}, {pipeline_mode = #tpu.pipeline_mode<synchronous>, transform_indices = @transform_3, window_bounds = array<i64: 8, 1, 16>}, {pipeline_mode = #tpu.pipeline_mode<synchronous>, transform_indices = @transform_4, window_bounds = array<i64: 36, 1>}, {transform_indices = @transform_5, window_bounds = array<i64: 1, 36, 16>}]} {
    %cst = arith.constant 0.000000e+00 : f32
    %0 = vector.broadcast %cst : f32 to vector<50x16xf32>
    %c0 = arith.constant 0 : index
    %c0_0 = arith.constant 0 : index
    %1 = vector.load %arg7[%c0, %c0_0] : memref<50x16xf32, #tpu.memory_space<vmem>>, vector<50x16xf32>
    tpu.vector_store %arg7[%c0, %c0_0], %0 {strides = array<i32>} : memref<50x16xf32, #tpu.memory_space<vmem>>, vector<50x16xf32>,
    %c0_1 = arith.constant 0 : index
    %c0_2 = arith.constant 0 : index
    %2 = vector.load %arg8[%c0_1, %c0_2] : memref<50x16xf32, #tpu.memory_space<vmem>>, vector<50x16xf32>
    tpu.vector_store %arg8[%c0_1, %c0_2], %0 {strides = array<i32>} : memref<50x16xf32, #tpu.memory_space<vmem>>, vector<50x16xf32>,
    %c0_3 = arith.constant 0 : index
    %c0_4 = arith.constant 0 : index
    %3 = vector.load %arg5[%c0_3, %c0_4] : memref<36x1xf32, #tpu.memory_space<vmem>>, vector<36x1xf32>
    %c0_5 = arith.constant 0 : index
    %c0_6 = arith.constant 0 : index
    %c0_7 = arith.constant 0 : index
    %4 = vector.load %arg1[%c0_5, %c0_6, %c0_7] : memref<1x50x16xf32, #tpu.memory_space<vmem>>, vector<1x36x16xf32>
    %5 = vector.shape_cast %4 : vector<1x36x16xf32> to vector<36x16xf32>
    %6 = arith.truncf %5 : vector<36x16xf32> to vector<36x16xbf16>
    %c0_8 = arith.constant 0 : index
    %c0_9 = arith.constant 0 : index
    %c0_10 = arith.constant 0 : index
    %7 = vector.load %arg2[%c0_8, %c0_9, %c0_10] : memref<72x16x16xbf16, #tpu.memory_space<vmem>>, vector<1x16x16xbf16>
    %8 = vector.shape_cast %7 : vector<1x16x16xbf16> to vector<16x16xbf16>
    %cst_11 = arith.constant dense<0.000000e+00> : vector<36x16xf32>
    %9 = tpu.matmul %6, %8, %cst_11 {dimension_numbers = #tpu.dot_dimension_numbers<[1], [0], [0], [1], [0, 0, 1, 1], [], []>} : vector<36x16xbf16>, vector<16x16xbf16>, vector<36x16xf32> -> vector<36x16xf32>
    %c0_12 = arith.constant 0 : index
    %c1 = arith.constant 1 : index
    %c0_13 = arith.constant 0 : index
    %10 = vector.load %arg1[%c0_12, %c1, %c0_13] : memref<1x50x16xf32, #tpu.memory_space<vmem>>, vector<1x36x16xf32>
    %11 = vector.shape_cast %10 : vector<1x36x16xf32> to vector<36x16xf32>
    %12 = arith.truncf %11 : vector<36x16xf32> to vector<36x16xbf16>
    %c1_14 = arith.constant 1 : index
    %c0_15 = arith.constant 0 : index
    %c0_16 = arith.constant 0 : index
    %13 = vector.load %arg2[%c1_14, %c0_15, %c0_16] : memref<72x16x16xbf16, #tpu.memory_space<vmem>>, vector<1x16x16xbf16>
    %14 = vector.shape_cast %13 : vector<1x16x16xbf16> to vector<16x16xbf16>
    %cst_17 = arith.constant dense<0.000000e+00> : vector<36x16xf32>
    %15 = tpu.matmul %12, %14, %cst_17 {dimension_numbers = #tpu.dot_dimension_numbers<[1], [0], [0], [1], [0, 0, 1, 1], [], []>} : vector<36x16xbf16>, vector<16x16xbf16>, vector<36x16xf32> -> vector<36x16xf32>
    %16 = arith.addf %9, %15 : vector<36x16xf32>
    %c0_18 = arith.constant 0 : index
    %c2 = arith.constant 2 : index
    %c0_19 = arith.constant 0 : index
    %17 = vector.load %arg1[%c0_18, %c2, %c0_19] : memref<1x50x16xf32, #tpu.memory_space<vmem>>, vector<1x36x16xf32>
    %18 = vector.shape_cast %17 : vector<1x36x16xf32> to vector<36x16xf32>
    %19 = arith.truncf %18 : vector<36x16xf32> to vector<36x16xbf16>
    %c2_20 = arith.constant 2 : index
    %c0_21 = arith.constant 0 : index
    %c0_22 = arith.constant 0 : index
    %20 = vector.load %arg2[%c2_20, %c0_21, %c0_22] : memref<72x16x16xbf16, #tpu.memory_space<vmem>>, vector<1x16x16xbf16>
    %21 = vector.shape_cast %20 : vector<1x16x16xbf16> to vector<16x16xbf16>
    %cst_23 = arith.constant dense<0.000000e+00> : vector<36x16xf32>
    %22 = tpu.matmul %19, %21, %cst_23 {dimension_numbers = #tpu.dot_dimension_numbers<[1], [0], [0], [1], [0, 0, 1, 1], [], []>} : vector<36x16xbf16>, vector<16x16xbf16>, vector<36x16xf32> -> vector<36x16xf32>
    %23 = arith.addf %16, %22 : vector<36x16xf32>
    %c0_24 = arith.constant 0 : index
    %c6 = arith.constant 6 : index
    %c0_25 = arith.constant 0 : index
    %24 = vector.load %arg1[%c0_24, %c6, %c0_25] : memref<1x50x16xf32, #tpu.memory_space<vmem>>, vector<1x36x16xf32>
    %25 = vector.shape_cast %24 : vector<1x36x16xf32> to vector<36x16xf32>
    %26 = arith.truncf %25 : vector<36x16xf32> to vector<36x16xbf16>
    %c3 = arith.constant 3 : index
    %c0_26 = arith.constant 0 : index
    %c0_27 = arith.constant 0 : index
    %27 = vector.load %arg2[%c3, %c0_26, %c0_27] : memref<72x16x16xbf16, #tpu.memory_space<vmem>>, vector<1x16x16xbf16>
    %28 = vector.shape_cast %27 : vector<1x16x16xbf16> to vector<16x16xbf16>
    %cst_28 = arith.constant dense<0.000000e+00> : vector<36x16xf32>
    %29 = tpu.matmul %26, %28, %cst_28 {dimension_numbers = #tpu.dot_dimension_numbers<[1], [0], [0], [1], [0, 0, 1, 1], [], []>} : vector<36x16xbf16>, vector<16x16xbf16>, vector<36x16xf32> -> vector<36x16xf32>
    %30 = arith.addf %23, %29 : vector<36x16xf32>
    %c0_29 = arith.constant 0 : index
    %c7 = arith.constant 7 : index
    %c0_30 = arith.constant 0 : index
    %31 = vector.load %arg1[%c0_29, %c7, %c0_30] : memref<1x50x16xf32, #tpu.memory_space<vmem>>, vector<1x36x16xf32>
    %32 = vector.shape_cast %31 : vector<1x36x16xf32> to vector<36x16xf32>
    %33 = arith.truncf %32 : vector<36x16xf32> to vector<36x16xbf16>
    %c4 = arith.constant 4 : index
    %c0_31 = arith.constant 0 : index
    %c0_32 = arith.constant 0 : index
    %34 = vector.load %arg2[%c4, %c0_31, %c0_32] : memref<72x16x16xbf16, #tpu.memory_space<vmem>>, vector<1x16x16xbf16>
    %35 = vector.shape_cast %34 : vector<1x16x16xbf16> to vector<16x16xbf16>
    %cst_33 = arith.constant dense<0.000000e+00> : vector<36x16xf32>
    %36 = tpu.matmul %33, %35, %cst_33 {dimension_numbers = #tpu.dot_dimension_numbers<[1], [0], [0], [1], [0, 0, 1, 1], [], []>} : vector<36x16xbf16>, vector<16x16xbf16>, vector<36x16xf32> -> vector<36x16xf32>
    %37 = arith.addf %30, %36 : vector<36x16xf32>
    %c0_34 = arith.constant 0 : index
    %c8 = arith.constant 8 : index
    %c0_35 = arith.constant 0 : index
    %38 = vector.load %arg1[%c0_34, %c8, %c0_35] : memref<1x50x16xf32, #tpu.memory_space<vmem>>, vector<1x36x16xf32>
    %39 = vector.shape_cast %38 : vector<1x36x16xf32> to vector<36x16xf32>
    %40 = arith.truncf %39 : vector<36x16xf32> to vector<36x16xbf16>
    %c5 = arith.constant 5 : index
    %c0_36 = arith.constant 0 : index
    %c0_37 = arith.constant 0 : index
    %41 = vector.load %arg2[%c5, %c0_36, %c0_37] : memref<72x16x16xbf16, #tpu.memory_space<vmem>>, vector<1x16x16xbf16>
    %42 = vector.shape_cast %41 : vector<1x16x16xbf16> to vector<16x16xbf16>
    %cst_38 = arith.constant dense<0.000000e+00> : vector<36x16xf32>
    %43 = tpu.matmul %40, %42, %cst_38 {dimension_numbers = #tpu.dot_dimension_numbers<[1], [0], [0], [1], [0, 0, 1, 1], [], []>} : vector<36x16xbf16>, vector<16x16xbf16>, vector<36x16xf32> -> vector<36x16xf32>
    %44 = arith.addf %37, %43 : vector<36x16xf32>
    %c0_39 = arith.constant 0 : index
    %c12 = arith.constant 12 : index
    %c0_40 = arith.constant 0 : index
    %45 = vector.load %arg1[%c0_39, %c12, %c0_40] : memref<1x50x16xf32, #tpu.memory_space<vmem>>, vector<1x36x16xf32>
    %46 = vector.shape_cast %45 : vector<1x36x16xf32> to vector<36x16xf32>
    %47 = arith.truncf %46 : vector<36x16xf32> to vector<36x16xbf16>
    %c6_41 = arith.constant 6 : index
    %c0_42 = arith.constant 0 : index
    %c0_43 = arith.constant 0 : index
    %48 = vector.load %arg2[%c6_41, %c0_42, %c0_43] : memref<72x16x16xbf16, #tpu.memory_space<vmem>>, vector<1x16x16xbf16>
    %49 = vector.shape_cast %48 : vector<1x16x16xbf16> to vector<16x16xbf16>
    %cst_44 = arith.constant dense<0.000000e+00> : vector<36x16xf32>
    %50 = tpu.matmul %47, %49, %cst_44 {dimension_numbers = #tpu.dot_dimension_numbers<[1], [0], [0], [1], [0, 0, 1, 1], [], []>} : vector<36x16xbf16>, vector<16x16xbf16>, vector<36x16xf32> -> vector<36x16xf32>
    %51 = arith.addf %44, %50 : vector<36x16xf32>
    %c0_45 = arith.constant 0 : index
    %c13 = arith.constant 13 : index
    %c0_46 = arith.constant 0 : index
    %52 = vector.load %arg1[%c0_45, %c13, %c0_46] : memref<1x50x16xf32, #tpu.memory_space<vmem>>, vector<1x36x16xf32>
    %53 = vector.shape_cast %52 : vector<1x36x16xf32> to vector<36x16xf32>
    %54 = arith.truncf %53 : vector<36x16xf32> to vector<36x16xbf16>
    %c7_47 = arith.constant 7 : index
    %c0_48 = arith.constant 0 : index
    %c0_49 = arith.constant 0 : index
    %55 = vector.load %arg2[%c7_47, %c0_48, %c0_49] : memref<72x16x16xbf16, #tpu.memory_space<vmem>>, vector<1x16x16xbf16>
    %56 = vector.shape_cast %55 : vector<1x16x16xbf16> to vector<16x16xbf16>
    %cst_50 = arith.constant dense<0.000000e+00> : vector<36x16xf32>
    %57 = tpu.matmul %54, %56, %cst_50 {dimension_numbers = #tpu.dot_dimension_numbers<[1], [0], [0], [1], [0, 0, 1, 1], [], []>} : vector<36x16xbf16>, vector<16x16xbf16>, vector<36x16xf32> -> vector<36x16xf32>
    %58 = arith.addf %51, %57 : vector<36x16xf32>
    %c0_51 = arith.constant 0 : index
    %c14 = arith.constant 14 : index
    %c0_52 = arith.constant 0 : index
    %59 = vector.load %arg1[%c0_51, %c14, %c0_52] : memref<1x50x16xf32, #tpu.memory_space<vmem>>, vector<1x36x16xf32>
    %60 = vector.shape_cast %59 : vector<1x36x16xf32> to vector<36x16xf32>
    %61 = arith.truncf %60 : vector<36x16xf32> to vector<36x16xbf16>
    %c8_53 = arith.constant 8 : index
    %c0_54 = arith.constant 0 : index
    %c0_55 = arith.constant 0 : index
    %62 = vector.load %arg2[%c8_53, %c0_54, %c0_55] : memref<72x16x16xbf16, #tpu.memory_space<vmem>>, vector<1x16x16xbf16>
    %63 = vector.shape_cast %62 : vector<1x16x16xbf16> to vector<16x16xbf16>
    %cst_56 = arith.constant dense<0.000000e+00> : vector<36x16xf32>
    %64 = tpu.matmul %61, %63, %cst_56 {dimension_numbers = #tpu.dot_dimension_numbers<[1], [0], [0], [1], [0, 0, 1, 1], [], []>} : vector<36x16xbf16>, vector<16x16xbf16>, vector<36x16xf32> -> vector<36x16xf32>
    %65 = arith.addf %58, %64 : vector<36x16xf32>
    %c0_57 = arith.constant 0 : index
    %c0_58 = arith.constant 0 : index
    %c0_59 = arith.constant 0 : index
    %66 = vector.load %arg3[%c0_57, %c0_58, %c0_59] : memref<8x1x16xf32, #tpu.memory_space<vmem>>, vector<1x1x16xf32>
    %67 = vector.shape_cast %66 : vector<1x1x16xf32> to vector<1x16xf32>
    %68 = vector.broadcast %67 : vector<1x16xf32> to vector<36x16xf32>
    %69 = arith.addf %65, %68 : vector<36x16xf32>
    %cst_60 = arith.constant 0.000000e+00 : f32
    %70 = vector.broadcast %cst_60 : f32 to vector<36x16xf32>
    %71 = arith.cmpf oge, %69, %70 : vector<36x16xf32>
    %c0_61 = arith.constant 0 : index
    %c0_62 = arith.constant 0 : index
    %c0_63 = arith.constant 0 : index
    %72 = vector.load %arg4[%c0_61, %c0_62, %c0_63] : memref<8x1x16xf32, #tpu.memory_space<vmem>>, vector<1x1x16xf32>
    %73 = vector.shape_cast %72 : vector<1x1x16xf32> to vector<1x16xf32>
    %74 = vector.broadcast %73 : vector<1x16xf32> to vector<36x16xf32>
    %75 = arith.mulf %74, %69 : vector<36x16xf32>
    %76 = arith.select %71, %69, %75 : vector<36x16xi1>, vector<36x16xf32>
    %77 = vector.broadcast %3 : vector<36x1xf32> to vector<36x16xf32>
    %78 = arith.mulf %76, %77 : vector<36x16xf32>
    %c7_64 = arith.constant 7 : index
    %c0_65 = arith.constant 0 : index
    %79 = vector.load %arg7[%c7_64, %c0_65] : memref<50x16xf32, #tpu.memory_space<vmem>>, vector<36x16xf32>
    tpu.vector_store %arg7[%c7_64, %c0_65], %78 {strides = array<i32>} : memref<50x16xf32, #tpu.memory_space<vmem>>, vector<36x16xf32>,
    %c0_66 = arith.constant 0 : index
    %c0_67 = arith.constant 0 : index
    %80 = vector.load %arg7[%c0_66, %c0_67] : memref<50x16xf32, #tpu.memory_space<vmem>>, vector<36x16xf32>
    %81 = arith.truncf %80 : vector<36x16xf32> to vector<36x16xbf16>
    %c9 = arith.constant 9 : index
    %c0_68 = arith.constant 0 : index
    %c0_69 = arith.constant 0 : index
    %82 = vector.load %arg2[%c9, %c0_68, %c0_69] : memref<72x16x16xbf16, #tpu.memory_space<vmem>>, vector<1x16x16xbf16>
    %83 = vector.shape_cast %82 : vector<1x16x16xbf16> to vector<16x16xbf16>
    %cst_70 = arith.constant dense<0.000000e+00> : vector<36x16xf32>
    %84 = tpu.matmul %81, %83, %cst_70 {dimension_numbers = #tpu.dot_dimension_numbers<[1], [0], [0], [1], [0, 0, 1, 1], [], []>} : vector<36x16xbf16>, vector<16x16xbf16>, vector<36x16xf32> -> vector<36x16xf32>
    %c1_71 = arith.constant 1 : index
    %c0_72 = arith.constant 0 : index
    %85 = vector.load %arg7[%c1_71, %c0_72] : memref<50x16xf32, #tpu.memory_space<vmem>>, vector<36x16xf32>
    %86 = arith.truncf %85 : vector<36x16xf32> to vector<36x16xbf16>
    %c10 = arith.constant 10 : index
    %c0_73 = arith.constant 0 : index
    %c0_74 = arith.constant 0 : index
    %87 = vector.load %arg2[%c10, %c0_73, %c0_74] : memref<72x16x16xbf16, #tpu.memory_space<vmem>>, vector<1x16x16xbf16>
    %88 = vector.shape_cast %87 : vector<1x16x16xbf16> to vector<16x16xbf16>
    %cst_75 = arith.constant dense<0.000000e+00> : vector<36x16xf32>
    %89 = tpu.matmul %86, %88, %cst_75 {dimension_numbers = #tpu.dot_dimension_numbers<[1], [0], [0], [1], [0, 0, 1, 1], [], []>} : vector<36x16xbf16>, vector<16x16xbf16>, vector<36x16xf32> -> vector<36x16xf32>
    %90 = arith.addf %84, %89 : vector<36x16xf32>
    %c2_76 = arith.constant 2 : index
    %c0_77 = arith.constant 0 : index
    %91 = vector.load %arg7[%c2_76, %c0_77] : memref<50x16xf32, #tpu.memory_space<vmem>>, vector<36x16xf32>
    %92 = arith.truncf %91 : vector<36x16xf32> to vector<36x16xbf16>
    %c11 = arith.constant 11 : index
    %c0_78 = arith.constant 0 : index
    %c0_79 = arith.constant 0 : index
    %93 = vector.load %arg2[%c11, %c0_78, %c0_79] : memref<72x16x16xbf16, #tpu.memory_space<vmem>>, vector<1x16x16xbf16>
    %94 = vector.shape_cast %93 : vector<1x16x16xbf16> to vector<16x16xbf16>
    %cst_80 = arith.constant dense<0.000000e+00> : vector<36x16xf32>
    %95 = tpu.matmul %92, %94, %cst_80 {dimension_numbers = #tpu.dot_dimension_numbers<[1], [0], [0], [1], [0, 0, 1, 1], [], []>} : vector<36x16xbf16>, vector<16x16xbf16>, vector<36x16xf32> -> vector<36x16xf32>
    %96 = arith.addf %90, %95 : vector<36x16xf32>
    %c6_81 = arith.constant 6 : index
    %c0_82 = arith.constant 0 : index
    %97 = vector.load %arg7[%c6_81, %c0_82] : memref<50x16xf32, #tpu.memory_space<vmem>>, vector<36x16xf32>
    %98 = arith.truncf %97 : vector<36x16xf32> to vector<36x16xbf16>
    %c12_83 = arith.constant 12 : index
    %c0_84 = arith.constant 0 : index
    %c0_85 = arith.constant 0 : index
    %99 = vector.load %arg2[%c12_83, %c0_84, %c0_85] : memref<72x16x16xbf16, #tpu.memory_space<vmem>>, vector<1x16x16xbf16>
    %100 = vector.shape_cast %99 : vector<1x16x16xbf16> to vector<16x16xbf16>
    %cst_86 = arith.constant dense<0.000000e+00> : vector<36x16xf32>
    %101 = tpu.matmul %98, %100, %cst_86 {dimension_numbers = #tpu.dot_dimension_numbers<[1], [0], [0], [1], [0, 0, 1, 1], [], []>} : vector<36x16xbf16>, vector<16x16xbf16>, vector<36x16xf32> -> vector<36x16xf32>
    %102 = arith.addf %96, %101 : vector<36x16xf32>
    %c7_87 = arith.constant 7 : index
    %c0_88 = arith.constant 0 : index
    %103 = vector.load %arg7[%c7_87, %c0_88] : memref<50x16xf32, #tpu.memory_space<vmem>>, vector<36x16xf32>
    %104 = arith.truncf %103 : vector<36x16xf32> to vector<36x16xbf16>
    %c13_89 = arith.constant 13 : index
    %c0_90 = arith.constant 0 : index
    %c0_91 = arith.constant 0 : index
    %105 = vector.load %arg2[%c13_89, %c0_90, %c0_91] : memref<72x16x16xbf16, #tpu.memory_space<vmem>>, vector<1x16x16xbf16>
    %106 = vector.shape_cast %105 : vector<1x16x16xbf16> to vector<16x16xbf16>
    %cst_92 = arith.constant dense<0.000000e+00> : vector<36x16xf32>
    %107 = tpu.matmul %104, %106, %cst_92 {dimension_numbers = #tpu.dot_dimension_numbers<[1], [0], [0], [1], [0, 0, 1, 1], [], []>} : vector<36x16xbf16>, vector<16x16xbf16>, vector<36x16xf32> -> vector<36x16xf32>
    %108 = arith.addf %102, %107 : vector<36x16xf32>
    %c8_93 = arith.constant 8 : index
    %c0_94 = arith.constant 0 : index
    %109 = vector.load %arg7[%c8_93, %c0_94] : memref<50x16xf32, #tpu.memory_space<vmem>>, vector<36x16xf32>
    %110 = arith.truncf %109 : vector<36x16xf32> to vector<36x16xbf16>
    %c14_95 = arith.constant 14 : index
    %c0_96 = arith.constant 0 : index
    %c0_97 = arith.constant 0 : index
    %111 = vector.load %arg2[%c14_95, %c0_96, %c0_97] : memref<72x16x16xbf16, #tpu.memory_space<vmem>>, vector<1x16x16xbf16>
    %112 = vector.shape_cast %111 : vector<1x16x16xbf16> to vector<16x16xbf16>
    %cst_98 = arith.constant dense<0.000000e+00> : vector<36x16xf32>
    %113 = tpu.matmul %110, %112, %cst_98 {dimension_numbers = #tpu.dot_dimension_numbers<[1], [0], [0], [1], [0, 0, 1, 1], [], []>} : vector<36x16xbf16>, vector<16x16xbf16>, vector<36x16xf32> -> vector<36x16xf32>
    %114 = arith.addf %108, %113 : vector<36x16xf32>
    %c12_99 = arith.constant 12 : index
    %c0_100 = arith.constant 0 : index
    %115 = vector.load %arg7[%c12_99, %c0_100] : memref<50x16xf32, #tpu.memory_space<vmem>>, vector<36x16xf32>
    %116 = arith.truncf %115 : vector<36x16xf32> to vector<36x16xbf16>
    %c15 = arith.constant 15 : index
    %c0_101 = arith.constant 0 : index
    %c0_102 = arith.constant 0 : index
    %117 = vector.load %arg2[%c15, %c0_101, %c0_102] : memref<72x16x16xbf16, #tpu.memory_space<vmem>>, vector<1x16x16xbf16>
    %118 = vector.shape_cast %117 : vector<1x16x16xbf16> to vector<16x16xbf16>
    %cst_103 = arith.constant dense<0.000000e+00> : vector<36x16xf32>
    %119 = tpu.matmul %116, %118, %cst_103 {dimension_numbers = #tpu.dot_dimension_numbers<[1], [0], [0], [1], [0, 0, 1, 1], [], []>} : vector<36x16xbf16>, vector<16x16xbf16>, vector<36x16xf32> -> vector<36x16xf32>
    %120 = arith.addf %114, %119 : vector<36x16xf32>
    %c13_104 = arith.constant 13 : index
    %c0_105 = arith.constant 0 : index
    %121 = vector.load %arg7[%c13_104, %c0_105] : memref<50x16xf32, #tpu.memory_space<vmem>>, vector<36x16xf32>
    %122 = arith.truncf %121 : vector<36x16xf32> to vector<36x16xbf16>
    %c16 = arith.constant 16 : index
    %c0_106 = arith.constant 0 : index
    %c0_107 = arith.constant 0 : index
    %123 = vector.load %arg2[%c16, %c0_106, %c0_107] : memref<72x16x16xbf16, #tpu.memory_space<vmem>>, vector<1x16x16xbf16>
    %124 = vector.shape_cast %123 : vector<1x16x16xbf16> to vector<16x16xbf16>
    %cst_108 = arith.constant dense<0.000000e+00> : vector<36x16xf32>
    %125 = tpu.matmul %122, %124, %cst_108 {dimension_numbers = #tpu.dot_dimension_numbers<[1], [0], [0], [1], [0, 0, 1, 1], [], []>} : vector<36x16xbf16>, vector<16x16xbf16>, vector<36x16xf32> -> vector<36x16xf32>
    %126 = arith.addf %120, %125 : vector<36x16xf32>
    %c14_109 = arith.constant 14 : index
    %c0_110 = arith.constant 0 : index
    %127 = vector.load %arg7[%c14_109, %c0_110] : memref<50x16xf32, #tpu.memory_space<vmem>>, vector<36x16xf32>
    %128 = arith.truncf %127 : vector<36x16xf32> to vector<36x16xbf16>
    %c17 = arith.constant 17 : index
    %c0_111 = arith.constant 0 : index
    %c0_112 = arith.constant 0 : index
    %129 = vector.load %arg2[%c17, %c0_111, %c0_112] : memref<72x16x16xbf16, #tpu.memory_space<vmem>>, vector<1x16x16xbf16>
    %130 = vector.shape_cast %129 : vector<1x16x16xbf16> to vector<16x16xbf16>
    %cst_113 = arith.constant dense<0.000000e+00> : vector<36x16xf32>
    %131 = tpu.matmul %128, %130, %cst_113 {dimension_numbers = #tpu.dot_dimension_numbers<[1], [0], [0], [1], [0, 0, 1, 1], [], []>} : vector<36x16xbf16>, vector<16x16xbf16>, vector<36x16xf32> -> vector<36x16xf32>
    %132 = arith.addf %126, %131 : vector<36x16xf32>
    %c1_114 = arith.constant 1 : index
    %c0_115 = arith.constant 0 : index
    %c0_116 = arith.constant 0 : index
    %133 = vector.load %arg3[%c1_114, %c0_115, %c0_116] : memref<8x1x16xf32, #tpu.memory_space<vmem>>, vector<1x1x16xf32>
    %134 = vector.shape_cast %133 : vector<1x1x16xf32> to vector<1x16xf32>
    %135 = vector.broadcast %134 : vector<1x16xf32> to vector<36x16xf32>
    %136 = arith.addf %132, %135 : vector<36x16xf32>
    %cst_117 = arith.constant 0.000000e+00 : f32
    %137 = vector.broadcast %cst_117 : f32 to vector<36x16xf32>
    %138 = arith.cmpf oge, %136, %137 : vector<36x16xf32>
    %c1_118 = arith.constant 1 : index
    %c0_119 = arith.constant 0 : index
    %c0_120 = arith.constant 0 : index
    %139 = vector.load %arg4[%c1_118, %c0_119, %c0_120] : memref<8x1x16xf32, #tpu.memory_space<vmem>>, vector<1x1x16xf32>
    %140 = vector.shape_cast %139 : vector<1x1x16xf32> to vector<1x16xf32>
    %141 = vector.broadcast %140 : vector<1x16xf32> to vector<36x16xf32>
    %142 = arith.mulf %141, %136 : vector<36x16xf32>
    %143 = arith.select %138, %136, %142 : vector<36x16xi1>, vector<36x16xf32>
    %144 = vector.broadcast %3 : vector<36x1xf32> to vector<36x16xf32>
    %145 = arith.mulf %143, %144 : vector<36x16xf32>
    %c7_121 = arith.constant 7 : index
    %c0_122 = arith.constant 0 : index
    %146 = vector.load %arg8[%c7_121, %c0_122] : memref<50x16xf32, #tpu.memory_space<vmem>>, vector<36x16xf32>
    tpu.vector_store %arg8[%c7_121, %c0_122], %145 {strides = array<i32>} : memref<50x16xf32, #tpu.memory_space<vmem>>, vector<36x16xf32>,
    %c0_123 = arith.constant 0 : index
    %c0_124 = arith.constant 0 : index
    %147 = vector.load %arg8[%c0_123, %c0_124] : memref<50x16xf32, #tpu.memory_space<vmem>>, vector<36x16xf32>
    %148 = arith.truncf %147 : vector<36x16xf32> to vector<36x16xbf16>
    %c18 = arith.constant 18 : index
    %c0_125 = arith.constant 0 : index
    %c0_126 = arith.constant 0 : index
    %149 = vector.load %arg2[%c18, %c0_125, %c0_126] : memref<72x16x16xbf16, #tpu.memory_space<vmem>>, vector<1x16x16xbf16>
    %150 = vector.shape_cast %149 : vector<1x16x16xbf16> to vector<16x16xbf16>
    %cst_127 = arith.constant dense<0.000000e+00> : vector<36x16xf32>
    %151 = tpu.matmul %148, %150, %cst_127 {dimension_numbers = #tpu.dot_dimension_numbers<[1], [0], [0], [1], [0, 0, 1, 1], [], []>} : vector<36x16xbf16>, vector<16x16xbf16>, vector<36x16xf32> -> vector<36x16xf32>
    %c1_128 = arith.constant 1 : index
    %c0_129 = arith.constant 0 : index
    %152 = vector.load %arg8[%c1_128, %c0_129] : memref<50x16xf32, #tpu.memory_space<vmem>>, vector<36x16xf32>
    %153 = arith.truncf %152 : vector<36x16xf32> to vector<36x16xbf16>
    %c19 = arith.constant 19 : index
    %c0_130 = arith.constant 0 : index
    %c0_131 = arith.constant 0 : index
    %154 = vector.load %arg2[%c19, %c0_130, %c0_131] : memref<72x16x16xbf16, #tpu.memory_space<vmem>>, vector<1x16x16xbf16>
    %155 = vector.shape_cast %154 : vector<1x16x16xbf16> to vector<16x16xbf16>
    %cst_132 = arith.constant dense<0.000000e+00> : vector<36x16xf32>
    %156 = tpu.matmul %153, %155, %cst_132 {dimension_numbers = #tpu.dot_dimension_numbers<[1], [0], [0], [1], [0, 0, 1, 1], [], []>} : vector<36x16xbf16>, vector<16x16xbf16>, vector<36x16xf32> -> vector<36x16xf32>
    %157 = arith.addf %151, %156 : vector<36x16xf32>
    %c2_133 = arith.constant 2 : index
    %c0_134 = arith.constant 0 : index
    %158 = vector.load %arg8[%c2_133, %c0_134] : memref<50x16xf32, #tpu.memory_space<vmem>>, vector<36x16xf32>
    %159 = arith.truncf %158 : vector<36x16xf32> to vector<36x16xbf16>
    %c20 = arith.constant 20 : index
    %c0_135 = arith.constant 0 : index
    %c0_136 = arith.constant 0 : index
    %160 = vector.load %arg2[%c20, %c0_135, %c0_136] : memref<72x16x16xbf16, #tpu.memory_space<vmem>>, vector<1x16x16xbf16>
    %161 = vector.shape_cast %160 : vector<1x16x16xbf16> to vector<16x16xbf16>
    %cst_137 = arith.constant dense<0.000000e+00> : vector<36x16xf32>
    %162 = tpu.matmul %159, %161, %cst_137 {dimension_numbers = #tpu.dot_dimension_numbers<[1], [0], [0], [1], [0, 0, 1, 1], [], []>} : vector<36x16xbf16>, vector<16x16xbf16>, vector<36x16xf32> -> vector<36x16xf32>
    %163 = arith.addf %157, %162 : vector<36x16xf32>
    %c6_138 = arith.constant 6 : index
    %c0_139 = arith.constant 0 : index
    %164 = vector.load %arg8[%c6_138, %c0_139] : memref<50x16xf32, #tpu.memory_space<vmem>>, vector<36x16xf32>
    %165 = arith.truncf %164 : vector<36x16xf32> to vector<36x16xbf16>
    %c21 = arith.constant 21 : index
    %c0_140 = arith.constant 0 : index
    %c0_141 = arith.constant 0 : index
    %166 = vector.load %arg2[%c21, %c0_140, %c0_141] : memref<72x16x16xbf16, #tpu.memory_space<vmem>>, vector<1x16x16xbf16>
    %167 = vector.shape_cast %166 : vector<1x16x16xbf16> to vector<16x16xbf16>
    %cst_142 = arith.constant dense<0.000000e+00> : vector<36x16xf32>
    %168 = tpu.matmul %165, %167, %cst_142 {dimension_numbers = #tpu.dot_dimension_numbers<[1], [0], [0], [1], [0, 0, 1, 1], [], []>} : vector<36x16xbf16>, vector<16x16xbf16>, vector<36x16xf32> -> vector<36x16xf32>
    %169 = arith.addf %163, %168 : vector<36x16xf32>
    %c7_143 = arith.constant 7 : index
    %c0_144 = arith.constant 0 : index
    %170 = vector.load %arg8[%c7_143, %c0_144] : memref<50x16xf32, #tpu.memory_space<vmem>>, vector<36x16xf32>
    %171 = arith.truncf %170 : vector<36x16xf32> to vector<36x16xbf16>
    %c22 = arith.constant 22 : index
    %c0_145 = arith.constant 0 : index
    %c0_146 = arith.constant 0 : index
    %172 = vector.load %arg2[%c22, %c0_145, %c0_146] : memref<72x16x16xbf16, #tpu.memory_space<vmem>>, vector<1x16x16xbf16>
    %173 = vector.shape_cast %172 : vector<1x16x16xbf16> to vector<16x16xbf16>
    %cst_147 = arith.constant dense<0.000000e+00> : vector<36x16xf32>
    %174 = tpu.matmul %171, %173, %cst_147 {dimension_numbers = #tpu.dot_dimension_numbers<[1], [0], [0], [1], [0, 0, 1, 1], [], []>} : vector<36x16xbf16>, vector<16x16xbf16>, vector<36x16xf32> -> vector<36x16xf32>
    %175 = arith.addf %169, %174 : vector<36x16xf32>
    %c8_148 = arith.constant 8 : index
    %c0_149 = arith.constant 0 : index
    %176 = vector.load %arg8[%c8_148, %c0_149] : memref<50x16xf32, #tpu.memory_space<vmem>>, vector<36x16xf32>
    %177 = arith.truncf %176 : vector<36x16xf32> to vector<36x16xbf16>
    %c23 = arith.constant 23 : index
    %c0_150 = arith.constant 0 : index
    %c0_151 = arith.constant 0 : index
    %178 = vector.load %arg2[%c23, %c0_150, %c0_151] : memref<72x16x16xbf16, #tpu.memory_space<vmem>>, vector<1x16x16xbf16>
    %179 = vector.shape_cast %178 : vector<1x16x16xbf16> to vector<16x16xbf16>
    %cst_152 = arith.constant dense<0.000000e+00> : vector<36x16xf32>
    %180 = tpu.matmul %177, %179, %cst_152 {dimension_numbers = #tpu.dot_dimension_numbers<[1], [0], [0], [1], [0, 0, 1, 1], [], []>} : vector<36x16xbf16>, vector<16x16xbf16>, vector<36x16xf32> -> vector<36x16xf32>
    %181 = arith.addf %175, %180 : vector<36x16xf32>
    %c12_153 = arith.constant 12 : index
    %c0_154 = arith.constant 0 : index
    %182 = vector.load %arg8[%c12_153, %c0_154] : memref<50x16xf32, #tpu.memory_space<vmem>>, vector<36x16xf32>
    %183 = arith.truncf %182 : vector<36x16xf32> to vector<36x16xbf16>
    %c24 = arith.constant 24 : index
    %c0_155 = arith.constant 0 : index
    %c0_156 = arith.constant 0 : index
    %184 = vector.load %arg2[%c24, %c0_155, %c0_156] : memref<72x16x16xbf16, #tpu.memory_space<vmem>>, vector<1x16x16xbf16>
    %185 = vector.shape_cast %184 : vector<1x16x16xbf16> to vector<16x16xbf16>
    %cst_157 = arith.constant dense<0.000000e+00> : vector<36x16xf32>
    %186 = tpu.matmul %183, %185, %cst_157 {dimension_numbers = #tpu.dot_dimension_numbers<[1], [0], [0], [1], [0, 0, 1, 1], [], []>} : vector<36x16xbf16>, vector<16x16xbf16>, vector<36x16xf32> -> vector<36x16xf32>
    %187 = arith.addf %181, %186 : vector<36x16xf32>
    %c13_158 = arith.constant 13 : index
    %c0_159 = arith.constant 0 : index
    %188 = vector.load %arg8[%c13_158, %c0_159] : memref<50x16xf32, #tpu.memory_space<vmem>>, vector<36x16xf32>
    %189 = arith.truncf %188 : vector<36x16xf32> to vector<36x16xbf16>
    %c25 = arith.constant 25 : index
    %c0_160 = arith.constant 0 : index
    %c0_161 = arith.constant 0 : index
    %190 = vector.load %arg2[%c25, %c0_160, %c0_161] : memref<72x16x16xbf16, #tpu.memory_space<vmem>>, vector<1x16x16xbf16>
    %191 = vector.shape_cast %190 : vector<1x16x16xbf16> to vector<16x16xbf16>
    %cst_162 = arith.constant dense<0.000000e+00> : vector<36x16xf32>
    %192 = tpu.matmul %189, %191, %cst_162 {dimension_numbers = #tpu.dot_dimension_numbers<[1], [0], [0], [1], [0, 0, 1, 1], [], []>} : vector<36x16xbf16>, vector<16x16xbf16>, vector<36x16xf32> -> vector<36x16xf32>
    %193 = arith.addf %187, %192 : vector<36x16xf32>
    %c14_163 = arith.constant 14 : index
    %c0_164 = arith.constant 0 : index
    %194 = vector.load %arg8[%c14_163, %c0_164] : memref<50x16xf32, #tpu.memory_space<vmem>>, vector<36x16xf32>
    %195 = arith.truncf %194 : vector<36x16xf32> to vector<36x16xbf16>
    %c26 = arith.constant 26 : index
    %c0_165 = arith.constant 0 : index
    %c0_166 = arith.constant 0 : index
    %196 = vector.load %arg2[%c26, %c0_165, %c0_166] : memref<72x16x16xbf16, #tpu.memory_space<vmem>>, vector<1x16x16xbf16>
    %197 = vector.shape_cast %196 : vector<1x16x16xbf16> to vector<16x16xbf16>
    %cst_167 = arith.constant dense<0.000000e+00> : vector<36x16xf32>
    %198 = tpu.matmul %195, %197, %cst_167 {dimension_numbers = #tpu.dot_dimension_numbers<[1], [0], [0], [1], [0, 0, 1, 1], [], []>} : vector<36x16xbf16>, vector<16x16xbf16>, vector<36x16xf32> -> vector<36x16xf32>
    %199 = arith.addf %193, %198 : vector<36x16xf32>
    %c2_168 = arith.constant 2 : index
    %c0_169 = arith.constant 0 : index
    %c0_170 = arith.constant 0 : index
    %200 = vector.load %arg3[%c2_168, %c0_169, %c0_170] : memref<8x1x16xf32, #tpu.memory_space<vmem>>, vector<1x1x16xf32>
    %201 = vector.shape_cast %200 : vector<1x1x16xf32> to vector<1x16xf32>
    %202 = vector.broadcast %201 : vector<1x16xf32> to vector<36x16xf32>
    %203 = arith.addf %199, %202 : vector<36x16xf32>
    %cst_171 = arith.constant 0.000000e+00 : f32
    %204 = vector.broadcast %cst_171 : f32 to vector<36x16xf32>
    %205 = arith.cmpf oge, %203, %204 : vector<36x16xf32>
    %c2_172 = arith.constant 2 : index
    %c0_173 = arith.constant 0 : index
    %c0_174 = arith.constant 0 : index
    %206 = vector.load %arg4[%c2_172, %c0_173, %c0_174] : memref<8x1x16xf32, #tpu.memory_space<vmem>>, vector<1x1x16xf32>
    %207 = vector.shape_cast %206 : vector<1x1x16xf32> to vector<1x16xf32>
    %208 = vector.broadcast %207 : vector<1x16xf32> to vector<36x16xf32>
    %209 = arith.mulf %208, %203 : vector<36x16xf32>
    %210 = arith.select %205, %203, %209 : vector<36x16xi1>, vector<36x16xf32>
    %211 = vector.broadcast %3 : vector<36x1xf32> to vector<36x16xf32>
    %212 = arith.mulf %210, %211 : vector<36x16xf32>
    %c7_175 = arith.constant 7 : index
    %c0_176 = arith.constant 0 : index
    %213 = vector.load %arg7[%c7_175, %c0_176] : memref<50x16xf32, #tpu.memory_space<vmem>>, vector<36x16xf32>
    tpu.vector_store %arg7[%c7_175, %c0_176], %212 {strides = array<i32>} : memref<50x16xf32, #tpu.memory_space<vmem>>, vector<36x16xf32>,
    %c0_177 = arith.constant 0 : index
    %c0_178 = arith.constant 0 : index
    %214 = vector.load %arg7[%c0_177, %c0_178] : memref<50x16xf32, #tpu.memory_space<vmem>>, vector<36x16xf32>
    %215 = arith.truncf %214 : vector<36x16xf32> to vector<36x16xbf16>
    %c27 = arith.constant 27 : index
    %c0_179 = arith.constant 0 : index
    %c0_180 = arith.constant 0 : index
    %216 = vector.load %arg2[%c27, %c0_179, %c0_180] : memref<72x16x16xbf16, #tpu.memory_space<vmem>>, vector<1x16x16xbf16>
    %217 = vector.shape_cast %216 : vector<1x16x16xbf16> to vector<16x16xbf16>
    %cst_181 = arith.constant dense<0.000000e+00> : vector<36x16xf32>
    %218 = tpu.matmul %215, %217, %cst_181 {dimension_numbers = #tpu.dot_dimension_numbers<[1], [0], [0], [1], [0, 0, 1, 1], [], []>} : vector<36x16xbf16>, vector<16x16xbf16>, vector<36x16xf32> -> vector<36x16xf32>
    %c1_182 = arith.constant 1 : index
    %c0_183 = arith.constant 0 : index
    %219 = vector.load %arg7[%c1_182, %c0_183] : memref<50x16xf32, #tpu.memory_space<vmem>>, vector<36x16xf32>
    %220 = arith.truncf %219 : vector<36x16xf32> to vector<36x16xbf16>
    %c28 = arith.constant 28 : index
    %c0_184 = arith.constant 0 : index
    %c0_185 = arith.constant 0 : index
    %221 = vector.load %arg2[%c28, %c0_184, %c0_185] : memref<72x16x16xbf16, #tpu.memory_space<vmem>>, vector<1x16x16xbf16>
    %222 = vector.shape_cast %221 : vector<1x16x16xbf16> to vector<16x16xbf16>
    %cst_186 = arith.constant dense<0.000000e+00> : vector<36x16xf32>
    %223 = tpu.matmul %220, %222, %cst_186 {dimension_numbers = #tpu.dot_dimension_numbers<[1], [0], [0], [1], [0, 0, 1, 1], [], []>} : vector<36x16xbf16>, vector<16x16xbf16>, vector<36x16xf32> -> vector<36x16xf32>
    %224 = arith.addf %218, %223 : vector<36x16xf32>
    %c2_187 = arith.constant 2 : index
    %c0_188 = arith.constant 0 : index
    %225 = vector.load %arg7[%c2_187, %c0_188] : memref<50x16xf32, #tpu.memory_space<vmem>>, vector<36x16xf32>
    %226 = arith.truncf %225 : vector<36x16xf32> to vector<36x16xbf16>
    %c29 = arith.constant 29 : index
    %c0_189 = arith.constant 0 : index
    %c0_190 = arith.constant 0 : index
    %227 = vector.load %arg2[%c29, %c0_189, %c0_190] : memref<72x16x16xbf16, #tpu.memory_space<vmem>>, vector<1x16x16xbf16>
    %228 = vector.shape_cast %227 : vector<1x16x16xbf16> to vector<16x16xbf16>
    %cst_191 = arith.constant dense<0.000000e+00> : vector<36x16xf32>
    %229 = tpu.matmul %226, %228, %cst_191 {dimension_numbers = #tpu.dot_dimension_numbers<[1], [0], [0], [1], [0, 0, 1, 1], [], []>} : vector<36x16xbf16>, vector<16x16xbf16>, vector<36x16xf32> -> vector<36x16xf32>
    %230 = arith.addf %224, %229 : vector<36x16xf32>
    %c6_192 = arith.constant 6 : index
    %c0_193 = arith.constant 0 : index
    %231 = vector.load %arg7[%c6_192, %c0_193] : memref<50x16xf32, #tpu.memory_space<vmem>>, vector<36x16xf32>
    %232 = arith.truncf %231 : vector<36x16xf32> to vector<36x16xbf16>
    %c30 = arith.constant 30 : index
    %c0_194 = arith.constant 0 : index
    %c0_195 = arith.constant 0 : index
    %233 = vector.load %arg2[%c30, %c0_194, %c0_195] : memref<72x16x16xbf16, #tpu.memory_space<vmem>>, vector<1x16x16xbf16>
    %234 = vector.shape_cast %233 : vector<1x16x16xbf16> to vector<16x16xbf16>
    %cst_196 = arith.constant dense<0.000000e+00> : vector<36x16xf32>
    %235 = tpu.matmul %232, %234, %cst_196 {dimension_numbers = #tpu.dot_dimension_numbers<[1], [0], [0], [1], [0, 0, 1, 1], [], []>} : vector<36x16xbf16>, vector<16x16xbf16>, vector<36x16xf32> -> vector<36x16xf32>
    %236 = arith.addf %230, %235 : vector<36x16xf32>
    %c7_197 = arith.constant 7 : index
    %c0_198 = arith.constant 0 : index
    %237 = vector.load %arg7[%c7_197, %c0_198] : memref<50x16xf32, #tpu.memory_space<vmem>>, vector<36x16xf32>
    %238 = arith.truncf %237 : vector<36x16xf32> to vector<36x16xbf16>
    %c31 = arith.constant 31 : index
    %c0_199 = arith.constant 0 : index
    %c0_200 = arith.constant 0 : index
    %239 = vector.load %arg2[%c31, %c0_199, %c0_200] : memref<72x16x16xbf16, #tpu.memory_space<vmem>>, vector<1x16x16xbf16>
    %240 = vector.shape_cast %239 : vector<1x16x16xbf16> to vector<16x16xbf16>
    %cst_201 = arith.constant dense<0.000000e+00> : vector<36x16xf32>
    %241 = tpu.matmul %238, %240, %cst_201 {dimension_numbers = #tpu.dot_dimension_numbers<[1], [0], [0], [1], [0, 0, 1, 1], [], []>} : vector<36x16xbf16>, vector<16x16xbf16>, vector<36x16xf32> -> vector<36x16xf32>
    %242 = arith.addf %236, %241 : vector<36x16xf32>
    %c8_202 = arith.constant 8 : index
    %c0_203 = arith.constant 0 : index
    %243 = vector.load %arg7[%c8_202, %c0_203] : memref<50x16xf32, #tpu.memory_space<vmem>>, vector<36x16xf32>
    %244 = arith.truncf %243 : vector<36x16xf32> to vector<36x16xbf16>
    %c32 = arith.constant 32 : index
    %c0_204 = arith.constant 0 : index
    %c0_205 = arith.constant 0 : index
    %245 = vector.load %arg2[%c32, %c0_204, %c0_205] : memref<72x16x16xbf16, #tpu.memory_space<vmem>>, vector<1x16x16xbf16>
    %246 = vector.shape_cast %245 : vector<1x16x16xbf16> to vector<16x16xbf16>
    %cst_206 = arith.constant dense<0.000000e+00> : vector<36x16xf32>
    %247 = tpu.matmul %244, %246, %cst_206 {dimension_numbers = #tpu.dot_dimension_numbers<[1], [0], [0], [1], [0, 0, 1, 1], [], []>} : vector<36x16xbf16>, vector<16x16xbf16>, vector<36x16xf32> -> vector<36x16xf32>
    %248 = arith.addf %242, %247 : vector<36x16xf32>
    %c12_207 = arith.constant 12 : index
    %c0_208 = arith.constant 0 : index
    %249 = vector.load %arg7[%c12_207, %c0_208] : memref<50x16xf32, #tpu.memory_space<vmem>>, vector<36x16xf32>
    %250 = arith.truncf %249 : vector<36x16xf32> to vector<36x16xbf16>
    %c33 = arith.constant 33 : index
    %c0_209 = arith.constant 0 : index
    %c0_210 = arith.constant 0 : index
    %251 = vector.load %arg2[%c33, %c0_209, %c0_210] : memref<72x16x16xbf16, #tpu.memory_space<vmem>>, vector<1x16x16xbf16>
    %252 = vector.shape_cast %251 : vector<1x16x16xbf16> to vector<16x16xbf16>
    %cst_211 = arith.constant dense<0.000000e+00> : vector<36x16xf32>
    %253 = tpu.matmul %250, %252, %cst_211 {dimension_numbers = #tpu.dot_dimension_numbers<[1], [0], [0], [1], [0, 0, 1, 1], [], []>} : vector<36x16xbf16>, vector<16x16xbf16>, vector<36x16xf32> -> vector<36x16xf32>
    %254 = arith.addf %248, %253 : vector<36x16xf32>
    %c13_212 = arith.constant 13 : index
    %c0_213 = arith.constant 0 : index
    %255 = vector.load %arg7[%c13_212, %c0_213] : memref<50x16xf32, #tpu.memory_space<vmem>>, vector<36x16xf32>
    %256 = arith.truncf %255 : vector<36x16xf32> to vector<36x16xbf16>
    %c34 = arith.constant 34 : index
    %c0_214 = arith.constant 0 : index
    %c0_215 = arith.constant 0 : index
    %257 = vector.load %arg2[%c34, %c0_214, %c0_215] : memref<72x16x16xbf16, #tpu.memory_space<vmem>>, vector<1x16x16xbf16>
    %258 = vector.shape_cast %257 : vector<1x16x16xbf16> to vector<16x16xbf16>
    %cst_216 = arith.constant dense<0.000000e+00> : vector<36x16xf32>
    %259 = tpu.matmul %256, %258, %cst_216 {dimension_numbers = #tpu.dot_dimension_numbers<[1], [0], [0], [1], [0, 0, 1, 1], [], []>} : vector<36x16xbf16>, vector<16x16xbf16>, vector<36x16xf32> -> vector<36x16xf32>
    %260 = arith.addf %254, %259 : vector<36x16xf32>
    %c14_217 = arith.constant 14 : index
    %c0_218 = arith.constant 0 : index
    %261 = vector.load %arg7[%c14_217, %c0_218] : memref<50x16xf32, #tpu.memory_space<vmem>>, vector<36x16xf32>
    %262 = arith.truncf %261 : vector<36x16xf32> to vector<36x16xbf16>
    %c35 = arith.constant 35 : index
    %c0_219 = arith.constant 0 : index
    %c0_220 = arith.constant 0 : index
    %263 = vector.load %arg2[%c35, %c0_219, %c0_220] : memref<72x16x16xbf16, #tpu.memory_space<vmem>>, vector<1x16x16xbf16>
    %264 = vector.shape_cast %263 : vector<1x16x16xbf16> to vector<16x16xbf16>
    %cst_221 = arith.constant dense<0.000000e+00> : vector<36x16xf32>
    %265 = tpu.matmul %262, %264, %cst_221 {dimension_numbers = #tpu.dot_dimension_numbers<[1], [0], [0], [1], [0, 0, 1, 1], [], []>} : vector<36x16xbf16>, vector<16x16xbf16>, vector<36x16xf32> -> vector<36x16xf32>
    %266 = arith.addf %260, %265 : vector<36x16xf32>
    %c3_222 = arith.constant 3 : index
    %c0_223 = arith.constant 0 : index
    %c0_224 = arith.constant 0 : index
    %267 = vector.load %arg3[%c3_222, %c0_223, %c0_224] : memref<8x1x16xf32, #tpu.memory_space<vmem>>, vector<1x1x16xf32>
    %268 = vector.shape_cast %267 : vector<1x1x16xf32> to vector<1x16xf32>
    %269 = vector.broadcast %268 : vector<1x16xf32> to vector<36x16xf32>
    %270 = arith.addf %266, %269 : vector<36x16xf32>
    %cst_225 = arith.constant 0.000000e+00 : f32
    %271 = vector.broadcast %cst_225 : f32 to vector<36x16xf32>
    %272 = arith.cmpf oge, %270, %271 : vector<36x16xf32>
    %c3_226 = arith.constant 3 : index
    %c0_227 = arith.constant 0 : index
    %c0_228 = arith.constant 0 : index
    %273 = vector.load %arg4[%c3_226, %c0_227, %c0_228] : memref<8x1x16xf32, #tpu.memory_space<vmem>>, vector<1x1x16xf32>
    %274 = vector.shape_cast %273 : vector<1x1x16xf32> to vector<1x16xf32>
    %275 = vector.broadcast %274 : vector<1x16xf32> to vector<36x16xf32>
    %276 = arith.mulf %275, %270 : vector<36x16xf32>
    %277 = arith.select %272, %270, %276 : vector<36x16xi1>, vector<36x16xf32>
    %278 = vector.broadcast %3 : vector<36x1xf32> to vector<36x16xf32>
    %279 = arith.mulf %277, %278 : vector<36x16xf32>
    %c7_229 = arith.constant 7 : index
    %c0_230 = arith.constant 0 : index
    %280 = vector.load %arg8[%c7_229, %c0_230] : memref<50x16xf32, #tpu.memory_space<vmem>>, vector<36x16xf32>
    tpu.vector_store %arg8[%c7_229, %c0_230], %279 {strides = array<i32>} : memref<50x16xf32, #tpu.memory_space<vmem>>, vector<36x16xf32>,
    %c0_231 = arith.constant 0 : index
    %c0_232 = arith.constant 0 : index
    %281 = vector.load %arg8[%c0_231, %c0_232] : memref<50x16xf32, #tpu.memory_space<vmem>>, vector<36x16xf32>
    %282 = arith.truncf %281 : vector<36x16xf32> to vector<36x16xbf16>
    %c36 = arith.constant 36 : index
    %c0_233 = arith.constant 0 : index
    %c0_234 = arith.constant 0 : index
    %283 = vector.load %arg2[%c36, %c0_233, %c0_234] : memref<72x16x16xbf16, #tpu.memory_space<vmem>>, vector<1x16x16xbf16>
    %284 = vector.shape_cast %283 : vector<1x16x16xbf16> to vector<16x16xbf16>
    %cst_235 = arith.constant dense<0.000000e+00> : vector<36x16xf32>
    %285 = tpu.matmul %282, %284, %cst_235 {dimension_numbers = #tpu.dot_dimension_numbers<[1], [0], [0], [1], [0, 0, 1, 1], [], []>} : vector<36x16xbf16>, vector<16x16xbf16>, vector<36x16xf32> -> vector<36x16xf32>
    %c1_236 = arith.constant 1 : index
    %c0_237 = arith.constant 0 : index
    %286 = vector.load %arg8[%c1_236, %c0_237] : memref<50x16xf32, #tpu.memory_space<vmem>>, vector<36x16xf32>
    %287 = arith.truncf %286 : vector<36x16xf32> to vector<36x16xbf16>
    %c37 = arith.constant 37 : index
    %c0_238 = arith.constant 0 : index
    %c0_239 = arith.constant 0 : index
    %288 = vector.load %arg2[%c37, %c0_238, %c0_239] : memref<72x16x16xbf16, #tpu.memory_space<vmem>>, vector<1x16x16xbf16>
    %289 = vector.shape_cast %288 : vector<1x16x16xbf16> to vector<16x16xbf16>
    %cst_240 = arith.constant dense<0.000000e+00> : vector<36x16xf32>
    %290 = tpu.matmul %287, %289, %cst_240 {dimension_numbers = #tpu.dot_dimension_numbers<[1], [0], [0], [1], [0, 0, 1, 1], [], []>} : vector<36x16xbf16>, vector<16x16xbf16>, vector<36x16xf32> -> vector<36x16xf32>
    %291 = arith.addf %285, %290 : vector<36x16xf32>
    %c2_241 = arith.constant 2 : index
    %c0_242 = arith.constant 0 : index
    %292 = vector.load %arg8[%c2_241, %c0_242] : memref<50x16xf32, #tpu.memory_space<vmem>>, vector<36x16xf32>
    %293 = arith.truncf %292 : vector<36x16xf32> to vector<36x16xbf16>
    %c38 = arith.constant 38 : index
    %c0_243 = arith.constant 0 : index
    %c0_244 = arith.constant 0 : index
    %294 = vector.load %arg2[%c38, %c0_243, %c0_244] : memref<72x16x16xbf16, #tpu.memory_space<vmem>>, vector<1x16x16xbf16>
    %295 = vector.shape_cast %294 : vector<1x16x16xbf16> to vector<16x16xbf16>
    %cst_245 = arith.constant dense<0.000000e+00> : vector<36x16xf32>
    %296 = tpu.matmul %293, %295, %cst_245 {dimension_numbers = #tpu.dot_dimension_numbers<[1], [0], [0], [1], [0, 0, 1, 1], [], []>} : vector<36x16xbf16>, vector<16x16xbf16>, vector<36x16xf32> -> vector<36x16xf32>
    %297 = arith.addf %291, %296 : vector<36x16xf32>
    %c6_246 = arith.constant 6 : index
    %c0_247 = arith.constant 0 : index
    %298 = vector.load %arg8[%c6_246, %c0_247] : memref<50x16xf32, #tpu.memory_space<vmem>>, vector<36x16xf32>
    %299 = arith.truncf %298 : vector<36x16xf32> to vector<36x16xbf16>
    %c39 = arith.constant 39 : index
    %c0_248 = arith.constant 0 : index
    %c0_249 = arith.constant 0 : index
    %300 = vector.load %arg2[%c39, %c0_248, %c0_249] : memref<72x16x16xbf16, #tpu.memory_space<vmem>>, vector<1x16x16xbf16>
    %301 = vector.shape_cast %300 : vector<1x16x16xbf16> to vector<16x16xbf16>
    %cst_250 = arith.constant dense<0.000000e+00> : vector<36x16xf32>
    %302 = tpu.matmul %299, %301, %cst_250 {dimension_numbers = #tpu.dot_dimension_numbers<[1], [0], [0], [1], [0, 0, 1, 1], [], []>} : vector<36x16xbf16>, vector<16x16xbf16>, vector<36x16xf32> -> vector<36x16xf32>
    %303 = arith.addf %297, %302 : vector<36x16xf32>
    %c7_251 = arith.constant 7 : index
    %c0_252 = arith.constant 0 : index
    %304 = vector.load %arg8[%c7_251, %c0_252] : memref<50x16xf32, #tpu.memory_space<vmem>>, vector<36x16xf32>
    %305 = arith.truncf %304 : vector<36x16xf32> to vector<36x16xbf16>
    %c40 = arith.constant 40 : index
    %c0_253 = arith.constant 0 : index
    %c0_254 = arith.constant 0 : index
    %306 = vector.load %arg2[%c40, %c0_253, %c0_254] : memref<72x16x16xbf16, #tpu.memory_space<vmem>>, vector<1x16x16xbf16>
    %307 = vector.shape_cast %306 : vector<1x16x16xbf16> to vector<16x16xbf16>
    %cst_255 = arith.constant dense<0.000000e+00> : vector<36x16xf32>
    %308 = tpu.matmul %305, %307, %cst_255 {dimension_numbers = #tpu.dot_dimension_numbers<[1], [0], [0], [1], [0, 0, 1, 1], [], []>} : vector<36x16xbf16>, vector<16x16xbf16>, vector<36x16xf32> -> vector<36x16xf32>
    %309 = arith.addf %303, %308 : vector<36x16xf32>
    %c8_256 = arith.constant 8 : index
    %c0_257 = arith.constant 0 : index
    %310 = vector.load %arg8[%c8_256, %c0_257] : memref<50x16xf32, #tpu.memory_space<vmem>>, vector<36x16xf32>
    %311 = arith.truncf %310 : vector<36x16xf32> to vector<36x16xbf16>
    %c41 = arith.constant 41 : index
    %c0_258 = arith.constant 0 : index
    %c0_259 = arith.constant 0 : index
    %312 = vector.load %arg2[%c41, %c0_258, %c0_259] : memref<72x16x16xbf16, #tpu.memory_space<vmem>>, vector<1x16x16xbf16>
    %313 = vector.shape_cast %312 : vector<1x16x16xbf16> to vector<16x16xbf16>
    %cst_260 = arith.constant dense<0.000000e+00> : vector<36x16xf32>
    %314 = tpu.matmul %311, %313, %cst_260 {dimension_numbers = #tpu.dot_dimension_numbers<[1], [0], [0], [1], [0, 0, 1, 1], [], []>} : vector<36x16xbf16>, vector<16x16xbf16>, vector<36x16xf32> -> vector<36x16xf32>
    %315 = arith.addf %309, %314 : vector<36x16xf32>
    %c12_261 = arith.constant 12 : index
    %c0_262 = arith.constant 0 : index
    %316 = vector.load %arg8[%c12_261, %c0_262] : memref<50x16xf32, #tpu.memory_space<vmem>>, vector<36x16xf32>
    %317 = arith.truncf %316 : vector<36x16xf32> to vector<36x16xbf16>
    %c42 = arith.constant 42 : index
    %c0_263 = arith.constant 0 : index
    %c0_264 = arith.constant 0 : index
    %318 = vector.load %arg2[%c42, %c0_263, %c0_264] : memref<72x16x16xbf16, #tpu.memory_space<vmem>>, vector<1x16x16xbf16>
    %319 = vector.shape_cast %318 : vector<1x16x16xbf16> to vector<16x16xbf16>
    %cst_265 = arith.constant dense<0.000000e+00> : vector<36x16xf32>
    %320 = tpu.matmul %317, %319, %cst_265 {dimension_numbers = #tpu.dot_dimension_numbers<[1], [0], [0], [1], [0, 0, 1, 1], [], []>} : vector<36x16xbf16>, vector<16x16xbf16>, vector<36x16xf32> -> vector<36x16xf32>
    %321 = arith.addf %315, %320 : vector<36x16xf32>
    %c13_266 = arith.constant 13 : index
    %c0_267 = arith.constant 0 : index
    %322 = vector.load %arg8[%c13_266, %c0_267] : memref<50x16xf32, #tpu.memory_space<vmem>>, vector<36x16xf32>
    %323 = arith.truncf %322 : vector<36x16xf32> to vector<36x16xbf16>
    %c43 = arith.constant 43 : index
    %c0_268 = arith.constant 0 : index
    %c0_269 = arith.constant 0 : index
    %324 = vector.load %arg2[%c43, %c0_268, %c0_269] : memref<72x16x16xbf16, #tpu.memory_space<vmem>>, vector<1x16x16xbf16>
    %325 = vector.shape_cast %324 : vector<1x16x16xbf16> to vector<16x16xbf16>
    %cst_270 = arith.constant dense<0.000000e+00> : vector<36x16xf32>
    %326 = tpu.matmul %323, %325, %cst_270 {dimension_numbers = #tpu.dot_dimension_numbers<[1], [0], [0], [1], [0, 0, 1, 1], [], []>} : vector<36x16xbf16>, vector<16x16xbf16>, vector<36x16xf32> -> vector<36x16xf32>
    %327 = arith.addf %321, %326 : vector<36x16xf32>
    %c14_271 = arith.constant 14 : index
    %c0_272 = arith.constant 0 : index
    %328 = vector.load %arg8[%c14_271, %c0_272] : memref<50x16xf32, #tpu.memory_space<vmem>>, vector<36x16xf32>
    %329 = arith.truncf %328 : vector<36x16xf32> to vector<36x16xbf16>
    %c44 = arith.constant 44 : index
    %c0_273 = arith.constant 0 : index
    %c0_274 = arith.constant 0 : index
    %330 = vector.load %arg2[%c44, %c0_273, %c0_274] : memref<72x16x16xbf16, #tpu.memory_space<vmem>>, vector<1x16x16xbf16>
    %331 = vector.shape_cast %330 : vector<1x16x16xbf16> to vector<16x16xbf16>
    %cst_275 = arith.constant dense<0.000000e+00> : vector<36x16xf32>
    %332 = tpu.matmul %329, %331, %cst_275 {dimension_numbers = #tpu.dot_dimension_numbers<[1], [0], [0], [1], [0, 0, 1, 1], [], []>} : vector<36x16xbf16>, vector<16x16xbf16>, vector<36x16xf32> -> vector<36x16xf32>
    %333 = arith.addf %327, %332 : vector<36x16xf32>
    %c4_276 = arith.constant 4 : index
    %c0_277 = arith.constant 0 : index
    %c0_278 = arith.constant 0 : index
    %334 = vector.load %arg3[%c4_276, %c0_277, %c0_278] : memref<8x1x16xf32, #tpu.memory_space<vmem>>, vector<1x1x16xf32>
    %335 = vector.shape_cast %334 : vector<1x1x16xf32> to vector<1x16xf32>
    %336 = vector.broadcast %335 : vector<1x16xf32> to vector<36x16xf32>
    %337 = arith.addf %333, %336 : vector<36x16xf32>
    %cst_279 = arith.constant 0.000000e+00 : f32
    %338 = vector.broadcast %cst_279 : f32 to vector<36x16xf32>
    %339 = arith.cmpf oge, %337, %338 : vector<36x16xf32>
    %c4_280 = arith.constant 4 : index
    %c0_281 = arith.constant 0 : index
    %c0_282 = arith.constant 0 : index
    %340 = vector.load %arg4[%c4_280, %c0_281, %c0_282] : memref<8x1x16xf32, #tpu.memory_space<vmem>>, vector<1x1x16xf32>
    %341 = vector.shape_cast %340 : vector<1x1x16xf32> to vector<1x16xf32>
    %342 = vector.broadcast %341 : vector<1x16xf32> to vector<36x16xf32>
    %343 = arith.mulf %342, %337 : vector<36x16xf32>
    %344 = arith.select %339, %337, %343 : vector<36x16xi1>, vector<36x16xf32>
    %345 = vector.broadcast %3 : vector<36x1xf32> to vector<36x16xf32>
    %346 = arith.mulf %344, %345 : vector<36x16xf32>
    %c7_283 = arith.constant 7 : index
    %c0_284 = arith.constant 0 : index
    %347 = vector.load %arg7[%c7_283, %c0_284] : memref<50x16xf32, #tpu.memory_space<vmem>>, vector<36x16xf32>
    tpu.vector_store %arg7[%c7_283, %c0_284], %346 {strides = array<i32>} : memref<50x16xf32, #tpu.memory_space<vmem>>, vector<36x16xf32>,
    %c0_285 = arith.constant 0 : index
    %c0_286 = arith.constant 0 : index
    %348 = vector.load %arg7[%c0_285, %c0_286] : memref<50x16xf32, #tpu.memory_space<vmem>>, vector<36x16xf32>
    %349 = arith.truncf %348 : vector<36x16xf32> to vector<36x16xbf16>
    %c45 = arith.constant 45 : index
    %c0_287 = arith.constant 0 : index
    %c0_288 = arith.constant 0 : index
    %350 = vector.load %arg2[%c45, %c0_287, %c0_288] : memref<72x16x16xbf16, #tpu.memory_space<vmem>>, vector<1x16x16xbf16>
    %351 = vector.shape_cast %350 : vector<1x16x16xbf16> to vector<16x16xbf16>
    %cst_289 = arith.constant dense<0.000000e+00> : vector<36x16xf32>
    %352 = tpu.matmul %349, %351, %cst_289 {dimension_numbers = #tpu.dot_dimension_numbers<[1], [0], [0], [1], [0, 0, 1, 1], [], []>} : vector<36x16xbf16>, vector<16x16xbf16>, vector<36x16xf32> -> vector<36x16xf32>
    %c1_290 = arith.constant 1 : index
    %c0_291 = arith.constant 0 : index
    %353 = vector.load %arg7[%c1_290, %c0_291] : memref<50x16xf32, #tpu.memory_space<vmem>>, vector<36x16xf32>
    %354 = arith.truncf %353 : vector<36x16xf32> to vector<36x16xbf16>
    %c46 = arith.constant 46 : index
    %c0_292 = arith.constant 0 : index
    %c0_293 = arith.constant 0 : index
    %355 = vector.load %arg2[%c46, %c0_292, %c0_293] : memref<72x16x16xbf16, #tpu.memory_space<vmem>>, vector<1x16x16xbf16>
    %356 = vector.shape_cast %355 : vector<1x16x16xbf16> to vector<16x16xbf16>
    %cst_294 = arith.constant dense<0.000000e+00> : vector<36x16xf32>
    %357 = tpu.matmul %354, %356, %cst_294 {dimension_numbers = #tpu.dot_dimension_numbers<[1], [0], [0], [1], [0, 0, 1, 1], [], []>} : vector<36x16xbf16>, vector<16x16xbf16>, vector<36x16xf32> -> vector<36x16xf32>
    %358 = arith.addf %352, %357 : vector<36x16xf32>
    %c2_295 = arith.constant 2 : index
    %c0_296 = arith.constant 0 : index
    %359 = vector.load %arg7[%c2_295, %c0_296] : memref<50x16xf32, #tpu.memory_space<vmem>>, vector<36x16xf32>
    %360 = arith.truncf %359 : vector<36x16xf32> to vector<36x16xbf16>
    %c47 = arith.constant 47 : index
    %c0_297 = arith.constant 0 : index
    %c0_298 = arith.constant 0 : index
    %361 = vector.load %arg2[%c47, %c0_297, %c0_298] : memref<72x16x16xbf16, #tpu.memory_space<vmem>>, vector<1x16x16xbf16>
    %362 = vector.shape_cast %361 : vector<1x16x16xbf16> to vector<16x16xbf16>
    %cst_299 = arith.constant dense<0.000000e+00> : vector<36x16xf32>
    %363 = tpu.matmul %360, %362, %cst_299 {dimension_numbers = #tpu.dot_dimension_numbers<[1], [0], [0], [1], [0, 0, 1, 1], [], []>} : vector<36x16xbf16>, vector<16x16xbf16>, vector<36x16xf32> -> vector<36x16xf32>
    %364 = arith.addf %358, %363 : vector<36x16xf32>
    %c6_300 = arith.constant 6 : index
    %c0_301 = arith.constant 0 : index
    %365 = vector.load %arg7[%c6_300, %c0_301] : memref<50x16xf32, #tpu.memory_space<vmem>>, vector<36x16xf32>
    %366 = arith.truncf %365 : vector<36x16xf32> to vector<36x16xbf16>
    %c48 = arith.constant 48 : index
    %c0_302 = arith.constant 0 : index
    %c0_303 = arith.constant 0 : index
    %367 = vector.load %arg2[%c48, %c0_302, %c0_303] : memref<72x16x16xbf16, #tpu.memory_space<vmem>>, vector<1x16x16xbf16>
    %368 = vector.shape_cast %367 : vector<1x16x16xbf16> to vector<16x16xbf16>
    %cst_304 = arith.constant dense<0.000000e+00> : vector<36x16xf32>
    %369 = tpu.matmul %366, %368, %cst_304 {dimension_numbers = #tpu.dot_dimension_numbers<[1], [0], [0], [1], [0, 0, 1, 1], [], []>} : vector<36x16xbf16>, vector<16x16xbf16>, vector<36x16xf32> -> vector<36x16xf32>
    %370 = arith.addf %364, %369 : vector<36x16xf32>
    %c7_305 = arith.constant 7 : index
    %c0_306 = arith.constant 0 : index
    %371 = vector.load %arg7[%c7_305, %c0_306] : memref<50x16xf32, #tpu.memory_space<vmem>>, vector<36x16xf32>
    %372 = arith.truncf %371 : vector<36x16xf32> to vector<36x16xbf16>
    %c49 = arith.constant 49 : index
    %c0_307 = arith.constant 0 : index
    %c0_308 = arith.constant 0 : index
    %373 = vector.load %arg2[%c49, %c0_307, %c0_308] : memref<72x16x16xbf16, #tpu.memory_space<vmem>>, vector<1x16x16xbf16>
    %374 = vector.shape_cast %373 : vector<1x16x16xbf16> to vector<16x16xbf16>
    %cst_309 = arith.constant dense<0.000000e+00> : vector<36x16xf32>
    %375 = tpu.matmul %372, %374, %cst_309 {dimension_numbers = #tpu.dot_dimension_numbers<[1], [0], [0], [1], [0, 0, 1, 1], [], []>} : vector<36x16xbf16>, vector<16x16xbf16>, vector<36x16xf32> -> vector<36x16xf32>
    %376 = arith.addf %370, %375 : vector<36x16xf32>
    %c8_310 = arith.constant 8 : index
    %c0_311 = arith.constant 0 : index
    %377 = vector.load %arg7[%c8_310, %c0_311] : memref<50x16xf32, #tpu.memory_space<vmem>>, vector<36x16xf32>
    %378 = arith.truncf %377 : vector<36x16xf32> to vector<36x16xbf16>
    %c50 = arith.constant 50 : index
    %c0_312 = arith.constant 0 : index
    %c0_313 = arith.constant 0 : index
    %379 = vector.load %arg2[%c50, %c0_312, %c0_313] : memref<72x16x16xbf16, #tpu.memory_space<vmem>>, vector<1x16x16xbf16>
    %380 = vector.shape_cast %379 : vector<1x16x16xbf16> to vector<16x16xbf16>
    %cst_314 = arith.constant dense<0.000000e+00> : vector<36x16xf32>
    %381 = tpu.matmul %378, %380, %cst_314 {dimension_numbers = #tpu.dot_dimension_numbers<[1], [0], [0], [1], [0, 0, 1, 1], [], []>} : vector<36x16xbf16>, vector<16x16xbf16>, vector<36x16xf32> -> vector<36x16xf32>
    %382 = arith.addf %376, %381 : vector<36x16xf32>
    %c12_315 = arith.constant 12 : index
    %c0_316 = arith.constant 0 : index
    %383 = vector.load %arg7[%c12_315, %c0_316] : memref<50x16xf32, #tpu.memory_space<vmem>>, vector<36x16xf32>
    %384 = arith.truncf %383 : vector<36x16xf32> to vector<36x16xbf16>
    %c51 = arith.constant 51 : index
    %c0_317 = arith.constant 0 : index
    %c0_318 = arith.constant 0 : index
    %385 = vector.load %arg2[%c51, %c0_317, %c0_318] : memref<72x16x16xbf16, #tpu.memory_space<vmem>>, vector<1x16x16xbf16>
    %386 = vector.shape_cast %385 : vector<1x16x16xbf16> to vector<16x16xbf16>
    %cst_319 = arith.constant dense<0.000000e+00> : vector<36x16xf32>
    %387 = tpu.matmul %384, %386, %cst_319 {dimension_numbers = #tpu.dot_dimension_numbers<[1], [0], [0], [1], [0, 0, 1, 1], [], []>} : vector<36x16xbf16>, vector<16x16xbf16>, vector<36x16xf32> -> vector<36x16xf32>
    %388 = arith.addf %382, %387 : vector<36x16xf32>
    %c13_320 = arith.constant 13 : index
    %c0_321 = arith.constant 0 : index
    %389 = vector.load %arg7[%c13_320, %c0_321] : memref<50x16xf32, #tpu.memory_space<vmem>>, vector<36x16xf32>
    %390 = arith.truncf %389 : vector<36x16xf32> to vector<36x16xbf16>
    %c52 = arith.constant 52 : index
    %c0_322 = arith.constant 0 : index
    %c0_323 = arith.constant 0 : index
    %391 = vector.load %arg2[%c52, %c0_322, %c0_323] : memref<72x16x16xbf16, #tpu.memory_space<vmem>>, vector<1x16x16xbf16>
    %392 = vector.shape_cast %391 : vector<1x16x16xbf16> to vector<16x16xbf16>
    %cst_324 = arith.constant dense<0.000000e+00> : vector<36x16xf32>
    %393 = tpu.matmul %390, %392, %cst_324 {dimension_numbers = #tpu.dot_dimension_numbers<[1], [0], [0], [1], [0, 0, 1, 1], [], []>} : vector<36x16xbf16>, vector<16x16xbf16>, vector<36x16xf32> -> vector<36x16xf32>
    %394 = arith.addf %388, %393 : vector<36x16xf32>
    %c14_325 = arith.constant 14 : index
    %c0_326 = arith.constant 0 : index
    %395 = vector.load %arg7[%c14_325, %c0_326] : memref<50x16xf32, #tpu.memory_space<vmem>>, vector<36x16xf32>
    %396 = arith.truncf %395 : vector<36x16xf32> to vector<36x16xbf16>
    %c53 = arith.constant 53 : index
    %c0_327 = arith.constant 0 : index
    %c0_328 = arith.constant 0 : index
    %397 = vector.load %arg2[%c53, %c0_327, %c0_328] : memref<72x16x16xbf16, #tpu.memory_space<vmem>>, vector<1x16x16xbf16>
    %398 = vector.shape_cast %397 : vector<1x16x16xbf16> to vector<16x16xbf16>
    %cst_329 = arith.constant dense<0.000000e+00> : vector<36x16xf32>
    %399 = tpu.matmul %396, %398, %cst_329 {dimension_numbers = #tpu.dot_dimension_numbers<[1], [0], [0], [1], [0, 0, 1, 1], [], []>} : vector<36x16xbf16>, vector<16x16xbf16>, vector<36x16xf32> -> vector<36x16xf32>
    %400 = arith.addf %394, %399 : vector<36x16xf32>
    %c5_330 = arith.constant 5 : index
    %c0_331 = arith.constant 0 : index
    %c0_332 = arith.constant 0 : index
    %401 = vector.load %arg3[%c5_330, %c0_331, %c0_332] : memref<8x1x16xf32, #tpu.memory_space<vmem>>, vector<1x1x16xf32>
    %402 = vector.shape_cast %401 : vector<1x1x16xf32> to vector<1x16xf32>
    %403 = vector.broadcast %402 : vector<1x16xf32> to vector<36x16xf32>
    %404 = arith.addf %400, %403 : vector<36x16xf32>
    %cst_333 = arith.constant 0.000000e+00 : f32
    %405 = vector.broadcast %cst_333 : f32 to vector<36x16xf32>
    %406 = arith.cmpf oge, %404, %405 : vector<36x16xf32>
    %c5_334 = arith.constant 5 : index
    %c0_335 = arith.constant 0 : index
    %c0_336 = arith.constant 0 : index
    %407 = vector.load %arg4[%c5_334, %c0_335, %c0_336] : memref<8x1x16xf32, #tpu.memory_space<vmem>>, vector<1x1x16xf32>
    %408 = vector.shape_cast %407 : vector<1x1x16xf32> to vector<1x16xf32>
    %409 = vector.broadcast %408 : vector<1x16xf32> to vector<36x16xf32>
    %410 = arith.mulf %409, %404 : vector<36x16xf32>
    %411 = arith.select %406, %404, %410 : vector<36x16xi1>, vector<36x16xf32>
    %412 = vector.broadcast %3 : vector<36x1xf32> to vector<36x16xf32>
    %413 = arith.mulf %411, %412 : vector<36x16xf32>
    %c7_337 = arith.constant 7 : index
    %c0_338 = arith.constant 0 : index
    %414 = vector.load %arg8[%c7_337, %c0_338] : memref<50x16xf32, #tpu.memory_space<vmem>>, vector<36x16xf32>
    tpu.vector_store %arg8[%c7_337, %c0_338], %413 {strides = array<i32>} : memref<50x16xf32, #tpu.memory_space<vmem>>, vector<36x16xf32>,
    %c0_339 = arith.constant 0 : index
    %c0_340 = arith.constant 0 : index
    %415 = vector.load %arg8[%c0_339, %c0_340] : memref<50x16xf32, #tpu.memory_space<vmem>>, vector<36x16xf32>
    %416 = arith.truncf %415 : vector<36x16xf32> to vector<36x16xbf16>
    %c54 = arith.constant 54 : index
    %c0_341 = arith.constant 0 : index
    %c0_342 = arith.constant 0 : index
    %417 = vector.load %arg2[%c54, %c0_341, %c0_342] : memref<72x16x16xbf16, #tpu.memory_space<vmem>>, vector<1x16x16xbf16>
    %418 = vector.shape_cast %417 : vector<1x16x16xbf16> to vector<16x16xbf16>
    %cst_343 = arith.constant dense<0.000000e+00> : vector<36x16xf32>
    %419 = tpu.matmul %416, %418, %cst_343 {dimension_numbers = #tpu.dot_dimension_numbers<[1], [0], [0], [1], [0, 0, 1, 1], [], []>} : vector<36x16xbf16>, vector<16x16xbf16>, vector<36x16xf32> -> vector<36x16xf32>
    %c1_344 = arith.constant 1 : index
    %c0_345 = arith.constant 0 : index
    %420 = vector.load %arg8[%c1_344, %c0_345] : memref<50x16xf32, #tpu.memory_space<vmem>>, vector<36x16xf32>
    %421 = arith.truncf %420 : vector<36x16xf32> to vector<36x16xbf16>
    %c55 = arith.constant 55 : index
    %c0_346 = arith.constant 0 : index
    %c0_347 = arith.constant 0 : index
    %422 = vector.load %arg2[%c55, %c0_346, %c0_347] : memref<72x16x16xbf16, #tpu.memory_space<vmem>>, vector<1x16x16xbf16>
    %423 = vector.shape_cast %422 : vector<1x16x16xbf16> to vector<16x16xbf16>
    %cst_348 = arith.constant dense<0.000000e+00> : vector<36x16xf32>
    %424 = tpu.matmul %421, %423, %cst_348 {dimension_numbers = #tpu.dot_dimension_numbers<[1], [0], [0], [1], [0, 0, 1, 1], [], []>} : vector<36x16xbf16>, vector<16x16xbf16>, vector<36x16xf32> -> vector<36x16xf32>
    %425 = arith.addf %419, %424 : vector<36x16xf32>
    %c2_349 = arith.constant 2 : index
    %c0_350 = arith.constant 0 : index
    %426 = vector.load %arg8[%c2_349, %c0_350] : memref<50x16xf32, #tpu.memory_space<vmem>>, vector<36x16xf32>
    %427 = arith.truncf %426 : vector<36x16xf32> to vector<36x16xbf16>
    %c56 = arith.constant 56 : index
    %c0_351 = arith.constant 0 : index
    %c0_352 = arith.constant 0 : index
    %428 = vector.load %arg2[%c56, %c0_351, %c0_352] : memref<72x16x16xbf16, #tpu.memory_space<vmem>>, vector<1x16x16xbf16>
    %429 = vector.shape_cast %428 : vector<1x16x16xbf16> to vector<16x16xbf16>
    %cst_353 = arith.constant dense<0.000000e+00> : vector<36x16xf32>
    %430 = tpu.matmul %427, %429, %cst_353 {dimension_numbers = #tpu.dot_dimension_numbers<[1], [0], [0], [1], [0, 0, 1, 1], [], []>} : vector<36x16xbf16>, vector<16x16xbf16>, vector<36x16xf32> -> vector<36x16xf32>
    %431 = arith.addf %425, %430 : vector<36x16xf32>
    %c6_354 = arith.constant 6 : index
    %c0_355 = arith.constant 0 : index
    %432 = vector.load %arg8[%c6_354, %c0_355] : memref<50x16xf32, #tpu.memory_space<vmem>>, vector<36x16xf32>
    %433 = arith.truncf %432 : vector<36x16xf32> to vector<36x16xbf16>
    %c57 = arith.constant 57 : index
    %c0_356 = arith.constant 0 : index
    %c0_357 = arith.constant 0 : index
    %434 = vector.load %arg2[%c57, %c0_356, %c0_357] : memref<72x16x16xbf16, #tpu.memory_space<vmem>>, vector<1x16x16xbf16>
    %435 = vector.shape_cast %434 : vector<1x16x16xbf16> to vector<16x16xbf16>
    %cst_358 = arith.constant dense<0.000000e+00> : vector<36x16xf32>
    %436 = tpu.matmul %433, %435, %cst_358 {dimension_numbers = #tpu.dot_dimension_numbers<[1], [0], [0], [1], [0, 0, 1, 1], [], []>} : vector<36x16xbf16>, vector<16x16xbf16>, vector<36x16xf32> -> vector<36x16xf32>
    %437 = arith.addf %431, %436 : vector<36x16xf32>
    %c7_359 = arith.constant 7 : index
    %c0_360 = arith.constant 0 : index
    %438 = vector.load %arg8[%c7_359, %c0_360] : memref<50x16xf32, #tpu.memory_space<vmem>>, vector<36x16xf32>
    %439 = arith.truncf %438 : vector<36x16xf32> to vector<36x16xbf16>
    %c58 = arith.constant 58 : index
    %c0_361 = arith.constant 0 : index
    %c0_362 = arith.constant 0 : index
    %440 = vector.load %arg2[%c58, %c0_361, %c0_362] : memref<72x16x16xbf16, #tpu.memory_space<vmem>>, vector<1x16x16xbf16>
    %441 = vector.shape_cast %440 : vector<1x16x16xbf16> to vector<16x16xbf16>
    %cst_363 = arith.constant dense<0.000000e+00> : vector<36x16xf32>
    %442 = tpu.matmul %439, %441, %cst_363 {dimension_numbers = #tpu.dot_dimension_numbers<[1], [0], [0], [1], [0, 0, 1, 1], [], []>} : vector<36x16xbf16>, vector<16x16xbf16>, vector<36x16xf32> -> vector<36x16xf32>
    %443 = arith.addf %437, %442 : vector<36x16xf32>
    %c8_364 = arith.constant 8 : index
    %c0_365 = arith.constant 0 : index
    %444 = vector.load %arg8[%c8_364, %c0_365] : memref<50x16xf32, #tpu.memory_space<vmem>>, vector<36x16xf32>
    %445 = arith.truncf %444 : vector<36x16xf32> to vector<36x16xbf16>
    %c59 = arith.constant 59 : index
    %c0_366 = arith.constant 0 : index
    %c0_367 = arith.constant 0 : index
    %446 = vector.load %arg2[%c59, %c0_366, %c0_367] : memref<72x16x16xbf16, #tpu.memory_space<vmem>>, vector<1x16x16xbf16>
    %447 = vector.shape_cast %446 : vector<1x16x16xbf16> to vector<16x16xbf16>
    %cst_368 = arith.constant dense<0.000000e+00> : vector<36x16xf32>
    %448 = tpu.matmul %445, %447, %cst_368 {dimension_numbers = #tpu.dot_dimension_numbers<[1], [0], [0], [1], [0, 0, 1, 1], [], []>} : vector<36x16xbf16>, vector<16x16xbf16>, vector<36x16xf32> -> vector<36x16xf32>
    %449 = arith.addf %443, %448 : vector<36x16xf32>
    %c12_369 = arith.constant 12 : index
    %c0_370 = arith.constant 0 : index
    %450 = vector.load %arg8[%c12_369, %c0_370] : memref<50x16xf32, #tpu.memory_space<vmem>>, vector<36x16xf32>
    %451 = arith.truncf %450 : vector<36x16xf32> to vector<36x16xbf16>
    %c60 = arith.constant 60 : index
    %c0_371 = arith.constant 0 : index
    %c0_372 = arith.constant 0 : index
    %452 = vector.load %arg2[%c60, %c0_371, %c0_372] : memref<72x16x16xbf16, #tpu.memory_space<vmem>>, vector<1x16x16xbf16>
    %453 = vector.shape_cast %452 : vector<1x16x16xbf16> to vector<16x16xbf16>
    %cst_373 = arith.constant dense<0.000000e+00> : vector<36x16xf32>
    %454 = tpu.matmul %451, %453, %cst_373 {dimension_numbers = #tpu.dot_dimension_numbers<[1], [0], [0], [1], [0, 0, 1, 1], [], []>} : vector<36x16xbf16>, vector<16x16xbf16>, vector<36x16xf32> -> vector<36x16xf32>
    %455 = arith.addf %449, %454 : vector<36x16xf32>
    %c13_374 = arith.constant 13 : index
    %c0_375 = arith.constant 0 : index
    %456 = vector.load %arg8[%c13_374, %c0_375] : memref<50x16xf32, #tpu.memory_space<vmem>>, vector<36x16xf32>
    %457 = arith.truncf %456 : vector<36x16xf32> to vector<36x16xbf16>
    %c61 = arith.constant 61 : index
    %c0_376 = arith.constant 0 : index
    %c0_377 = arith.constant 0 : index
    %458 = vector.load %arg2[%c61, %c0_376, %c0_377] : memref<72x16x16xbf16, #tpu.memory_space<vmem>>, vector<1x16x16xbf16>
    %459 = vector.shape_cast %458 : vector<1x16x16xbf16> to vector<16x16xbf16>
    %cst_378 = arith.constant dense<0.000000e+00> : vector<36x16xf32>
    %460 = tpu.matmul %457, %459, %cst_378 {dimension_numbers = #tpu.dot_dimension_numbers<[1], [0], [0], [1], [0, 0, 1, 1], [], []>} : vector<36x16xbf16>, vector<16x16xbf16>, vector<36x16xf32> -> vector<36x16xf32>
    %461 = arith.addf %455, %460 : vector<36x16xf32>
    %c14_379 = arith.constant 14 : index
    %c0_380 = arith.constant 0 : index
    %462 = vector.load %arg8[%c14_379, %c0_380] : memref<50x16xf32, #tpu.memory_space<vmem>>, vector<36x16xf32>
    %463 = arith.truncf %462 : vector<36x16xf32> to vector<36x16xbf16>
    %c62 = arith.constant 62 : index
    %c0_381 = arith.constant 0 : index
    %c0_382 = arith.constant 0 : index
    %464 = vector.load %arg2[%c62, %c0_381, %c0_382] : memref<72x16x16xbf16, #tpu.memory_space<vmem>>, vector<1x16x16xbf16>
    %465 = vector.shape_cast %464 : vector<1x16x16xbf16> to vector<16x16xbf16>
    %cst_383 = arith.constant dense<0.000000e+00> : vector<36x16xf32>
    %466 = tpu.matmul %463, %465, %cst_383 {dimension_numbers = #tpu.dot_dimension_numbers<[1], [0], [0], [1], [0, 0, 1, 1], [], []>} : vector<36x16xbf16>, vector<16x16xbf16>, vector<36x16xf32> -> vector<36x16xf32>
    %467 = arith.addf %461, %466 : vector<36x16xf32>
    %c6_384 = arith.constant 6 : index
    %c0_385 = arith.constant 0 : index
    %c0_386 = arith.constant 0 : index
    %468 = vector.load %arg3[%c6_384, %c0_385, %c0_386] : memref<8x1x16xf32, #tpu.memory_space<vmem>>, vector<1x1x16xf32>
    %469 = vector.shape_cast %468 : vector<1x1x16xf32> to vector<1x16xf32>
    %470 = vector.broadcast %469 : vector<1x16xf32> to vector<36x16xf32>
    %471 = arith.addf %467, %470 : vector<36x16xf32>
    %cst_387 = arith.constant 0.000000e+00 : f32
    %472 = vector.broadcast %cst_387 : f32 to vector<36x16xf32>
    %473 = arith.cmpf oge, %471, %472 : vector<36x16xf32>
    %c6_388 = arith.constant 6 : index
    %c0_389 = arith.constant 0 : index
    %c0_390 = arith.constant 0 : index
    %474 = vector.load %arg4[%c6_388, %c0_389, %c0_390] : memref<8x1x16xf32, #tpu.memory_space<vmem>>, vector<1x1x16xf32>
    %475 = vector.shape_cast %474 : vector<1x1x16xf32> to vector<1x16xf32>
    %476 = vector.broadcast %475 : vector<1x16xf32> to vector<36x16xf32>
    %477 = arith.mulf %476, %471 : vector<36x16xf32>
    %478 = arith.select %473, %471, %477 : vector<36x16xi1>, vector<36x16xf32>
    %479 = vector.broadcast %3 : vector<36x1xf32> to vector<36x16xf32>
    %480 = arith.mulf %478, %479 : vector<36x16xf32>
    %c7_391 = arith.constant 7 : index
    %c0_392 = arith.constant 0 : index
    %481 = vector.load %arg7[%c7_391, %c0_392] : memref<50x16xf32, #tpu.memory_space<vmem>>, vector<36x16xf32>
    tpu.vector_store %arg7[%c7_391, %c0_392], %480 {strides = array<i32>} : memref<50x16xf32, #tpu.memory_space<vmem>>, vector<36x16xf32>,
    %c0_393 = arith.constant 0 : index
    %c0_394 = arith.constant 0 : index
    %482 = vector.load %arg7[%c0_393, %c0_394] : memref<50x16xf32, #tpu.memory_space<vmem>>, vector<36x16xf32>
    %483 = arith.truncf %482 : vector<36x16xf32> to vector<36x16xbf16>
    %c63 = arith.constant 63 : index
    %c0_395 = arith.constant 0 : index
    %c0_396 = arith.constant 0 : index
    %484 = vector.load %arg2[%c63, %c0_395, %c0_396] : memref<72x16x16xbf16, #tpu.memory_space<vmem>>, vector<1x16x16xbf16>
    %485 = vector.shape_cast %484 : vector<1x16x16xbf16> to vector<16x16xbf16>
    %cst_397 = arith.constant dense<0.000000e+00> : vector<36x16xf32>
    %486 = tpu.matmul %483, %485, %cst_397 {dimension_numbers = #tpu.dot_dimension_numbers<[1], [0], [0], [1], [0, 0, 1, 1], [], []>} : vector<36x16xbf16>, vector<16x16xbf16>, vector<36x16xf32> -> vector<36x16xf32>
    %c1_398 = arith.constant 1 : index
    %c0_399 = arith.constant 0 : index
    %487 = vector.load %arg7[%c1_398, %c0_399] : memref<50x16xf32, #tpu.memory_space<vmem>>, vector<36x16xf32>
    %488 = arith.truncf %487 : vector<36x16xf32> to vector<36x16xbf16>
    %c64 = arith.constant 64 : index
    %c0_400 = arith.constant 0 : index
    %c0_401 = arith.constant 0 : index
    %489 = vector.load %arg2[%c64, %c0_400, %c0_401] : memref<72x16x16xbf16, #tpu.memory_space<vmem>>, vector<1x16x16xbf16>
    %490 = vector.shape_cast %489 : vector<1x16x16xbf16> to vector<16x16xbf16>
    %cst_402 = arith.constant dense<0.000000e+00> : vector<36x16xf32>
    %491 = tpu.matmul %488, %490, %cst_402 {dimension_numbers = #tpu.dot_dimension_numbers<[1], [0], [0], [1], [0, 0, 1, 1], [], []>} : vector<36x16xbf16>, vector<16x16xbf16>, vector<36x16xf32> -> vector<36x16xf32>
    %492 = arith.addf %486, %491 : vector<36x16xf32>
    %c2_403 = arith.constant 2 : index
    %c0_404 = arith.constant 0 : index
    %493 = vector.load %arg7[%c2_403, %c0_404] : memref<50x16xf32, #tpu.memory_space<vmem>>, vector<36x16xf32>
    %494 = arith.truncf %493 : vector<36x16xf32> to vector<36x16xbf16>
    %c65 = arith.constant 65 : index
    %c0_405 = arith.constant 0 : index
    %c0_406 = arith.constant 0 : index
    %495 = vector.load %arg2[%c65, %c0_405, %c0_406] : memref<72x16x16xbf16, #tpu.memory_space<vmem>>, vector<1x16x16xbf16>
    %496 = vector.shape_cast %495 : vector<1x16x16xbf16> to vector<16x16xbf16>
    %cst_407 = arith.constant dense<0.000000e+00> : vector<36x16xf32>
    %497 = tpu.matmul %494, %496, %cst_407 {dimension_numbers = #tpu.dot_dimension_numbers<[1], [0], [0], [1], [0, 0, 1, 1], [], []>} : vector<36x16xbf16>, vector<16x16xbf16>, vector<36x16xf32> -> vector<36x16xf32>
    %498 = arith.addf %492, %497 : vector<36x16xf32>
    %c6_408 = arith.constant 6 : index
    %c0_409 = arith.constant 0 : index
    %499 = vector.load %arg7[%c6_408, %c0_409] : memref<50x16xf32, #tpu.memory_space<vmem>>, vector<36x16xf32>
    %500 = arith.truncf %499 : vector<36x16xf32> to vector<36x16xbf16>
    %c66 = arith.constant 66 : index
    %c0_410 = arith.constant 0 : index
    %c0_411 = arith.constant 0 : index
    %501 = vector.load %arg2[%c66, %c0_410, %c0_411] : memref<72x16x16xbf16, #tpu.memory_space<vmem>>, vector<1x16x16xbf16>
    %502 = vector.shape_cast %501 : vector<1x16x16xbf16> to vector<16x16xbf16>
    %cst_412 = arith.constant dense<0.000000e+00> : vector<36x16xf32>
    %503 = tpu.matmul %500, %502, %cst_412 {dimension_numbers = #tpu.dot_dimension_numbers<[1], [0], [0], [1], [0, 0, 1, 1], [], []>} : vector<36x16xbf16>, vector<16x16xbf16>, vector<36x16xf32> -> vector<36x16xf32>
    %504 = arith.addf %498, %503 : vector<36x16xf32>
    %c7_413 = arith.constant 7 : index
    %c0_414 = arith.constant 0 : index
    %505 = vector.load %arg7[%c7_413, %c0_414] : memref<50x16xf32, #tpu.memory_space<vmem>>, vector<36x16xf32>
    %506 = arith.truncf %505 : vector<36x16xf32> to vector<36x16xbf16>
    %c67 = arith.constant 67 : index
    %c0_415 = arith.constant 0 : index
    %c0_416 = arith.constant 0 : index
    %507 = vector.load %arg2[%c67, %c0_415, %c0_416] : memref<72x16x16xbf16, #tpu.memory_space<vmem>>, vector<1x16x16xbf16>
    %508 = vector.shape_cast %507 : vector<1x16x16xbf16> to vector<16x16xbf16>
    %cst_417 = arith.constant dense<0.000000e+00> : vector<36x16xf32>
    %509 = tpu.matmul %506, %508, %cst_417 {dimension_numbers = #tpu.dot_dimension_numbers<[1], [0], [0], [1], [0, 0, 1, 1], [], []>} : vector<36x16xbf16>, vector<16x16xbf16>, vector<36x16xf32> -> vector<36x16xf32>
    %510 = arith.addf %504, %509 : vector<36x16xf32>
    %c8_418 = arith.constant 8 : index
    %c0_419 = arith.constant 0 : index
    %511 = vector.load %arg7[%c8_418, %c0_419] : memref<50x16xf32, #tpu.memory_space<vmem>>, vector<36x16xf32>
    %512 = arith.truncf %511 : vector<36x16xf32> to vector<36x16xbf16>
    %c68 = arith.constant 68 : index
    %c0_420 = arith.constant 0 : index
    %c0_421 = arith.constant 0 : index
    %513 = vector.load %arg2[%c68, %c0_420, %c0_421] : memref<72x16x16xbf16, #tpu.memory_space<vmem>>, vector<1x16x16xbf16>
    %514 = vector.shape_cast %513 : vector<1x16x16xbf16> to vector<16x16xbf16>
    %cst_422 = arith.constant dense<0.000000e+00> : vector<36x16xf32>
    %515 = tpu.matmul %512, %514, %cst_422 {dimension_numbers = #tpu.dot_dimension_numbers<[1], [0], [0], [1], [0, 0, 1, 1], [], []>} : vector<36x16xbf16>, vector<16x16xbf16>, vector<36x16xf32> -> vector<36x16xf32>
    %516 = arith.addf %510, %515 : vector<36x16xf32>
    %c12_423 = arith.constant 12 : index
    %c0_424 = arith.constant 0 : index
    %517 = vector.load %arg7[%c12_423, %c0_424] : memref<50x16xf32, #tpu.memory_space<vmem>>, vector<36x16xf32>
    %518 = arith.truncf %517 : vector<36x16xf32> to vector<36x16xbf16>
    %c69 = arith.constant 69 : index
    %c0_425 = arith.constant 0 : index
    %c0_426 = arith.constant 0 : index
    %519 = vector.load %arg2[%c69, %c0_425, %c0_426] : memref<72x16x16xbf16, #tpu.memory_space<vmem>>, vector<1x16x16xbf16>
    %520 = vector.shape_cast %519 : vector<1x16x16xbf16> to vector<16x16xbf16>
    %cst_427 = arith.constant dense<0.000000e+00> : vector<36x16xf32>
    %521 = tpu.matmul %518, %520, %cst_427 {dimension_numbers = #tpu.dot_dimension_numbers<[1], [0], [0], [1], [0, 0, 1, 1], [], []>} : vector<36x16xbf16>, vector<16x16xbf16>, vector<36x16xf32> -> vector<36x16xf32>
    %522 = arith.addf %516, %521 : vector<36x16xf32>
    %c13_428 = arith.constant 13 : index
    %c0_429 = arith.constant 0 : index
    %523 = vector.load %arg7[%c13_428, %c0_429] : memref<50x16xf32, #tpu.memory_space<vmem>>, vector<36x16xf32>
    %524 = arith.truncf %523 : vector<36x16xf32> to vector<36x16xbf16>
    %c70 = arith.constant 70 : index
    %c0_430 = arith.constant 0 : index
    %c0_431 = arith.constant 0 : index
    %525 = vector.load %arg2[%c70, %c0_430, %c0_431] : memref<72x16x16xbf16, #tpu.memory_space<vmem>>, vector<1x16x16xbf16>
    %526 = vector.shape_cast %525 : vector<1x16x16xbf16> to vector<16x16xbf16>
    %cst_432 = arith.constant dense<0.000000e+00> : vector<36x16xf32>
    %527 = tpu.matmul %524, %526, %cst_432 {dimension_numbers = #tpu.dot_dimension_numbers<[1], [0], [0], [1], [0, 0, 1, 1], [], []>} : vector<36x16xbf16>, vector<16x16xbf16>, vector<36x16xf32> -> vector<36x16xf32>
    %528 = arith.addf %522, %527 : vector<36x16xf32>
    %c14_433 = arith.constant 14 : index
    %c0_434 = arith.constant 0 : index
    %529 = vector.load %arg7[%c14_433, %c0_434] : memref<50x16xf32, #tpu.memory_space<vmem>>, vector<36x16xf32>
    %530 = arith.truncf %529 : vector<36x16xf32> to vector<36x16xbf16>
    %c71 = arith.constant 71 : index
    %c0_435 = arith.constant 0 : index
    %c0_436 = arith.constant 0 : index
    %531 = vector.load %arg2[%c71, %c0_435, %c0_436] : memref<72x16x16xbf16, #tpu.memory_space<vmem>>, vector<1x16x16xbf16>
    %532 = vector.shape_cast %531 : vector<1x16x16xbf16> to vector<16x16xbf16>
    %cst_437 = arith.constant dense<0.000000e+00> : vector<36x16xf32>
    %533 = tpu.matmul %530, %532, %cst_437 {dimension_numbers = #tpu.dot_dimension_numbers<[1], [0], [0], [1], [0, 0, 1, 1], [], []>} : vector<36x16xbf16>, vector<16x16xbf16>, vector<36x16xf32> -> vector<36x16xf32>
    %534 = arith.addf %528, %533 : vector<36x16xf32>
    %c7_438 = arith.constant 7 : index
    %c0_439 = arith.constant 0 : index
    %c0_440 = arith.constant 0 : index
    %535 = vector.load %arg3[%c7_438, %c0_439, %c0_440] : memref<8x1x16xf32, #tpu.memory_space<vmem>>, vector<1x1x16xf32>
    %536 = vector.shape_cast %535 : vector<1x1x16xf32> to vector<1x16xf32>
    %537 = vector.broadcast %536 : vector<1x16xf32> to vector<36x16xf32>
    %538 = arith.addf %534, %537 : vector<36x16xf32>
    %cst_441 = arith.constant 0.000000e+00 : f32
    %539 = vector.broadcast %cst_441 : f32 to vector<36x16xf32>
    %540 = arith.cmpf oge, %538, %539 : vector<36x16xf32>
    %c7_442 = arith.constant 7 : index
    %c0_443 = arith.constant 0 : index
    %c0_444 = arith.constant 0 : index
    %541 = vector.load %arg4[%c7_442, %c0_443, %c0_444] : memref<8x1x16xf32, #tpu.memory_space<vmem>>, vector<1x1x16xf32>
    %542 = vector.shape_cast %541 : vector<1x1x16xf32> to vector<1x16xf32>
    %543 = vector.broadcast %542 : vector<1x16xf32> to vector<36x16xf32>
    %544 = arith.mulf %543, %538 : vector<36x16xf32>
    %545 = arith.select %540, %538, %544 : vector<36x16xi1>, vector<36x16xf32>
    %546 = vector.broadcast %3 : vector<36x1xf32> to vector<36x16xf32>
    %547 = arith.mulf %545, %546 : vector<36x16xf32>
    %c0_445 = arith.constant 0 : index
    %c7_446 = arith.constant 7 : index
    %c0_447 = arith.constant 0 : index
    %548 = vector.load %arg1[%c0_445, %c7_446, %c0_447] : memref<1x50x16xf32, #tpu.memory_space<vmem>>, vector<1x36x16xf32>
    %549 = vector.shape_cast %548 : vector<1x36x16xf32> to vector<36x16xf32>
    %550 = arith.addf %547, %549 : vector<36x16xf32>
    %c0_448 = arith.constant 0 : index
    %c0_449 = arith.constant 0 : index
    %c0_450 = arith.constant 0 : index
    %551 = vector.load %arg6[%c0_448, %c0_449, %c0_450] : memref<1x36x16xf32, #tpu.memory_space<vmem>>, vector<1x36x16xf32>
    %552 = vector.shape_cast %551 : vector<1x36x16xf32> to vector<36x16xf32>
    %553 = vector.shape_cast %550 : vector<36x16xf32> to vector<1x36x16xf32>
    tpu.vector_store %arg6[%c0_448, %c0_449, %c0_450], %553 {strides = array<i32>} : memref<1x36x16xf32, #tpu.memory_space<vmem>>, vector<1x36x16xf32>,
    return
  }
  func.func @transform_0(%arg0: i32) -> (i32, i32, i32) {
    %c0_i32 = arith.constant 0 : i32
    %c0_i32_0 = arith.constant 0 : i32
    %c0_i32_1 = arith.constant 0 : i32
    return %arg0, %c0_i32, %c0_i32_0 : i32, i32, i32
  }
  func.func @transform_1(%arg0: i32) -> (i32, i32, i32) {
    %c0_i32 = arith.constant 0 : i32
    %c0_i32_0 = arith.constant 0 : i32
    %c0_i32_1 = arith.constant 0 : i32
    %c0_i32_2 = arith.constant 0 : i32
    return %c0_i32, %c0_i32_0, %c0_i32_1 : i32, i32, i32
  }
  func.func @transform_2(%arg0: i32) -> (i32, i32, i32) {
    %c0_i32 = arith.constant 0 : i32
    %c0_i32_0 = arith.constant 0 : i32
    %c0_i32_1 = arith.constant 0 : i32
    %c0_i32_2 = arith.constant 0 : i32
    return %c0_i32, %c0_i32_0, %c0_i32_1 : i32, i32, i32
  }
  func.func @transform_3(%arg0: i32) -> (i32, i32, i32) {
    %c0_i32 = arith.constant 0 : i32
    %c0_i32_0 = arith.constant 0 : i32
    %c0_i32_1 = arith.constant 0 : i32
    %c0_i32_2 = arith.constant 0 : i32
    return %c0_i32, %c0_i32_0, %c0_i32_1 : i32, i32, i32
  }
  func.func @transform_4(%arg0: i32) -> (i32, i32) {
    %c0_i32 = arith.constant 0 : i32
    %c0_i32_0 = arith.constant 0 : i32
    %c0_i32_1 = arith.constant 0 : i32
    return %c0_i32, %c0_i32_0 : i32, i32
  }
  func.func @transform_5(%arg0: i32) -> (i32, i32, i32) {
    %c0_i32 = arith.constant 0 : i32
    %c0_i32_0 = arith.constant 0 : i32
    %c0_i32_1 = arith.constant 0 : i32
    return %arg0, %c0_i32, %c0_i32_0 : i32, i32, i32
  }
}

module attributes {stable_mosaic.version = 11 : i64} {
  func.func @kernel(%arg0: i32, %arg1: memref<1x50x16xf32, #tpu.memory_space<vmem>>, %arg2: memref<9x16x20xbf16, #tpu.memory_space<vmem>>, %arg3: memref<1x20xf32, #tpu.memory_space<vmem>>, %arg4: memref<1x36x20xf32, #tpu.memory_space<vmem>>) attributes {dimension_semantics = [#tpu.dimension_semantics<parallel>], iteration_bounds = array<i64: 2>, scalar_prefetch = 0 : i64, scratch_operands = 0 : i64, tpu.core_type = #tpu.core_type<tc>, window_params = [{transform_indices = @transform_0, window_bounds = array<i64: 1, 50, 16>}, {pipeline_mode = #tpu.pipeline_mode<synchronous>, transform_indices = @transform_1, window_bounds = array<i64: 9, 16, 20>}, {pipeline_mode = #tpu.pipeline_mode<synchronous>, transform_indices = @transform_2, window_bounds = array<i64: 1, 20>}, {transform_indices = @transform_3, window_bounds = array<i64: 1, 36, 20>}]} {
    %c0 = arith.constant 0 : index
    %c0_0 = arith.constant 0 : index
    %c0_1 = arith.constant 0 : index
    %0 = vector.load %arg1[%c0, %c0_0, %c0_1] : memref<1x50x16xf32, #tpu.memory_space<vmem>>, vector<1x36x16xf32>
    %1 = vector.shape_cast %0 : vector<1x36x16xf32> to vector<36x16xf32>
    %2 = arith.truncf %1 : vector<36x16xf32> to vector<36x16xbf16>
    %c0_2 = arith.constant 0 : index
    %c0_3 = arith.constant 0 : index
    %c0_4 = arith.constant 0 : index
    %3 = vector.load %arg2[%c0_2, %c0_3, %c0_4] : memref<9x16x20xbf16, #tpu.memory_space<vmem>>, vector<1x16x20xbf16>
    %4 = vector.shape_cast %3 : vector<1x16x20xbf16> to vector<16x20xbf16>
    %cst = arith.constant dense<0.000000e+00> : vector<36x20xf32>
    %5 = tpu.matmul %2, %4, %cst {dimension_numbers = #tpu.dot_dimension_numbers<[1], [0], [0], [1], [0, 0, 1, 1], [], []>} : vector<36x16xbf16>, vector<16x20xbf16>, vector<36x20xf32> -> vector<36x20xf32>
    %c0_5 = arith.constant 0 : index
    %c1 = arith.constant 1 : index
    %c0_6 = arith.constant 0 : index
    %6 = vector.load %arg1[%c0_5, %c1, %c0_6] : memref<1x50x16xf32, #tpu.memory_space<vmem>>, vector<1x36x16xf32>
    %7 = vector.shape_cast %6 : vector<1x36x16xf32> to vector<36x16xf32>
    %8 = arith.truncf %7 : vector<36x16xf32> to vector<36x16xbf16>
    %c1_7 = arith.constant 1 : index
    %c0_8 = arith.constant 0 : index
    %c0_9 = arith.constant 0 : index
    %9 = vector.load %arg2[%c1_7, %c0_8, %c0_9] : memref<9x16x20xbf16, #tpu.memory_space<vmem>>, vector<1x16x20xbf16>
    %10 = vector.shape_cast %9 : vector<1x16x20xbf16> to vector<16x20xbf16>
    %cst_10 = arith.constant dense<0.000000e+00> : vector<36x20xf32>
    %11 = tpu.matmul %8, %10, %cst_10 {dimension_numbers = #tpu.dot_dimension_numbers<[1], [0], [0], [1], [0, 0, 1, 1], [], []>} : vector<36x16xbf16>, vector<16x20xbf16>, vector<36x20xf32> -> vector<36x20xf32>
    %12 = arith.addf %5, %11 : vector<36x20xf32>
    %c0_11 = arith.constant 0 : index
    %c2 = arith.constant 2 : index
    %c0_12 = arith.constant 0 : index
    %13 = vector.load %arg1[%c0_11, %c2, %c0_12] : memref<1x50x16xf32, #tpu.memory_space<vmem>>, vector<1x36x16xf32>
    %14 = vector.shape_cast %13 : vector<1x36x16xf32> to vector<36x16xf32>
    %15 = arith.truncf %14 : vector<36x16xf32> to vector<36x16xbf16>
    %c2_13 = arith.constant 2 : index
    %c0_14 = arith.constant 0 : index
    %c0_15 = arith.constant 0 : index
    %16 = vector.load %arg2[%c2_13, %c0_14, %c0_15] : memref<9x16x20xbf16, #tpu.memory_space<vmem>>, vector<1x16x20xbf16>
    %17 = vector.shape_cast %16 : vector<1x16x20xbf16> to vector<16x20xbf16>
    %cst_16 = arith.constant dense<0.000000e+00> : vector<36x20xf32>
    %18 = tpu.matmul %15, %17, %cst_16 {dimension_numbers = #tpu.dot_dimension_numbers<[1], [0], [0], [1], [0, 0, 1, 1], [], []>} : vector<36x16xbf16>, vector<16x20xbf16>, vector<36x20xf32> -> vector<36x20xf32>
    %19 = arith.addf %12, %18 : vector<36x20xf32>
    %c0_17 = arith.constant 0 : index
    %c6 = arith.constant 6 : index
    %c0_18 = arith.constant 0 : index
    %20 = vector.load %arg1[%c0_17, %c6, %c0_18] : memref<1x50x16xf32, #tpu.memory_space<vmem>>, vector<1x36x16xf32>
    %21 = vector.shape_cast %20 : vector<1x36x16xf32> to vector<36x16xf32>
    %22 = arith.truncf %21 : vector<36x16xf32> to vector<36x16xbf16>
    %c3 = arith.constant 3 : index
    %c0_19 = arith.constant 0 : index
    %c0_20 = arith.constant 0 : index
    %23 = vector.load %arg2[%c3, %c0_19, %c0_20] : memref<9x16x20xbf16, #tpu.memory_space<vmem>>, vector<1x16x20xbf16>
    %24 = vector.shape_cast %23 : vector<1x16x20xbf16> to vector<16x20xbf16>
    %cst_21 = arith.constant dense<0.000000e+00> : vector<36x20xf32>
    %25 = tpu.matmul %22, %24, %cst_21 {dimension_numbers = #tpu.dot_dimension_numbers<[1], [0], [0], [1], [0, 0, 1, 1], [], []>} : vector<36x16xbf16>, vector<16x20xbf16>, vector<36x20xf32> -> vector<36x20xf32>
    %26 = arith.addf %19, %25 : vector<36x20xf32>
    %c0_22 = arith.constant 0 : index
    %c7 = arith.constant 7 : index
    %c0_23 = arith.constant 0 : index
    %27 = vector.load %arg1[%c0_22, %c7, %c0_23] : memref<1x50x16xf32, #tpu.memory_space<vmem>>, vector<1x36x16xf32>
    %28 = vector.shape_cast %27 : vector<1x36x16xf32> to vector<36x16xf32>
    %29 = arith.truncf %28 : vector<36x16xf32> to vector<36x16xbf16>
    %c4 = arith.constant 4 : index
    %c0_24 = arith.constant 0 : index
    %c0_25 = arith.constant 0 : index
    %30 = vector.load %arg2[%c4, %c0_24, %c0_25] : memref<9x16x20xbf16, #tpu.memory_space<vmem>>, vector<1x16x20xbf16>
    %31 = vector.shape_cast %30 : vector<1x16x20xbf16> to vector<16x20xbf16>
    %cst_26 = arith.constant dense<0.000000e+00> : vector<36x20xf32>
    %32 = tpu.matmul %29, %31, %cst_26 {dimension_numbers = #tpu.dot_dimension_numbers<[1], [0], [0], [1], [0, 0, 1, 1], [], []>} : vector<36x16xbf16>, vector<16x20xbf16>, vector<36x20xf32> -> vector<36x20xf32>
    %33 = arith.addf %26, %32 : vector<36x20xf32>
    %c0_27 = arith.constant 0 : index
    %c8 = arith.constant 8 : index
    %c0_28 = arith.constant 0 : index
    %34 = vector.load %arg1[%c0_27, %c8, %c0_28] : memref<1x50x16xf32, #tpu.memory_space<vmem>>, vector<1x36x16xf32>
    %35 = vector.shape_cast %34 : vector<1x36x16xf32> to vector<36x16xf32>
    %36 = arith.truncf %35 : vector<36x16xf32> to vector<36x16xbf16>
    %c5 = arith.constant 5 : index
    %c0_29 = arith.constant 0 : index
    %c0_30 = arith.constant 0 : index
    %37 = vector.load %arg2[%c5, %c0_29, %c0_30] : memref<9x16x20xbf16, #tpu.memory_space<vmem>>, vector<1x16x20xbf16>
    %38 = vector.shape_cast %37 : vector<1x16x20xbf16> to vector<16x20xbf16>
    %cst_31 = arith.constant dense<0.000000e+00> : vector<36x20xf32>
    %39 = tpu.matmul %36, %38, %cst_31 {dimension_numbers = #tpu.dot_dimension_numbers<[1], [0], [0], [1], [0, 0, 1, 1], [], []>} : vector<36x16xbf16>, vector<16x20xbf16>, vector<36x20xf32> -> vector<36x20xf32>
    %40 = arith.addf %33, %39 : vector<36x20xf32>
    %c0_32 = arith.constant 0 : index
    %c12 = arith.constant 12 : index
    %c0_33 = arith.constant 0 : index
    %41 = vector.load %arg1[%c0_32, %c12, %c0_33] : memref<1x50x16xf32, #tpu.memory_space<vmem>>, vector<1x36x16xf32>
    %42 = vector.shape_cast %41 : vector<1x36x16xf32> to vector<36x16xf32>
    %43 = arith.truncf %42 : vector<36x16xf32> to vector<36x16xbf16>
    %c6_34 = arith.constant 6 : index
    %c0_35 = arith.constant 0 : index
    %c0_36 = arith.constant 0 : index
    %44 = vector.load %arg2[%c6_34, %c0_35, %c0_36] : memref<9x16x20xbf16, #tpu.memory_space<vmem>>, vector<1x16x20xbf16>
    %45 = vector.shape_cast %44 : vector<1x16x20xbf16> to vector<16x20xbf16>
    %cst_37 = arith.constant dense<0.000000e+00> : vector<36x20xf32>
    %46 = tpu.matmul %43, %45, %cst_37 {dimension_numbers = #tpu.dot_dimension_numbers<[1], [0], [0], [1], [0, 0, 1, 1], [], []>} : vector<36x16xbf16>, vector<16x20xbf16>, vector<36x20xf32> -> vector<36x20xf32>
    %47 = arith.addf %40, %46 : vector<36x20xf32>
    %c0_38 = arith.constant 0 : index
    %c13 = arith.constant 13 : index
    %c0_39 = arith.constant 0 : index
    %48 = vector.load %arg1[%c0_38, %c13, %c0_39] : memref<1x50x16xf32, #tpu.memory_space<vmem>>, vector<1x36x16xf32>
    %49 = vector.shape_cast %48 : vector<1x36x16xf32> to vector<36x16xf32>
    %50 = arith.truncf %49 : vector<36x16xf32> to vector<36x16xbf16>
    %c7_40 = arith.constant 7 : index
    %c0_41 = arith.constant 0 : index
    %c0_42 = arith.constant 0 : index
    %51 = vector.load %arg2[%c7_40, %c0_41, %c0_42] : memref<9x16x20xbf16, #tpu.memory_space<vmem>>, vector<1x16x20xbf16>
    %52 = vector.shape_cast %51 : vector<1x16x20xbf16> to vector<16x20xbf16>
    %cst_43 = arith.constant dense<0.000000e+00> : vector<36x20xf32>
    %53 = tpu.matmul %50, %52, %cst_43 {dimension_numbers = #tpu.dot_dimension_numbers<[1], [0], [0], [1], [0, 0, 1, 1], [], []>} : vector<36x16xbf16>, vector<16x20xbf16>, vector<36x20xf32> -> vector<36x20xf32>
    %54 = arith.addf %47, %53 : vector<36x20xf32>
    %c0_44 = arith.constant 0 : index
    %c14 = arith.constant 14 : index
    %c0_45 = arith.constant 0 : index
    %55 = vector.load %arg1[%c0_44, %c14, %c0_45] : memref<1x50x16xf32, #tpu.memory_space<vmem>>, vector<1x36x16xf32>
    %56 = vector.shape_cast %55 : vector<1x36x16xf32> to vector<36x16xf32>
    %57 = arith.truncf %56 : vector<36x16xf32> to vector<36x16xbf16>
    %c8_46 = arith.constant 8 : index
    %c0_47 = arith.constant 0 : index
    %c0_48 = arith.constant 0 : index
    %58 = vector.load %arg2[%c8_46, %c0_47, %c0_48] : memref<9x16x20xbf16, #tpu.memory_space<vmem>>, vector<1x16x20xbf16>
    %59 = vector.shape_cast %58 : vector<1x16x20xbf16> to vector<16x20xbf16>
    %cst_49 = arith.constant dense<0.000000e+00> : vector<36x20xf32>
    %60 = tpu.matmul %57, %59, %cst_49 {dimension_numbers = #tpu.dot_dimension_numbers<[1], [0], [0], [1], [0, 0, 1, 1], [], []>} : vector<36x16xbf16>, vector<16x20xbf16>, vector<36x20xf32> -> vector<36x20xf32>
    %61 = arith.addf %54, %60 : vector<36x20xf32>
    %c0_50 = arith.constant 0 : index
    %c0_51 = arith.constant 0 : index
    %62 = vector.load %arg3[%c0_50, %c0_51] : memref<1x20xf32, #tpu.memory_space<vmem>>, vector<1x20xf32>
    %63 = vector.broadcast %62 : vector<1x20xf32> to vector<36x20xf32>
    %64 = arith.addf %61, %63 : vector<36x20xf32>
    %c0_52 = arith.constant 0 : index
    %c0_53 = arith.constant 0 : index
    %c0_54 = arith.constant 0 : index
    %65 = vector.load %arg4[%c0_52, %c0_53, %c0_54] : memref<1x36x20xf32, #tpu.memory_space<vmem>>, vector<1x36x20xf32>
    %66 = vector.shape_cast %65 : vector<1x36x20xf32> to vector<36x20xf32>
    %67 = vector.shape_cast %64 : vector<36x20xf32> to vector<1x36x20xf32>
    tpu.vector_store %arg4[%c0_52, %c0_53, %c0_54], %67 {strides = array<i32>} : memref<1x36x20xf32, #tpu.memory_space<vmem>>, vector<1x36x20xf32>,
    return
  }
  func.func @transform_0(%arg0: i32) -> (i32, i32, i32) {
    %c0_i32 = arith.constant 0 : i32
    %c0_i32_0 = arith.constant 0 : i32
    %c0_i32_1 = arith.constant 0 : i32
    return %arg0, %c0_i32, %c0_i32_0 : i32, i32, i32
  }
  func.func @transform_1(%arg0: i32) -> (i32, i32, i32) {
    %c0_i32 = arith.constant 0 : i32
    %c0_i32_0 = arith.constant 0 : i32
    %c0_i32_1 = arith.constant 0 : i32
    %c0_i32_2 = arith.constant 0 : i32
    return %c0_i32, %c0_i32_0, %c0_i32_1 : i32, i32, i32
  }
  func.func @transform_2(%arg0: i32) -> (i32, i32) {
    %c0_i32 = arith.constant 0 : i32
    %c0_i32_0 = arith.constant 0 : i32
    %c0_i32_1 = arith.constant 0 : i32
    return %c0_i32, %c0_i32_0 : i32, i32
  }
  func.func @transform_3(%arg0: i32) -> (i32, i32, i32) {
    %c0_i32 = arith.constant 0 : i32
    %c0_i32_0 = arith.constant 0 : i32
    %c0_i32_1 = arith.constant 0 : i32
    return %arg0, %c0_i32, %c0_i32_0 : i32, i32, i32
  }
}

module attributes {stable_mosaic.version = 11 : i64} {
  func.func @_bilinear_kernel(%arg0: i32, %arg1: memref<1x8x40xf32, #tpu.memory_space<vmem>>, %arg2: memref<16x8xf32, #tpu.memory_space<vmem>>, %arg3: memref<40x80xf32, #tpu.memory_space<vmem>>, %arg4: memref<1x16x80xf32, #tpu.memory_space<vmem>>) attributes {dimension_semantics = [#tpu.dimension_semantics<parallel>], iteration_bounds = array<i64: 2>, scalar_prefetch = 0 : i64, scratch_operands = 0 : i64, tpu.core_type = #tpu.core_type<tc>, window_params = [{transform_indices = @transform_0, window_bounds = array<i64: 1, 8, 40>}, {pipeline_mode = #tpu.pipeline_mode<synchronous>, transform_indices = @transform_1, window_bounds = array<i64: 16, 8>}, {pipeline_mode = #tpu.pipeline_mode<synchronous>, transform_indices = @transform_2, window_bounds = array<i64: 40, 80>}, {transform_indices = @transform_3, window_bounds = array<i64: 1, 16, 80>}]} {
    %c0 = arith.constant 0 : index
    %c0_0 = arith.constant 0 : index
    %0 = vector.load %arg2[%c0, %c0_0] : memref<16x8xf32, #tpu.memory_space<vmem>>, vector<16x8xf32>
    %c0_1 = arith.constant 0 : index
    %c0_2 = arith.constant 0 : index
    %c0_3 = arith.constant 0 : index
    %1 = vector.load %arg1[%c0_1, %c0_2, %c0_3] : memref<1x8x40xf32, #tpu.memory_space<vmem>>, vector<1x8x40xf32>
    %2 = vector.shape_cast %1 : vector<1x8x40xf32> to vector<8x40xf32>
    %cst = arith.constant dense<0.000000e+00> : vector<16x40xf32>
    %3 = tpu.matmul %0, %2, %cst {dimension_numbers = #tpu.dot_dimension_numbers<[1], [0], [0], [1], [0, 0, 1, 1], [], []>} : vector<16x8xf32>, vector<8x40xf32>, vector<16x40xf32> -> vector<16x40xf32>
    %c0_4 = arith.constant 0 : index
    %c0_5 = arith.constant 0 : index
    %4 = vector.load %arg3[%c0_4, %c0_5] : memref<40x80xf32, #tpu.memory_space<vmem>>, vector<40x80xf32>
    %cst_6 = arith.constant dense<0.000000e+00> : vector<16x80xf32>
    %5 = tpu.matmul %3, %4, %cst_6 {dimension_numbers = #tpu.dot_dimension_numbers<[1], [0], [0], [1], [0, 0, 1, 1], [], []>} : vector<16x40xf32>, vector<40x80xf32>, vector<16x80xf32> -> vector<16x80xf32>
    %c0_7 = arith.constant 0 : index
    %c0_8 = arith.constant 0 : index
    %c0_9 = arith.constant 0 : index
    %6 = vector.load %arg4[%c0_7, %c0_8, %c0_9] : memref<1x16x80xf32, #tpu.memory_space<vmem>>, vector<1x16x80xf32>
    %7 = vector.shape_cast %6 : vector<1x16x80xf32> to vector<16x80xf32>
    %8 = vector.shape_cast %5 : vector<16x80xf32> to vector<1x16x80xf32>
    tpu.vector_store %arg4[%c0_7, %c0_8, %c0_9], %8 {strides = array<i32>} : memref<1x16x80xf32, #tpu.memory_space<vmem>>, vector<1x16x80xf32>,
    return
  }
  func.func @transform_0(%arg0: i32) -> (i32, i32, i32) {
    %c0_i32 = arith.constant 0 : i32
    %c0_i32_0 = arith.constant 0 : i32
    %c0_i32_1 = arith.constant 0 : i32
    return %arg0, %c0_i32, %c0_i32_0 : i32, i32, i32
  }
  func.func @transform_1(%arg0: i32) -> (i32, i32) {
    %c0_i32 = arith.constant 0 : i32
    %c0_i32_0 = arith.constant 0 : i32
    %c0_i32_1 = arith.constant 0 : i32
    return %c0_i32, %c0_i32_0 : i32, i32
  }
  func.func @transform_2(%arg0: i32) -> (i32, i32) {
    %c0_i32 = arith.constant 0 : i32
    %c0_i32_0 = arith.constant 0 : i32
    %c0_i32_1 = arith.constant 0 : i32
    return %c0_i32, %c0_i32_0 : i32, i32
  }
  func.func @transform_3(%arg0: i32) -> (i32, i32, i32) {
    %c0_i32 = arith.constant 0 : i32
    %c0_i32_0 = arith.constant 0 : i32
    %c0_i32_1 = arith.constant 0 : i32
    return %arg0, %c0_i32, %c0_i32_0 : i32, i32, i32
  }
}

</mosaic_0001>

<bundles_post_ra>
// kernel: _lambda_.5
= control target key start
LH: loop header
LB: loop body
LE: loop exit
PB: predicated region body
PF: predicated region fallthrough
CT: control target
= control target key end

     0   :  { %s1223_s15 = smov 0   ;;  %s1516_s0 = inlined_call_operand.vmem [shape: f32[2,111,32], index: 0, kind: input, shape index: {}]   ;;  %s1517_s1 = inlined_call_operand.vmem [shape: bf16[4,32,8], index: 1, kind: input, shape index: {}]   ;;  %s1518_s2 = inlined_call_operand.vmem [shape: f32[1,8], index: 2, kind: input, shape index: {}]   ;;  %s1519_s3 = inlined_call_operand.vmem [shape: f32[1,8], index: 3, kind: input, shape index: {}]   ;;  %s1520_s4 = inlined_call_operand.vmem [shape: f32[2,100,8], index: 4, kind: output, shape index: {}]  }
   0x1 LB: > { %s945_s16 = sadd.s32 4294967295, %s1194_s15   ;;  %p949_p0 = scmp.ge.s32.totalorder %s1194_s15, 1  ;;  %s1194_s15 = sphi %s1223_s15, %s14_s15  }
   0x2   : > { %p162_p1 = scmp.lt.s32.totalorder %s1194_s15, 3 }
   0x4   : > { %p163_p2 = pnand %p949_p0, %p162_p1 }
   0x5   : > { %v1180_v0 = vld [vmem:[%s1517_s1 + $0x10] sm:$0xff] (!%p163_p2)   ;;  %v1196_v1 = vmov (!%p163_p2), 0.0   ;;  %v1181_v2 = vld [vmem:[%s1517_s1] sm:$0xff] (!%p163_p2)   ;;  %v1182_v3 = vld [vmem:[%s1517_s1 + $0x18] sm:$0xff] (!%p163_p2)   ;;  %vm1197_vm0 = vmmov (!%p163_p2), 0   ;;  %p188_p3 = scmp.lt.s32.totalorder (!%p163_p2), %s945_s16, 1 }
   0x6   : > { %166 = sbr.rel (%p163_p2) target bundleno = 346 (0x15a), region = 36  ;;  %1040 = vmatprep.subr.bf16.mxu0 (!%p163_p2), %v1196_v1  ;;  %1072 = vmatprep.subr.bf16.mxu1 (!%p163_p2), %v1196_v1  ;;  %v1183_v4 = vld [vmem:[%s1517_s1 + $0x8] sm:$0xff] (!%p163_p2)   ;;  %v1184_v5 = vld [vmem:[%s1517_s1 + $0x20] sm:$0xff] (!%p163_p2)   ;;  %vm260_vm1 = vcmask (!%p163_p2), 261120   ;;  %v1185_v11 = vld [vmem:[%s1517_s1 + $0x30] sm:$0xff] (!%p163_p2)   ;;  %vm875_vm3 = vcmask (!%p163_p2), 64512  }
   0x7   : > { %1041 = vmatpush3.bf16.msra.mxu0 (!%p163_p2), %v1180_v0  ;;  %1044 = vmatprep.mubr.msk.bf16.mxu0 (!%p163_p2), %vm1197_vm0, %v1196_v1  ;;  %v1186_v15 = vld [vmem:[%s1517_s1 + $0x28] sm:$0xff] (!%p163_p2)   ;;  %v1187_v18 = vld [vmem:[%s1517_s1 + $0x38] sm:$0xff] (!%p163_p2)  }
   0x8   : > { %1073 = vmatpush3.bf16.msra.mxu1 (!%p163_p2), %v1181_v2  ;;  %1042 = vmatprep.subr.bf16.mxu0 (!%p163_p2), %v1196_v1 }
   0x9   : > { %1074 = vmatprep.subr.bf16.mxu1 (!%p163_p2), %v1196_v1  ;;  %1076 = vmatprep.mubr.msk.bf16.mxu1 (!%p163_p2), %vm1197_vm0, %v1196_v1 }
   0xb   : > { %1043 = vmatpush3.bf16.msra.mxu0 (!%p163_p2), %v1182_v3 }
   0xc   : > { %1075 = vmatpush3.bf16.msra.mxu1 (!%p163_p2), %v1183_v4  ;;  %1104 = vmatprep.subr.bf16.mxu0 (!%p163_p2), %v1196_v1 }
   0xd   : > { %s1522_s16 = smov (!%p188_p3, %s945_s16), 1  ;;  %1136 = vmatprep.subr.bf16.mxu1 %v1196_v1 }
   0xe   : > { %s1168_s25 = smul.u32 112, %s1522_s16 }
   0xf   : > { %s1169_s13 = smul.u32 104, %s1522_s16 }
  0x10   : > { %s1258_s28 = scalar_lea.vmem %s1516_s0, %s1168_s25 }
  0x11   : > { %v223_v6 = vld [vmem:[%s1258_s28 + $0x1] sm:$0xff]  ;;  %v224_v7 = vld [vmem:[%s1258_s28 + $0x9] sm:$0xff]  ;;  %v225_v13 = vld [vmem:[%s1258_s28 + $0x11] sm:$0xff]  ;;  %s1450_s20 = scalar_lea.vmem %s1520_s4, %s1169_s13 }
  0x12   : > { %v199_v8 = vld [vmem:[%s1258_s28] sm:$0xff]  ;;  %v236_v9 = vpack.c.bf16 %v224_v7, %v223_v6  ;;  %v200_v10 = vld [vmem:[%s1258_s28 + $0x8] sm:$0xff]  ;;  %v201_v16 = vld [vmem:[%s1258_s28 + $0x10] sm:$0xff] }
  0x13   : > { %v212_v12 = vpack.c.bf16 %v200_v10, %v199_v8  ;;  %v226_v14 = vld [vmem:[%s1258_s28 + $0x19] sm:$0xff]  ;;  %v227_v21 = vld [vmem:[%s1258_s28 + $0x21] sm:$0xff]  ;;  %v228_v22 = vld [vmem:[%s1258_s28 + $0x29] sm:$0xff] }
  0x14   : > { %1045 = vmatmul.mubr.msk.bf16.vlgmr.msra.gmra.mrb[0].mxu0 %vm260_vm1, %v236_v9  ;;  %v202_v17 = vld [vmem:[%s1258_s28 + $0x18] sm:$0xff]  ;;  %v237_v19 = vpack.c.bf16 %v226_v14, %v225_v13  ;;  %v203_v23 = vld [vmem:[%s1258_s28 + $0x20] sm:$0xff]  ;;  %v204_v24 = vld [vmem:[%s1258_s28 + $0x28] sm:$0xff]  ;;  %v238_v25 = vpack.c.bf16 %v228_v22, %v227_v21 }
  0x15   : > { %1077 = vmatmul.mubr.msk.bf16.vlgmr.msra.gmra.mrb[0].mxu1 %vm260_vm1, %v212_v12  ;;  %1105 = vmatpush3.bf16.msra.mxu0 %v1184_v5  ;;  %v213_v20 = vpack.c.bf16 %v202_v17, %v201_v16  ;;  %v214_v26 = vpack.c.bf16 %v204_v24, %v203_v23  ;;  %v229_v27 = vld [vmem:[%s1258_s28 + $0x31] sm:$0xff]  ;;  %v230_v28 = vld [vmem:[%s1258_s28 + $0x39] sm:$0xff]  ;;  %v231_v33 = vld [vmem:[%s1258_s28 + $0x41] sm:$0xff] }
  0x16   : > { %1137 = vmatpush3.bf16.msra.mxu1 %v1185_v11  ;;  %1048 = vmatprep.mubr.msk.bf16.mxu0 %vm1197_vm0, %v1196_v1  ;;  %v205_v29 = vld [vmem:[%s1258_s28 + $0x30] sm:$0xff]  ;;  %v206_v30 = vld [vmem:[%s1258_s28 + $0x38] sm:$0xff]  ;;  %v239_v31 = vpack.c.bf16 %v230_v28, %v229_v27  ;;  %v207_v35 = vld [vmem:[%s1258_s28 + $0x40] sm:$0xff] }
  0x17   : > { %1080 = vmatprep.mubr.msk.bf16.mxu1 %vm1197_vm0, %v1196_v1  ;;  %1106 = vmatprep.subr.bf16.mxu0 %v1196_v1  ;;  %v215_v32 = vpack.c.bf16 %v206_v30, %v205_v29  ;;  %v232_v34 = vld [vmem:[%s1258_s28 + $0x49] sm:$0xff]  ;;  %v233_v39 = vld [vmem:[%s1258_s28 + $0x51] sm:$0xff]  ;;  %v234_v40 = vld [vmem:[%s1258_s28 + $0x59] sm:$0xff] }
  0x18   : > { %1138 = vmatprep.subr.bf16.mxu1 %v1196_v1  ;;  %v208_v36 = vld [vmem:[%s1258_s28 + $0x48] sm:$0xff]  ;;  %v240_v37 = vpack.c.bf16 %v232_v34, %v231_v33  ;;  %v209_v41 = vld [vmem:[%s1258_s28 + $0x50] sm:$0xff]  ;;  %v210_v42 = vld [vmem:[%s1258_s28 + $0x58] sm:$0xff]  ;;  %v241_v43 = vpack.c.bf16 %v234_v40, %v233_v39 }
  0x19   : > { %1107 = vmatpush3.bf16.msra.mxu0 %v1186_v15  ;;  %v216_v38 = vpack.c.bf16 %v208_v36, %v207_v35  ;;  %v217_v44 = vpack.c.bf16 %v210_v42, %v209_v41  ;;  %v235_v45 = vld [vmem:[%s1258_s28 + $0x61] sm:$0xf]  ;;  %v491_v49 = vld [vmem:[%s1258_s28 + $0xa] sm:$0xff]  ;;  %v492_v50 = vld [vmem:[%s1258_s28 + $0x12] sm:$0xff] }
  0x1a   : > { %1139 = vmatpush3.bf16.msra.mxu1 %v1187_v18  ;;  %v211_v46 = vld [vmem:[%s1258_s28 + $0x60] sm:$0xf]  ;;  %v242_v47 = vpack.c.bf16 %v235_v45, %v235_v45  ;;  %v650_v51 = vld [vmem:[%s1258_s28 + $0xb] sm:$0xff]  ;;  %v651_v52 = vld [vmem:[%s1258_s28 + $0x13] sm:$0xff]  ;;  %v504_v53 = vpack.c.bf16 %v492_v50, %v491_v49 }
  0x1b   : > { %v218_v48 = vpack.c.bf16 %v211_v46, %v211_v46  ;;  %v663_v54 = vpack.c.bf16 %v651_v52, %v650_v51  ;;  %v493_v55 = vld [vmem:[%s1258_s28 + $0x1a] sm:$0xff]  ;;  %v494_v56 = vld [vmem:[%s1258_s28 + $0x22] sm:$0xff]  ;;  %v495_v61 = vld [vmem:[%s1258_s28 + $0x2a] sm:$0xff] }
  0x1c   : > { %1049 = vmatmul.mubr.msk.bf16.gmra.mrb[4].mxu0 %vm260_vm1, %v237_v19  ;;  %v652_v57 = vld [vmem:[%s1258_s28 + $0x1b] sm:$0xff]  ;;  %v653_v58 = vld [vmem:[%s1258_s28 + $0x23] sm:$0xff]  ;;  %v505_v59 = vpack.c.bf16 %v494_v56, %v493_v55  ;;  %v496_v62 = vld [vmem:[%s1258_s28 + $0x32] sm:$0xff] }
  0x1d   : > { %1081 = vmatmul.mubr.msk.bf16.gmra.mrb[4].mxu1 %vm260_vm1, %v213_v20  ;;  %1052 = vmatprep.mubr.msk.bf16.mxu0 %vm1197_vm0, %v1196_v1  ;;  %v664_v60 = vpack.c.bf16 %v653_v58, %v652_v57  ;;  %v654_v63 = vld [vmem:[%s1258_s28 + $0x2b] sm:$0xff]  ;;  %v655_v0 = vld [vmem:[%s1258_s28 + $0x33] sm:$0xff]  ;;  %v506_v2 = vpack.c.bf16 %v496_v62, %v495_v61  ;;  %v498_v5 = vld [vmem:[%s1258_s28 + $0x42] sm:$0xff] }
  0x1e   : > { %1084 = vmatprep.mubr.msk.bf16.mxu1 %vm1197_vm0, %v1196_v1  ;;  %v665_v3 = vpack.c.bf16 %v655_v0, %v654_v63  ;;  %v497_v4 = vld [vmem:[%s1258_s28 + $0x3a] sm:$0xff]  ;;  %v657_v7 = vld [vmem:[%s1258_s28 + $0x43] sm:$0xff]  ;;  %v500_v11 = vld [vmem:[%s1258_s28 + $0x52] sm:$0xff] }
  0x1f   : > { %v656_v6 = vld [vmem:[%s1258_s28 + $0x3b] sm:$0xff]  ;;  %v507_v8 = vpack.c.bf16 %v498_v5, %v497_v4  ;;  %v499_v10 = vld [vmem:[%s1258_s28 + $0x4a] sm:$0xff]  ;;  %v659_v13 = vld [vmem:[%s1258_s28 + $0x53] sm:$0xff] }
  0x20   : > { %v666_v9 = vpack.c.bf16 %v657_v7, %v656_v6  ;;  %v658_v12 = vld [vmem:[%s1258_s28 + $0x4b] sm:$0xff]  ;;  %v508_v14 = vpack.c.bf16 %v500_v11, %v499_v10  ;;  %v501_v16 = vld [vmem:[%s1258_s28 + $0x5a] sm:$0xff]  ;;  %v502_v17 = vld [vmem:[%s1258_s28 + $0x62] sm:$0xff] }
  0x21   : > { %v667_v15 = vpack.c.bf16 %v659_v13, %v658_v12  ;;  %v660_v18 = vld [vmem:[%s1258_s28 + $0x5b] sm:$0xff]  ;;  %v661_v19 = vld [vmem:[%s1258_s28 + $0x63] sm:$0xff]  ;;  %v509_v20 = vpack.c.bf16 %v502_v17, %v501_v16  ;;  %v662_v23 = vld [vmem:[%s1258_s28 + $0x6b] sm:$0xf] }
  0x22   : > { %v668_v21 = vpack.c.bf16 %v661_v19, %v660_v18  ;;  %v503_v22 = vld [vmem:[%s1258_s28 + $0x6a] sm:$0xf] }
  0x23   : > { %v510_v24 = vpack.c.bf16 %v503_v22, %v503_v22 }
  0x24   : > { %1053 = vmatmul.mubr.msk.bf16.gmra.mrb[8].mxu0 %vm260_vm1, %v238_v25  ;;  %v669_v25 = vpack.c.bf16 %v662_v23, %v662_v23 }
  0x25   : > { %1085 = vmatmul.mubr.msk.bf16.gmra.mrb[8].mxu1 %vm260_vm1, %v214_v26  ;;  %1056 = vmatprep.mubr.msk.bf16.mxu0 %vm1197_vm0, %v1196_v1 }
  0x26   : > { %1088 = vmatprep.mubr.msk.bf16.mxu1 %vm1197_vm0, %v1196_v1 }
  0x2c   : > { %1057 = vmatmul.mubr.msk.bf16.gmra.mrb[12].mxu0 %vm260_vm1, %v239_v31 }
  0x2d   : > { %1089 = vmatmul.mubr.msk.bf16.gmra.mrb[12].mxu1 %vm260_vm1, %v215_v32  ;;  %1060 = vmatprep.mubr.msk.bf16.mxu0 %vm1197_vm0, %v1196_v1 }
  0x2e   : > { %1092 = vmatprep.mubr.msk.bf16.mxu1 %vm1197_vm0, %v1196_v1 }
  0x34   : > { %1061 = vmatmul.mubr.msk.bf16.gmra.mrb[16].mxu0 %vm260_vm1, %v240_v37 }
  0x35   : > { %1093 = vmatmul.mubr.msk.bf16.gmra.mrb[16].mxu1 %vm260_vm1, %v216_v38  ;;  %1064 = vmatprep.mubr.msk.bf16.mxu0 %vm1197_vm0, %v1196_v1 }
  0x36   : > { %1096 = vmatprep.mubr.msk.bf16.mxu1 %vm1197_vm0, %v1196_v1 }
  0x3c   : > { %1065 = vmatmul.mubr.msk.bf16.gmra.mrb[20].mxu0 %vm260_vm1, %v241_v43 }
  0x3d   : > { %1097 = vmatmul.mubr.msk.bf16.gmra.mrb[20].mxu1 %vm260_vm1, %v217_v44  ;;  %1068 = vmatprep.mubr.msk.bf16.mxu0 %vm1197_vm0, %v1196_v1 }
  0x3e   : > { %1100 = vmatprep.mubr.msk.bf16.mxu1 %vm1197_vm0, %v1196_v1 }
  0x44   : > { %1069 = vmatmul.mubr.msk.bf16.gmra.mrb[24].mxu0 %vm260_vm1, %v242_v47 }
  0x45   : > { %1101 = vmatmul.mubr.msk.bf16.gmra.mrb[24].mxu1 %vm260_vm1, %v218_v48  ;;  %1108 = vmatprep.mubr.msk.bf16.mxu0 %vm1197_vm0, %v1196_v1 }
  0x46   : > { %1140 = vmatprep.mubr.msk.bf16.mxu1 %vm1197_vm0, %v1196_v1 }
  0x4c   : > { %1109 = vmatmul.mubr.msk.bf16.vlgmr.msra.gmra.mrb[28].mxu0 %vm260_vm1, %v504_v53 }
  0x4d   : > { %1141 = vmatmul.mubr.msk.bf16.vlgmr.msra.gmra.mrb[28].mxu1 %vm260_vm1, %v663_v54  ;;  %1112 = vmatprep.mubr.msk.bf16.mxu0 %vm1197_vm0, %v1196_v1 }
  0x4e   : > { %1144 = vmatprep.mubr.msk.bf16.mxu1 %vm1197_vm0, %v1196_v1 }
  0x54   : > { %1113 = vmatmul.mubr.msk.bf16.gmra.mrb[32].mxu0 %vm260_vm1, %v505_v59 }
  0x55   : > { %1145 = vmatmul.mubr.msk.bf16.gmra.mrb[32].mxu1 %vm260_vm1, %v664_v60  ;;  %1116 = vmatprep.mubr.msk.bf16.mxu0 %vm1197_vm0, %v1196_v1 }
  0x56   : > { %1148 = vmatprep.mubr.msk.bf16.mxu1 %vm1197_vm0, %v1196_v1 }
  0x5c   : > { %1117 = vmatmul.mubr.msk.bf16.gmra.mrb[36].mxu0 %vm260_vm1, %v506_v2 }
  0x5d   : > { %1149 = vmatmul.mubr.msk.bf16.gmra.mrb[36].mxu1 %vm260_vm1, %v665_v3  ;;  %1120 = vmatprep.mubr.msk.bf16.mxu0 %vm1197_vm0, %v1196_v1 }
  0x5e   : > { %1152 = vmatprep.mubr.msk.bf16.mxu1 %vm1197_vm0, %v1196_v1 }
  0x64   : > { %1121 = vmatmul.mubr.msk.bf16.gmra.mrb[40].mxu0 %vm260_vm1, %v507_v8 }
  0x65   : > { %1153 = vmatmul.mubr.msk.bf16.gmra.mrb[40].mxu1 %vm260_vm1, %v666_v9  ;;  %1124 = vmatprep.mubr.msk.bf16.mxu0 %vm1197_vm0, %v1196_v1 }
  0x66   : > { %1156 = vmatprep.mubr.msk.bf16.mxu1 %vm1197_vm0, %v1196_v1 }
  0x6c   : > { %1125 = vmatmul.mubr.msk.bf16.gmra.mrb[44].mxu0 %vm260_vm1, %v508_v14 }
  0x6d   : > { %1157 = vmatmul.mubr.msk.bf16.gmra.mrb[44].mxu1 %vm260_vm1, %v667_v15  ;;  %1128 = vmatprep.mubr.msk.bf16.mxu0 %vm1197_vm0, %v1196_v1 }
  0x6e   : > { %1160 = vmatprep.mubr.msk.bf16.mxu1 %vm1197_vm0, %v1196_v1 }
  0x74   : > { %1129 = vmatmul.mubr.msk.bf16.gmra.mrb[48].mxu0 %vm260_vm1, %v509_v20 }
  0x75   : > { %1161 = vmatmul.mubr.msk.bf16.gmra.mrb[48].mxu1 %vm260_vm1, %v668_v21  ;;  %1132 = vmatprep.mubr.msk.bf16.mxu0 %vm1197_vm0, %v1196_v1 }
  0x76   : > { %1164 = vmatprep.mubr.msk.bf16.mxu1 %vm1197_vm0, %v1196_v1  ;;  %vm888_vm0 = vcmask 60416  }
  0x7c   : > { %1133 = vmatmul.mubr.msk.bf16.gmra.mrb[52].mxu0 %vm260_vm1, %v510_v24 }
  0x7d   : > { %1165 = vmatmul.mubr.msk.bf16.gmra.mrb[52].mxu1 %vm260_vm1, %v669_v25 }
  0xe7   : > { %v316_v26 = vpop.f32.mrb[0].mxu0 }
  0xe8   : > { %v437_v27 = vpop.f32.mrb[0].mxu1  ;;  %v1046_v28 = vpop.f32.mrb[1].mxu0 }
  0xe9   : > { %v1407_v29 = vadd.f32 %v437_v27, %v316_v26  ;;  %v1078_v30 = vpop.f32.mrb[1].mxu1  ;;  %v319_v31 = vpop.f32.mrb[2].mxu0 }
  0xea   : > { %v440_v32 = vpop.f32.mrb[2].mxu1  ;;  %v1047_v33 = vpop.f32.mrb[3].mxu0 }
  0xeb   : > { %v1409_v34 = vadd.f32 %v440_v32, %v319_v31  ;;  %v1079_v35 = vpop.f32.mrb[3].mxu1 }
  0xef   : > { %v324_v1 = vpop.f32.mrb[4].mxu0 }
  0xf0   : > { %v445_v36 = vpop.f32.mrb[4].mxu1  ;;  %v1050_v37 = vpop.f32.mrb[5].mxu0 }
  0xf1   : > { %v1411_v38 = vadd.f32 %v445_v36, %v324_v1  ;;  %v1082_v39 = vpop.f32.mrb[5].mxu1  ;;  %v327_v40 = vpop.f32.mrb[6].mxu0  ;;  %v1437_v36 = vld [vmem:[%s1518_s2] ss:$0 sm:$0xff] }
  0xf2   : > { %v448_v41 = vpop.f32.mrb[6].mxu1  ;;  %v1051_v42 = vpop.f32.mrb[7].mxu0 }
  0xf3   : > { %v1413_v43 = vadd.f32 %v448_v41, %v327_v40  ;;  %v1083_v44 = vpop.f32.mrb[7].mxu1 }
  0xf7   : > { %v332_v45 = vpop.f32.mrb[8].mxu0 }
  0xf8   : > { %v453_v46 = vpop.f32.mrb[8].mxu1  ;;  %v1054_v47 = vpop.f32.mrb[9].mxu0 }
  0xf9   : > { %v1415_v48 = vadd.f32 %v453_v46, %v332_v45  ;;  %v1086_v49 = vpop.f32.mrb[9].mxu1  ;;  %v335_v50 = vpop.f32.mrb[10].mxu0  ;;  %v1444_v45 = vld [vmem:[%s1519_s3] ss:$0 sm:$0xff] }
  0xfa   : > { %v456_v51 = vpop.f32.mrb[10].mxu1  ;;  %v1055_v52 = vpop.f32.mrb[11].mxu0 }
  0xfb   : > { %v1417_v53 = vadd.f32 %v456_v51, %v335_v50  ;;  %v1087_v54 = vpop.f32.mrb[11].mxu1 }
  0xff   : > { %v340_v55 = vpop.f32.mrb[12].mxu0 }
 0x100   : > { %v461_v56 = vpop.f32.mrb[12].mxu1  ;;  %v1058_v57 = vpop.f32.mrb[13].mxu0 }
 0x101   : > { %v1419_v58 = vadd.f32 %v461_v56, %v340_v55  ;;  %v1090_v59 = vpop.f32.mrb[13].mxu1  ;;  %v343_v60 = vpop.f32.mrb[14].mxu0 }
 0x102   : > { %v464_v61 = vpop.f32.mrb[14].mxu1  ;;  %v1059_v62 = vpop.f32.mrb[15].mxu0 }
 0x103   : > { %v1421_v63 = vadd.f32 %v464_v61, %v343_v60  ;;  %v1091_v0 = vpop.f32.mrb[15].mxu1 }
 0x107   : > { %v348_v2 = vpop.f32.mrb[16].mxu0 }
 0x108   : > { %v469_v3 = vpop.f32.mrb[16].mxu1  ;;  %v1062_v4 = vpop.f32.mrb[17].mxu0 }
 0x109   : > { %v1423_v5 = vadd.f32 %v469_v3, %v348_v2  ;;  %v1094_v6 = vpop.f32.mrb[17].mxu1  ;;  %v351_v7 = vpop.f32.mrb[18].mxu0 }
 0x10a   : > { %v472_v8 = vpop.f32.mrb[18].mxu1  ;;  %v1063_v9 = vpop.f32.mrb[19].mxu0 }
 0x10b   : > { %v1425_v10 = vadd.f32 %v472_v8, %v351_v7  ;;  %v1095_v11 = vpop.f32.mrb[19].mxu1 }
 0x10f   : > { %v356_v12 = vpop.f32.mrb[20].mxu0 }
 0x110   : > { %v477_v13 = vpop.f32.mrb[20].mxu1  ;;  %v1066_v14 = vpop.f32.mrb[21].mxu0 }
 0x111   : > { %v1427_v15 = vadd.f32 %v477_v13, %v356_v12  ;;  %v1098_v16 = vpop.f32.mrb[21].mxu1  ;;  %v359_v17 = vpop.f32.mrb[22].mxu0 }
 0x112   : > { %v480_v18 = vpop.f32.mrb[22].mxu1  ;;  %v1067_v19 = vpop.f32.mrb[23].mxu0 }
 0x113   : > { %v1429_v20 = vadd.f32 %v480_v18, %v359_v17  ;;  %v1099_v21 = vpop.f32.mrb[23].mxu1 }
 0x117   : > { %v364_v22 = vpop.f32.mrb[24].mxu0 }
 0x118   : > { %v485_v23 = vpop.f32.mrb[24].mxu1  ;;  %v1070_v24 = vpop.f32.mrb[25].mxu0 }
 0x119   : > { %v1431_v25 = vadd.f32 %v485_v23, %v364_v22  ;;  %v1102_v26 = vpop.f32.mrb[25].mxu1  ;;  %v367_v27 = vpop.f32.mrb[26].mxu0 }
 0x11a   : > { %v488_v28 = vpop.f32.mrb[26].mxu1  ;;  %v1071_v30 = vpop.f32.mrb[27].mxu0 }
 0x11b   : > { %v1103_v31 = vpop.f32.mrb[27].mxu1 }
 0x11f   : > { %v583_v32 = vpop.f32.mrb[28].mxu0 }
 0x120   : > { %v637_v33 = vadd.f32 %v583_v32, %v1407_v29  ;;  %v742_v35 = vpop.f32.mrb[28].mxu1  ;;  %v1110_v1 = vpop.f32.mrb[29].mxu0 }
 0x121   : > { %v1142_v37 = vpop.f32.mrb[29].mxu1  ;;  %v586_v39 = vpop.f32.mrb[30].mxu0 }
 0x122   : > { %v796_v40 = vadd.f32 %v742_v35, %v637_v33  ;;  %v638_v41 = vadd.f32 %v586_v39, %v1409_v34  ;;  %v745_v42 = vpop.f32.mrb[30].mxu1  ;;  %v1111_v44 = vpop.f32.mrb[31].mxu0 }
 0x123   : > { %v1143_v29 = vpop.f32.mrb[31].mxu1 }
 0x124   : > { %v816_v46 = vadd.f32 %v1437_v36, %v796_v40  ;;  %v797_v47 = vadd.f32 %v745_v42, %v638_v41 }
 0x126   : > { %vm829_vm2 = vcmp.ge.f32.partialorder %v816_v46, 0.0  ;;  %v849_v34 = vmul.f32 %v1444_v45, %v816_v46  ;;  %v817_v49 = vadd.f32 %v1437_v36, %v797_v47 }
 0x127   : > { %v591_v50 = vpop.f32.mrb[32].mxu0 }
 0x128   : > { %v862_v51 = vsel %vm829_vm2, %v816_v46, %v849_v34  ;;  %vm830_vm4 = vcmp.ge.f32.partialorder %v817_v49, 0.0  ;;  %v850_v52 = vmul.f32 %v1444_v45, %v817_v49  ;;  %v639_v54 = vadd.f32 %v591_v50, %v1411_v38  ;;  %v750_v55 = vpop.f32.mrb[32].mxu1  ;;  %v1114_v56 = vpop.f32.mrb[33].mxu0 }
 0x129   : > { %876 = vst.msk [vmem:[%s1450_s20] sm:$0xff] %vm875_vm3, %v862_v51  ;;  %v1146_v57 = vpop.f32.mrb[33].mxu1  ;;  %v594_v59 = vpop.f32.mrb[34].mxu0 }
 0x12a   : > { %v863_v60 = vsel %vm830_vm4, %v817_v49, %v850_v52  ;;  %v798_v61 = vadd.f32 %v750_v55, %v639_v54  ;;  %v640_v62 = vadd.f32 %v594_v59, %v1413_v43  ;;  %v753_v0 = vpop.f32.mrb[34].mxu1  ;;  %v1115_v2 = vpop.f32.mrb[35].mxu0 }
 0x12b   : > { %877 = vst.msk [vmem:[%s1450_s20 + $0x8] sm:$0xff] %vm875_vm3, %v863_v60  ;;  %v1147_v3 = vpop.f32.mrb[35].mxu1 }
 0x12c   : > { %v818_v4 = vadd.f32 %v1437_v36, %v798_v61  ;;  %v799_v6 = vadd.f32 %v753_v0, %v640_v62 }
 0x12e   : > { %vm831_vm5 = vcmp.ge.f32.partialorder %v818_v4, 0.0  ;;  %v851_v38 = vmul.f32 %v1444_v45, %v818_v4  ;;  %v819_v7 = vadd.f32 %v1437_v36, %v799_v6 }
 0x12f   : > { %v599_v8 = vpop.f32.mrb[36].mxu0 }
 0x130   : > { %v864_v9 = vsel %vm831_vm5, %v818_v4, %v851_v38  ;;  %vm832_vm6 = vcmp.ge.f32.partialorder %v819_v7, 0.0  ;;  %v852_v43 = vmul.f32 %v1444_v45, %v819_v7  ;;  %v641_v11 = vadd.f32 %v599_v8, %v1415_v48  ;;  %v758_v12 = vpop.f32.mrb[36].mxu1  ;;  %v1118_v13 = vpop.f32.mrb[37].mxu0 }
 0x131   : > { %878 = vst.msk [vmem:[%s1450_s20 + $0x10] sm:$0xff] %vm875_vm3, %v864_v9  ;;  %v1150_v14 = vpop.f32.mrb[37].mxu1  ;;  %v602_v16 = vpop.f32.mrb[38].mxu0 }
 0x132   : > { %v865_v17 = vsel %vm832_vm6, %v819_v7, %v852_v43  ;;  %v800_v18 = vadd.f32 %v758_v12, %v641_v11  ;;  %v642_v19 = vadd.f32 %v602_v16, %v1417_v53  ;;  %v761_v21 = vpop.f32.mrb[38].mxu1  ;;  %v1119_v22 = vpop.f32.mrb[39].mxu0 }
 0x133   : > { %879 = vst.msk [vmem:[%s1450_s20 + $0x18] sm:$0xff] %vm875_vm3, %v865_v17  ;;  %v1151_v23 = vpop.f32.mrb[39].mxu1 }
 0x134   : > { %v820_v24 = vadd.f32 %v1437_v36, %v800_v18  ;;  %v801_v26 = vadd.f32 %v761_v21, %v642_v19 }
 0x136   : > { %vm833_vm7 = vcmp.ge.f32.partialorder %v820_v24, 0.0  ;;  %v853_v48 = vmul.f32 %v1444_v45, %v820_v24  ;;  %v821_v27 = vadd.f32 %v1437_v36, %v801_v26 }
 0x137   : > { %v607_v28 = vpop.f32.mrb[40].mxu0 }
 0x138   : > { %v866_v30 = vsel %vm833_vm7, %v820_v24, %v853_v48  ;;  %vm834_vm8 = vcmp.ge.f32.partialorder %v821_v27, 0.0  ;;  %v854_v53 = vmul.f32 %v1444_v45, %v821_v27  ;;  %v643_v31 = vadd.f32 %v607_v28, %v1419_v58  ;;  %v766_v32 = vpop.f32.mrb[40].mxu1  ;;  %v1122_v33 = vpop.f32.mrb[41].mxu0 }
 0x139   : > { %880 = vst.msk [vmem:[%s1450_s20 + $0x20] sm:$0xff] %vm875_vm3, %v866_v30  ;;  %v1154_v35 = vpop.f32.mrb[41].mxu1  ;;  %v610_v1 = vpop.f32.mrb[42].mxu0 }
 0x13a   : > { %v867_v37 = vsel %vm834_vm8, %v821_v27, %v854_v53  ;;  %v802_v39 = vadd.f32 %v766_v32, %v643_v31  ;;  %v644_v40 = vadd.f32 %v610_v1, %v1421_v63  ;;  %v769_v41 = vpop.f32.mrb[42].mxu1  ;;  %v1123_v42 = vpop.f32.mrb[43].mxu0 }
 0x13b   : > { %881 = vst.msk [vmem:[%s1450_s20 + $0x28] sm:$0xff] %vm875_vm3, %v867_v37  ;;  %v1155_v44 = vpop.f32.mrb[43].mxu1 }
 0x13c   : > { %v822_v29 = vadd.f32 %v1437_v36, %v802_v39  ;;  %v803_v46 = vadd.f32 %v769_v41, %v644_v40 }
 0x13e   : > { %vm835_vm9 = vcmp.ge.f32.partialorder %v822_v29, 0.0  ;;  %v855_v58 = vmul.f32 %v1444_v45, %v822_v29  ;;  %v823_v47 = vadd.f32 %v1437_v36, %v803_v46 }
 0x13f   : > { %v615_v34 = vpop.f32.mrb[44].mxu0 }
 0x140   : > { %v868_v49 = vsel %vm835_vm9, %v822_v29, %v855_v58  ;;  %vm836_vm10 = vcmp.ge.f32.partialorder %v823_v47, 0.0  ;;  %v856_v63 = vmul.f32 %v1444_v45, %v823_v47  ;;  %v645_v50 = vadd.f32 %v615_v34, %v1423_v5  ;;  %v774_v51 = vpop.f32.mrb[44].mxu1  ;;  %v1126_v52 = vpop.f32.mrb[45].mxu0 }
 0x141   : > { %882 = vst.msk [vmem:[%s1450_s20 + $0x30] sm:$0xff] %vm875_vm3, %v868_v49  ;;  %v1158_v54 = vpop.f32.mrb[45].mxu1  ;;  %v618_v55 = vpop.f32.mrb[46].mxu0 }
 0x142   : > { %v869_v56 = vsel %vm836_vm10, %v823_v47, %v856_v63  ;;  %v804_v57 = vadd.f32 %v774_v51, %v645_v50  ;;  %v646_v59 = vadd.f32 %v618_v55, %v1425_v10  ;;  %v777_v60 = vpop.f32.mrb[46].mxu1  ;;  %v1127_v61 = vpop.f32.mrb[47].mxu0 }
 0x143   : > { %883 = vst.msk [vmem:[%s1450_s20 + $0x38] sm:$0xff] %vm875_vm3, %v869_v56  ;;  %v1159_v62 = vpop.f32.mrb[47].mxu1 }
 0x144   : > { %v824_v0 = vadd.f32 %v1437_v36, %v804_v57  ;;  %v805_v2 = vadd.f32 %v777_v60, %v646_v59 }
 0x146   : > { %vm837_vm11 = vcmp.ge.f32.partialorder %v824_v0, 0.0  ;;  %v857_v5 = vmul.f32 %v1444_v45, %v824_v0  ;;  %v825_v3 = vadd.f32 %v1437_v36, %v805_v2 }
 0x147   : > { %v623_v4 = vpop.f32.mrb[48].mxu0 }
 0x148   : > { %v870_v6 = vsel %vm837_vm11, %v824_v0, %v857_v5  ;;  %vm838_vm12 = vcmp.ge.f32.partialorder %v825_v3, 0.0  ;;  %v858_v10 = vmul.f32 %v1444_v45, %v825_v3  ;;  %v647_v38 = vadd.f32 %v623_v4, %v1427_v15  ;;  %v782_v7 = vpop.f32.mrb[48].mxu1  ;;  %v1130_v8 = vpop.f32.mrb[49].mxu0 }
 0x149   : > { %884 = vst.msk [vmem:[%s1450_s20 + $0x40] sm:$0xff] %vm875_vm3, %v870_v6  ;;  %v1162_v9 = vpop.f32.mrb[49].mxu1  ;;  %v626_v43 = vpop.f32.mrb[50].mxu0 }
 0x14a   : > { %v871_v11 = vsel %vm838_vm12, %v825_v3, %v858_v10  ;;  %v806_v12 = vadd.f32 %v782_v7, %v647_v38  ;;  %v648_v13 = vadd.f32 %v626_v43, %v1429_v20  ;;  %v785_v14 = vpop.f32.mrb[50].mxu1  ;;  %v1131_v16 = vpop.f32.mrb[51].mxu0 }
 0x14b   : > { %885 = vst.msk [vmem:[%s1450_s20 + $0x48] sm:$0xff] %vm875_vm3, %v871_v11  ;;  %v1163_v17 = vpop.f32.mrb[51].mxu1 }
 0x14c   : > { %v826_v18 = vadd.f32 %v1437_v36, %v806_v12  ;;  %v807_v19 = vadd.f32 %v785_v14, %v648_v13 }
 0x14e   : > { %vm839_vm13 = vcmp.ge.f32.partialorder %v826_v18, 0.0  ;;  %v859_v15 = vmul.f32 %v1444_v45, %v826_v18  ;;  %v827_v21 = vadd.f32 %v1437_v36, %v807_v19 }
 0x14f   : > { %v631_v22 = vpop.f32.mrb[52].mxu0 }
 0x150   : > { %v872_v23 = vsel %vm839_vm13, %v826_v18, %v859_v15  ;;  %vm840_vm14 = vcmp.ge.f32.partialorder %v827_v21, 0.0  ;;  %v860_v20 = vmul.f32 %v1444_v45, %v827_v21  ;;  %v649_v24 = vadd.f32 %v631_v22, %v1431_v25  ;;  %v790_v26 = vpop.f32.mrb[52].mxu1  ;;  %v1134_v48 = vpop.f32.mrb[53].mxu0 }
 0x151   : > { %886 = vst.msk [vmem:[%s1450_s20 + $0x50] sm:$0xff] %vm875_vm3, %v872_v23  ;;  %v1166_v27 = vpop.f32.mrb[53].mxu1  ;;  %v634_v28 = vpop.f32.mrb[54].mxu0 }
 0x152   : > { %v873_v30 = vsel %vm840_vm14, %v827_v21, %v860_v20  ;;  %v808_v53 = vadd.f32 %v790_v26, %v649_v24  ;;  %v793_v31 = vpop.f32.mrb[54].mxu1  ;;  %v1135_v32 = vpop.f32.mrb[55].mxu0 }
 0x153   : > { %887 = vst.msk [vmem:[%s1450_s20 + $0x58] sm:$0xff] %vm875_vm3, %v873_v30  ;;  %v1167_v33 = vpop.f32.mrb[55].mxu1 }
 0x154   : > { %v828_v35 = vadd.f32 %v1437_v36, %v808_v53 }
 0x156   : > { %vm841_vm15 = vcmp.ge.f32.partialorder %v828_v35, 0.0  ;;  %v861_v1 = vmul.f32 %v1444_v45, %v828_v35 }
 0x158   : > { %v874_v25 = vsel %vm841_vm15, %v828_v35, %v861_v1 }
 0x159   : > { %889 = vst.msk [vmem:[%s1450_s20 + $0x60] sm:$0xf] %vm888_vm0, %v874_v25 }
 0x15a PF: > { %s14_s15 = sadd.s32 1, %s1194_s15  }
 0x15b   : > { %p11_p4 = scmp.ge.s32.totalorder %s14_s15, 4  }
 0x15d   :  { %13 = sbr.rel (!%p11_p4) target bundleno = 1 (0x1), region = 69 }

// kernel: _lambda_.6
= control target key start
LH: loop header
LB: loop body
LE: loop exit
PB: predicated region body
PF: predicated region fallthrough
CT: control target
= control target key end

     0   :  { %s847_s15 = smov 0   ;;  %s975_s0 = inlined_call_operand.vmem [shape: f32[2,43,32], index: 0, kind: input, shape index: {}]   ;;  %s976_s1 = inlined_call_operand.vmem [shape: bf16[4,32,16], index: 1, kind: input, shape index: {}]   ;;  %s977_s2 = inlined_call_operand.vmem [shape: f32[1,16], index: 2, kind: input, shape index: {}]   ;;  %s978_s3 = inlined_call_operand.vmem [shape: f32[1,16], index: 3, kind: input, shape index: {}]   ;;  %s979_s4 = inlined_call_operand.vmem [shape: f32[2,36,16], index: 4, kind: output, shape index: {}]  }
   0x1 LB: > { %s665_s16 = sadd.s32 4294967295, %s818_s15   ;;  %p669_p0 = scmp.ge.s32.totalorder %s818_s15, 1  ;;  %s818_s15 = sphi %s847_s15, %s14_s15  }
   0x2   : > { %p162_p1 = scmp.lt.s32.totalorder %s818_s15, 3 }
   0x4   : > { %p163_p2 = pnand %p669_p0, %p162_p1 }
   0x5   : > { %v804_v0 = vld [vmem:[%s976_s1 + $0x10] sm:$0xff] (!%p163_p2)   ;;  %v820_v1 = vmov (!%p163_p2), 0.0   ;;  %v805_v2 = vld [vmem:[%s976_s1] sm:$0xff] (!%p163_p2)   ;;  %v806_v3 = vld [vmem:[%s976_s1 + $0x18] sm:$0xff] (!%p163_p2)   ;;  %vm821_vm0 = vmmov (!%p163_p2), 0   ;;  %p188_p3 = scmp.lt.s32.totalorder (!%p163_p2), %s665_s16, 1 }
   0x6   : > { %166 = sbr.rel (%p163_p2) target bundleno = 282 (0x11a), region = 36  ;;  %728 = vmatprep.subr.bf16.mxu0 (!%p163_p2), %v820_v1  ;;  %744 = vmatprep.subr.bf16.mxu1 (!%p163_p2), %v820_v1  ;;  %v807_v4 = vld [vmem:[%s976_s1 + $0x8] sm:$0xff] (!%p163_p2)   ;;  %v808_v5 = vld [vmem:[%s976_s1 + $0x20] sm:$0xff] (!%p163_p2)   ;;  %vm236_vm1 = vcmask (!%p163_p2), 261120   ;;  %v809_v11 = vld [vmem:[%s976_s1 + $0x30] sm:$0xff] (!%p163_p2)   ;;  %vm603_vm3 = vcmask (!%p163_p2), 130048  }
   0x7   : > { %729 = vmatpush3.bf16.msra.mxu0 (!%p163_p2), %v804_v0  ;;  %732 = vmatprep.mubr.msk.bf16.mxu0 (!%p163_p2), %vm821_vm0, %v820_v1  ;;  %v810_v15 = vld [vmem:[%s976_s1 + $0x28] sm:$0xff] (!%p163_p2)   ;;  %v811_v18 = vld [vmem:[%s976_s1 + $0x38] sm:$0xff] (!%p163_p2)   ;;  %vm608_vm8 = vcmask (!%p163_p2), 125952  }
   0x8   : > { %745 = vmatpush3.bf16.msra.mxu1 (!%p163_p2), %v805_v2  ;;  %730 = vmatprep.subr.bf16.mxu0 (!%p163_p2), %v820_v1 }
   0x9   : > { %746 = vmatprep.subr.bf16.mxu1 (!%p163_p2), %v820_v1  ;;  %748 = vmatprep.mubr.msk.bf16.mxu1 (!%p163_p2), %vm821_vm0, %v820_v1 }
   0xb   : > { %731 = vmatpush3.bf16.msra.mxu0 (!%p163_p2), %v806_v3 }
   0xc   : > { %747 = vmatpush3.bf16.msra.mxu1 (!%p163_p2), %v807_v4  ;;  %760 = vmatprep.subr.bf16.mxu0 (!%p163_p2), %v820_v1 }
   0xd   : > { %s981_s16 = smov (!%p188_p3, %s665_s16), 1  ;;  %776 = vmatprep.subr.bf16.mxu1 %v820_v1 }
   0xe   : > { %s792_s25 = smul.u32 48, %s981_s16 }
   0xf   : > { %s793_s13 = smul.u32 40, %s981_s16 }
  0x10   : > { %s882_s28 = scalar_lea.vmem %s975_s0, %s792_s25 }
  0x11   : > { %v211_v6 = vld [vmem:[%s882_s28 + $0x1] sm:$0xff]  ;;  %v212_v7 = vld [vmem:[%s882_s28 + $0x9] sm:$0xff]  ;;  %v213_v13 = vld [vmem:[%s882_s28 + $0x11] sm:$0xff]  ;;  %s961_s20 = scalar_lea.vmem %s979_s4, %s793_s13 }
  0x12   : > { %v199_v8 = vld [vmem:[%s882_s28] sm:$0xff]  ;;  %v216_v9 = vpack.c.bf16 %v212_v7, %v211_v6  ;;  %v200_v10 = vld [vmem:[%s882_s28 + $0x8] sm:$0xff]  ;;  %v201_v16 = vld [vmem:[%s882_s28 + $0x10] sm:$0xff] }
  0x13   : > { %v204_v12 = vpack.c.bf16 %v200_v10, %v199_v8  ;;  %v214_v14 = vld [vmem:[%s882_s28 + $0x19] sm:$0xff]  ;;  %v215_v21 = vld [vmem:[%s882_s28 + $0x21] sm:$0xf]  ;;  %v379_v25 = vld [vmem:[%s882_s28 + $0x6] sm:$0xff] }
  0x14   : > { %733 = vmatmul.mubr.msk.bf16.vlgmr.msra.gmra.mrb[0].mxu0 %vm236_vm1, %v216_v9  ;;  %v202_v17 = vld [vmem:[%s882_s28 + $0x18] sm:$0xff]  ;;  %v217_v19 = vpack.c.bf16 %v214_v14, %v213_v13  ;;  %v203_v22 = vld [vmem:[%s882_s28 + $0x20] sm:$0xf]  ;;  %v218_v23 = vpack.c.bf16 %v215_v21, %v215_v21  ;;  %v380_v26 = vld [vmem:[%s882_s28 + $0xe] sm:$0xff] }
  0x15   : > { %749 = vmatmul.mubr.msk.bf16.vlgmr.msra.gmra.mrb[0].mxu1 %vm236_vm1, %v204_v12  ;;  %761 = vmatpush3.bf16.msra.mxu0 %v808_v5  ;;  %v205_v20 = vpack.c.bf16 %v202_v17, %v201_v16  ;;  %v206_v24 = vpack.c.bf16 %v203_v22, %v203_v22  ;;  %v474_v27 = vld [vmem:[%s882_s28 + $0x7] sm:$0xff]  ;;  %v475_v28 = vld [vmem:[%s882_s28 + $0xf] sm:$0xff]  ;;  %v384_v29 = vpack.c.bf16 %v380_v26, %v379_v25  ;;  %v382_v32 = vld [vmem:[%s882_s28 + $0x1e] sm:$0xff] }
  0x16   : > { %777 = vmatpush3.bf16.msra.mxu1 %v809_v11  ;;  %736 = vmatprep.mubr.msk.bf16.mxu0 %vm821_vm0, %v820_v1  ;;  %v479_v30 = vpack.c.bf16 %v475_v28, %v474_v27  ;;  %v381_v31 = vld [vmem:[%s882_s28 + $0x16] sm:$0xff]  ;;  %v477_v34 = vld [vmem:[%s882_s28 + $0x1f] sm:$0xff]  ;;  %v478_v38 = vld [vmem:[%s882_s28 + $0x27] sm:$0xf] }
  0x17   : > { %752 = vmatprep.mubr.msk.bf16.mxu1 %vm821_vm0, %v820_v1  ;;  %762 = vmatprep.subr.bf16.mxu0 %v820_v1  ;;  %v476_v33 = vld [vmem:[%s882_s28 + $0x17] sm:$0xff]  ;;  %v385_v35 = vpack.c.bf16 %v382_v32, %v381_v31  ;;  %v383_v37 = vld [vmem:[%s882_s28 + $0x26] sm:$0xf]  ;;  %v481_v40 = vpack.c.bf16 %v478_v38, %v478_v38  ;;  %v704_v10 = vld [vmem:[%s977_s2] ss:$0 sm:$0xff] }
  0x18   : > { %778 = vmatprep.subr.bf16.mxu1 %v820_v1  ;;  %v480_v36 = vpack.c.bf16 %v477_v34, %v476_v33  ;;  %v386_v39 = vpack.c.bf16 %v383_v37, %v383_v37  ;;  %v705_v17 = vld [vmem:[%s978_s3] ss:$0 sm:$0xff] }
  0x19   : > { %763 = vmatpush3.bf16.msra.mxu0 %v810_v15 }
  0x1a   : > { %779 = vmatpush3.bf16.msra.mxu1 %v811_v18 }
  0x1c   : > { %737 = vmatmul.mubr.msk.bf16.gmra.mrb[4].mxu0 %vm236_vm1, %v217_v19 }
  0x1d   : > { %753 = vmatmul.mubr.msk.bf16.gmra.mrb[4].mxu1 %vm236_vm1, %v205_v20  ;;  %740 = vmatprep.mubr.msk.bf16.mxu0 %vm821_vm0, %v820_v1 }
  0x1e   : > { %756 = vmatprep.mubr.msk.bf16.mxu1 %vm821_vm0, %v820_v1 }
  0x24   : > { %741 = vmatmul.mubr.msk.bf16.gmra.mrb[8].mxu0 %vm236_vm1, %v218_v23 }
  0x25   : > { %757 = vmatmul.mubr.msk.bf16.gmra.mrb[8].mxu1 %vm236_vm1, %v206_v24  ;;  %764 = vmatprep.mubr.msk.bf16.mxu0 %vm821_vm0, %v820_v1 }
  0x26   : > { %780 = vmatprep.mubr.msk.bf16.mxu1 %vm821_vm0, %v820_v1 }
  0x2c   : > { %765 = vmatmul.mubr.msk.bf16.vlgmr.msra.gmra.mrb[12].mxu0 %vm236_vm1, %v384_v29 }
  0x2d   : > { %781 = vmatmul.mubr.msk.bf16.vlgmr.msra.gmra.mrb[12].mxu1 %vm236_vm1, %v479_v30  ;;  %768 = vmatprep.mubr.msk.bf16.mxu0 %vm821_vm0, %v820_v1 }
  0x2e   : > { %784 = vmatprep.mubr.msk.bf16.mxu1 %vm821_vm0, %v820_v1 }
  0x34   : > { %769 = vmatmul.mubr.msk.bf16.gmra.mrb[16].mxu0 %vm236_vm1, %v385_v35 }
  0x35   : > { %785 = vmatmul.mubr.msk.bf16.gmra.mrb[16].mxu1 %vm236_vm1, %v480_v36  ;;  %772 = vmatprep.mubr.msk.bf16.mxu0 %vm821_vm0, %v820_v1 }
  0x36   : > { %788 = vmatprep.mubr.msk.bf16.mxu1 %vm821_vm0, %v820_v1 }
  0x3c   : > { %773 = vmatmul.mubr.msk.bf16.gmra.mrb[20].mxu0 %vm236_vm1, %v386_v39 }
  0x3d   : > { %789 = vmatmul.mubr.msk.bf16.gmra.mrb[20].mxu1 %vm236_vm1, %v481_v40 }
  0xe7   : > { %v280_v41 = vpop.f32.mrb[0].mxu0 }
  0xe8   : > { %v357_v42 = vpop.f32.mrb[0].mxu1  ;;  %v734_v43 = vpop.f32.mrb[1].mxu0 }
  0xe9   : > { %v358_v44 = vadd.f32 %v357_v42, %v280_v41  ;;  %v750_v45 = vpop.f32.mrb[1].mxu1  ;;  %v283_v46 = vpop.f32.mrb[2].mxu0 }
  0xea   : > { %v360_v47 = vpop.f32.mrb[2].mxu1  ;;  %v735_v48 = vpop.f32.mrb[3].mxu0 }
  0xeb   : > { %v361_v49 = vadd.f32 %v360_v47, %v283_v46  ;;  %v751_v50 = vpop.f32.mrb[3].mxu1 }
  0xef   : > { %v288_v51 = vpop.f32.mrb[4].mxu0 }
  0xf0   : > { %v365_v52 = vpop.f32.mrb[4].mxu1  ;;  %v738_v53 = vpop.f32.mrb[5].mxu0 }
  0xf1   : > { %v366_v54 = vadd.f32 %v365_v52, %v288_v51  ;;  %v754_v55 = vpop.f32.mrb[5].mxu1  ;;  %v291_v56 = vpop.f32.mrb[6].mxu0 }
  0xf2   : > { %v368_v57 = vpop.f32.mrb[6].mxu1  ;;  %v739_v58 = vpop.f32.mrb[7].mxu0 }
  0xf3   : > { %v369_v59 = vadd.f32 %v368_v57, %v291_v56  ;;  %v755_v60 = vpop.f32.mrb[7].mxu1 }
  0xf7   : > { %v296_v61 = vpop.f32.mrb[8].mxu0 }
  0xf8   : > { %v373_v62 = vpop.f32.mrb[8].mxu1  ;;  %v742_v63 = vpop.f32.mrb[9].mxu0 }
  0xf9   : > { %v374_v0 = vadd.f32 %v373_v62, %v296_v61  ;;  %v758_v1 = vpop.f32.mrb[9].mxu1  ;;  %v299_v2 = vpop.f32.mrb[10].mxu0 }
  0xfa   : > { %v376_v3 = vpop.f32.mrb[10].mxu1  ;;  %v743_v4 = vpop.f32.mrb[11].mxu0 }
  0xfb   : > { %v759_v5 = vpop.f32.mrb[11].mxu1 }
  0xff   : > { %v447_v6 = vpop.f32.mrb[12].mxu0 }
 0x100   : > { %v469_v7 = vadd.f32 %v447_v6, %v358_v44  ;;  %v542_v8 = vpop.f32.mrb[12].mxu1  ;;  %v766_v9 = vpop.f32.mrb[13].mxu0 }
 0x101   : > { %v782_v11 = vpop.f32.mrb[13].mxu1  ;;  %v450_v12 = vpop.f32.mrb[14].mxu0 }
 0x102   : > { %v564_v13 = vadd.f32 %v542_v8, %v469_v7  ;;  %v470_v14 = vadd.f32 %v450_v12, %v361_v49  ;;  %v545_v15 = vpop.f32.mrb[14].mxu1  ;;  %v767_v16 = vpop.f32.mrb[15].mxu0 }
 0x103   : > { %v783_v18 = vpop.f32.mrb[15].mxu1 }
 0x104   : > { %v576_v19 = vadd.f32 %v704_v10, %v564_v13  ;;  %v565_v20 = vadd.f32 %v545_v15, %v470_v14 }
 0x106   : > { %vm581_vm2 = vcmp.ge.f32.partialorder %v576_v19, 0.0  ;;  %v593_v21 = vmul.f32 %v705_v17, %v576_v19  ;;  %v577_v22 = vadd.f32 %v704_v10, %v565_v20 }
 0x107   : > { %v455_v23 = vpop.f32.mrb[16].mxu0 }
 0x108   : > { %v598_v24 = vsel %vm581_vm2, %v576_v19, %v593_v21  ;;  %vm582_vm4 = vcmp.ge.f32.partialorder %v577_v22, 0.0  ;;  %v594_v25 = vmul.f32 %v705_v17, %v577_v22  ;;  %v471_v26 = vadd.f32 %v455_v23, %v366_v54  ;;  %v550_v27 = vpop.f32.mrb[16].mxu1  ;;  %v770_v28 = vpop.f32.mrb[17].mxu0 }
 0x109   : > { %604 = vst.msk [vmem:[%s961_s20] sm:$0xff] %vm603_vm3, %v598_v24  ;;  %v786_v29 = vpop.f32.mrb[17].mxu1  ;;  %v458_v30 = vpop.f32.mrb[18].mxu0 }
 0x10a   : > { %v599_v31 = vsel %vm582_vm4, %v577_v22, %v594_v25  ;;  %v566_v32 = vadd.f32 %v550_v27, %v471_v26  ;;  %v472_v33 = vadd.f32 %v458_v30, %v369_v59  ;;  %v553_v34 = vpop.f32.mrb[18].mxu1  ;;  %v771_v35 = vpop.f32.mrb[19].mxu0 }
 0x10b   : > { %605 = vst.msk [vmem:[%s961_s20 + $0x8] sm:$0xff] %vm603_vm3, %v599_v31  ;;  %v787_v36 = vpop.f32.mrb[19].mxu1 }
 0x10c   : > { %v578_v37 = vadd.f32 %v704_v10, %v566_v32  ;;  %v567_v38 = vadd.f32 %v553_v34, %v472_v33 }
 0x10e   : > { %vm583_vm5 = vcmp.ge.f32.partialorder %v578_v37, 0.0  ;;  %v595_v39 = vmul.f32 %v705_v17, %v578_v37  ;;  %v579_v40 = vadd.f32 %v704_v10, %v567_v38 }
 0x10f   : > { %v463_v41 = vpop.f32.mrb[20].mxu0 }
 0x110   : > { %v600_v42 = vsel %vm583_vm5, %v578_v37, %v595_v39  ;;  %vm584_vm6 = vcmp.ge.f32.partialorder %v579_v40, 0.0  ;;  %v596_v43 = vmul.f32 %v705_v17, %v579_v40  ;;  %v473_v44 = vadd.f32 %v463_v41, %v374_v0  ;;  %v558_v45 = vpop.f32.mrb[20].mxu1  ;;  %v774_v46 = vpop.f32.mrb[21].mxu0 }
 0x111   : > { %606 = vst.msk [vmem:[%s961_s20 + $0x10] sm:$0xff] %vm603_vm3, %v600_v42  ;;  %v790_v47 = vpop.f32.mrb[21].mxu1  ;;  %v466_v48 = vpop.f32.mrb[22].mxu0 }
 0x112   : > { %v601_v49 = vsel %vm584_vm6, %v579_v40, %v596_v43  ;;  %v568_v50 = vadd.f32 %v558_v45, %v473_v44  ;;  %v561_v51 = vpop.f32.mrb[22].mxu1  ;;  %v775_v52 = vpop.f32.mrb[23].mxu0 }
 0x113   : > { %607 = vst.msk [vmem:[%s961_s20 + $0x18] sm:$0xff] %vm603_vm3, %v601_v49  ;;  %v791_v53 = vpop.f32.mrb[23].mxu1 }
 0x114   : > { %v580_v54 = vadd.f32 %v704_v10, %v568_v50 }
 0x116   : > { %vm585_vm7 = vcmp.ge.f32.partialorder %v580_v54, 0.0  ;;  %v597_v55 = vmul.f32 %v705_v17, %v580_v54 }
 0x118   : > { %v602_v56 = vsel %vm585_vm7, %v580_v54, %v597_v55 }
 0x119   : > { %609 = vst.msk [vmem:[%s961_s20 + $0x20] sm:$0xf] %vm608_vm8, %v602_v56 }
 0x11a PF: > { %s14_s15 = sadd.s32 1, %s818_s15  }
 0x11b   : > { %p11_p4 = scmp.ge.s32.totalorder %s14_s15, 4  }
 0x11d   :  { %13 = sbr.rel (!%p11_p4) target bundleno = 1 (0x1), region = 69 }

// kernel: tile.8
= control target key start
LH: loop header
LB: loop body
LE: loop exit
PB: predicated region body
PF: predicated region fallthrough
CT: control target
= control target key end

     0   :  { %s22_s0 = inlined_call_operand.vmem [shape: f32[5], index: 0, kind: input, shape index: {}]   ;;  %s23_s1 = inlined_call_operand.vmem [shape: f32[4,5], index: 1, kind: output, shape index: {}]  }
   0x1   :  { %v4_v0 = vld [vmem:[%s22_s0] ss:$0 sm:$0xff] }
   0x2   :  { %5 = vst [vmem:[%s23_s1] sm:$0xf] %v4_v0 }

// kernel: tile.9
= control target key start
LH: loop header
LB: loop body
LE: loop exit
PB: predicated region body
PF: predicated region fallthrough
CT: control target
= control target key end

     0   :  { %vm7_vm0 = vcmask 39936   ;;  %s37_s8 = smov 5   ;;  %s38_s9 = smov 10   ;;  %vm13_vm1 = vcmask 162936   ;;  %vm19_vm2 = vcmask 121936   ;;  %vm25_vm3 = vcmask 80936   ;;  %s55_s0 = inlined_call_operand.vmem [shape: f32[4,5], index: 0, kind: input, shape index: {}]   ;;  %s56_s1 = inlined_call_operand.vmem [shape: f32[1,20], index: 1, kind: output, shape index: {}]  }
   0x1   :  { %v4_v0 = vld [vmem:[%s55_s0] sm:$0xf]  ;;  %s36_s0 = smov 15  }
   0x2   :  { %5 = vst [vmem:[#allocation1] sm:$0xf] %v4_v0 }
   0x9   :  { %v10_v1 = vld [vmem:[#allocation1 + $0x3] sm:$0x1]   ;;  %v22_v2 = vld [vmem:[#allocation1 + $0x1] sm:$0x1]   ;;  %v6_v3 = vld [vmem:[#allocation1] sm:$0x1]  }
   0xa   :  { %11 = vrot.lane.b32.xlu0 %v10_v1, %s36_s0  ;;  %23 = vrot.lane.b32.xlu1 %v22_v2, %s37_s8  ;;  %v16_v4 = vld [vmem:[#allocation1 + $0x2] sm:$0x1]   ;;  %8 = vst.msk [vmem:[#allocation0] sm:$0x1] %vm7_vm0, %v6_v3  }
   0xe   :  { %17 = vrot.lane.b32.xlu0 %v16_v4, %s38_s9 }
  0x7c   :  { %v12_v5 = vpop.permute.xlu0 %11   ;;  %v24_v6 = vpop.permute.xlu1 %23  }
  0x7d   :  { %14 = vst.msk [vmem:[#allocation0] sm:$0x1] %vm13_vm1, %v12_v5  }
  0x80   :  { %v18_v7 = vpop.permute.xlu0 %17  }
  0x81   :  { %20 = vst.msk [vmem:[#allocation0] sm:$0x1] %vm19_vm2, %v18_v7  }
  0x82   :  { %26 = vst.msk [vmem:[#allocation0] sm:$0x1] %vm25_vm3, %v24_v6  }
  0x89   :  { %v30_v8 = vld [vmem:[#allocation0] sm:$0x1] }
  0x8a   :  { %32 = vst [vmem:[%s56_s1] sm:$0x1] %v30_v8 }

// kernel: _lambda_.9
= control target key start
LH: loop header
LB: loop body
LE: loop exit
PB: predicated region body
PF: predicated region fallthrough
CT: control target
= control target key end

     0   :  { %s485_s12 = smov 0   ;;  %s525_s0 = inlined_call_operand.vmem [shape: f32[2,8,40], index: 0, kind: input, shape index: {}]   ;;  %s526_s1 = inlined_call_operand.vmem [shape: f32[16,8], index: 1, kind: input, shape index: {}]   ;;  %s527_s2 = inlined_call_operand.vmem [shape: f32[40,80], index: 2, kind: input, shape index: {}]   ;;  %s528_s3 = inlined_call_operand.vmem [shape: f32[2,16,80], index: 3, kind: output, shape index: {}]  }
   0x1 LB: > { %s398_s13 = sadd.s32 4294967295, %s463_s12   ;;  %p402_p0 = scmp.ge.s32.totalorder %s463_s12, 1  ;;  %s463_s12 = sphi %s485_s12, %s13_s12  }
   0x2   : > { %p136_p1 = scmp.lt.s32.totalorder %s463_s12, 3 }
   0x4   : > { %p137_p2 = pnand %p402_p0, %p136_p1 }
   0x5   : > { %p159_p3 = scmp.lt.s32.totalorder (!%p137_p2), %s398_s13, 1  ;;  %v168_v0 = vld [vmem:[%s526_s1] sm:$0xff] (!%p137_p2)  ;;  %vm171_vm0 = vcmask (!%p137_p2), 64512   ;;  %v254_v2 = vld [vmem:[%s527_s2 + $0x8] sm:$0xff] (!%p137_p2)  ;;  %v255_v3 = vld [vmem:[%s527_s2 + $0x10] sm:$0xff] (!%p137_p2)  ;;  %vm258_vm1 = vcmask (!%p137_p2), 326656  }
   0x6   : > { %140 = sbr.rel (%p137_p2) target bundleno = 447 (0x1bf), region = 32  ;;  %v253_v1 = vld [vmem:[%s527_s2] sm:$0xff] (!%p137_p2)  ;;  %425 = vmatprep.mubr.msk.f32.mxu0 (!%p137_p2), %vm171_vm0, %v168_v0  ;;  %v256_v4 = vld [vmem:[%s527_s2 + $0x18] sm:$0xff] (!%p137_p2)  ;;  %v169_v8 = vld [vmem:[%s526_s1 + $0x8] sm:$0xff] (!%p137_p2)  ;;  %vm340_vm2 = vcmask (!%p137_p2), 654336  }
   0x7   : > { %v441_v5 = vpack.c.bf16 (!%p137_p2), %v254_v2, %v253_v1  ;;  %v445_v6 = vpack.c.bf16 (!%p137_p2), %v256_v4, %v255_v3  ;;  %v257_v9 = vld [vmem:[%s527_s2 + $0x20] sm:$0xff] (!%p137_p2) }
   0x9   : > { %442 = vmatprep.subr.bf16.mxu1 (!%p137_p2), %v441_v5 }
   0xa   : > { %444 = vmatpush3.bf16.msra.mxu1 (!%p137_p2), %v441_v5 }
   0xb   : > { %446 = vmatprep.subr.bf16.mxu1 (!%p137_p2), %v445_v6 }
   0xd   : > { %s530_s13 = smov (!%p159_p3, %s398_s13), 1 }
   0xe   : > { %s403_s24 = sshll.u32 %s530_s13, 3  ;;  %448 = vmatpush3.bf16.msra.mxu1 %v445_v6  ;;  %s412_s5 = sshll.u32 %s530_s13, 4 }
   0xf   : > { %s162_s27 = scalar_lea.vmem %s525_s0, %s403_s24  ;;  %436 = vmatprep.subr.mxu1 %v257_v9  ;;  %s167_s8 = scalar_lea.vmem %s528_s3, %s412_s5 }
  0x10   : > { %v170_v7 = vld [vmem:[%s162_s27] sm:$0xff] }
  0x11   : > { %423 = vmatprep.subr.mxu0 %v170_v7 }
  0x12   : > { %424 = vmatpush3.msra.mxu0 %v170_v7  ;;  %437 = vmatpush3.msra.mxu1 %v257_v9 }
  0x13   : > { %426 = vmatmul.mubr.msk.f32.vlgmr.msra.gmra.mrb[0].mxu0 %vm171_vm0, %v169_v8 }
  0xe6   : > { %v427_v10 = vpop.f32.mrb[0].mxu0 }
  0xe7   : > { %v244_v11 = vpop.f32.mrb[1].mxu0 }
  0xe8   : > { %438 = vmatprep.mubr.msk.f32.mxu1 %vm258_vm1, %v244_v11 }
  0xe9   : > { %439 = vmatmul.mubr.msk.f32.vlgmr.msra.gmra.mrb[0].mxu1 %vm258_vm1, %v427_v10 }
 0x1bc   : > { %v440_v12 = vpop.f32.mrb[0].mxu1 }
 0x1bd   : > { %342 = vst.msk [vmem:[%s167_s8 + $0x8] sm:$0xff] %vm340_vm2, %v440_v12  ;;  %v331_v13 = vpop.f32.mrb[1].mxu1 }
 0x1be   : > { %341 = vst.msk [vmem:[%s167_s8] sm:$0xff] %vm340_vm2, %v331_v13 }
 0x1bf PF: > { %s13_s12 = sadd.s32 1, %s463_s12  }
 0x1c0   : > { %p10_p4 = scmp.ge.s32.totalorder %s13_s12, 4  }
 0x1c2   :  { %12 = sbr.rel (!%p10_p4) target bundleno = 1 (0x1), region = 62 }

// kernel: _lambda_.8
= control target key start
LH: loop header
LB: loop body
LE: loop exit
PB: predicated region body
PF: predicated region fallthrough
CT: control target
= control target key end

     0   :  { %s1296_s12 = smov 0   ;;  %s1502_s0 = inlined_call_operand.vmem [shape: f32[2,50,16], index: 0, kind: input, shape index: {}]   ;;  %s1503_s1 = inlined_call_operand.vmem [shape: bf16[9,16,20], index: 1, kind: input, shape index: {}]   ;;  %s1504_s2 = inlined_call_operand.vmem [shape: f32[1,20], index: 2, kind: input, shape index: {}]   ;;  %s1505_s3 = inlined_call_operand.vmem [shape: f32[2,36,20], index: 3, kind: output, shape index: {}]  }
   0x1 LB: > { %s1019_s13 = sadd.s32 4294967295, %s1272_s12   ;;  %p1023_p0 = scmp.ge.s32.totalorder %s1272_s12, 1  ;;  %s1272_s12 = sphi %s1296_s12, %s13_s12  }
   0x2   : > { %p137_p1 = scmp.lt.s32.totalorder %s1272_s12, 3 }
   0x4   : > { %p138_p2 = pnand %p1023_p0, %p137_p1 }
   0x5   : > { %v1257_v0 = vld [vmem:[%s1503_s1 + $0x8] sm:$0xff] (!%p138_p2)   ;;  %v1274_v1 = vmov (!%p138_p2), 0.0   ;;  %p161_p3 = scmp.lt.s32.totalorder (!%p138_p2), %s1019_s13, 1  ;;  %vm1275_vm0 = vmmov (!%p138_p2), 0   ;;  %v1258_v2 = vld [vmem:[%s1503_s1] sm:$0xff] (!%p138_p2)   ;;  %vm199_vm1 = vcmask (!%p138_p2), 130048  }
   0x6   : > { %141 = sbr.rel (%p138_p2) target bundleno = 343 (0x157), region = 32  ;;  %1243 = vmatprep.subr.bf16.mxu1 (!%p138_p2), %v1274_v1  ;;  %1117 = vmatprep.subr.bf16.mxu0 (!%p138_p2), %v1274_v1  ;;  %v1259_v8 = vld [vmem:[%s1503_s1 + $0x10] sm:$0xff] (!%p138_p2)   ;;  %v1261_v15 = vld [vmem:[%s1503_s1 + $0x20] sm:$0xff] (!%p138_p2)   ;;  %v1260_v21 = vld [vmem:[%s1503_s1 + $0x18] sm:$0xff] (!%p138_p2)   ;;  %vm957_vm2 = vcmask (!%p138_p2), 162816   ;;  %vm962_vm3 = vcmask (!%p138_p2), 158720  }
   0x7   : > { %1244 = vmatpush3.bf16.msra.mxu1 (!%p138_p2), %v1257_v0  ;;  %1123 = vmatprep.mubr.msk.bf16.mxu1 (!%p138_p2), %vm1275_vm0, %v1274_v1  ;;  %v1263_v33 = vld [vmem:[%s1503_s1 + $0x30] sm:$0xff] (!%p138_p2)   ;;  %v1262_v39 = vld [vmem:[%s1503_s1 + $0x28] sm:$0xff] (!%p138_p2)   ;;  %v1265_v51 = vld [vmem:[%s1503_s1 + $0x40] sm:$0xff] (!%p138_p2)  }
   0x8   : > { %1131 = vmatprep.subr.bf16.mxu1 (!%p138_p2), %v1274_v1  ;;  %1118 = vmatpush3.bf16.msra.mxu0 (!%p138_p2), %v1257_v0  ;;  %v1264_v55 = vld [vmem:[%s1503_s1 + $0x38] sm:$0xff] (!%p138_p2)  }
   0x9   : > { %1119 = vmatprep.mubr.msk.bf16.mxu0 (!%p138_p2), %vm1275_vm0, %v1274_v1  ;;  %1145 = vmatprep.subr.bf16.mxu0 (!%p138_p2), %v1274_v1 }
   0xd   : > { %s1507_s13 = smov (!%p161_p3, %s1019_s13), 1 }
   0xe   : > { %s1245_s16 = smul.u32 56, %s1507_s13 }
   0xf   : > { %s1246_s9 = smul.u32 40, %s1507_s13 }
  0x10   : > { %s1321_s19 = scalar_lea.vmem %s1502_s0, %s1245_s16 }
  0x11   : > { %v184_v3 = vld [vmem:[%s1321_s19 + $0x11] sm:$0xff]  ;;  %v185_v4 = vld [vmem:[%s1321_s19 + $0x19] sm:$0xff]  ;;  %v182_v5 = vld [vmem:[%s1321_s19 + $0x1] sm:$0xff]  ;;  %s1488_s16 = scalar_lea.vmem %s1505_s3, %s1246_s9 }
  0x12   : > { %v188_v6 = vpack.c.bf16 %v185_v4, %v184_v3  ;;  %v183_v7 = vld [vmem:[%s1321_s19 + $0x9] sm:$0xff]  ;;  %v186_v10 = vld [vmem:[%s1321_s19 + $0x21] sm:$0xf]  ;;  %v338_v18 = vld [vmem:[%s1321_s19 + $0x12] sm:$0xff] }
  0x13   : > { %v187_v9 = vpack.c.bf16 %v183_v7, %v182_v5  ;;  %v336_v11 = vld [vmem:[%s1321_s19 + $0x2] sm:$0xff]  ;;  %v337_v12 = vld [vmem:[%s1321_s19 + $0xa] sm:$0xff]  ;;  %v189_v13 = vpack.c.bf16 %v186_v10, %v186_v10  ;;  %v339_v19 = vld [vmem:[%s1321_s19 + $0x1a] sm:$0xff] }
  0x14   : > { %1124 = vmatmul.mubr.msk.bf16.vlgmr.msra.gmra.mrb[0].mxu1 %vm199_vm1, %v188_v6  ;;  %v341_v14 = vpack.c.bf16 %v337_v12, %v336_v11  ;;  %v172_v16 = vld [vmem:[%s1321_s19] sm:$0xff]  ;;  %v1353_v17 = vld [vmem:[%s1321_s19 + $0x8] sm:$0xff]  ;;  %v342_v22 = vpack.c.bf16 %v339_v19, %v338_v18  ;;  %v1368_v23 = vld [vmem:[%s1321_s19 + $0x10] sm:$0xff] }
  0x15   : > { %1132 = vmatpush3.bf16.msra.mxu1 %v1258_v2  ;;  %1120 = vmatmul.mubr.msk.bf16.vlgmr.msra.gmra.mrb[0].mxu0 %vm199_vm1, %v187_v9  ;;  %v177_v20 = vpack.c.bf16 %v1353_v17, %v172_v16  ;;  %v1371_v24 = vld [vmem:[%s1321_s19 + $0x18] sm:$0xff]  ;;  %v340_v25 = vld [vmem:[%s1321_s19 + $0x22] sm:$0xf]  ;;  %v510_v29 = vld [vmem:[%s1321_s19 + $0x7] sm:$0xff]  ;;  %v602_v54 = vpack.c.bf16 %v1368_v23, %v1353_v17 }
  0x16   : > { %1127 = vmatprep.mubr.msk.bf16.mxu1 %vm1275_vm0, %v1274_v1  ;;  %1146 = vmatpush3.bf16.msra.mxu0 %v1259_v8  ;;  %v178_v26 = vpack.c.bf16 %v1371_v24, %v1368_v23  ;;  %v343_v27 = vpack.c.bf16 %v340_v25, %v340_v25  ;;  %v176_v28 = vld [vmem:[%s1321_s19 + $0x20] sm:$0xf]  ;;  %v511_v30 = vld [vmem:[%s1321_s19 + $0xf] sm:$0xff]  ;;  %v423_v34 = vld [vmem:[%s1321_s19 + $0x6] sm:$0xff] }
  0x17   : > { %1147 = vmatprep.mubr.msk.bf16.mxu0 %vm1275_vm0, %v1274_v1  ;;  %1159 = vmatprep.subr.bf16.mxu1 %v1274_v1  ;;  %v179_v31 = vpack.c.bf16 %v176_v28, %v176_v28  ;;  %v515_v32 = vpack.c.bf16 %v511_v30, %v510_v29  ;;  %v424_v35 = vld [vmem:[%s1321_s19 + $0xe] sm:$0xff]  ;;  %v512_v36 = vld [vmem:[%s1321_s19 + $0x17] sm:$0xff]  ;;  %v513_v37 = vld [vmem:[%s1321_s19 + $0x1f] sm:$0xff] }
  0x18   : > { %1173 = vmatprep.subr.bf16.mxu0 %v1274_v1  ;;  %v428_v38 = vpack.c.bf16 %v424_v35, %v423_v34  ;;  %v516_v40 = vpack.c.bf16 %v513_v37, %v512_v36  ;;  %v425_v41 = vld [vmem:[%s1321_s19 + $0x16] sm:$0xff]  ;;  %v426_v42 = vld [vmem:[%s1321_s19 + $0x1e] sm:$0xff]  ;;  %v514_v43 = vld [vmem:[%s1321_s19 + $0x27] sm:$0xf] }
  0x19   : > { %v429_v44 = vpack.c.bf16 %v426_v42, %v425_v41  ;;  %v517_v45 = vpack.c.bf16 %v514_v43, %v514_v43  ;;  %v427_v46 = vld [vmem:[%s1321_s19 + $0x26] sm:$0xf]  ;;  %v684_v47 = vld [vmem:[%s1321_s19 + $0xc] sm:$0xff]  ;;  %v685_v48 = vld [vmem:[%s1321_s19 + $0x14] sm:$0xff]  ;;  %v863_v63 = vpack.c.bf16 %v425_v41, %v424_v35 }
  0x1a   : > { %v430_v49 = vpack.c.bf16 %v427_v46, %v427_v46  ;;  %v689_v50 = vpack.c.bf16 %v685_v48, %v684_v47  ;;  %v686_v52 = vld [vmem:[%s1321_s19 + $0x1c] sm:$0xff]  ;;  %v687_v53 = vld [vmem:[%s1321_s19 + $0x24] sm:$0xff]  ;;  %v688_v58 = vld [vmem:[%s1321_s19 + $0x2c] sm:$0xf] }
  0x1b   : > { %v690_v56 = vpack.c.bf16 %v687_v53, %v686_v52  ;;  %v600_v57 = vld [vmem:[%s1321_s19 + $0x20] sm:$0xff]  ;;  %v691_v60 = vpack.c.bf16 %v688_v58, %v688_v58  ;;  %v601_v61 = vld [vmem:[%s1321_s19 + $0x28] sm:$0xf]  ;;  %v771_v0 = vld [vmem:[%s1321_s19 + $0xd] sm:$0xff] }
  0x1c   : > { %1128 = vmatmul.mubr.msk.bf16.gmra.mrb[4].mxu1 %vm199_vm1, %v189_v13  ;;  %v603_v59 = vpack.c.bf16 %v600_v57, %v1371_v24  ;;  %v604_v62 = vpack.c.bf16 %v601_v61, %v601_v61  ;;  %v772_v2 = vld [vmem:[%s1321_s19 + $0x15] sm:$0xff]  ;;  %v861_v3 = vld [vmem:[%s1321_s19 + $0x26] sm:$0xff]  ;;  %v773_v6 = vld [vmem:[%s1321_s19 + $0x1d] sm:$0xff] }
  0x1d   : > { %1133 = vmatprep.mubr.msk.bf16.mxu1 %vm1275_vm0, %v1274_v1  ;;  %1148 = vmatmul.mubr.msk.bf16.vlgmr.msra.gmra.mrb[4].mxu0 %vm199_vm1, %v341_v14  ;;  %v776_v4 = vpack.c.bf16 %v772_v2, %v771_v0  ;;  %v864_v5 = vpack.c.bf16 %v861_v3, %v426_v42  ;;  %v774_v7 = vld [vmem:[%s1321_s19 + $0x25] sm:$0xff]  ;;  %v862_v8 = vld [vmem:[%s1321_s19 + $0x2e] sm:$0xf] }
  0x1e   : > { %1174 = vmatpush3.bf16.msra.mxu0 %v1261_v15  ;;  %1151 = vmatprep.mubr.msk.bf16.mxu0 %vm1275_vm0, %v1274_v1  ;;  %v777_v9 = vpack.c.bf16 %v774_v7, %v773_v6  ;;  %v865_v10 = vpack.c.bf16 %v862_v8, %v862_v8  ;;  %v775_v11 = vld [vmem:[%s1321_s19 + $0x2d] sm:$0xf] }
  0x1f   : > { %1201 = vmatprep.subr.bf16.mxu0 %v1274_v1  ;;  %v778_v12 = vpack.c.bf16 %v775_v11, %v775_v11 }
  0x24   : > { %1134 = vmatmul.mubr.msk.bf16.vlgmr.msra.gmra.mrb[8].mxu1 %vm199_vm1, %v177_v20 }
  0x25   : > { %1160 = vmatpush3.bf16.msra.mxu1 %v1260_v21  ;;  %1137 = vmatprep.mubr.msk.bf16.mxu1 %vm1275_vm0, %v1274_v1 }
  0x26   : > { %1152 = vmatmul.mubr.msk.bf16.gmra.mrb[8].mxu0 %vm199_vm1, %v342_v22  ;;  %1187 = vmatprep.subr.bf16.mxu1 %v1274_v1 }
  0x27   : > { %1155 = vmatprep.mubr.msk.bf16.mxu0 %vm1275_vm0, %v1274_v1 }
  0x2c   : > { %1138 = vmatmul.mubr.msk.bf16.gmra.mrb[12].mxu1 %vm199_vm1, %v178_v26 }
  0x2d   : > { %1141 = vmatprep.mubr.msk.bf16.mxu1 %vm1275_vm0, %v1274_v1 }
  0x2e   : > { %1156 = vmatmul.mubr.msk.bf16.gmra.mrb[12].mxu0 %vm199_vm1, %v343_v27 }
  0x2f   : > { %1175 = vmatprep.mubr.msk.bf16.mxu0 %vm1275_vm0, %v1274_v1 }
  0x34   : > { %1142 = vmatmul.mubr.msk.bf16.gmra.mrb[16].mxu1 %vm199_vm1, %v179_v31 }
  0x35   : > { %1161 = vmatprep.mubr.msk.bf16.mxu1 %vm1275_vm0, %v1274_v1 }
  0x36   : > { %1176 = vmatmul.mubr.msk.bf16.vlgmr.msra.gmra.mrb[16].mxu0 %vm199_vm1, %v515_v32 }
  0x37   : > { %1202 = vmatpush3.bf16.msra.mxu0 %v1263_v33  ;;  %1179 = vmatprep.mubr.msk.bf16.mxu0 %vm1275_vm0, %v1274_v1 }
  0x38   : > { %1229 = vmatprep.subr.bf16.mxu0 %v1274_v1 }
  0x3c   : > { %1162 = vmatmul.mubr.msk.bf16.vlgmr.msra.gmra.mrb[20].mxu1 %vm199_vm1, %v428_v38 }
  0x3d   : > { %1188 = vmatpush3.bf16.msra.mxu1 %v1262_v39  ;;  %1165 = vmatprep.mubr.msk.bf16.mxu1 %vm1275_vm0, %v1274_v1 }
  0x3e   : > { %1180 = vmatmul.mubr.msk.bf16.gmra.mrb[20].mxu0 %vm199_vm1, %v516_v40  ;;  %1215 = vmatprep.subr.bf16.mxu1 %v1274_v1 }
  0x3f   : > { %1183 = vmatprep.mubr.msk.bf16.mxu0 %vm1275_vm0, %v1274_v1 }
  0x44   : > { %1166 = vmatmul.mubr.msk.bf16.gmra.mrb[24].mxu1 %vm199_vm1, %v429_v44 }
  0x45   : > { %1169 = vmatprep.mubr.msk.bf16.mxu1 %vm1275_vm0, %v1274_v1 }
  0x46   : > { %1184 = vmatmul.mubr.msk.bf16.gmra.mrb[24].mxu0 %vm199_vm1, %v517_v45 }
  0x47   : > { %1203 = vmatprep.mubr.msk.bf16.mxu0 %vm1275_vm0, %v1274_v1 }
  0x4c   : > { %1170 = vmatmul.mubr.msk.bf16.gmra.mrb[28].mxu1 %vm199_vm1, %v430_v49 }
  0x4d   : > { %1189 = vmatprep.mubr.msk.bf16.mxu1 %vm1275_vm0, %v1274_v1 }
  0x4e   : > { %1204 = vmatmul.mubr.msk.bf16.vlgmr.msra.gmra.mrb[28].mxu0 %vm199_vm1, %v689_v50 }
  0x4f   : > { %1230 = vmatpush3.bf16.msra.mxu0 %v1265_v51  ;;  %1207 = vmatprep.mubr.msk.bf16.mxu0 %vm1275_vm0, %v1274_v1 }
  0x54   : > { %1190 = vmatmul.mubr.msk.bf16.vlgmr.msra.gmra.mrb[32].mxu1 %vm199_vm1, %v602_v54 }
  0x55   : > { %1216 = vmatpush3.bf16.msra.mxu1 %v1264_v55  ;;  %1193 = vmatprep.mubr.msk.bf16.mxu1 %vm1275_vm0, %v1274_v1 }
  0x56   : > { %1208 = vmatmul.mubr.msk.bf16.gmra.mrb[32].mxu0 %vm199_vm1, %v690_v56 }
  0x57   : > { %1211 = vmatprep.mubr.msk.bf16.mxu0 %vm1275_vm0, %v1274_v1 }
  0x5c   : > { %1194 = vmatmul.mubr.msk.bf16.gmra.mrb[36].mxu1 %vm199_vm1, %v603_v59 }
  0x5d   : > { %1197 = vmatprep.mubr.msk.bf16.mxu1 %vm1275_vm0, %v1274_v1 }
  0x5e   : > { %1212 = vmatmul.mubr.msk.bf16.gmra.mrb[36].mxu0 %vm199_vm1, %v691_v60 }
  0x5f   : > { %1231 = vmatprep.mubr.msk.bf16.mxu0 %vm1275_vm0, %v1274_v1 }
  0x64   : > { %1198 = vmatmul.mubr.msk.bf16.gmra.mrb[40].mxu1 %vm199_vm1, %v604_v62 }
  0x65   : > { %1217 = vmatprep.mubr.msk.bf16.mxu1 %vm1275_vm0, %v1274_v1 }
  0x66   : > { %1232 = vmatmul.mubr.msk.bf16.vlgmr.msra.gmra.mrb[40].mxu0 %vm199_vm1, %v863_v63 }
  0x67   : > { %1235 = vmatprep.mubr.msk.bf16.mxu0 %vm1275_vm0, %v1274_v1 }
  0x6c   : > { %1218 = vmatmul.mubr.msk.bf16.vlgmr.msra.gmra.mrb[44].mxu1 %vm199_vm1, %v776_v4 }
  0x6d   : > { %1221 = vmatprep.mubr.msk.bf16.mxu1 %vm1275_vm0, %v1274_v1 }
  0x6e   : > { %1236 = vmatmul.mubr.msk.bf16.gmra.mrb[44].mxu0 %vm199_vm1, %v864_v5 }
  0x6f   : > { %1239 = vmatprep.mubr.msk.bf16.mxu0 %vm1275_vm0, %v1274_v1 }
  0x74   : > { %1222 = vmatmul.mubr.msk.bf16.gmra.mrb[48].mxu1 %vm199_vm1, %v777_v9 }
  0x75   : > { %1225 = vmatprep.mubr.msk.bf16.mxu1 %vm1275_vm0, %v1274_v1 }
  0x76   : > { %1240 = vmatmul.mubr.msk.bf16.gmra.mrb[48].mxu0 %vm199_vm1, %v865_v10 }
  0x7c   : > { %1226 = vmatmul.mubr.msk.bf16.gmra.mrb[52].mxu1 %vm199_vm1, %v778_v12 }
  0xe7   : > { %v251_v13 = vpop.f32.mrb[0].mxu1 }
  0xe8   : > { %v1125_v14 = vpop.f32.mrb[1].mxu1  ;;  %v243_v15 = vpop.f32.mrb[0].mxu0 }
  0xe9   : > { %v254_v16 = vpop.f32.mrb[2].mxu1  ;;  %v1121_v17 = vpop.f32.mrb[1].mxu0 }
  0xea   : > { %v1126_v18 = vpop.f32.mrb[3].mxu1  ;;  %v246_v19 = vpop.f32.mrb[2].mxu0 }
  0xeb   : > { %v1122_v20 = vpop.f32.mrb[3].mxu0 }
  0xef   : > { %v259_v21 = vpop.f32.mrb[4].mxu1 }
  0xf0   : > { %v1129_v22 = vpop.f32.mrb[5].mxu1  ;;  %v396_v23 = vpop.f32.mrb[4].mxu0 }
  0xf1   : > { %v262_v24 = vpop.f32.mrb[6].mxu1  ;;  %v1149_v25 = vpop.f32.mrb[5].mxu0 }
  0xf2   : > { %v1130_v1 = vpop.f32.mrb[7].mxu1  ;;  %v399_v26 = vpop.f32.mrb[6].mxu0 }
  0xf3   : > { %v1150_v27 = vpop.f32.mrb[7].mxu0 }
  0xf7   : > { %v314_v28 = vpop.f32.mrb[8].mxu1 }
  0xf8   : > { %v315_v29 = vadd.f32 %v314_v28, %v243_v15  ;;  %v1135_v30 = vpop.f32.mrb[9].mxu1 }
  0xf9   : > { %v317_v31 = vpop.f32.mrb[10].mxu1  ;;  %v404_v32 = vpop.f32.mrb[8].mxu0 }
  0xfa   : > { %v318_v33 = vadd.f32 %v317_v31, %v246_v19  ;;  %v1136_v34 = vpop.f32.mrb[11].mxu1  ;;  %v1153_v35 = vpop.f32.mrb[9].mxu0  ;;  %v418_v36 = vadd.f32 %v396_v23, %v315_v29 }
  0xfb   : > { %v407_v37 = vpop.f32.mrb[10].mxu0 }
  0xfc   : > { %v1154_v38 = vpop.f32.mrb[11].mxu0  ;;  %v419_v39 = vadd.f32 %v399_v26, %v318_v33 }
  0xff   : > { %v322_v40 = vpop.f32.mrb[12].mxu1 }
 0x100   : > { %v323_v41 = vadd.f32 %v322_v40, %v251_v13  ;;  %v1139_v42 = vpop.f32.mrb[13].mxu1 }
 0x101   : > { %v325_v43 = vpop.f32.mrb[14].mxu1  ;;  %v412_v44 = vpop.f32.mrb[12].mxu0 }
 0x102   : > { %v326_v45 = vadd.f32 %v325_v43, %v254_v16  ;;  %v1140_v46 = vpop.f32.mrb[15].mxu1  ;;  %v1157_v47 = vpop.f32.mrb[13].mxu0  ;;  %v420_v48 = vadd.f32 %v404_v32, %v323_v41 }
 0x103   : > { %v415_v49 = vpop.f32.mrb[14].mxu0 }
 0x104   : > { %v1158_v50 = vpop.f32.mrb[15].mxu0  ;;  %v421_v51 = vadd.f32 %v407_v37, %v326_v45 }
 0x107   : > { %v330_v52 = vpop.f32.mrb[16].mxu1 }
 0x108   : > { %v331_v53 = vadd.f32 %v330_v52, %v259_v21  ;;  %v1143_v54 = vpop.f32.mrb[17].mxu1 }
 0x109   : > { %v333_v55 = vpop.f32.mrb[18].mxu1  ;;  %v570_v56 = vpop.f32.mrb[16].mxu0 }
 0x10a   : > { %v1144_v57 = vpop.f32.mrb[19].mxu1  ;;  %v1177_v58 = vpop.f32.mrb[17].mxu0  ;;  %v422_v59 = vadd.f32 %v412_v44, %v331_v53 }
 0x10b   : > { %v573_v60 = vpop.f32.mrb[18].mxu0 }
 0x10c   : > { %v1178_v61 = vpop.f32.mrb[19].mxu0 }
 0x10f   : > { %v483_v62 = vpop.f32.mrb[20].mxu1 }
 0x110   : > { %v505_v63 = vadd.f32 %v483_v62, %v418_v36  ;;  %v1163_v0 = vpop.f32.mrb[21].mxu1 }
 0x111   : > { %v486_v2 = vpop.f32.mrb[22].mxu1  ;;  %v578_v3 = vpop.f32.mrb[20].mxu0 }
 0x112   : > { %v506_v4 = vadd.f32 %v486_v2, %v419_v39  ;;  %v1164_v5 = vpop.f32.mrb[23].mxu1  ;;  %v1181_v6 = vpop.f32.mrb[21].mxu0  ;;  %v592_v7 = vadd.f32 %v570_v56, %v505_v63 }
 0x113   : > { %v581_v8 = vpop.f32.mrb[22].mxu0  ;;  %v1078_v6 = vld [vmem:[%s1504_s2] ss:$0 sm:$0xff] }
 0x114   : > { %v1182_v9 = vpop.f32.mrb[23].mxu0  ;;  %v593_v10 = vadd.f32 %v573_v60, %v506_v4 }
 0x117   : > { %v491_v11 = vpop.f32.mrb[24].mxu1 }
 0x118   : > { %v507_v12 = vadd.f32 %v491_v11, %v420_v48  ;;  %v1167_v13 = vpop.f32.mrb[25].mxu1 }
 0x119   : > { %v494_v14 = vpop.f32.mrb[26].mxu1  ;;  %v586_v15 = vpop.f32.mrb[24].mxu0 }
 0x11a   : > { %v508_v16 = vadd.f32 %v494_v14, %v421_v51  ;;  %v1168_v17 = vpop.f32.mrb[27].mxu1  ;;  %v1185_v18 = vpop.f32.mrb[25].mxu0  ;;  %v594_v19 = vadd.f32 %v578_v3, %v507_v12 }
 0x11b   : > { %v589_v20 = vpop.f32.mrb[26].mxu0 }
 0x11c   : > { %v1186_v21 = vpop.f32.mrb[27].mxu0  ;;  %v595_v22 = vadd.f32 %v581_v8, %v508_v16 }
 0x11f   : > { %v499_v23 = vpop.f32.mrb[28].mxu1 }
 0x120   : > { %v509_v24 = vadd.f32 %v499_v23, %v422_v59  ;;  %v1171_v25 = vpop.f32.mrb[29].mxu1 }
 0x121   : > { %v502_v1 = vpop.f32.mrb[30].mxu1  ;;  %v744_v26 = vpop.f32.mrb[28].mxu0 }
 0x122   : > { %v1172_v27 = vpop.f32.mrb[31].mxu1  ;;  %v1205_v28 = vpop.f32.mrb[29].mxu0  ;;  %v596_v29 = vadd.f32 %v586_v15, %v509_v24 }
 0x123   : > { %v747_v30 = vpop.f32.mrb[30].mxu0 }
 0x124   : > { %v1206_v31 = vpop.f32.mrb[31].mxu0 }
 0x127   : > { %v657_v32 = vpop.f32.mrb[32].mxu1 }
 0x128   : > { %v679_v33 = vadd.f32 %v657_v32, %v592_v7  ;;  %v1191_v34 = vpop.f32.mrb[33].mxu1 }
 0x129   : > { %v660_v35 = vpop.f32.mrb[34].mxu1  ;;  %v752_v36 = vpop.f32.mrb[32].mxu0 }
 0x12a   : > { %v680_v37 = vadd.f32 %v660_v35, %v593_v10  ;;  %v1192_v38 = vpop.f32.mrb[35].mxu1  ;;  %v1209_v39 = vpop.f32.mrb[33].mxu0  ;;  %v766_v40 = vadd.f32 %v744_v26, %v679_v33 }
 0x12b   : > { %v755_v41 = vpop.f32.mrb[34].mxu0 }
 0x12c   : > { %v1210_v42 = vpop.f32.mrb[35].mxu0  ;;  %v767_v43 = vadd.f32 %v747_v30, %v680_v37 }
 0x12f   : > { %v665_v44 = vpop.f32.mrb[36].mxu1 }
 0x130   : > { %v681_v45 = vadd.f32 %v665_v44, %v594_v19  ;;  %v1195_v46 = vpop.f32.mrb[37].mxu1 }
 0x131   : > { %v668_v47 = vpop.f32.mrb[38].mxu1  ;;  %v760_v48 = vpop.f32.mrb[36].mxu0 }
 0x132   : > { %v682_v49 = vadd.f32 %v668_v47, %v595_v22  ;;  %v1196_v50 = vpop.f32.mrb[39].mxu1  ;;  %v1213_v51 = vpop.f32.mrb[37].mxu0  ;;  %v768_v52 = vadd.f32 %v752_v36, %v681_v45 }
 0x133   : > { %v763_v53 = vpop.f32.mrb[38].mxu0 }
 0x134   : > { %v1214_v54 = vpop.f32.mrb[39].mxu0  ;;  %v769_v55 = vadd.f32 %v755_v41, %v682_v49 }
 0x137   : > { %v673_v56 = vpop.f32.mrb[40].mxu1 }
 0x138   : > { %v683_v57 = vadd.f32 %v673_v56, %v596_v29  ;;  %v1199_v58 = vpop.f32.mrb[41].mxu1 }
 0x139   : > { %v676_v59 = vpop.f32.mrb[42].mxu1  ;;  %v918_v60 = vpop.f32.mrb[40].mxu0 }
 0x13a   : > { %v1200_v61 = vpop.f32.mrb[43].mxu1  ;;  %v1233_v62 = vpop.f32.mrb[41].mxu0  ;;  %v770_v63 = vadd.f32 %v760_v48, %v683_v57 }
 0x13b   : > { %v921_v0 = vpop.f32.mrb[42].mxu0 }
 0x13c   : > { %v1234_v2 = vpop.f32.mrb[43].mxu0 }
 0x13f   : > { %v831_v3 = vpop.f32.mrb[44].mxu1 }
 0x140   : > { %v853_v4 = vadd.f32 %v831_v3, %v766_v40  ;;  %v1219_v5 = vpop.f32.mrb[45].mxu1 }
 0x141   : > { %v834_v7 = vpop.f32.mrb[46].mxu1  ;;  %v926_v8 = vpop.f32.mrb[44].mxu0 }
 0x142   : > { %v940_v9 = vadd.f32 %v918_v60, %v853_v4  ;;  %v854_v10 = vadd.f32 %v834_v7, %v767_v43  ;;  %v1220_v11 = vpop.f32.mrb[47].mxu1  ;;  %v1237_v12 = vpop.f32.mrb[45].mxu0 }
 0x143   : > { %v929_v13 = vpop.f32.mrb[46].mxu0 }
 0x144   : > { %v952_v14 = vadd.f32 %v1078_v6, %v940_v9  ;;  %v941_v15 = vadd.f32 %v921_v0, %v854_v10  ;;  %v1238_v16 = vpop.f32.mrb[47].mxu0 }
 0x146   : > { %958 = vst.msk [vmem:[%s1488_s16] sm:$0xff] %vm957_vm2, %v952_v14  ;;  %v953_v17 = vadd.f32 %v1078_v6, %v941_v15 }
 0x147   : > { %v839_v18 = vpop.f32.mrb[48].mxu1 }
 0x148   : > { %959 = vst.msk [vmem:[%s1488_s16 + $0x8] sm:$0xff] %vm957_vm2, %v953_v17  ;;  %v855_v19 = vadd.f32 %v839_v18, %v768_v52  ;;  %v1223_v20 = vpop.f32.mrb[49].mxu1 }
 0x149   : > { %v842_v21 = vpop.f32.mrb[50].mxu1  ;;  %v934_v22 = vpop.f32.mrb[48].mxu0 }
 0x14a   : > { %v942_v23 = vadd.f32 %v926_v8, %v855_v19  ;;  %v856_v24 = vadd.f32 %v842_v21, %v769_v55  ;;  %v1224_v25 = vpop.f32.mrb[51].mxu1  ;;  %v1241_v1 = vpop.f32.mrb[49].mxu0 }
 0x14b   : > { %v937_v26 = vpop.f32.mrb[50].mxu0 }
 0x14c   : > { %v954_v27 = vadd.f32 %v1078_v6, %v942_v23  ;;  %v943_v28 = vadd.f32 %v929_v13, %v856_v24  ;;  %v1242_v29 = vpop.f32.mrb[51].mxu0 }
 0x14e   : > { %960 = vst.msk [vmem:[%s1488_s16 + $0x10] sm:$0xff] %vm957_vm2, %v954_v27  ;;  %v955_v30 = vadd.f32 %v1078_v6, %v943_v28 }
 0x14f   : > { %v847_v31 = vpop.f32.mrb[52].mxu1 }
 0x150   : > { %961 = vst.msk [vmem:[%s1488_s16 + $0x18] sm:$0xff] %vm957_vm2, %v955_v30  ;;  %v857_v32 = vadd.f32 %v847_v31, %v770_v63  ;;  %v1227_v33 = vpop.f32.mrb[53].mxu1 }
 0x151   : > { %v850_v34 = vpop.f32.mrb[54].mxu1 }
 0x152   : > { %v944_v35 = vadd.f32 %v934_v22, %v857_v32  ;;  %v1228_v36 = vpop.f32.mrb[55].mxu1 }
 0x154   : > { %v956_v37 = vadd.f32 %v1078_v6, %v944_v35 }
 0x156   : > { %963 = vst.msk [vmem:[%s1488_s16 + $0x20] sm:$0xf] %vm962_vm3, %v956_v37 }
 0x157 PF: > { %s13_s12 = sadd.s32 1, %s1272_s12  }
 0x158   : > { %p10_p4 = scmp.ge.s32.totalorder %s13_s12, 4  }
 0x15a   :  { %12 = sbr.rel (!%p10_p4) target bundleno = 1 (0x1), region = 70 }

// kernel: _lambda_.7
= control target key start
LH: loop header
LB: loop body
LE: loop exit
PB: predicated region body
PF: predicated region fallthrough
CT: control target
= control target key end

     0   :  { %s8780_s18 = smov 0   ;;  %s10149_s0 = inlined_call_operand.vmem [shape: f32[2,50,16], index: 0, kind: input, shape index: {}]   ;;  %s10150_s1 = inlined_call_operand.vmem [shape: bf16[72,16,16], index: 1, kind: input, shape index: {}]   ;;  %s10151_s2 = inlined_call_operand.vmem [shape: f32[8,1,16], index: 2, kind: input, shape index: {}]   ;;  %s10152_s3 = inlined_call_operand.vmem [shape: f32[8,1,16], index: 3, kind: input, shape index: {}]   ;;  %s10153_s4 = inlined_call_operand.vmem [shape: f32[36,1], index: 4, kind: input, shape index: {}]   ;;  %s10154_s5 = inlined_call_operand.vmem [shape: f32[2,36,16], index: 5, kind: output, shape index: {}]  }
   0x1 LB: > { %s6887_s19 = sadd.s32 4294967295, %s8745_s18   ;;  %p6891_p0 = scmp.ge.s32.totalorder %s8745_s18, 1  ;;  %s8745_s18 = sphi %s8780_s18, %s15_s18  }
   0x2   : > { %p187_p1 = scmp.lt.s32.totalorder %s8745_s18, 3 }
   0x4   : > { %p188_p2 = pnand %p6891_p0, %p187_p1 }
   0x5   : > { %v8667_v0 = vld [vmem:[%s10150_s1 + $0x8] sm:$0xff] (!%p188_p2)   ;;  %v8747_v1 = vmov (!%p188_p2), 0.0   ;;  %v8668_v2 = vld [vmem:[%s10150_s1] sm:$0xff] (!%p188_p2)   ;;  %vm8748_vm0 = vmmov (!%p188_p2), 0   ;;  %p8800_p3 = scmp.lt.s32.totalorder (!%p188_p2), %s6887_s19, 1  ;;  %vm226_vm1 = vcmask (!%p188_p2), 130048  }
   0x6   : > { %191 = sbr.rel (%p188_p2) target bundleno = 2659 (0xa63), region = 40  ;;  %7644 = vmatprep.subr.bf16.mxu0 (!%p188_p2), %v8747_v1  ;;  %7658 = vmatprep.subr.bf16.mxu1 (!%p188_p2), %v8747_v1  ;;  %227 = vst.msk [vmem:[#allocation2] sm:$0xff] (!%p188_p2), %vm226_vm1, %v8747_v1  ;;  %228 = vst.msk [vmem:[#allocation2 + $0x8] sm:$0xff] (!%p188_p2), %vm226_vm1, %v8747_v1  ;;  %v8749_v3 = vmov (!%p188_p2), 0   ;;  %v8669_v4 = vld [vmem:[%s10150_s1 + $0x10] sm:$0xff] (!%p188_p2)   ;;  %v8670_v11 = vld [vmem:[%s10150_s1 + $0x18] sm:$0xff] (!%p188_p2)  }
   0x7   : > { %7645 = vmatpush3.bf16.msra.mxu0 (!%p188_p2), %v8667_v0  ;;  %7646 = vmatprep.mubr.msk.bf16.mxu0 (!%p188_p2), %vm8748_vm0, %v8747_v1  ;;  %229 = vst.msk [vmem:[#allocation2 + $0x10] sm:$0xff] (!%p188_p2), %vm226_vm1, %v8747_v1  ;;  %230 = vst.msk [vmem:[#allocation2 + $0x18] sm:$0xff] (!%p188_p2), %vm226_vm1, %v8747_v1  ;;  %v242_v20 = vld [vmem:[%s10153_s4] sm:$0xff] (!%p188_p2)  ;;  %v243_v21 = vld [vmem:[%s10153_s4 + $0x8] sm:$0xff] (!%p188_p2)  ;;  %vm233_vm2 = vcmask (!%p188_p2), 123904   ;;  %vm1087_vm8 = vcmask (!%p188_p2), 125952  }
   0x8   : > { %7659 = vmatpush3.bf16.msra.mxu1 (!%p188_p2), %v8668_v2  ;;  %7660 = vmatprep.mubr.msk.bf16.mxu1 (!%p188_p2), %vm8748_vm0, %v8747_v1  ;;  %231 = vst.msk [vmem:[#allocation2 + $0x20] sm:$0xff] (!%p188_p2), %vm226_vm1, %v8747_v1  ;;  %232 = vst.msk [vmem:[#allocation2 + $0x28] sm:$0xff] (!%p188_p2), %vm226_vm1, %v8747_v1  ;;  %v244_v22 = vld [vmem:[%s10153_s4 + $0x10] sm:$0xff] (!%p188_p2)  ;;  %v245_v23 = vld [vmem:[%s10153_s4 + $0x18] sm:$0xff] (!%p188_p2) }
   0x9   : > { %235 = vst.msk [vmem:[#allocation3] sm:$0xff] (!%p188_p2), %vm226_vm1, %v8747_v1  ;;  %236 = vst.msk [vmem:[#allocation3 + $0x8] sm:$0xff] (!%p188_p2), %vm226_vm1, %v8747_v1  ;;  %7672 = vmatprep.subr.bf16.mxu0 (!%p188_p2), %v8747_v1  ;;  %7686 = vmatprep.subr.bf16.mxu1 (!%p188_p2), %v8747_v1  ;;  %v246_v26 = vld [vmem:[%s10153_s4 + $0x20] sm:$0xf] (!%p188_p2)  ;;  %v8672_v34 = vld [vmem:[%s10150_s1 + $0x28] sm:$0xff] (!%p188_p2)  }
   0xa   : > { %237 = vst.msk [vmem:[#allocation3 + $0x10] sm:$0xff] (!%p188_p2), %vm226_vm1, %v8747_v1  ;;  %238 = vst.msk [vmem:[#allocation3 + $0x18] sm:$0xff] (!%p188_p2), %vm226_vm1, %v8747_v1  ;;  %8665 = vset.pattern.permute.xlu0 (!%p188_p2), %v8749_v3  ;;  %8666 = vset.pattern.permute.xlu1 (!%p188_p2), %v8749_v3  ;;  %v8671_v31 = vld [vmem:[%s10150_s1 + $0x20] sm:$0xff] (!%p188_p2)   ;;  %v8673_v47 = vld [vmem:[%s10150_s1 + $0x30] sm:$0xff] (!%p188_p2)  }
   0xb   : > { %239 = vst.msk [vmem:[#allocation3 + $0x20] sm:$0xff] (!%p188_p2), %vm226_vm1, %v8747_v1  ;;  %240 = vst.msk [vmem:[#allocation3 + $0x28] sm:$0xff] (!%p188_p2), %vm226_vm1, %v8747_v1  ;;  %1055 = vperm.xlu0 (!%p188_p2), %8665, %v242_v20   ;;  %1065 = vperm.xlu1 (!%p188_p2), %8666, %v244_v22   ;;  %v8674_v50 = vld [vmem:[%s10150_s1 + $0x38] sm:$0xff] (!%p188_p2)   ;;  %v8675_v2 = vld [vmem:[%s10150_s1 + $0x40] sm:$0xff] (!%p188_p2)  }
   0xc   : > { %v8677_v20 = vld [vmem:[%s10150_s1 + $0x48] sm:$0xff] (!%p188_p2)   ;;  %234 = vst.msk [vmem:[#allocation2 + $0x30] sm:$0x3] (!%p188_p2), %vm233_vm2, %v8747_v1  ;;  %241 = vst.msk [vmem:[#allocation3 + $0x30] sm:$0x3] (!%p188_p2), %vm233_vm2, %v8747_v1 }
   0xd   : > { %s10157_s19 = smov (!%p8800_p3, %s6887_s19), 1 }
   0xe   : > { %s8652_s25 = smul.u32 56, %s10157_s19 }
   0xf   : > { %1060 = vperm.xlu0 %8665, %v243_v21   ;;  %1070 = vperm.xlu1 %8666, %v245_v23   ;;  %s8653_s10 = smul.u32 40, %s10157_s19 }
  0x10   : > { %s8842_s28 = scalar_lea.vmem %s10149_s0, %s8652_s25 }
  0x11   : > { %v257_v5 = vld [vmem:[%s8842_s28 + $0x1] sm:$0xff]  ;;  %v258_v6 = vld [vmem:[%s8842_s28 + $0x9] sm:$0xff]  ;;  %v259_v12 = vld [vmem:[%s8842_s28 + $0x11] sm:$0xff]  ;;  %s10126_s13 = scalar_lea.vmem %s10154_s5, %s8653_s10 }
  0x12   : > { %v247_v7 = vld [vmem:[%s8842_s28] sm:$0xff]  ;;  %v262_v8 = vpack.c.bf16 %v258_v6, %v257_v5  ;;  %v8851_v9 = vld [vmem:[%s8842_s28 + $0x8] sm:$0xff]  ;;  %v8866_v14 = vld [vmem:[%s8842_s28 + $0x10] sm:$0xff] }
  0x13   : > { %v252_v10 = vpack.c.bf16 %v8851_v9, %v247_v7  ;;  %v260_v13 = vld [vmem:[%s8842_s28 + $0x19] sm:$0xff]  ;;  %v261_v18 = vld [vmem:[%s8842_s28 + $0x21] sm:$0xf]  ;;  %v411_v28 = vld [vmem:[%s8842_s28 + $0xa] sm:$0xff]  ;;  %1075 = vperm.xlu0 %8665, %v246_v26   ;;  %v676_v49 = vpack.c.bf16 %v8866_v14, %v8851_v9 }
  0x14   : > { %7647 = vmatmul.mubr.msk.bf16.vlgmr.msra.gmra.mrb[0].mxu0 %vm226_vm1, %v262_v8  ;;  %v8869_v15 = vld [vmem:[%s8842_s28 + $0x18] sm:$0xff]  ;;  %v263_v16 = vpack.c.bf16 %v260_v13, %v259_v12  ;;  %v251_v19 = vld [vmem:[%s8842_s28 + $0x20] sm:$0xf]  ;;  %v264_v24 = vpack.c.bf16 %v261_v18, %v261_v18  ;;  %v497_v29 = vld [vmem:[%s8842_s28 + $0x6] sm:$0xff] }
  0x15   : > { %7661 = vmatmul.mubr.msk.bf16.vlgmr.msra.gmra.mrb[0].mxu1 %vm226_vm1, %v252_v10  ;;  %7673 = vmatpush3.bf16.msra.mxu0 %v8669_v4  ;;  %v253_v17 = vpack.c.bf16 %v8869_v15, %v8866_v14  ;;  %v254_v25 = vpack.c.bf16 %v251_v19, %v251_v19  ;;  %v410_v27 = vld [vmem:[%s8842_s28 + $0x2] sm:$0xff]  ;;  %v8903_v30 = vld [vmem:[%s8842_s28 + $0xe] sm:$0xff]  ;;  %v413_v36 = vld [vmem:[%s8842_s28 + $0x1a] sm:$0xff] }
  0x16   : > { %7650 = vmatprep.mubr.msk.bf16.mxu0 %vm8748_vm0, %v8747_v1  ;;  %7664 = vmatprep.mubr.msk.bf16.mxu1 %vm8748_vm0, %v8747_v1  ;;  %v415_v32 = vpack.c.bf16 %v411_v28, %v410_v27  ;;  %v502_v33 = vpack.c.bf16 %v8903_v30, %v497_v29  ;;  %v412_v35 = vld [vmem:[%s8842_s28 + $0x12] sm:$0xff]  ;;  %v8924_v38 = vld [vmem:[%s8842_s28 + $0x1e] sm:$0xff]  ;;  %v501_v42 = vld [vmem:[%s8842_s28 + $0x26] sm:$0xf] }
  0x17   : > { %7687 = vmatpush3.bf16.msra.mxu1 %v8670_v11  ;;  %7700 = vmatprep.subr.bf16.mxu0 %v8747_v1  ;;  %v8921_v37 = vld [vmem:[%s8842_s28 + $0x16] sm:$0xff]  ;;  %v416_v39 = vpack.c.bf16 %v413_v36, %v412_v35  ;;  %v414_v41 = vld [vmem:[%s8842_s28 + $0x22] sm:$0xf]  ;;  %v504_v44 = vpack.c.bf16 %v501_v42, %v501_v42  ;;  %v584_v45 = vld [vmem:[%s8842_s28 + $0x7] sm:$0xff] }
  0x18   : > { %7714 = vmatprep.subr.bf16.mxu1 %v8747_v1  ;;  %v503_v40 = vpack.c.bf16 %v8924_v38, %v8921_v37  ;;  %v417_v43 = vpack.c.bf16 %v414_v41, %v414_v41  ;;  %v585_v46 = vld [vmem:[%s8842_s28 + $0xf] sm:$0xff]  ;;  %v586_v51 = vld [vmem:[%s8842_s28 + $0x17] sm:$0xff]  ;;  %v587_v52 = vld [vmem:[%s8842_s28 + $0x1f] sm:$0xff]  ;;  %v937_v14 = vpack.c.bf16 %v8921_v37, %v8903_v30 }
  0x19   : > { %v589_v48 = vpack.c.bf16 %v585_v46, %v584_v45  ;;  %v674_v53 = vld [vmem:[%s8842_s28 + $0x20] sm:$0xff]  ;;  %v590_v54 = vpack.c.bf16 %v587_v52, %v586_v51  ;;  %v675_v57 = vld [vmem:[%s8842_s28 + $0x28] sm:$0xf]  ;;  %v758_v60 = vld [vmem:[%s8842_s28 + $0xc] sm:$0xff] }
  0x1a   : > { %v677_v55 = vpack.c.bf16 %v674_v53, %v8869_v15  ;;  %v588_v56 = vld [vmem:[%s8842_s28 + $0x27] sm:$0xf]  ;;  %v678_v59 = vpack.c.bf16 %v675_v57, %v675_v57  ;;  %v759_v61 = vld [vmem:[%s8842_s28 + $0x14] sm:$0xff]  ;;  %v760_v4 = vld [vmem:[%s8842_s28 + $0x1c] sm:$0xff] }
  0x1b   : > { %v591_v58 = vpack.c.bf16 %v588_v56, %v588_v56  ;;  %v845_v62 = vld [vmem:[%s8842_s28 + $0xd] sm:$0xff]  ;;  %v846_v63 = vld [vmem:[%s8842_s28 + $0x15] sm:$0xff]  ;;  %v763_v0 = vpack.c.bf16 %v759_v61, %v758_v60  ;;  %v761_v5 = vld [vmem:[%s8842_s28 + $0x24] sm:$0xff] }
  0x1c   : > { %7651 = vmatmul.mubr.msk.bf16.gmra.mrb[4].mxu0 %vm226_vm1, %v263_v16  ;;  %v850_v3 = vpack.c.bf16 %v846_v63, %v845_v62  ;;  %v847_v6 = vld [vmem:[%s8842_s28 + $0x1d] sm:$0xff]  ;;  %v848_v7 = vld [vmem:[%s8842_s28 + $0x25] sm:$0xff]  ;;  %v764_v8 = vpack.c.bf16 %v761_v5, %v760_v4  ;;  %v849_v11 = vld [vmem:[%s8842_s28 + $0x2d] sm:$0xf] }
  0x1d   : > { %7665 = vmatmul.mubr.msk.bf16.gmra.mrb[4].mxu1 %vm226_vm1, %v253_v17  ;;  %7654 = vmatprep.mubr.msk.bf16.mxu0 %vm8748_vm0, %v8747_v1  ;;  %v851_v9 = vpack.c.bf16 %v848_v7, %v847_v6  ;;  %v762_v10 = vld [vmem:[%s8842_s28 + $0x2c] sm:$0xf]  ;;  %v852_v13 = vpack.c.bf16 %v849_v11, %v849_v11  ;;  %v8676_v19 = vld [vmem:[%s10150_s1 + $0x50] sm:$0xff]  }
  0x1e   : > { %7668 = vmatprep.mubr.msk.bf16.mxu1 %vm8748_vm0, %v8747_v1  ;;  %v765_v12 = vpack.c.bf16 %v762_v10, %v762_v10  ;;  %v935_v15 = vld [vmem:[%s8842_s28 + $0x26] sm:$0xff]  ;;  %v936_v17 = vld [vmem:[%s8842_s28 + $0x2e] sm:$0xf] }
  0x1f   : > { %v938_v16 = vpack.c.bf16 %v935_v15, %v8924_v38  ;;  %v939_v18 = vpack.c.bf16 %v936_v17, %v936_v17 }
  0x24   : > { %7655 = vmatmul.mubr.msk.bf16.gmra.mrb[8].mxu0 %vm226_vm1, %v264_v24 }
  0x25   : > { %7669 = vmatmul.mubr.msk.bf16.gmra.mrb[8].mxu1 %vm226_vm1, %v254_v25  ;;  %7674 = vmatprep.mubr.msk.bf16.mxu0 %vm8748_vm0, %v8747_v1 }
  0x26   : > { %7688 = vmatprep.mubr.msk.bf16.mxu1 %vm8748_vm0, %v8747_v1 }
  0x2c   : > { %7675 = vmatmul.mubr.msk.bf16.vlgmr.msra.gmra.mrb[12].mxu0 %vm226_vm1, %v415_v32 }
  0x2d   : > { %7701 = vmatpush3.bf16.msra.mxu0 %v8671_v31  ;;  %7689 = vmatmul.mubr.msk.bf16.vlgmr.msra.gmra.mrb[12].mxu1 %vm226_vm1, %v502_v33 }
  0x2e   : > { %7678 = vmatprep.mubr.msk.bf16.mxu0 %vm8748_vm0, %v8747_v1  ;;  %7692 = vmatprep.mubr.msk.bf16.mxu1 %vm8748_vm0, %v8747_v1 }
  0x2f   : > { %7715 = vmatpush3.bf16.msra.mxu1 %v8672_v34  ;;  %7728 = vmatprep.subr.bf16.mxu0 %v8747_v1 }
  0x30   : > { %7742 = vmatprep.subr.bf16.mxu1 %v8747_v1 }
  0x34   : > { %7679 = vmatmul.mubr.msk.bf16.gmra.mrb[16].mxu0 %vm226_vm1, %v416_v39 }
  0x35   : > { %7693 = vmatmul.mubr.msk.bf16.gmra.mrb[16].mxu1 %vm226_vm1, %v503_v40  ;;  %7682 = vmatprep.mubr.msk.bf16.mxu0 %vm8748_vm0, %v8747_v1 }
  0x36   : > { %7696 = vmatprep.mubr.msk.bf16.mxu1 %vm8748_vm0, %v8747_v1 }
  0x3c   : > { %7683 = vmatmul.mubr.msk.bf16.gmra.mrb[20].mxu0 %vm226_vm1, %v417_v43 }
  0x3d   : > { %7697 = vmatmul.mubr.msk.bf16.gmra.mrb[20].mxu1 %vm226_vm1, %v504_v44  ;;  %7702 = vmatprep.mubr.msk.bf16.mxu0 %vm8748_vm0, %v8747_v1 }
  0x3e   : > { %7716 = vmatprep.mubr.msk.bf16.mxu1 %vm8748_vm0, %v8747_v1 }
  0x44   : > { %7703 = vmatmul.mubr.msk.bf16.vlgmr.msra.gmra.mrb[24].mxu0 %vm226_vm1, %v589_v48 }
  0x45   : > { %7729 = vmatpush3.bf16.msra.mxu0 %v8673_v47  ;;  %7717 = vmatmul.mubr.msk.bf16.vlgmr.msra.gmra.mrb[24].mxu1 %vm226_vm1, %v676_v49 }
  0x46   : > { %7706 = vmatprep.mubr.msk.bf16.mxu0 %vm8748_vm0, %v8747_v1  ;;  %7720 = vmatprep.mubr.msk.bf16.mxu1 %vm8748_vm0, %v8747_v1 }
  0x47   : > { %7743 = vmatpush3.bf16.msra.mxu1 %v8674_v50  ;;  %7756 = vmatprep.subr.bf16.mxu0 %v8747_v1 }
  0x48   : > { %7770 = vmatprep.subr.bf16.mxu1 %v8747_v1 }
  0x4c   : > { %7707 = vmatmul.mubr.msk.bf16.gmra.mrb[28].mxu0 %vm226_vm1, %v590_v54 }
  0x4d   : > { %7721 = vmatmul.mubr.msk.bf16.gmra.mrb[28].mxu1 %vm226_vm1, %v677_v55  ;;  %7710 = vmatprep.mubr.msk.bf16.mxu0 %vm8748_vm0, %v8747_v1 }
  0x4e   : > { %7724 = vmatprep.mubr.msk.bf16.mxu1 %vm8748_vm0, %v8747_v1 }
  0x54   : > { %7711 = vmatmul.mubr.msk.bf16.gmra.mrb[32].mxu0 %vm226_vm1, %v591_v58 }
  0x55   : > { %7725 = vmatmul.mubr.msk.bf16.gmra.mrb[32].mxu1 %vm226_vm1, %v678_v59  ;;  %7730 = vmatprep.mubr.msk.bf16.mxu0 %vm8748_vm0, %v8747_v1 }
  0x56   : > { %7744 = vmatprep.mubr.msk.bf16.mxu1 %vm8748_vm0, %v8747_v1 }
  0x5c   : > { %7731 = vmatmul.mubr.msk.bf16.vlgmr.msra.gmra.mrb[36].mxu0 %vm226_vm1, %v763_v0 }
  0x5d   : > { %7757 = vmatpush3.bf16.msra.mxu0 %v8675_v2  ;;  %7745 = vmatmul.mubr.msk.bf16.vlgmr.msra.gmra.mrb[36].mxu1 %vm226_vm1, %v850_v3 }
  0x5e   : > { %7734 = vmatprep.mubr.msk.bf16.mxu0 %vm8748_vm0, %v8747_v1  ;;  %7748 = vmatprep.mubr.msk.bf16.mxu1 %vm8748_vm0, %v8747_v1 }
  0x5f   : > { %7784 = vmatprep.subr.bf16.mxu0 %v8747_v1  ;;  %7771 = vmatpush3.bf16.msra.mxu1 %v8676_v19 }
  0x60   : > { %7798 = vmatprep.subr.bf16.mxu1 %v8747_v1 }
  0x64   : > { %7735 = vmatmul.mubr.msk.bf16.gmra.mrb[40].mxu0 %vm226_vm1, %v764_v8 }
  0x65   : > { %7749 = vmatmul.mubr.msk.bf16.gmra.mrb[40].mxu1 %vm226_vm1, %v851_v9  ;;  %7738 = vmatprep.mubr.msk.bf16.mxu0 %vm8748_vm0, %v8747_v1 }
  0x66   : > { %7752 = vmatprep.mubr.msk.bf16.mxu1 %vm8748_vm0, %v8747_v1 }
  0x6c   : > { %7739 = vmatmul.mubr.msk.bf16.gmra.mrb[44].mxu0 %vm226_vm1, %v765_v12 }
  0x6d   : > { %7753 = vmatmul.mubr.msk.bf16.gmra.mrb[44].mxu1 %vm226_vm1, %v852_v13  ;;  %7758 = vmatprep.mubr.msk.bf16.mxu0 %vm8748_vm0, %v8747_v1 }
  0x6e   : > { %7772 = vmatprep.mubr.msk.bf16.mxu1 %vm8748_vm0, %v8747_v1 }
  0x74   : > { %7759 = vmatmul.mubr.msk.bf16.vlgmr.msra.gmra.mrb[48].mxu0 %vm226_vm1, %v937_v14 }
  0x75   : > { %7762 = vmatprep.mubr.msk.bf16.mxu0 %vm8748_vm0, %v8747_v1  ;;  %7785 = vmatpush3.bf16.msra.mxu0 %v8677_v20 }
  0x76   : > { %7812 = vmatprep.subr.bf16.mxu0 %v8747_v1 }
  0x7c   : > { %7763 = vmatmul.mubr.msk.bf16.gmra.mrb[52].mxu0 %vm226_vm1, %v938_v16 }
  0x7d   : > { %7766 = vmatprep.mubr.msk.bf16.mxu0 %vm8748_vm0, %v8747_v1 }
  0x84   : > { %7767 = vmatmul.mubr.msk.bf16.gmra.mrb[56].mxu0 %vm226_vm1, %v939_v18 }
  0x85   : > { %7786 = vmatprep.mubr.msk.bf16.mxu0 %vm8748_vm0, %v8747_v1 }
  0xe7   : > { %v317_v21 = vpop.f32.mrb[0].mxu0 }
  0xe8   : > { %v388_v22 = vpop.f32.mrb[0].mxu1  ;;  %v7648_v23 = vpop.f32.mrb[1].mxu0 }
  0xe9   : > { %v389_v24 = vadd.f32 %v388_v22, %v317_v21  ;;  %v7662_v25 = vpop.f32.mrb[1].mxu1  ;;  %v320_v26 = vpop.f32.mrb[2].mxu0 }
  0xea   : > { %v391_v27 = vpop.f32.mrb[2].mxu1  ;;  %v7649_v28 = vpop.f32.mrb[3].mxu0 }
  0xeb   : > { %v392_v29 = vadd.f32 %v391_v27, %v320_v26  ;;  %v7663_v30 = vpop.f32.mrb[3].mxu1 }
  0xef   : > { %v325_v31 = vpop.f32.mrb[4].mxu0 }
  0xf0   : > { %v396_v32 = vpop.f32.mrb[4].mxu1  ;;  %v7652_v33 = vpop.f32.mrb[5].mxu0 }
  0xf1   : > { %v397_v34 = vadd.f32 %v396_v32, %v325_v31  ;;  %v7666_v35 = vpop.f32.mrb[5].mxu1  ;;  %v328_v36 = vpop.f32.mrb[6].mxu0 }
  0xf2   : > { %v399_v37 = vpop.f32.mrb[6].mxu1  ;;  %v7653_v38 = vpop.f32.mrb[7].mxu0 }
  0xf3   : > { %v400_v39 = vadd.f32 %v399_v37, %v328_v36  ;;  %v7667_v40 = vpop.f32.mrb[7].mxu1 }
  0xf7   : > { %v333_v41 = vpop.f32.mrb[8].mxu0 }
  0xf8   : > { %v404_v42 = vpop.f32.mrb[8].mxu1  ;;  %v7656_v43 = vpop.f32.mrb[9].mxu0 }
  0xf9   : > { %v405_v44 = vadd.f32 %v404_v42, %v333_v41  ;;  %v336_v45 = vpop.f32.mrb[10].mxu0  ;;  %v7670_v46 = vpop.f32.mrb[9].mxu1 }
  0xfa   : > { %v7657_v47 = vpop.f32.mrb[11].mxu0  ;;  %v407_v48 = vpop.f32.mrb[10].mxu1 }
  0xfb   : > { %v7671_v49 = vpop.f32.mrb[11].mxu1 }
  0xff   : > { %v470_v50 = vpop.f32.mrb[12].mxu0 }
 0x100   : > { %v492_v51 = vadd.f32 %v470_v50, %v389_v24  ;;  %v7676_v52 = vpop.f32.mrb[13].mxu0  ;;  %v557_v53 = vpop.f32.mrb[12].mxu1 }
 0x101   : > { %v473_v54 = vpop.f32.mrb[14].mxu0  ;;  %v7690_v55 = vpop.f32.mrb[13].mxu1 }
 0x102   : > { %v493_v56 = vadd.f32 %v473_v54, %v392_v29  ;;  %v579_v57 = vadd.f32 %v557_v53, %v492_v51  ;;  %v7677_v58 = vpop.f32.mrb[15].mxu0  ;;  %v560_v59 = vpop.f32.mrb[14].mxu1 }
 0x103   : > { %v7691_v60 = vpop.f32.mrb[15].mxu1 }
 0x104   : > { %v580_v61 = vadd.f32 %v560_v59, %v493_v56 }
 0x107   : > { %v478_v62 = vpop.f32.mrb[16].mxu0 }
 0x108   : > { %v494_v63 = vadd.f32 %v478_v62, %v397_v34  ;;  %v7680_v0 = vpop.f32.mrb[17].mxu0  ;;  %v565_v2 = vpop.f32.mrb[16].mxu1 }
 0x109   : > { %v481_v3 = vpop.f32.mrb[18].mxu0  ;;  %v7694_v4 = vpop.f32.mrb[17].mxu1 }
 0x10a   : > { %v495_v5 = vadd.f32 %v481_v3, %v400_v39  ;;  %v581_v6 = vadd.f32 %v565_v2, %v494_v63  ;;  %v7681_v7 = vpop.f32.mrb[19].mxu0  ;;  %v568_v8 = vpop.f32.mrb[18].mxu1 }
 0x10b   : > { %v7695_v9 = vpop.f32.mrb[19].mxu1 }
 0x10c   : > { %v582_v10 = vadd.f32 %v568_v8, %v495_v5 }
 0x10f   : > { %v486_v11 = vpop.f32.mrb[20].mxu0 }
 0x110   : > { %v496_v12 = vadd.f32 %v486_v11, %v405_v44  ;;  %v7684_v13 = vpop.f32.mrb[21].mxu0  ;;  %v573_v14 = vpop.f32.mrb[20].mxu1 }
 0x111   : > { %v489_v15 = vpop.f32.mrb[22].mxu0  ;;  %v7698_v16 = vpop.f32.mrb[21].mxu1 }
 0x112   : > { %v583_v17 = vadd.f32 %v573_v14, %v496_v12  ;;  %v7685_v18 = vpop.f32.mrb[23].mxu0  ;;  %v576_v19 = vpop.f32.mrb[22].mxu1 }
 0x113   : > { %v7699_v20 = vpop.f32.mrb[23].mxu1 }
 0x117   : > { %v644_v21 = vpop.f32.mrb[24].mxu0 }
 0x118   : > { %v666_v22 = vadd.f32 %v644_v21, %v579_v57  ;;  %v7704_v23 = vpop.f32.mrb[25].mxu0  ;;  %v731_v24 = vpop.f32.mrb[24].mxu1 }
 0x119   : > { %v647_v25 = vpop.f32.mrb[26].mxu0  ;;  %v7718_v26 = vpop.f32.mrb[25].mxu1 }
 0x11a   : > { %v667_v27 = vadd.f32 %v647_v25, %v580_v61  ;;  %v753_v28 = vadd.f32 %v731_v24, %v666_v22  ;;  %v7705_v29 = vpop.f32.mrb[27].mxu0  ;;  %v734_v30 = vpop.f32.mrb[26].mxu1 }
 0x11b   : > { %v7719_v31 = vpop.f32.mrb[27].mxu1 }
 0x11c   : > { %v754_v32 = vadd.f32 %v734_v30, %v667_v27  ;;  %v6946_v27 = vld [vmem:[%s10151_s2] ss:$0 sm:$0xff] }
 0x11d   : > { %v6947_v30 = vld [vmem:[%s10152_s3] ss:$0 sm:$0xff] }
 0x11f   : > { %v652_v33 = vpop.f32.mrb[28].mxu0 }
 0x120   : > { %v668_v34 = vadd.f32 %v652_v33, %v581_v6  ;;  %v7708_v35 = vpop.f32.mrb[29].mxu0  ;;  %v739_v36 = vpop.f32.mrb[28].mxu1 }
 0x121   : > { %v655_v37 = vpop.f32.mrb[30].mxu0  ;;  %v7722_v38 = vpop.f32.mrb[29].mxu1 }
 0x122   : > { %v669_v39 = vadd.f32 %v655_v37, %v582_v10  ;;  %v755_v40 = vadd.f32 %v739_v36, %v668_v34  ;;  %v7709_v41 = vpop.f32.mrb[31].mxu0  ;;  %v742_v42 = vpop.f32.mrb[30].mxu1 }
 0x123   : > { %v7723_v43 = vpop.f32.mrb[31].mxu1 }
 0x124   : > { %v756_v44 = vadd.f32 %v742_v42, %v669_v39 }
 0x127   : > { %v660_v45 = vpop.f32.mrb[32].mxu0 }
 0x128   : > { %v670_v46 = vadd.f32 %v660_v45, %v583_v17  ;;  %v7712_v47 = vpop.f32.mrb[33].mxu0  ;;  %v747_v48 = vpop.f32.mrb[32].mxu1 }
 0x129   : > { %v663_v49 = vpop.f32.mrb[34].mxu0  ;;  %v7726_v50 = vpop.f32.mrb[33].mxu1 }
 0x12a   : > { %v757_v51 = vadd.f32 %v747_v48, %v670_v46  ;;  %v7713_v52 = vpop.f32.mrb[35].mxu0  ;;  %v750_v53 = vpop.f32.mrb[34].mxu1 }
 0x12b   : > { %v7727_v54 = vpop.f32.mrb[35].mxu1  ;;  %v9054_v49 = vpop.permute.xlu1 %1065 }
 0x12f   : > { %v818_v55 = vpop.f32.mrb[36].mxu0 }
 0x130   : > { %v840_v56 = vadd.f32 %v818_v55, %v753_v28  ;;  %v7732_v57 = vpop.f32.mrb[37].mxu0  ;;  %v905_v58 = vpop.f32.mrb[36].mxu1 }
 0x131   : > { %v821_v59 = vpop.f32.mrb[38].mxu0  ;;  %v7746_v60 = vpop.f32.mrb[37].mxu1 }
 0x132   : > { %v841_v61 = vadd.f32 %v821_v59, %v754_v32  ;;  %v927_v62 = vadd.f32 %v905_v58, %v840_v56  ;;  %v7733_v63 = vpop.f32.mrb[39].mxu0  ;;  %v908_v0 = vpop.f32.mrb[38].mxu1 }
 0x133   : > { %v7747_v2 = vpop.f32.mrb[39].mxu1  ;;  %v9047_v32 = vpop.permute.xlu0 %1055 }
 0x134   : > { %v928_v3 = vadd.f32 %v908_v0, %v841_v61  ;;  %v9058_v59 = vpop.permute.xlu1 %1070  ;;  %v8678_v0 = vld [vmem:[%s10150_s1 + $0x58] sm:$0xff]  }
 0x137   : > { %v826_v4 = vpop.f32.mrb[40].mxu0  ;;  %v9050_v42 = vpop.permute.xlu0 %1060 }
 0x138   : > { %v842_v5 = vadd.f32 %v826_v4, %v755_v40  ;;  %v7736_v6 = vpop.f32.mrb[41].mxu0  ;;  %v913_v7 = vpop.f32.mrb[40].mxu1 }
 0x139   : > { %v829_v8 = vpop.f32.mrb[42].mxu0  ;;  %v7750_v9 = vpop.f32.mrb[41].mxu1 }
 0x13a   : > { %v843_v10 = vadd.f32 %v829_v8, %v756_v44  ;;  %v929_v11 = vadd.f32 %v913_v7, %v842_v5  ;;  %v7737_v12 = vpop.f32.mrb[43].mxu0  ;;  %v916_v13 = vpop.f32.mrb[42].mxu1 }
 0x13b   : > { %v7751_v14 = vpop.f32.mrb[43].mxu1  ;;  %v9074_v12 = vpop.permute.xlu0 %1075 }
 0x13c   : > { %v930_v15 = vadd.f32 %v916_v13, %v843_v10  ;;  %v8679_v10 = vld [vmem:[%s10150_s1 + $0x60] sm:$0xff]  }
 0x13f   : > { %v834_v16 = vpop.f32.mrb[44].mxu0 }
 0x140   : > { %v844_v17 = vadd.f32 %v834_v16, %v757_v51  ;;  %v7740_v18 = vpop.f32.mrb[45].mxu0  ;;  %v921_v19 = vpop.f32.mrb[44].mxu1 }
 0x141   : > { %v837_v20 = vpop.f32.mrb[46].mxu0  ;;  %v7754_v21 = vpop.f32.mrb[45].mxu1 }
 0x142   : > { %v931_v22 = vadd.f32 %v921_v19, %v844_v17  ;;  %v7741_v23 = vpop.f32.mrb[47].mxu0  ;;  %v924_v24 = vpop.f32.mrb[46].mxu1 }
 0x143   : > { %v7755_v25 = vpop.f32.mrb[47].mxu1 }
 0x147   : > { %v992_v26 = vpop.f32.mrb[48].mxu0 }
 0x148   : > { %v1014_v28 = vadd.f32 %v992_v26, %v927_v62  ;;  %v7760_v29 = vpop.f32.mrb[49].mxu0 }
 0x149   : > { %v995_v31 = vpop.f32.mrb[50].mxu0  ;;  %v8680_v29 = vld [vmem:[%s10150_s1 + $0x68] sm:$0xff]  }
 0x14a   : > { %v1026_v33 = vadd.f32 %v6946_v27, %v1014_v28  ;;  %v1015_v34 = vadd.f32 %v995_v31, %v928_v3  ;;  %v7761_v35 = vpop.f32.mrb[51].mxu0 }
 0x14c   : > { %vm1031_vm3 = vcmp.ge.f32.partialorder %v1026_v33, 0.0  ;;  %v1043_v36 = vmul.f32 %v6947_v30, %v1026_v33  ;;  %v1027_v37 = vadd.f32 %v6946_v27, %v1015_v34 }
 0x14e   : > { %v1048_v38 = vsel %vm1031_vm3, %v1026_v33, %v1043_v36  ;;  %vm1032_vm4 = vcmp.ge.f32.partialorder %v1027_v37, 0.0  ;;  %v1044_v39 = vmul.f32 %v6947_v30, %v1027_v37  ;;  %v8681_v33 = vld [vmem:[%s10150_s1 + $0x70] sm:$0xff]  }
 0x14f   : > { %v1078_v40 = vmul.f32 %v9047_v32, %v1048_v38  ;;  %v1000_v41 = vpop.f32.mrb[52].mxu0 }
 0x150   : > { %v1049_v43 = vsel %vm1032_vm4, %v1027_v37, %v1044_v39  ;;  %v1016_v44 = vadd.f32 %v1000_v41, %v929_v11  ;;  %v7764_v45 = vpop.f32.mrb[53].mxu0 }
 0x151   : > { %1083 = vst.msk [vmem:[#allocation2 + $0x7] sm:$0xff] %vm226_vm1, %v1078_v40  ;;  %v1079_v46 = vmul.f32 %v9050_v42, %v1049_v43  ;;  %v1003_v47 = vpop.f32.mrb[54].mxu0 }
 0x152   : > { %v1028_v48 = vadd.f32 %v6946_v27, %v1016_v44  ;;  %v1017_v50 = vadd.f32 %v1003_v47, %v930_v15  ;;  %v7765_v51 = vpop.f32.mrb[55].mxu0  ;;  %v8682_v47 = vld [vmem:[%s10150_s1 + $0x78] sm:$0xff]  }
 0x153   : > { %1084 = vst.msk [vmem:[#allocation2 + $0xf] sm:$0xff] %vm226_vm1, %v1079_v46  ;;  %v8683_v51 = vld [vmem:[%s10150_s1 + $0x80] sm:$0xff]  }
 0x154   : > { %vm1033_vm5 = vcmp.ge.f32.partialorder %v1028_v48, 0.0  ;;  %v1045_v52 = vmul.f32 %v6947_v30, %v1028_v48  ;;  %v1029_v53 = vadd.f32 %v6946_v27, %v1017_v50 }
 0x156   : > { %v1050_v54 = vsel %vm1033_vm5, %v1028_v48, %v1045_v52  ;;  %vm1034_vm6 = vcmp.ge.f32.partialorder %v1029_v53, 0.0  ;;  %v1046_v55 = vmul.f32 %v6947_v30, %v1029_v53 }
 0x157   : > { %v1080_v56 = vmul.f32 %v9054_v49, %v1050_v54  ;;  %v1008_v57 = vpop.f32.mrb[56].mxu0 }
 0x158   : > { %v1051_v58 = vsel %vm1034_vm6, %v1029_v53, %v1046_v55  ;;  %v1018_v60 = vadd.f32 %v1008_v57, %v931_v22  ;;  %v7768_v61 = vpop.f32.mrb[57].mxu0  ;;  %v1100_v63 = vld [vmem:[#allocation2 + $0x1] sm:$0xff] }
 0x159   : > { %1085 = vst.msk [vmem:[#allocation2 + $0x17] sm:$0xff] %vm226_vm1, %v1080_v56  ;;  %v1081_v62 = vmul.f32 %v9058_v59, %v1051_v58  ;;  %v1011_v2 = vpop.f32.mrb[58].mxu0  ;;  %v1089_v5 = vld [vmem:[#allocation2] sm:$0xff] }
 0x15a   : > { %v1030_v3 = vadd.f32 %v6946_v27, %v1018_v60  ;;  %v1101_v4 = vld [vmem:[#allocation2 + $0x9] sm:$0xff]  ;;  %v7769_v7 = vpop.f32.mrb[59].mxu0 }
 0x15b   : > { %v9065_v6 = vld [vmem:[#allocation2 + $0x8] sm:$0xff]  ;;  %1086 = vst.msk [vmem:[#allocation2 + $0x1f] sm:$0xff] %vm226_vm1, %v1081_v62  ;;  %v1105_v8 = vpack.c.bf16 %v1101_v4, %v1100_v63 }
 0x15c   : > { %v1094_v9 = vpack.c.bf16 %v9065_v6, %v1089_v5  ;;  %vm1035_vm7 = vcmp.ge.f32.partialorder %v1030_v3, 0.0  ;;  %v1047_v11 = vmul.f32 %v6947_v30, %v1030_v3  ;;  %v1254_v25 = vld [vmem:[#allocation2 + $0xa] sm:$0xff]  ;;  %v1253_v27 = vld [vmem:[#allocation2 + $0x2] sm:$0xff] }
 0x15d   : > { %7773 = vmatmul.mubr.msk.bf16.vlgmr.msra.gmra.mrb[48].mxu1 %vm226_vm1, %v1105_v8  ;;  %v9099_v26 = vld [vmem:[#allocation2 + $0xe] sm:$0xff]  ;;  %v1340_v28 = vld [vmem:[#allocation2 + $0x6] sm:$0xff]  ;;  %v1258_v30 = vpack.c.bf16 %v1254_v25, %v1253_v27 }
 0x15e   : > { %7787 = vmatmul.mubr.msk.bf16.vlgmr.msra.gmra.mrb[60].mxu0 %vm226_vm1, %v1094_v9  ;;  %v1052_v13 = vsel %vm1035_vm7, %v1030_v3, %v1047_v11  ;;  %7799 = vmatpush3.bf16.msra.mxu1 %v8678_v0  ;;  %v1345_v31 = vpack.c.bf16 %v9099_v26, %v1340_v28  ;;  %v1428_v45 = vld [vmem:[#allocation2 + $0xf] sm:$0xff]  ;;  %v1427_v46 = vld [vmem:[#allocation2 + $0x7] sm:$0xff] }
 0x15f   : > { %7776 = vmatprep.mubr.msk.bf16.mxu1 %vm8748_vm0, %v8747_v1  ;;  %v1082_v14 = vmul.f32 %v9074_v12, %v1052_v13  ;;  %7790 = vmatprep.mubr.msk.bf16.mxu0 %vm8748_vm0, %v8747_v1  ;;  %v1432_v48 = vpack.c.bf16 %v1428_v45, %v1427_v46  ;;  %v1601_v0 = vld [vmem:[#allocation2 + $0xc] sm:$0xff] }
 0x160   : > { %7813 = vmatpush3.bf16.msra.mxu0 %v8679_v10  ;;  %7826 = vmatprep.subr.bf16.mxu1 %v8747_v1  ;;  %v1102_v15 = vld [vmem:[#allocation2 + $0x11] sm:$0xff]  ;;  %v8684_v3 = vld [vmem:[%s10150_s1 + $0x88] sm:$0xff]  }
 0x161   : > { %7840 = vmatprep.subr.bf16.mxu0 %v8747_v1  ;;  %1088 = vst.msk [vmem:[#allocation2 + $0x27] sm:$0xf] %vm1087_vm8, %v1082_v14  ;;  %v1091_v17 = vld [vmem:[#allocation2 + $0x10] sm:$0xff]  ;;  %v1605_v13 = vld [vmem:[#allocation2 + $0x2c] sm:$0xf] }
 0x162   : > { %v1103_v16 = vld [vmem:[#allocation2 + $0x19] sm:$0xff]  ;;  %v1104_v21 = vld [vmem:[#allocation2 + $0x21] sm:$0xf]  ;;  %v1519_v50 = vpack.c.bf16 %v1091_v17, %v9065_v6  ;;  %v1688_v2 = vld [vmem:[#allocation2 + $0xd] sm:$0xff] }
 0x163   : > { %v9084_v18 = vld [vmem:[#allocation2 + $0x18] sm:$0xff]  ;;  %v1106_v19 = vpack.c.bf16 %v1103_v16, %v1102_v15  ;;  %v1093_v22 = vld [vmem:[#allocation2 + $0x20] sm:$0xf]  ;;  %v1107_v23 = vpack.c.bf16 %v1104_v21, %v1104_v21  ;;  %v1692_v14 = vld [vmem:[#allocation2 + $0x2d] sm:$0xf]  ;;  %v1608_v15 = vpack.c.bf16 %v1605_v13, %v1605_v13 }
 0x164   : > { %v1095_v20 = vpack.c.bf16 %v9084_v18, %v1091_v17  ;;  %v1096_v24 = vpack.c.bf16 %v1093_v22, %v1093_v22  ;;  %v1256_v34 = vld [vmem:[#allocation2 + $0x1a] sm:$0xff]  ;;  %v1255_v36 = vld [vmem:[#allocation2 + $0x12] sm:$0xff]  ;;  %v1257_v40 = vld [vmem:[#allocation2 + $0x22] sm:$0xf]  ;;  %v1695_v16 = vpack.c.bf16 %v1692_v14, %v1692_v14 }
 0x165   : > { %7777 = vmatmul.mubr.msk.bf16.gmra.mrb[52].mxu1 %vm226_vm1, %v1106_v19  ;;  %v9114_v35 = vld [vmem:[#allocation2 + $0x1e] sm:$0xff]  ;;  %v9118_v37 = vld [vmem:[#allocation2 + $0x16] sm:$0xff]  ;;  %v1259_v38 = vpack.c.bf16 %v1256_v34, %v1255_v36  ;;  %v1260_v43 = vpack.c.bf16 %v1257_v40, %v1257_v40 }
 0x166   : > { %7791 = vmatmul.mubr.msk.bf16.gmra.mrb[64].mxu0 %vm226_vm1, %v1095_v20  ;;  %7780 = vmatprep.mubr.msk.bf16.mxu1 %vm8748_vm0, %v8747_v1  ;;  %v1346_v39 = vpack.c.bf16 %v9114_v35, %v9118_v37  ;;  %v1430_v52 = vld [vmem:[#allocation2 + $0x1f] sm:$0xff]  ;;  %v1429_v54 = vld [vmem:[#allocation2 + $0x17] sm:$0xff]  ;;  %v1780_v17 = vpack.c.bf16 %v9118_v37, %v9099_v26  ;;  %v1779_v20 = vld [vmem:[#allocation2 + $0x2e] sm:$0xf] }
 0x167   : > { %7794 = vmatprep.mubr.msk.bf16.mxu0 %vm8748_vm0, %v8747_v1  ;;  %v1433_v55 = vpack.c.bf16 %v1430_v52, %v1429_v54  ;;  %v1602_v62 = vld [vmem:[#allocation2 + $0x14] sm:$0xff]  ;;  %v1603_v8 = vld [vmem:[#allocation2 + $0x1c] sm:$0xff]  ;;  %v1782_v21 = vpack.c.bf16 %v1779_v20, %v1779_v20 }
 0x168   : > { %v1344_v41 = vld [vmem:[#allocation2 + $0x26] sm:$0xf]  ;;  %v1689_v63 = vld [vmem:[#allocation2 + $0x15] sm:$0xff]  ;;  %v1606_v4 = vpack.c.bf16 %v1602_v62, %v1601_v0  ;;  %v1690_v9 = vld [vmem:[#allocation2 + $0x1d] sm:$0xff] }
 0x169   : > { %v1347_v44 = vpack.c.bf16 %v1344_v41, %v1344_v41  ;;  %v1517_v53 = vld [vmem:[#allocation2 + $0x20] sm:$0xff]  ;;  %v1518_v58 = vld [vmem:[#allocation2 + $0x28] sm:$0xf]  ;;  %v1693_v5 = vpack.c.bf16 %v1689_v63, %v1688_v2  ;;  %v8685_v22 = vld [vmem:[%s10150_s1 + $0x98] sm:$0xff]  }
 0x16a   : > { %v1520_v56 = vpack.c.bf16 %v1517_v53, %v9084_v18  ;;  %v1431_v57 = vld [vmem:[#allocation2 + $0x27] sm:$0xf]  ;;  %v1521_v61 = vpack.c.bf16 %v1518_v58, %v1518_v58 }
 0x16b   : > { %v1434_v60 = vpack.c.bf16 %v1431_v57, %v1431_v57  ;;  %v1604_v6 = vld [vmem:[#allocation2 + $0x24] sm:$0xff] }
 0x16c   : > { %v1691_v7 = vld [vmem:[#allocation2 + $0x25] sm:$0xff]  ;;  %v1607_v10 = vpack.c.bf16 %v1604_v6, %v1603_v8 }
 0x16d   : > { %7781 = vmatmul.mubr.msk.bf16.gmra.mrb[56].mxu1 %vm226_vm1, %v1107_v23  ;;  %v1694_v11 = vpack.c.bf16 %v1691_v7, %v1690_v9  ;;  %v1778_v18 = vld [vmem:[#allocation2 + $0x26] sm:$0xff]  ;;  %v8686_v23 = vld [vmem:[%s10150_s1 + $0x90] sm:$0xff]  }
 0x16e   : > { %7795 = vmatmul.mubr.msk.bf16.gmra.mrb[68].mxu0 %vm226_vm1, %v1096_v24  ;;  %7800 = vmatprep.mubr.msk.bf16.mxu1 %vm8748_vm0, %v8747_v1  ;;  %v1781_v19 = vpack.c.bf16 %v1778_v18, %v9114_v35 }
 0x16f   : > { %7814 = vmatprep.mubr.msk.bf16.mxu0 %vm8748_vm0, %v8747_v1 }
 0x175   : > { %7801 = vmatmul.mubr.msk.bf16.vlgmr.msra.gmra.mrb[60].mxu1 %vm226_vm1, %v1258_v30 }
 0x176   : > { %7815 = vmatmul.mubr.msk.bf16.vlgmr.msra.gmra.mrb[72].mxu0 %vm226_vm1, %v1345_v31  ;;  %7827 = vmatpush3.bf16.msra.mxu1 %v8680_v29 }
 0x177   : > { %7804 = vmatprep.mubr.msk.bf16.mxu1 %vm8748_vm0, %v8747_v1  ;;  %7818 = vmatprep.mubr.msk.bf16.mxu0 %vm8748_vm0, %v8747_v1 }
 0x178   : > { %7841 = vmatpush3.bf16.msra.mxu0 %v8681_v33  ;;  %7854 = vmatprep.subr.bf16.mxu1 %v8747_v1 }
 0x179   : > { %7868 = vmatprep.subr.bf16.mxu0 %v8747_v1 }
 0x17d   : > { %7805 = vmatmul.mubr.msk.bf16.gmra.mrb[64].mxu1 %vm226_vm1, %v1259_v38 }
 0x17e   : > { %7819 = vmatmul.mubr.msk.bf16.gmra.mrb[76].mxu0 %vm226_vm1, %v1346_v39  ;;  %7808 = vmatprep.mubr.msk.bf16.mxu1 %vm8748_vm0, %v8747_v1 }
 0x17f   : > { %7822 = vmatprep.mubr.msk.bf16.mxu0 %vm8748_vm0, %v8747_v1 }
 0x185   : > { %7809 = vmatmul.mubr.msk.bf16.gmra.mrb[68].mxu1 %vm226_vm1, %v1260_v43 }
 0x186   : > { %7823 = vmatmul.mubr.msk.bf16.gmra.mrb[80].mxu0 %vm226_vm1, %v1347_v44  ;;  %7828 = vmatprep.mubr.msk.bf16.mxu1 %vm8748_vm0, %v8747_v1 }
 0x187   : > { %7842 = vmatprep.mubr.msk.bf16.mxu0 %vm8748_vm0, %v8747_v1 }
 0x18d   : > { %7829 = vmatmul.mubr.msk.bf16.vlgmr.msra.gmra.mrb[72].mxu1 %vm226_vm1, %v1432_v48 }
 0x18e   : > { %7843 = vmatmul.mubr.msk.bf16.vlgmr.msra.gmra.mrb[84].mxu0 %vm226_vm1, %v1519_v50  ;;  %7855 = vmatpush3.bf16.msra.mxu1 %v8682_v47 }
 0x18f   : > { %7832 = vmatprep.mubr.msk.bf16.mxu1 %vm8748_vm0, %v8747_v1  ;;  %7846 = vmatprep.mubr.msk.bf16.mxu0 %vm8748_vm0, %v8747_v1 }
 0x190   : > { %7869 = vmatpush3.bf16.msra.mxu0 %v8683_v51  ;;  %7882 = vmatprep.subr.bf16.mxu1 %v8747_v1 }
 0x191   : > { %7896 = vmatprep.subr.bf16.mxu0 %v8747_v1 }
 0x195   : > { %7833 = vmatmul.mubr.msk.bf16.gmra.mrb[76].mxu1 %vm226_vm1, %v1433_v55 }
 0x196   : > { %7847 = vmatmul.mubr.msk.bf16.gmra.mrb[88].mxu0 %vm226_vm1, %v1520_v56  ;;  %7836 = vmatprep.mubr.msk.bf16.mxu1 %vm8748_vm0, %v8747_v1 }
 0x197   : > { %7850 = vmatprep.mubr.msk.bf16.mxu0 %vm8748_vm0, %v8747_v1 }
 0x19d   : > { %7837 = vmatmul.mubr.msk.bf16.gmra.mrb[80].mxu1 %vm226_vm1, %v1434_v60 }
 0x19e   : > { %7851 = vmatmul.mubr.msk.bf16.gmra.mrb[92].mxu0 %vm226_vm1, %v1521_v61  ;;  %7856 = vmatprep.mubr.msk.bf16.mxu1 %vm8748_vm0, %v8747_v1 }
 0x19f   : > { %7870 = vmatprep.mubr.msk.bf16.mxu0 %vm8748_vm0, %v8747_v1 }
 0x1a5   : > { %7857 = vmatmul.mubr.msk.bf16.vlgmr.msra.gmra.mrb[84].mxu1 %vm226_vm1, %v1606_v4 }
 0x1a6   : > { %7871 = vmatmul.mubr.msk.bf16.vlgmr.msra.gmra.mrb[96].mxu0 %vm226_vm1, %v1693_v5  ;;  %7883 = vmatpush3.bf16.msra.mxu1 %v8684_v3 }
 0x1a7   : > { %7860 = vmatprep.mubr.msk.bf16.mxu1 %vm8748_vm0, %v8747_v1  ;;  %7874 = vmatprep.mubr.msk.bf16.mxu0 %vm8748_vm0, %v8747_v1 }
 0x1a8   : > { %7910 = vmatprep.subr.bf16.mxu1 %v8747_v1  ;;  %7897 = vmatpush3.bf16.msra.mxu0 %v8685_v22 }
 0x1a9   : > { %7924 = vmatprep.subr.bf16.mxu0 %v8747_v1 }
 0x1ad   : > { %7861 = vmatmul.mubr.msk.bf16.gmra.mrb[88].mxu1 %vm226_vm1, %v1607_v10 }
 0x1ae   : > { %7875 = vmatmul.mubr.msk.bf16.gmra.mrb[100].mxu0 %vm226_vm1, %v1694_v11  ;;  %7864 = vmatprep.mubr.msk.bf16.mxu1 %vm8748_vm0, %v8747_v1 }
 0x1af   : > { %7878 = vmatprep.mubr.msk.bf16.mxu0 %vm8748_vm0, %v8747_v1 }
 0x1b5   : > { %7865 = vmatmul.mubr.msk.bf16.gmra.mrb[92].mxu1 %vm226_vm1, %v1608_v15 }
 0x1b6   : > { %7879 = vmatmul.mubr.msk.bf16.gmra.mrb[104].mxu0 %vm226_vm1, %v1695_v16  ;;  %7884 = vmatprep.mubr.msk.bf16.mxu1 %vm8748_vm0, %v8747_v1 }
 0x1b7   : > { %7898 = vmatprep.mubr.msk.bf16.mxu0 %vm8748_vm0, %v8747_v1 }
 0x1bd   : > { %7885 = vmatmul.mubr.msk.bf16.vlgmr.msra.gmra.mrb[96].mxu1 %vm226_vm1, %v1780_v17 }
 0x1be   : > { %7888 = vmatprep.mubr.msk.bf16.mxu1 %vm8748_vm0, %v8747_v1  ;;  %7911 = vmatpush3.bf16.msra.mxu1 %v8686_v23 }
 0x1bf   : > { %7938 = vmatprep.subr.bf16.mxu1 %v8747_v1 }
 0x1c5   : > { %7889 = vmatmul.mubr.msk.bf16.gmra.mrb[100].mxu1 %vm226_vm1, %v1781_v19 }
 0x1c6   : > { %7892 = vmatprep.mubr.msk.bf16.mxu1 %vm8748_vm0, %v8747_v1 }
 0x1cd   : > { %7893 = vmatmul.mubr.msk.bf16.gmra.mrb[104].mxu1 %vm226_vm1, %v1782_v21 }
 0x1ce   : > { %7912 = vmatprep.mubr.msk.bf16.mxu1 %vm8748_vm0, %v8747_v1 }
 0x230   : > { %v1160_v24 = vpop.f32.mrb[48].mxu1 }
 0x231   : > { %v1231_v25 = vpop.f32.mrb[60].mxu0  ;;  %v7774_v27 = vpop.f32.mrb[49].mxu1 }
 0x232   : > { %v1232_v26 = vadd.f32 %v1231_v25, %v1160_v24  ;;  %v7788_v28 = vpop.f32.mrb[61].mxu0  ;;  %v1163_v29 = vpop.f32.mrb[50].mxu1 }
 0x233   : > { %v1234_v30 = vpop.f32.mrb[62].mxu0  ;;  %v7775_v33 = vpop.f32.mrb[51].mxu1 }
 0x234   : > { %v1235_v31 = vadd.f32 %v1234_v30, %v1163_v29  ;;  %v7789_v34 = vpop.f32.mrb[63].mxu0 }
 0x238   : > { %v1168_v35 = vpop.f32.mrb[52].mxu1 }
 0x239   : > { %v1239_v36 = vpop.f32.mrb[64].mxu0  ;;  %v7778_v38 = vpop.f32.mrb[53].mxu1 }
 0x23a   : > { %v1240_v37 = vadd.f32 %v1239_v36, %v1168_v35  ;;  %v7792_v39 = vpop.f32.mrb[65].mxu0  ;;  %v1171_v40 = vpop.f32.mrb[54].mxu1 }
 0x23b   : > { %v1242_v41 = vpop.f32.mrb[66].mxu0  ;;  %v7779_v44 = vpop.f32.mrb[55].mxu1 }
 0x23c   : > { %v1243_v43 = vadd.f32 %v1242_v41, %v1171_v40  ;;  %v7793_v45 = vpop.f32.mrb[67].mxu0 }
 0x240   : > { %v1176_v46 = vpop.f32.mrb[56].mxu1 }
 0x241   : > { %v1247_v47 = vpop.f32.mrb[68].mxu0  ;;  %v7782_v50 = vpop.f32.mrb[57].mxu1 }
 0x242   : > { %v1248_v48 = vadd.f32 %v1247_v47, %v1176_v46  ;;  %v7796_v51 = vpop.f32.mrb[69].mxu0  ;;  %v1179_v52 = vpop.f32.mrb[58].mxu1 }
 0x243   : > { %v1250_v53 = vpop.f32.mrb[70].mxu0  ;;  %v7783_v54 = vpop.f32.mrb[59].mxu1 }
 0x244   : > { %v7797_v55 = vpop.f32.mrb[71].mxu0 }
 0x248   : > { %v1313_v56 = vpop.f32.mrb[60].mxu1 }
 0x249   : > { %v1400_v57 = vpop.f32.mrb[72].mxu0  ;;  %v1335_v58 = vadd.f32 %v1313_v56, %v1232_v26  ;;  %v7802_v60 = vpop.f32.mrb[61].mxu1 }
 0x24a   : > { %v7816_v61 = vpop.f32.mrb[73].mxu0  ;;  %v1316_v62 = vpop.f32.mrb[62].mxu1 }
 0x24b   : > { %v1403_v63 = vpop.f32.mrb[74].mxu0  ;;  %v1422_v0 = vadd.f32 %v1400_v57, %v1335_v58  ;;  %v1336_v2 = vadd.f32 %v1316_v62, %v1235_v31  ;;  %v7803_v3 = vpop.f32.mrb[63].mxu1 }
 0x24c   : > { %v7817_v4 = vpop.f32.mrb[75].mxu0 }
 0x24d   : > { %v1423_v5 = vadd.f32 %v1403_v63, %v1336_v2 }
 0x250   : > { %v1321_v6 = vpop.f32.mrb[64].mxu1 }
 0x251   : > { %v1408_v7 = vpop.f32.mrb[76].mxu0  ;;  %v1337_v8 = vadd.f32 %v1321_v6, %v1240_v37  ;;  %v7806_v9 = vpop.f32.mrb[65].mxu1 }
 0x252   : > { %v7820_v10 = vpop.f32.mrb[77].mxu0  ;;  %v1324_v11 = vpop.f32.mrb[66].mxu1 }
 0x253   : > { %v1411_v13 = vpop.f32.mrb[78].mxu0  ;;  %v1424_v14 = vadd.f32 %v1408_v7, %v1337_v8  ;;  %v1338_v15 = vadd.f32 %v1324_v11, %v1243_v43  ;;  %v7807_v16 = vpop.f32.mrb[67].mxu1 }
 0x254   : > { %v7821_v17 = vpop.f32.mrb[79].mxu0 }
 0x255   : > { %v1425_v18 = vadd.f32 %v1411_v13, %v1338_v15 }
 0x258   : > { %v1329_v19 = vpop.f32.mrb[68].mxu1 }
 0x259   : > { %v1416_v20 = vpop.f32.mrb[80].mxu0  ;;  %v1339_v21 = vadd.f32 %v1329_v19, %v1248_v48  ;;  %v7810_v22 = vpop.f32.mrb[69].mxu1 }
 0x25a   : > { %v7824_v23 = vpop.f32.mrb[81].mxu0  ;;  %v1332_v24 = vpop.f32.mrb[70].mxu1 }
 0x25b   : > { %v1419_v25 = vpop.f32.mrb[82].mxu0  ;;  %v1426_v26 = vadd.f32 %v1416_v20, %v1339_v21  ;;  %v7811_v27 = vpop.f32.mrb[71].mxu1 }
 0x25c   : > { %v7825_v28 = vpop.f32.mrb[83].mxu0 }
 0x260   : > { %v1487_v29 = vpop.f32.mrb[72].mxu1 }
 0x261   : > { %v1574_v30 = vpop.f32.mrb[84].mxu0  ;;  %v1509_v31 = vadd.f32 %v1487_v29, %v1422_v0  ;;  %v7830_v33 = vpop.f32.mrb[73].mxu1 }
 0x262   : > { %v7844_v34 = vpop.f32.mrb[85].mxu0  ;;  %v1490_v35 = vpop.f32.mrb[74].mxu1 }
 0x263   : > { %v1577_v36 = vpop.f32.mrb[86].mxu0  ;;  %v1596_v37 = vadd.f32 %v1574_v30, %v1509_v31  ;;  %v1510_v38 = vadd.f32 %v1490_v35, %v1423_v5  ;;  %v7831_v39 = vpop.f32.mrb[75].mxu1 }
 0x264   : > { %v7845_v40 = vpop.f32.mrb[87].mxu0 }
 0x265   : > { %v1597_v41 = vadd.f32 %v1577_v36, %v1510_v38 }
 0x268   : > { %v1495_v43 = vpop.f32.mrb[76].mxu1 }
 0x269   : > { %v1582_v44 = vpop.f32.mrb[88].mxu0  ;;  %v1511_v45 = vadd.f32 %v1495_v43, %v1424_v14  ;;  %v7834_v46 = vpop.f32.mrb[77].mxu1 }
 0x26a   : > { %v7848_v47 = vpop.f32.mrb[89].mxu0  ;;  %v1498_v48 = vpop.f32.mrb[78].mxu1 }
 0x26b   : > { %v1585_v50 = vpop.f32.mrb[90].mxu0  ;;  %v1598_v51 = vadd.f32 %v1582_v44, %v1511_v45  ;;  %v1512_v52 = vadd.f32 %v1498_v48, %v1425_v18  ;;  %v7835_v53 = vpop.f32.mrb[79].mxu1  ;;  %v7005_v45 = vld [vmem:[%s10152_s3 + $0x1] ss:$0 sm:$0xff] }
 0x26c   : > { %v7849_v54 = vpop.f32.mrb[91].mxu0 }
 0x26d   : > { %v1599_v55 = vadd.f32 %v1585_v50, %v1512_v52 }
 0x270   : > { %v1503_v56 = vpop.f32.mrb[80].mxu1 }
 0x271   : > { %v1590_v57 = vpop.f32.mrb[92].mxu0  ;;  %v1513_v58 = vadd.f32 %v1503_v56, %v1426_v26  ;;  %v7838_v60 = vpop.f32.mrb[81].mxu1 }
 0x272   : > { %v7852_v61 = vpop.f32.mrb[93].mxu0  ;;  %v1506_v62 = vpop.f32.mrb[82].mxu1 }
 0x273   : > { %v1593_v63 = vpop.f32.mrb[94].mxu0  ;;  %v1600_v0 = vadd.f32 %v1590_v57, %v1513_v58  ;;  %v7839_v2 = vpop.f32.mrb[83].mxu1 }
 0x274   : > { %v7853_v3 = vpop.f32.mrb[95].mxu0 }
 0x278   : > { %v1661_v4 = vpop.f32.mrb[84].mxu1 }
 0x279   : > { %v1748_v5 = vpop.f32.mrb[96].mxu0  ;;  %v1683_v6 = vadd.f32 %v1661_v4, %v1596_v37  ;;  %v7858_v7 = vpop.f32.mrb[85].mxu1 }
 0x27a   : > { %v7872_v8 = vpop.f32.mrb[97].mxu0  ;;  %v1664_v9 = vpop.f32.mrb[86].mxu1 }
 0x27b   : > { %v1751_v10 = vpop.f32.mrb[98].mxu0  ;;  %v1770_v11 = vadd.f32 %v1748_v5, %v1683_v6  ;;  %v1684_v13 = vadd.f32 %v1664_v9, %v1597_v41  ;;  %v7859_v14 = vpop.f32.mrb[87].mxu1  ;;  %v7003_v41 = vld [vmem:[%s10151_s2 + $0x1] ss:$0 sm:$0xff] }
 0x27c   : > { %v7873_v15 = vpop.f32.mrb[99].mxu0 }
 0x27d   : > { %v1771_v16 = vadd.f32 %v1751_v10, %v1684_v13  ;;  %v8687_v15 = vld [vmem:[%s10150_s1 + $0xa0] sm:$0xff]  }
 0x280   : > { %v1669_v17 = vpop.f32.mrb[88].mxu1 }
 0x281   : > { %v1756_v18 = vpop.f32.mrb[100].mxu0  ;;  %v1685_v19 = vadd.f32 %v1669_v17, %v1598_v51  ;;  %v7862_v20 = vpop.f32.mrb[89].mxu1 }
 0x282   : > { %v7876_v21 = vpop.f32.mrb[101].mxu0  ;;  %v1672_v22 = vpop.f32.mrb[90].mxu1 }
 0x283   : > { %v1759_v23 = vpop.f32.mrb[102].mxu0  ;;  %v1772_v24 = vadd.f32 %v1756_v18, %v1685_v19  ;;  %v1686_v25 = vadd.f32 %v1672_v22, %v1599_v55  ;;  %v7863_v26 = vpop.f32.mrb[91].mxu1 }
 0x284   : > { %v7877_v27 = vpop.f32.mrb[103].mxu0 }
 0x285   : > { %v1773_v28 = vadd.f32 %v1759_v23, %v1686_v25 }
 0x288   : > { %v1677_v29 = vpop.f32.mrb[92].mxu1 }
 0x289   : > { %v1764_v30 = vpop.f32.mrb[104].mxu0  ;;  %v1687_v31 = vadd.f32 %v1677_v29, %v1600_v0  ;;  %v7866_v33 = vpop.f32.mrb[93].mxu1 }
 0x28a   : > { %v7880_v34 = vpop.f32.mrb[105].mxu0  ;;  %v1680_v35 = vpop.f32.mrb[94].mxu1 }
 0x28b   : > { %v1767_v36 = vpop.f32.mrb[106].mxu0  ;;  %v1774_v37 = vadd.f32 %v1764_v30, %v1687_v31  ;;  %v7867_v38 = vpop.f32.mrb[95].mxu1 }
 0x28c   : > { %v7881_v39 = vpop.f32.mrb[107].mxu0 }
 0x290   : > { %v1835_v40 = vpop.f32.mrb[96].mxu1 }
 0x291   : > { %v1857_v43 = vadd.f32 %v1835_v40, %v1770_v11  ;;  %v7886_v44 = vpop.f32.mrb[97].mxu1 }
 0x292   : > { %v1838_v46 = vpop.f32.mrb[98].mxu1  ;;  %v8689_v44 = vld [vmem:[%s10150_s1 + $0xb0] sm:$0xff]  }
 0x293   : > { %v1870_v47 = vadd.f32 %v7003_v41, %v1857_v43  ;;  %v1858_v48 = vadd.f32 %v1838_v46, %v1771_v16  ;;  %v7887_v50 = vpop.f32.mrb[99].mxu1 }
 0x295   : > { %vm1875_vm9 = vcmp.ge.f32.partialorder %v1870_v47, 0.0  ;;  %v1888_v51 = vmul.f32 %v7005_v45, %v1870_v47  ;;  %v1871_v52 = vadd.f32 %v7003_v41, %v1858_v48 }
 0x297   : > { %v1893_v53 = vsel %vm1875_vm9, %v1870_v47, %v1888_v51  ;;  %vm1876_vm10 = vcmp.ge.f32.partialorder %v1871_v52, 0.0  ;;  %v1889_v54 = vmul.f32 %v7005_v45, %v1871_v52  ;;  %v8690_v47 = vld [vmem:[%s10150_s1 + $0xb8] sm:$0xff]  }
 0x298   : > { %v1898_v55 = vmul.f32 %v1893_v53, %v9047_v32  ;;  %v1843_v56 = vpop.f32.mrb[100].mxu1 }
 0x299   : > { %v1894_v57 = vsel %vm1876_vm10, %v1871_v52, %v1889_v54  ;;  %v1859_v58 = vadd.f32 %v1843_v56, %v1772_v24  ;;  %v7890_v60 = vpop.f32.mrb[101].mxu1  ;;  %v8688_v24 = vld [vmem:[%s10150_s1 + $0xa8] sm:$0xff]  }
 0x29a   : > { %1903 = vst.msk [vmem:[#allocation3 + $0x7] sm:$0xff] %vm226_vm1, %v1898_v55  ;;  %v1899_v61 = vmul.f32 %v1894_v57, %v9050_v42  ;;  %v1846_v62 = vpop.f32.mrb[102].mxu1 }
 0x29b   : > { %v1872_v63 = vadd.f32 %v7003_v41, %v1859_v58  ;;  %v1860_v0 = vadd.f32 %v1846_v62, %v1773_v28  ;;  %v7891_v2 = vpop.f32.mrb[103].mxu1  ;;  %v8691_v62 = vld [vmem:[%s10150_s1 + $0xc0] sm:$0xff]  }
 0x29c   : > { %1904 = vst.msk [vmem:[#allocation3 + $0xf] sm:$0xff] %vm226_vm1, %v1899_v61  ;;  %v8692_v2 = vld [vmem:[%s10150_s1 + $0xc8] sm:$0xff]  }
 0x29d   : > { %vm1877_vm11 = vcmp.ge.f32.partialorder %v1872_v63, 0.0  ;;  %v1890_v3 = vmul.f32 %v7005_v45, %v1872_v63  ;;  %v1873_v4 = vadd.f32 %v7003_v41, %v1860_v0 }
 0x29f   : > { %v1895_v5 = vsel %vm1877_vm11, %v1872_v63, %v1890_v3  ;;  %vm1878_vm12 = vcmp.ge.f32.partialorder %v1873_v4, 0.0  ;;  %v1891_v6 = vmul.f32 %v7005_v45, %v1873_v4 }
 0x2a0   : > { %v1900_v7 = vmul.f32 %v1895_v5, %v9054_v49  ;;  %v1851_v8 = vpop.f32.mrb[104].mxu1 }
 0x2a1   : > { %v1896_v9 = vsel %vm1878_vm12, %v1873_v4, %v1891_v6  ;;  %v1861_v10 = vadd.f32 %v1851_v8, %v1774_v37  ;;  %v7894_v11 = vpop.f32.mrb[105].mxu1  ;;  %v1919_v14 = vld [vmem:[#allocation3 + $0x1] sm:$0xff] }
 0x2a2   : > { %1905 = vst.msk [vmem:[#allocation3 + $0x17] sm:$0xff] %vm226_vm1, %v1900_v7  ;;  %v1901_v13 = vmul.f32 %v1896_v9, %v9058_v59  ;;  %v1854_v16 = vpop.f32.mrb[106].mxu1  ;;  %v1908_v19 = vld [vmem:[#allocation3] sm:$0xff] }
 0x2a3   : > { %v1874_v17 = vadd.f32 %v7003_v41, %v1861_v10  ;;  %v1920_v18 = vld [vmem:[#allocation3 + $0x9] sm:$0xff]  ;;  %v7895_v21 = vpop.f32.mrb[107].mxu1 }
 0x2a4   : > { %v9220_v20 = vld [vmem:[#allocation3 + $0x8] sm:$0xff]  ;;  %1906 = vst.msk [vmem:[#allocation3 + $0x1f] sm:$0xff] %vm226_vm1, %v1901_v13  ;;  %v1924_v22 = vpack.c.bf16 %v1920_v18, %v1919_v14 }
 0x2a5   : > { %v1913_v23 = vpack.c.bf16 %v9220_v20, %v1908_v19  ;;  %vm1879_vm13 = vcmp.ge.f32.partialorder %v1874_v17, 0.0  ;;  %v1892_v25 = vmul.f32 %v7005_v45, %v1874_v17  ;;  %v2073_v39 = vld [vmem:[#allocation3 + $0xa] sm:$0xff]  ;;  %v2072_v41 = vld [vmem:[#allocation3 + $0x2] sm:$0xff] }
 0x2a6   : > { %7899 = vmatmul.mubr.msk.bf16.vlgmr.msra.gmra.mrb[108].mxu0 %vm226_vm1, %v1924_v22  ;;  %v9252_v40 = vld [vmem:[#allocation3 + $0xe] sm:$0xff]  ;;  %v2159_v43 = vld [vmem:[#allocation3 + $0x6] sm:$0xff]  ;;  %v2077_v45 = vpack.c.bf16 %v2073_v39, %v2072_v41 }
 0x2a7   : > { %7913 = vmatmul.mubr.msk.bf16.vlgmr.msra.gmra.mrb[108].mxu1 %vm226_vm1, %v1913_v23  ;;  %v1897_v26 = vsel %vm1879_vm13, %v1874_v17, %v1892_v25  ;;  %7925 = vmatpush3.bf16.msra.mxu0 %v8687_v15  ;;  %v2164_v46 = vpack.c.bf16 %v9252_v40, %v2159_v43  ;;  %v2247_v60 = vld [vmem:[#allocation3 + $0xf] sm:$0xff]  ;;  %v2246_v61 = vld [vmem:[#allocation3 + $0x7] sm:$0xff]  ;;  %v8693_v17 = vld [vmem:[%s10150_s1 + $0xd0] sm:$0xff]  }
 0x2a8   : > { %7902 = vmatprep.mubr.msk.bf16.mxu0 %vm8748_vm0, %v8747_v1  ;;  %v1902_v27 = vmul.f32 %v1897_v26, %v9074_v12  ;;  %7916 = vmatprep.mubr.msk.bf16.mxu1 %vm8748_vm0, %v8747_v1  ;;  %v2251_v63 = vpack.c.bf16 %v2247_v60, %v2246_v61  ;;  %v2420_v15 = vld [vmem:[#allocation3 + $0xc] sm:$0xff] }
 0x2a9   : > { %7939 = vmatpush3.bf16.msra.mxu1 %v8688_v24  ;;  %7952 = vmatprep.subr.bf16.mxu0 %v8747_v1  ;;  %v1921_v28 = vld [vmem:[#allocation3 + $0x11] sm:$0xff]  ;;  %v2424_v26 = vld [vmem:[#allocation3 + $0x2c] sm:$0xf] }
 0x2aa   : > { %7966 = vmatprep.subr.bf16.mxu1 %v8747_v1  ;;  %1907 = vst.msk [vmem:[#allocation3 + $0x27] sm:$0xf] %vm1087_vm8, %v1902_v27  ;;  %v1910_v30 = vld [vmem:[#allocation3 + $0x10] sm:$0xff] }
 0x2ab   : > { %v1922_v29 = vld [vmem:[#allocation3 + $0x19] sm:$0xff]  ;;  %v1923_v35 = vld [vmem:[#allocation3 + $0x21] sm:$0xf]  ;;  %v2338_v0 = vpack.c.bf16 %v1910_v30, %v9220_v20  ;;  %v2507_v16 = vld [vmem:[#allocation3 + $0xd] sm:$0xff] }
 0x2ac   : > { %v9237_v31 = vld [vmem:[#allocation3 + $0x18] sm:$0xff]  ;;  %v1925_v33 = vpack.c.bf16 %v1922_v29, %v1921_v28  ;;  %v1912_v36 = vld [vmem:[#allocation3 + $0x20] sm:$0xf]  ;;  %v1926_v37 = vpack.c.bf16 %v1923_v35, %v1923_v35  ;;  %v2511_v27 = vld [vmem:[#allocation3 + $0x2d] sm:$0xf]  ;;  %v2427_v28 = vpack.c.bf16 %v2424_v26, %v2424_v26 }
 0x2ad   : > { %v1914_v34 = vpack.c.bf16 %v9237_v31, %v1910_v30  ;;  %v1915_v38 = vpack.c.bf16 %v1912_v36, %v1912_v36  ;;  %v2075_v48 = vld [vmem:[#allocation3 + $0x1a] sm:$0xff]  ;;  %v2074_v51 = vld [vmem:[#allocation3 + $0x12] sm:$0xff]  ;;  %v2076_v55 = vld [vmem:[#allocation3 + $0x22] sm:$0xf]  ;;  %v2514_v29 = vpack.c.bf16 %v2511_v27, %v2511_v27 }
 0x2ae   : > { %7903 = vmatmul.mubr.msk.bf16.gmra.mrb[112].mxu0 %vm226_vm1, %v1925_v33  ;;  %v9267_v50 = vld [vmem:[#allocation3 + $0x1e] sm:$0xff]  ;;  %v9271_v52 = vld [vmem:[#allocation3 + $0x16] sm:$0xff]  ;;  %v2078_v53 = vpack.c.bf16 %v2075_v48, %v2074_v51  ;;  %v2079_v57 = vpack.c.bf16 %v2076_v55, %v2076_v55  ;;  %v8694_v36 = vld [vmem:[%s10150_s1 + $0xe0] sm:$0xff]  }
 0x2af   : > { %7917 = vmatmul.mubr.msk.bf16.gmra.mrb[112].mxu1 %vm226_vm1, %v1914_v34  ;;  %7906 = vmatprep.mubr.msk.bf16.mxu0 %vm8748_vm0, %v8747_v1  ;;  %v2165_v54 = vpack.c.bf16 %v9267_v50, %v9271_v52  ;;  %v2249_v3 = vld [vmem:[#allocation3 + $0x1f] sm:$0xff]  ;;  %v2248_v5 = vld [vmem:[#allocation3 + $0x17] sm:$0xff]  ;;  %v2599_v30 = vpack.c.bf16 %v9271_v52, %v9252_v40  ;;  %v2598_v34 = vld [vmem:[#allocation3 + $0x2e] sm:$0xf] }
 0x2b0   : > { %7920 = vmatprep.mubr.msk.bf16.mxu1 %vm8748_vm0, %v8747_v1  ;;  %v2252_v6 = vpack.c.bf16 %v2249_v3, %v2248_v5  ;;  %v2421_v13 = vld [vmem:[#allocation3 + $0x14] sm:$0xff]  ;;  %v2422_v22 = vld [vmem:[#allocation3 + $0x1c] sm:$0xff]  ;;  %v2601_v35 = vpack.c.bf16 %v2598_v34, %v2598_v34 }
 0x2b1   : > { %v2163_v56 = vld [vmem:[#allocation3 + $0x26] sm:$0xf]  ;;  %v2508_v14 = vld [vmem:[#allocation3 + $0x15] sm:$0xff]  ;;  %v2425_v18 = vpack.c.bf16 %v2421_v13, %v2420_v15  ;;  %v2509_v23 = vld [vmem:[#allocation3 + $0x1d] sm:$0xff] }
 0x2b2   : > { %v2166_v58 = vpack.c.bf16 %v2163_v56, %v2163_v56  ;;  %v2336_v4 = vld [vmem:[#allocation3 + $0x20] sm:$0xff]  ;;  %v2337_v9 = vld [vmem:[#allocation3 + $0x28] sm:$0xf]  ;;  %v2512_v19 = vpack.c.bf16 %v2508_v14, %v2507_v16 }
 0x2b3   : > { %v2339_v7 = vpack.c.bf16 %v2336_v4, %v9237_v31  ;;  %v2250_v8 = vld [vmem:[#allocation3 + $0x27] sm:$0xf]  ;;  %v2340_v11 = vpack.c.bf16 %v2337_v9, %v2337_v9 }
 0x2b4   : > { %v2253_v10 = vpack.c.bf16 %v2250_v8, %v2250_v8  ;;  %v2423_v20 = vld [vmem:[#allocation3 + $0x24] sm:$0xff] }
 0x2b5   : > { %v2510_v21 = vld [vmem:[#allocation3 + $0x25] sm:$0xff]  ;;  %v2426_v24 = vpack.c.bf16 %v2423_v20, %v2422_v22 }
 0x2b6   : > { %7907 = vmatmul.mubr.msk.bf16.gmra.mrb[116].mxu0 %vm226_vm1, %v1926_v37  ;;  %v2513_v25 = vpack.c.bf16 %v2510_v21, %v2509_v23  ;;  %v2597_v31 = vld [vmem:[#allocation3 + $0x26] sm:$0xff] }
 0x2b7   : > { %7921 = vmatmul.mubr.msk.bf16.gmra.mrb[116].mxu1 %vm226_vm1, %v1915_v38  ;;  %7926 = vmatprep.mubr.msk.bf16.mxu0 %vm8748_vm0, %v8747_v1  ;;  %v2600_v33 = vpack.c.bf16 %v2597_v31, %v9267_v50  ;;  %v8695_v37 = vld [vmem:[%s10150_s1 + $0xd8] sm:$0xff]  }
 0x2b8   : > { %7940 = vmatprep.mubr.msk.bf16.mxu1 %vm8748_vm0, %v8747_v1 }
 0x2be   : > { %7927 = vmatmul.mubr.msk.bf16.vlgmr.msra.gmra.mrb[120].mxu0 %vm226_vm1, %v2077_v45 }
 0x2bf   : > { %7941 = vmatmul.mubr.msk.bf16.vlgmr.msra.gmra.mrb[120].mxu1 %vm226_vm1, %v2164_v46  ;;  %7953 = vmatpush3.bf16.msra.mxu0 %v8689_v44 }
 0x2c0   : > { %7930 = vmatprep.mubr.msk.bf16.mxu0 %vm8748_vm0, %v8747_v1  ;;  %7944 = vmatprep.mubr.msk.bf16.mxu1 %vm8748_vm0, %v8747_v1 }
 0x2c1   : > { %7967 = vmatpush3.bf16.msra.mxu1 %v8690_v47  ;;  %7980 = vmatprep.subr.bf16.mxu0 %v8747_v1 }
 0x2c2   : > { %7994 = vmatprep.subr.bf16.mxu1 %v8747_v1 }
 0x2c6   : > { %7931 = vmatmul.mubr.msk.bf16.gmra.mrb[124].mxu0 %vm226_vm1, %v2078_v53 }
 0x2c7   : > { %7945 = vmatmul.mubr.msk.bf16.gmra.mrb[124].mxu1 %vm226_vm1, %v2165_v54  ;;  %7934 = vmatprep.mubr.msk.bf16.mxu0 %vm8748_vm0, %v8747_v1 }
 0x2c8   : > { %7948 = vmatprep.mubr.msk.bf16.mxu1 %vm8748_vm0, %v8747_v1 }
 0x2ce   : > { %7935 = vmatmul.mubr.msk.bf16.gmra.mrb[128].mxu0 %vm226_vm1, %v2079_v57 }
 0x2cf   : > { %7949 = vmatmul.mubr.msk.bf16.gmra.mrb[128].mxu1 %vm226_vm1, %v2166_v58  ;;  %7954 = vmatprep.mubr.msk.bf16.mxu0 %vm8748_vm0, %v8747_v1 }
 0x2d0   : > { %7968 = vmatprep.mubr.msk.bf16.mxu1 %vm8748_vm0, %v8747_v1 }
 0x2d6   : > { %7955 = vmatmul.mubr.msk.bf16.vlgmr.msra.gmra.mrb[132].mxu0 %vm226_vm1, %v2251_v63 }
 0x2d7   : > { %7969 = vmatmul.mubr.msk.bf16.vlgmr.msra.gmra.mrb[132].mxu1 %vm226_vm1, %v2338_v0  ;;  %7981 = vmatpush3.bf16.msra.mxu0 %v8691_v62 }
 0x2d8   : > { %7958 = vmatprep.mubr.msk.bf16.mxu0 %vm8748_vm0, %v8747_v1  ;;  %7972 = vmatprep.mubr.msk.bf16.mxu1 %vm8748_vm0, %v8747_v1 }
 0x2d9   : > { %7995 = vmatpush3.bf16.msra.mxu1 %v8692_v2  ;;  %8008 = vmatprep.subr.bf16.mxu0 %v8747_v1 }
 0x2da   : > { %8022 = vmatprep.subr.bf16.mxu1 %v8747_v1 }
 0x2de   : > { %7959 = vmatmul.mubr.msk.bf16.gmra.mrb[136].mxu0 %vm226_vm1, %v2252_v6 }
 0x2df   : > { %7973 = vmatmul.mubr.msk.bf16.gmra.mrb[136].mxu1 %vm226_vm1, %v2339_v7  ;;  %7962 = vmatprep.mubr.msk.bf16.mxu0 %vm8748_vm0, %v8747_v1 }
 0x2e0   : > { %7976 = vmatprep.mubr.msk.bf16.mxu1 %vm8748_vm0, %v8747_v1 }
 0x2e6   : > { %7963 = vmatmul.mubr.msk.bf16.gmra.mrb[140].mxu0 %vm226_vm1, %v2253_v10 }
 0x2e7   : > { %7977 = vmatmul.mubr.msk.bf16.gmra.mrb[140].mxu1 %vm226_vm1, %v2340_v11  ;;  %7982 = vmatprep.mubr.msk.bf16.mxu0 %vm8748_vm0, %v8747_v1 }
 0x2e8   : > { %7996 = vmatprep.mubr.msk.bf16.mxu1 %vm8748_vm0, %v8747_v1 }
 0x2ee   : > { %7983 = vmatmul.mubr.msk.bf16.vlgmr.msra.gmra.mrb[144].mxu0 %vm226_vm1, %v2425_v18 }
 0x2ef   : > { %7997 = vmatmul.mubr.msk.bf16.vlgmr.msra.gmra.mrb[144].mxu1 %vm226_vm1, %v2512_v19  ;;  %8009 = vmatpush3.bf16.msra.mxu0 %v8693_v17 }
 0x2f0   : > { %7986 = vmatprep.mubr.msk.bf16.mxu0 %vm8748_vm0, %v8747_v1  ;;  %8000 = vmatprep.mubr.msk.bf16.mxu1 %vm8748_vm0, %v8747_v1 }
 0x2f1   : > { %8036 = vmatprep.subr.bf16.mxu0 %v8747_v1  ;;  %8023 = vmatpush3.bf16.msra.mxu1 %v8694_v36 }
 0x2f2   : > { %8050 = vmatprep.subr.bf16.mxu1 %v8747_v1 }
 0x2f6   : > { %7987 = vmatmul.mubr.msk.bf16.gmra.mrb[148].mxu0 %vm226_vm1, %v2426_v24 }
 0x2f7   : > { %8001 = vmatmul.mubr.msk.bf16.gmra.mrb[148].mxu1 %vm226_vm1, %v2513_v25  ;;  %7990 = vmatprep.mubr.msk.bf16.mxu0 %vm8748_vm0, %v8747_v1 }
 0x2f8   : > { %8004 = vmatprep.mubr.msk.bf16.mxu1 %vm8748_vm0, %v8747_v1 }
 0x2fe   : > { %7991 = vmatmul.mubr.msk.bf16.gmra.mrb[152].mxu0 %vm226_vm1, %v2427_v28 }
 0x2ff   : > { %8005 = vmatmul.mubr.msk.bf16.gmra.mrb[152].mxu1 %vm226_vm1, %v2514_v29  ;;  %8010 = vmatprep.mubr.msk.bf16.mxu0 %vm8748_vm0, %v8747_v1 }
 0x300   : > { %8024 = vmatprep.mubr.msk.bf16.mxu1 %vm8748_vm0, %v8747_v1 }
 0x306   : > { %8011 = vmatmul.mubr.msk.bf16.vlgmr.msra.gmra.mrb[156].mxu0 %vm226_vm1, %v2599_v30 }
 0x307   : > { %8014 = vmatprep.mubr.msk.bf16.mxu0 %vm8748_vm0, %v8747_v1  ;;  %8037 = vmatpush3.bf16.msra.mxu0 %v8695_v37 }
 0x308   : > { %8064 = vmatprep.subr.bf16.mxu0 %v8747_v1 }
 0x30e   : > { %8015 = vmatmul.mubr.msk.bf16.gmra.mrb[160].mxu0 %vm226_vm1, %v2600_v33 }
 0x30f   : > { %8018 = vmatprep.mubr.msk.bf16.mxu0 %vm8748_vm0, %v8747_v1 }
 0x316   : > { %8019 = vmatmul.mubr.msk.bf16.gmra.mrb[164].mxu0 %vm226_vm1, %v2601_v35 }
 0x317   : > { %8038 = vmatprep.mubr.msk.bf16.mxu0 %vm8748_vm0, %v8747_v1 }
 0x379   : > { %v1979_v38 = vpop.f32.mrb[108].mxu0 }
 0x37a   : > { %v2050_v39 = vpop.f32.mrb[108].mxu1  ;;  %v7900_v41 = vpop.f32.mrb[109].mxu0 }
 0x37b   : > { %v2051_v40 = vadd.f32 %v2050_v39, %v1979_v38  ;;  %v7914_v43 = vpop.f32.mrb[109].mxu1  ;;  %v1982_v44 = vpop.f32.mrb[110].mxu0 }
 0x37c   : > { %v2053_v45 = vpop.f32.mrb[110].mxu1  ;;  %v7901_v47 = vpop.f32.mrb[111].mxu0 }
 0x37d   : > { %v2054_v46 = vadd.f32 %v2053_v45, %v1982_v44  ;;  %v7915_v48 = vpop.f32.mrb[111].mxu1 }
 0x381   : > { %v1987_v50 = vpop.f32.mrb[112].mxu0 }
 0x382   : > { %v2058_v51 = vpop.f32.mrb[112].mxu1  ;;  %v7904_v53 = vpop.f32.mrb[113].mxu0 }
 0x383   : > { %v2059_v52 = vadd.f32 %v2058_v51, %v1987_v50  ;;  %v7918_v54 = vpop.f32.mrb[113].mxu1  ;;  %v1990_v55 = vpop.f32.mrb[114].mxu0 }
 0x384   : > { %v2061_v56 = vpop.f32.mrb[114].mxu1  ;;  %v7905_v58 = vpop.f32.mrb[115].mxu0 }
 0x385   : > { %v2062_v57 = vadd.f32 %v2061_v56, %v1990_v55  ;;  %v7919_v60 = vpop.f32.mrb[115].mxu1 }
 0x389   : > { %v1995_v61 = vpop.f32.mrb[116].mxu0 }
 0x38a   : > { %v2066_v62 = vpop.f32.mrb[116].mxu1  ;;  %v7908_v0 = vpop.f32.mrb[117].mxu0 }
 0x38b   : > { %v2067_v63 = vadd.f32 %v2066_v62, %v1995_v61  ;;  %v7922_v2 = vpop.f32.mrb[117].mxu1  ;;  %v1998_v3 = vpop.f32.mrb[118].mxu0 }
 0x38c   : > { %v2069_v4 = vpop.f32.mrb[118].mxu1  ;;  %v7909_v5 = vpop.f32.mrb[119].mxu0 }
 0x38d   : > { %v7923_v6 = vpop.f32.mrb[119].mxu1 }
 0x391   : > { %v2132_v7 = vpop.f32.mrb[120].mxu0 }
 0x392   : > { %v2219_v8 = vpop.f32.mrb[120].mxu1  ;;  %v2154_v9 = vadd.f32 %v2132_v7, %v2051_v40  ;;  %v7928_v10 = vpop.f32.mrb[121].mxu0 }
 0x393   : > { %v7942_v11 = vpop.f32.mrb[121].mxu1  ;;  %v2135_v13 = vpop.f32.mrb[122].mxu0 }
 0x394   : > { %v2222_v14 = vpop.f32.mrb[122].mxu1  ;;  %v2241_v15 = vadd.f32 %v2219_v8, %v2154_v9  ;;  %v2155_v16 = vadd.f32 %v2135_v13, %v2054_v46  ;;  %v7929_v17 = vpop.f32.mrb[123].mxu0 }
 0x395   : > { %v7943_v18 = vpop.f32.mrb[123].mxu1 }
 0x396   : > { %v2242_v19 = vadd.f32 %v2222_v14, %v2155_v16 }
 0x399   : > { %v2140_v20 = vpop.f32.mrb[124].mxu0 }
 0x39a   : > { %v2227_v21 = vpop.f32.mrb[124].mxu1  ;;  %v2156_v22 = vadd.f32 %v2140_v20, %v2059_v52  ;;  %v7932_v23 = vpop.f32.mrb[125].mxu0 }
 0x39b   : > { %v7946_v24 = vpop.f32.mrb[125].mxu1  ;;  %v2143_v25 = vpop.f32.mrb[126].mxu0 }
 0x39c   : > { %v2230_v26 = vpop.f32.mrb[126].mxu1  ;;  %v2243_v27 = vadd.f32 %v2227_v21, %v2156_v22  ;;  %v2157_v28 = vadd.f32 %v2143_v25, %v2062_v57  ;;  %v7933_v29 = vpop.f32.mrb[127].mxu0 }
 0x39d   : > { %v7947_v30 = vpop.f32.mrb[127].mxu1 }
 0x39e   : > { %v2244_v31 = vadd.f32 %v2230_v26, %v2157_v28 }
 0x3a1   : > { %v2148_v33 = vpop.f32.mrb[128].mxu0 }
 0x3a2   : > { %v2235_v34 = vpop.f32.mrb[128].mxu1  ;;  %v2158_v35 = vadd.f32 %v2148_v33, %v2067_v63  ;;  %v7936_v36 = vpop.f32.mrb[129].mxu0 }
 0x3a3   : > { %v7950_v37 = vpop.f32.mrb[129].mxu1  ;;  %v2151_v38 = vpop.f32.mrb[130].mxu0 }
 0x3a4   : > { %v2238_v39 = vpop.f32.mrb[130].mxu1  ;;  %v2245_v40 = vadd.f32 %v2235_v34, %v2158_v35  ;;  %v7937_v41 = vpop.f32.mrb[131].mxu0 }
 0x3a5   : > { %v7951_v43 = vpop.f32.mrb[131].mxu1 }
 0x3a9   : > { %v2306_v44 = vpop.f32.mrb[132].mxu0 }
 0x3aa   : > { %v2393_v45 = vpop.f32.mrb[132].mxu1  ;;  %v2328_v46 = vadd.f32 %v2306_v44, %v2241_v15  ;;  %v7956_v47 = vpop.f32.mrb[133].mxu0 }
 0x3ab   : > { %v7970_v48 = vpop.f32.mrb[133].mxu1  ;;  %v2309_v50 = vpop.f32.mrb[134].mxu0 }
 0x3ac   : > { %v2396_v51 = vpop.f32.mrb[134].mxu1  ;;  %v2415_v52 = vadd.f32 %v2393_v45, %v2328_v46  ;;  %v2329_v53 = vadd.f32 %v2309_v50, %v2242_v19  ;;  %v7957_v54 = vpop.f32.mrb[135].mxu0 }
 0x3ad   : > { %v7971_v55 = vpop.f32.mrb[135].mxu1 }
 0x3ae   : > { %v2416_v56 = vadd.f32 %v2396_v51, %v2329_v53 }
 0x3b1   : > { %v2314_v57 = vpop.f32.mrb[136].mxu0 }
 0x3b2   : > { %v2401_v58 = vpop.f32.mrb[136].mxu1  ;;  %v2330_v60 = vadd.f32 %v2314_v57, %v2243_v27  ;;  %v7960_v61 = vpop.f32.mrb[137].mxu0 }
 0x3b3   : > { %v7974_v62 = vpop.f32.mrb[137].mxu1  ;;  %v2317_v63 = vpop.f32.mrb[138].mxu0 }
 0x3b4   : > { %v2404_v0 = vpop.f32.mrb[138].mxu1  ;;  %v2417_v2 = vadd.f32 %v2401_v58, %v2330_v60  ;;  %v2331_v3 = vadd.f32 %v2317_v63, %v2244_v31  ;;  %v7961_v4 = vpop.f32.mrb[139].mxu0  ;;  %v7063_v60 = vld [vmem:[%s10152_s3 + $0x2] ss:$0 sm:$0xff] }
 0x3b5   : > { %v7975_v5 = vpop.f32.mrb[139].mxu1 }
 0x3b6   : > { %v2418_v6 = vadd.f32 %v2404_v0, %v2331_v3 }
 0x3b9   : > { %v2322_v7 = vpop.f32.mrb[140].mxu0 }
 0x3ba   : > { %v2409_v8 = vpop.f32.mrb[140].mxu1  ;;  %v2332_v9 = vadd.f32 %v2322_v7, %v2245_v40  ;;  %v7964_v10 = vpop.f32.mrb[141].mxu0 }
 0x3bb   : > { %v7978_v11 = vpop.f32.mrb[141].mxu1  ;;  %v2325_v13 = vpop.f32.mrb[142].mxu0 }
 0x3bc   : > { %v2412_v14 = vpop.f32.mrb[142].mxu1  ;;  %v2419_v15 = vadd.f32 %v2409_v8, %v2332_v9  ;;  %v7965_v16 = vpop.f32.mrb[143].mxu0 }
 0x3bd   : > { %v7979_v17 = vpop.f32.mrb[143].mxu1 }
 0x3c1   : > { %v2480_v18 = vpop.f32.mrb[144].mxu0 }
 0x3c2   : > { %v2567_v19 = vpop.f32.mrb[144].mxu1  ;;  %v2502_v20 = vadd.f32 %v2480_v18, %v2415_v52  ;;  %v7984_v21 = vpop.f32.mrb[145].mxu0 }
 0x3c3   : > { %v7998_v22 = vpop.f32.mrb[145].mxu1  ;;  %v2483_v23 = vpop.f32.mrb[146].mxu0 }
 0x3c4   : > { %v2570_v24 = vpop.f32.mrb[146].mxu1  ;;  %v2589_v25 = vadd.f32 %v2567_v19, %v2502_v20  ;;  %v2503_v26 = vadd.f32 %v2483_v23, %v2416_v56  ;;  %v7985_v27 = vpop.f32.mrb[147].mxu0  ;;  %v7061_v56 = vld [vmem:[%s10151_s2 + $0x2] ss:$0 sm:$0xff] }
 0x3c5   : > { %v7999_v28 = vpop.f32.mrb[147].mxu1 }
 0x3c6   : > { %v2590_v29 = vadd.f32 %v2570_v24, %v2503_v26  ;;  %v8696_v28 = vld [vmem:[%s10150_s1 + $0xe8] sm:$0xff]  }
 0x3c9   : > { %v2488_v30 = vpop.f32.mrb[148].mxu0 }
 0x3ca   : > { %v2575_v31 = vpop.f32.mrb[148].mxu1  ;;  %v2504_v33 = vadd.f32 %v2488_v30, %v2417_v2  ;;  %v7988_v34 = vpop.f32.mrb[149].mxu0 }
 0x3cb   : > { %v8002_v35 = vpop.f32.mrb[149].mxu1  ;;  %v2491_v36 = vpop.f32.mrb[150].mxu0 }
 0x3cc   : > { %v2578_v37 = vpop.f32.mrb[150].mxu1  ;;  %v2591_v38 = vadd.f32 %v2575_v31, %v2504_v33  ;;  %v2505_v39 = vadd.f32 %v2491_v36, %v2418_v6  ;;  %v7989_v40 = vpop.f32.mrb[151].mxu0 }
 0x3cd   : > { %v8003_v41 = vpop.f32.mrb[151].mxu1 }
 0x3ce   : > { %v2592_v43 = vadd.f32 %v2578_v37, %v2505_v39 }
 0x3d1   : > { %v2496_v44 = vpop.f32.mrb[152].mxu0 }
 0x3d2   : > { %v2583_v45 = vpop.f32.mrb[152].mxu1  ;;  %v2506_v46 = vadd.f32 %v2496_v44, %v2419_v15  ;;  %v7992_v47 = vpop.f32.mrb[153].mxu0 }
 0x3d3   : > { %v8006_v48 = vpop.f32.mrb[153].mxu1  ;;  %v2499_v50 = vpop.f32.mrb[154].mxu0 }
 0x3d4   : > { %v2586_v51 = vpop.f32.mrb[154].mxu1  ;;  %v2593_v52 = vadd.f32 %v2583_v45, %v2506_v46  ;;  %v7993_v53 = vpop.f32.mrb[155].mxu0 }
 0x3d5   : > { %v8007_v54 = vpop.f32.mrb[155].mxu1 }
 0x3d9   : > { %v2654_v55 = vpop.f32.mrb[156].mxu0 }
 0x3da   : > { %v2676_v57 = vadd.f32 %v2654_v55, %v2589_v25  ;;  %v8012_v58 = vpop.f32.mrb[157].mxu0 }
 0x3db   : > { %v2657_v61 = vpop.f32.mrb[158].mxu0  ;;  %v8698_v58 = vld [vmem:[%s10150_s1 + $0xf8] sm:$0xff]  }
 0x3dc   : > { %v2689_v62 = vadd.f32 %v7061_v56, %v2676_v57  ;;  %v2677_v63 = vadd.f32 %v2657_v61, %v2590_v29  ;;  %v8013_v0 = vpop.f32.mrb[159].mxu0 }
 0x3de   : > { %vm2694_vm14 = vcmp.ge.f32.partialorder %v2689_v62, 0.0  ;;  %v2707_v2 = vmul.f32 %v7063_v60, %v2689_v62  ;;  %v2690_v3 = vadd.f32 %v7061_v56, %v2677_v63 }
 0x3e0   : > { %v2712_v4 = vsel %vm2694_vm14, %v2689_v62, %v2707_v2  ;;  %vm2695_vm15 = vcmp.ge.f32.partialorder %v2690_v3, 0.0  ;;  %v2708_v5 = vmul.f32 %v7063_v60, %v2690_v3  ;;  %v8699_v62 = vld [vmem:[%s10150_s1 + $0x100] sm:$0xff]  }
 0x3e1   : > { %v2717_v6 = vmul.f32 %v2712_v4, %v9047_v32  ;;  %v2662_v7 = vpop.f32.mrb[160].mxu0 }
 0x3e2   : > { %v2713_v8 = vsel %vm2695_vm15, %v2690_v3, %v2708_v5  ;;  %v2678_v9 = vadd.f32 %v2662_v7, %v2591_v38  ;;  %v8016_v10 = vpop.f32.mrb[161].mxu0  ;;  %v8697_v38 = vld [vmem:[%s10150_s1 + $0xf0] sm:$0xff]  }
 0x3e3   : > { %2722 = vst.msk [vmem:[#allocation2 + $0x7] sm:$0xff] %vm226_vm1, %v2717_v6  ;;  %v2718_v11 = vmul.f32 %v2713_v8, %v9050_v42  ;;  %v2665_v13 = vpop.f32.mrb[162].mxu0 }
 0x3e4   : > { %v2691_v14 = vadd.f32 %v7061_v56, %v2678_v9  ;;  %v2679_v15 = vadd.f32 %v2665_v13, %v2592_v43  ;;  %v8017_v16 = vpop.f32.mrb[163].mxu0  ;;  %v8700_v13 = vld [vmem:[%s10150_s1 + $0x108] sm:$0xff]  }
 0x3e5   : > { %2723 = vst.msk [vmem:[#allocation2 + $0xf] sm:$0xff] %vm226_vm1, %v2718_v11  ;;  %v8701_v16 = vld [vmem:[%s10150_s1 + $0x110] sm:$0xff]  }
 0x3e6   : > { %vm2696_vm2 = vcmp.ge.f32.partialorder %v2691_v14, 0.0  ;;  %v2709_v17 = vmul.f32 %v7063_v60, %v2691_v14  ;;  %v2692_v18 = vadd.f32 %v7061_v56, %v2679_v15 }
 0x3e8   : > { %v2714_v19 = vsel %vm2696_vm2, %v2691_v14, %v2709_v17  ;;  %vm2697_vm3 = vcmp.ge.f32.partialorder %v2692_v18, 0.0  ;;  %v2710_v20 = vmul.f32 %v7063_v60, %v2692_v18 }
 0x3e9   : > { %v2719_v21 = vmul.f32 %v2714_v19, %v9054_v49  ;;  %v2670_v22 = vpop.f32.mrb[164].mxu0 }
 0x3ea   : > { %v2715_v23 = vsel %vm2697_vm3, %v2692_v18, %v2710_v20  ;;  %v2680_v24 = vadd.f32 %v2670_v22, %v2593_v52  ;;  %v8020_v25 = vpop.f32.mrb[165].mxu0  ;;  %v2738_v27 = vld [vmem:[#allocation2 + $0x1] sm:$0xff] }
 0x3eb   : > { %2724 = vst.msk [vmem:[#allocation2 + $0x17] sm:$0xff] %vm226_vm1, %v2719_v21  ;;  %v2720_v26 = vmul.f32 %v2715_v23, %v9058_v59  ;;  %v2673_v29 = vpop.f32.mrb[166].mxu0  ;;  %v2727_v33 = vld [vmem:[#allocation2] sm:$0xff] }
 0x3ec   : > { %v2693_v30 = vadd.f32 %v7061_v56, %v2680_v24  ;;  %v2739_v31 = vld [vmem:[#allocation2 + $0x9] sm:$0xff]  ;;  %v8021_v35 = vpop.f32.mrb[167].mxu0 }
 0x3ed   : > { %v9373_v34 = vld [vmem:[#allocation2 + $0x8] sm:$0xff]  ;;  %2725 = vst.msk [vmem:[#allocation2 + $0x1f] sm:$0xff] %vm226_vm1, %v2720_v26  ;;  %v2743_v36 = vpack.c.bf16 %v2739_v31, %v2738_v27 }
 0x3ee   : > { %v2732_v37 = vpack.c.bf16 %v9373_v34, %v2727_v33  ;;  %vm2698_vm4 = vcmp.ge.f32.partialorder %v2693_v30, 0.0  ;;  %v2711_v39 = vmul.f32 %v7063_v60, %v2693_v30  ;;  %v2892_v54 = vld [vmem:[#allocation2 + $0xa] sm:$0xff]  ;;  %v2891_v56 = vld [vmem:[#allocation2 + $0x2] sm:$0xff] }
 0x3ef   : > { %8025 = vmatmul.mubr.msk.bf16.vlgmr.msra.gmra.mrb[156].mxu1 %vm226_vm1, %v2743_v36  ;;  %v9405_v55 = vld [vmem:[#allocation2 + $0xe] sm:$0xff]  ;;  %v2978_v57 = vld [vmem:[#allocation2 + $0x6] sm:$0xff]  ;;  %v2896_v60 = vpack.c.bf16 %v2892_v54, %v2891_v56 }
 0x3f0   : > { %8039 = vmatmul.mubr.msk.bf16.vlgmr.msra.gmra.mrb[168].mxu0 %vm226_vm1, %v2732_v37  ;;  %v2716_v40 = vsel %vm2698_vm4, %v2693_v30, %v2711_v39  ;;  %8051 = vmatpush3.bf16.msra.mxu1 %v8696_v28  ;;  %v2983_v61 = vpack.c.bf16 %v9405_v55, %v2978_v57  ;;  %v3066_v10 = vld [vmem:[#allocation2 + $0xf] sm:$0xff]  ;;  %v3065_v11 = vld [vmem:[#allocation2 + $0x7] sm:$0xff]  ;;  %v8702_v30 = vld [vmem:[%s10150_s1 + $0x118] sm:$0xff]  }
 0x3f1   : > { %8028 = vmatprep.mubr.msk.bf16.mxu1 %vm8748_vm0, %v8747_v1  ;;  %v2721_v41 = vmul.f32 %v2716_v40, %v9074_v12  ;;  %8042 = vmatprep.mubr.msk.bf16.mxu0 %vm8748_vm0, %v8747_v1  ;;  %v3070_v14 = vpack.c.bf16 %v3066_v10, %v3065_v11  ;;  %v3239_v28 = vld [vmem:[#allocation2 + $0xc] sm:$0xff] }
 0x3f2   : > { %8065 = vmatpush3.bf16.msra.mxu0 %v8697_v38  ;;  %8078 = vmatprep.subr.bf16.mxu1 %v8747_v1  ;;  %v2740_v43 = vld [vmem:[#allocation2 + $0x11] sm:$0xff]  ;;  %v3243_v40 = vld [vmem:[#allocation2 + $0x2c] sm:$0xf] }
 0x3f3   : > { %8092 = vmatprep.subr.bf16.mxu0 %v8747_v1  ;;  %2726 = vst.msk [vmem:[#allocation2 + $0x27] sm:$0xf] %vm1087_vm8, %v2721_v41  ;;  %v2729_v45 = vld [vmem:[#allocation2 + $0x10] sm:$0xff] }
 0x3f4   : > { %v2741_v44 = vld [vmem:[#allocation2 + $0x19] sm:$0xff]  ;;  %v2742_v50 = vld [vmem:[#allocation2 + $0x21] sm:$0xf]  ;;  %v3157_v15 = vpack.c.bf16 %v2729_v45, %v9373_v34  ;;  %v3326_v29 = vld [vmem:[#allocation2 + $0xd] sm:$0xff] }
 0x3f5   : > { %v9390_v46 = vld [vmem:[#allocation2 + $0x18] sm:$0xff]  ;;  %v2744_v47 = vpack.c.bf16 %v2741_v44, %v2740_v43  ;;  %v2731_v51 = vld [vmem:[#allocation2 + $0x20] sm:$0xf]  ;;  %v2745_v52 = vpack.c.bf16 %v2742_v50, %v2742_v50  ;;  %v3330_v41 = vld [vmem:[#allocation2 + $0x2d] sm:$0xf]  ;;  %v3246_v43 = vpack.c.bf16 %v3243_v40, %v3243_v40 }
 0x3f6   : > { %v2733_v48 = vpack.c.bf16 %v9390_v46, %v2729_v45  ;;  %v2734_v53 = vpack.c.bf16 %v2731_v51, %v2731_v51  ;;  %v2894_v63 = vld [vmem:[#allocation2 + $0x1a] sm:$0xff]  ;;  %v2893_v2 = vld [vmem:[#allocation2 + $0x12] sm:$0xff]  ;;  %v2895_v6 = vld [vmem:[#allocation2 + $0x22] sm:$0xf]  ;;  %v3333_v44 = vpack.c.bf16 %v3330_v41, %v3330_v41 }
 0x3f7   : > { %8029 = vmatmul.mubr.msk.bf16.gmra.mrb[160].mxu1 %vm226_vm1, %v2744_v47  ;;  %v9420_v0 = vld [vmem:[#allocation2 + $0x1e] sm:$0xff]  ;;  %v9424_v3 = vld [vmem:[#allocation2 + $0x16] sm:$0xff]  ;;  %v2897_v4 = vpack.c.bf16 %v2894_v63, %v2893_v2  ;;  %v2898_v8 = vpack.c.bf16 %v2895_v6, %v2895_v6  ;;  %v8703_v51 = vld [vmem:[%s10150_s1 + $0x128] sm:$0xff]  }
 0x3f8   : > { %8043 = vmatmul.mubr.msk.bf16.gmra.mrb[172].mxu0 %vm226_vm1, %v2733_v48  ;;  %8032 = vmatprep.mubr.msk.bf16.mxu1 %vm8748_vm0, %v8747_v1  ;;  %v2984_v5 = vpack.c.bf16 %v9420_v0, %v9424_v3  ;;  %v3068_v17 = vld [vmem:[#allocation2 + $0x1f] sm:$0xff]  ;;  %v3067_v19 = vld [vmem:[#allocation2 + $0x17] sm:$0xff]  ;;  %v3418_v45 = vpack.c.bf16 %v9424_v3, %v9405_v55  ;;  %v3417_v48 = vld [vmem:[#allocation2 + $0x2e] sm:$0xf] }
 0x3f9   : > { %8046 = vmatprep.mubr.msk.bf16.mxu0 %vm8748_vm0, %v8747_v1  ;;  %v3071_v20 = vpack.c.bf16 %v3068_v17, %v3067_v19  ;;  %v3240_v26 = vld [vmem:[#allocation2 + $0x14] sm:$0xff]  ;;  %v3241_v36 = vld [vmem:[#allocation2 + $0x1c] sm:$0xff]  ;;  %v3420_v50 = vpack.c.bf16 %v3417_v48, %v3417_v48 }
 0x3fa   : > { %v2982_v7 = vld [vmem:[#allocation2 + $0x26] sm:$0xf]  ;;  %v3327_v27 = vld [vmem:[#allocation2 + $0x15] sm:$0xff]  ;;  %v3244_v31 = vpack.c.bf16 %v3240_v26, %v3239_v28  ;;  %v3328_v37 = vld [vmem:[#allocation2 + $0x1d] sm:$0xff] }
 0x3fb   : > { %v2985_v9 = vpack.c.bf16 %v2982_v7, %v2982_v7  ;;  %v3155_v18 = vld [vmem:[#allocation2 + $0x20] sm:$0xff]  ;;  %v3156_v23 = vld [vmem:[#allocation2 + $0x28] sm:$0xf]  ;;  %v3331_v33 = vpack.c.bf16 %v3327_v27, %v3326_v29 }
 0x3fc   : > { %v3158_v21 = vpack.c.bf16 %v3155_v18, %v9390_v46  ;;  %v3069_v22 = vld [vmem:[#allocation2 + $0x27] sm:$0xf]  ;;  %v3159_v25 = vpack.c.bf16 %v3156_v23, %v3156_v23 }
 0x3fd   : > { %v3072_v24 = vpack.c.bf16 %v3069_v22, %v3069_v22  ;;  %v3242_v34 = vld [vmem:[#allocation2 + $0x24] sm:$0xff] }
 0x3fe   : > { %v3329_v35 = vld [vmem:[#allocation2 + $0x25] sm:$0xff]  ;;  %v3245_v38 = vpack.c.bf16 %v3242_v34, %v3241_v36 }
 0x3ff   : > { %8033 = vmatmul.mubr.msk.bf16.gmra.mrb[164].mxu1 %vm226_vm1, %v2745_v52  ;;  %v3332_v39 = vpack.c.bf16 %v3329_v35, %v3328_v37  ;;  %v3416_v46 = vld [vmem:[#allocation2 + $0x26] sm:$0xff] }
 0x400   : > { %8047 = vmatmul.mubr.msk.bf16.gmra.mrb[176].mxu0 %vm226_vm1, %v2734_v53  ;;  %8052 = vmatprep.mubr.msk.bf16.mxu1 %vm8748_vm0, %v8747_v1  ;;  %v3419_v47 = vpack.c.bf16 %v3416_v46, %v9420_v0  ;;  %v8704_v52 = vld [vmem:[%s10150_s1 + $0x120] sm:$0xff]  }
 0x401   : > { %8066 = vmatprep.mubr.msk.bf16.mxu0 %vm8748_vm0, %v8747_v1 }
 0x407   : > { %8053 = vmatmul.mubr.msk.bf16.vlgmr.msra.gmra.mrb[168].mxu1 %vm226_vm1, %v2896_v60 }
 0x408   : > { %8067 = vmatmul.mubr.msk.bf16.vlgmr.msra.gmra.mrb[180].mxu0 %vm226_vm1, %v2983_v61  ;;  %8079 = vmatpush3.bf16.msra.mxu1 %v8698_v58 }
 0x409   : > { %8056 = vmatprep.mubr.msk.bf16.mxu1 %vm8748_vm0, %v8747_v1  ;;  %8070 = vmatprep.mubr.msk.bf16.mxu0 %vm8748_vm0, %v8747_v1 }
 0x40a   : > { %8093 = vmatpush3.bf16.msra.mxu0 %v8699_v62  ;;  %8106 = vmatprep.subr.bf16.mxu1 %v8747_v1 }
 0x40b   : > { %8120 = vmatprep.subr.bf16.mxu0 %v8747_v1 }
 0x40f   : > { %8057 = vmatmul.mubr.msk.bf16.gmra.mrb[172].mxu1 %vm226_vm1, %v2897_v4 }
 0x410   : > { %8071 = vmatmul.mubr.msk.bf16.gmra.mrb[184].mxu0 %vm226_vm1, %v2984_v5  ;;  %8060 = vmatprep.mubr.msk.bf16.mxu1 %vm8748_vm0, %v8747_v1 }
 0x411   : > { %8074 = vmatprep.mubr.msk.bf16.mxu0 %vm8748_vm0, %v8747_v1 }
 0x417   : > { %8061 = vmatmul.mubr.msk.bf16.gmra.mrb[176].mxu1 %vm226_vm1, %v2898_v8 }
 0x418   : > { %8075 = vmatmul.mubr.msk.bf16.gmra.mrb[188].mxu0 %vm226_vm1, %v2985_v9  ;;  %8080 = vmatprep.mubr.msk.bf16.mxu1 %vm8748_vm0, %v8747_v1 }
 0x419   : > { %8094 = vmatprep.mubr.msk.bf16.mxu0 %vm8748_vm0, %v8747_v1 }
 0x41f   : > { %8081 = vmatmul.mubr.msk.bf16.vlgmr.msra.gmra.mrb[180].mxu1 %vm226_vm1, %v3070_v14 }
 0x420   : > { %8095 = vmatmul.mubr.msk.bf16.vlgmr.msra.gmra.mrb[192].mxu0 %vm226_vm1, %v3157_v15  ;;  %8107 = vmatpush3.bf16.msra.mxu1 %v8700_v13 }
 0x421   : > { %8084 = vmatprep.mubr.msk.bf16.mxu1 %vm8748_vm0, %v8747_v1  ;;  %8098 = vmatprep.mubr.msk.bf16.mxu0 %vm8748_vm0, %v8747_v1 }
 0x422   : > { %8121 = vmatpush3.bf16.msra.mxu0 %v8701_v16  ;;  %8134 = vmatprep.subr.bf16.mxu1 %v8747_v1 }
 0x423   : > { %8148 = vmatprep.subr.bf16.mxu0 %v8747_v1 }
 0x427   : > { %8085 = vmatmul.mubr.msk.bf16.gmra.mrb[184].mxu1 %vm226_vm1, %v3071_v20 }
 0x428   : > { %8099 = vmatmul.mubr.msk.bf16.gmra.mrb[196].mxu0 %vm226_vm1, %v3158_v21  ;;  %8088 = vmatprep.mubr.msk.bf16.mxu1 %vm8748_vm0, %v8747_v1 }
 0x429   : > { %8102 = vmatprep.mubr.msk.bf16.mxu0 %vm8748_vm0, %v8747_v1 }
 0x42f   : > { %8089 = vmatmul.mubr.msk.bf16.gmra.mrb[188].mxu1 %vm226_vm1, %v3072_v24 }
 0x430   : > { %8103 = vmatmul.mubr.msk.bf16.gmra.mrb[200].mxu0 %vm226_vm1, %v3159_v25  ;;  %8108 = vmatprep.mubr.msk.bf16.mxu1 %vm8748_vm0, %v8747_v1 }
 0x431   : > { %8122 = vmatprep.mubr.msk.bf16.mxu0 %vm8748_vm0, %v8747_v1 }
 0x437   : > { %8109 = vmatmul.mubr.msk.bf16.vlgmr.msra.gmra.mrb[192].mxu1 %vm226_vm1, %v3244_v31 }
 0x438   : > { %8123 = vmatmul.mubr.msk.bf16.vlgmr.msra.gmra.mrb[204].mxu0 %vm226_vm1, %v3331_v33  ;;  %8135 = vmatpush3.bf16.msra.mxu1 %v8702_v30 }
 0x439   : > { %8112 = vmatprep.mubr.msk.bf16.mxu1 %vm8748_vm0, %v8747_v1  ;;  %8126 = vmatprep.mubr.msk.bf16.mxu0 %vm8748_vm0, %v8747_v1 }
 0x43a   : > { %8162 = vmatprep.subr.bf16.mxu1 %v8747_v1  ;;  %8149 = vmatpush3.bf16.msra.mxu0 %v8703_v51 }
 0x43b   : > { %8176 = vmatprep.subr.bf16.mxu0 %v8747_v1 }
 0x43f   : > { %8113 = vmatmul.mubr.msk.bf16.gmra.mrb[196].mxu1 %vm226_vm1, %v3245_v38 }
 0x440   : > { %8127 = vmatmul.mubr.msk.bf16.gmra.mrb[208].mxu0 %vm226_vm1, %v3332_v39  ;;  %8116 = vmatprep.mubr.msk.bf16.mxu1 %vm8748_vm0, %v8747_v1 }
 0x441   : > { %8130 = vmatprep.mubr.msk.bf16.mxu0 %vm8748_vm0, %v8747_v1 }
 0x447   : > { %8117 = vmatmul.mubr.msk.bf16.gmra.mrb[200].mxu1 %vm226_vm1, %v3246_v43 }
 0x448   : > { %8131 = vmatmul.mubr.msk.bf16.gmra.mrb[212].mxu0 %vm226_vm1, %v3333_v44  ;;  %8136 = vmatprep.mubr.msk.bf16.mxu1 %vm8748_vm0, %v8747_v1 }
 0x449   : > { %8150 = vmatprep.mubr.msk.bf16.mxu0 %vm8748_vm0, %v8747_v1 }
 0x44f   : > { %8137 = vmatmul.mubr.msk.bf16.vlgmr.msra.gmra.mrb[204].mxu1 %vm226_vm1, %v3418_v45 }
 0x450   : > { %8140 = vmatprep.mubr.msk.bf16.mxu1 %vm8748_vm0, %v8747_v1  ;;  %8163 = vmatpush3.bf16.msra.mxu1 %v8704_v52 }
 0x451   : > { %8190 = vmatprep.subr.bf16.mxu1 %v8747_v1 }
 0x457   : > { %8141 = vmatmul.mubr.msk.bf16.gmra.mrb[208].mxu1 %vm226_vm1, %v3419_v47 }
 0x458   : > { %8144 = vmatprep.mubr.msk.bf16.mxu1 %vm8748_vm0, %v8747_v1 }
 0x45f   : > { %8145 = vmatmul.mubr.msk.bf16.gmra.mrb[212].mxu1 %vm226_vm1, %v3420_v50 }
 0x460   : > { %8164 = vmatprep.mubr.msk.bf16.mxu1 %vm8748_vm0, %v8747_v1 }
 0x4c2   : > { %v2798_v53 = vpop.f32.mrb[156].mxu1 }
 0x4c3   : > { %v2869_v54 = vpop.f32.mrb[168].mxu0  ;;  %v8026_v56 = vpop.f32.mrb[157].mxu1 }
 0x4c4   : > { %v2870_v55 = vadd.f32 %v2869_v54, %v2798_v53  ;;  %v8040_v57 = vpop.f32.mrb[169].mxu0  ;;  %v2801_v58 = vpop.f32.mrb[158].mxu1 }
 0x4c5   : > { %v2872_v60 = vpop.f32.mrb[170].mxu0  ;;  %v8027_v62 = vpop.f32.mrb[159].mxu1 }
 0x4c6   : > { %v2873_v61 = vadd.f32 %v2872_v60, %v2801_v58  ;;  %v8041_v63 = vpop.f32.mrb[171].mxu0 }
 0x4ca   : > { %v2806_v0 = vpop.f32.mrb[160].mxu1 }
 0x4cb   : > { %v2877_v2 = vpop.f32.mrb[172].mxu0  ;;  %v8030_v4 = vpop.f32.mrb[161].mxu1 }
 0x4cc   : > { %v2878_v3 = vadd.f32 %v2877_v2, %v2806_v0  ;;  %v8044_v5 = vpop.f32.mrb[173].mxu0  ;;  %v2809_v6 = vpop.f32.mrb[162].mxu1 }
 0x4cd   : > { %v2880_v7 = vpop.f32.mrb[174].mxu0  ;;  %v8031_v9 = vpop.f32.mrb[163].mxu1 }
 0x4ce   : > { %v2881_v8 = vadd.f32 %v2880_v7, %v2809_v6  ;;  %v8045_v10 = vpop.f32.mrb[175].mxu0 }
 0x4d2   : > { %v2814_v11 = vpop.f32.mrb[164].mxu1 }
 0x4d3   : > { %v2885_v13 = vpop.f32.mrb[176].mxu0  ;;  %v8034_v15 = vpop.f32.mrb[165].mxu1 }
 0x4d4   : > { %v2886_v14 = vadd.f32 %v2885_v13, %v2814_v11  ;;  %v8048_v16 = vpop.f32.mrb[177].mxu0  ;;  %v2817_v17 = vpop.f32.mrb[166].mxu1 }
 0x4d5   : > { %v2888_v18 = vpop.f32.mrb[178].mxu0  ;;  %v8035_v19 = vpop.f32.mrb[167].mxu1 }
 0x4d6   : > { %v8049_v20 = vpop.f32.mrb[179].mxu0 }
 0x4da   : > { %v2951_v21 = vpop.f32.mrb[168].mxu1 }
 0x4db   : > { %v3038_v22 = vpop.f32.mrb[180].mxu0  ;;  %v2973_v23 = vadd.f32 %v2951_v21, %v2870_v55  ;;  %v8054_v24 = vpop.f32.mrb[169].mxu1 }
 0x4dc   : > { %v8068_v25 = vpop.f32.mrb[181].mxu0  ;;  %v2954_v26 = vpop.f32.mrb[170].mxu1 }
 0x4dd   : > { %v3041_v27 = vpop.f32.mrb[182].mxu0  ;;  %v3060_v28 = vadd.f32 %v3038_v22, %v2973_v23  ;;  %v2974_v29 = vadd.f32 %v2954_v26, %v2873_v61  ;;  %v8055_v30 = vpop.f32.mrb[171].mxu1 }
 0x4de   : > { %v8069_v31 = vpop.f32.mrb[183].mxu0 }
 0x4df   : > { %v3061_v33 = vadd.f32 %v3041_v27, %v2974_v29 }
 0x4e2   : > { %v2959_v34 = vpop.f32.mrb[172].mxu1 }
 0x4e3   : > { %v3046_v35 = vpop.f32.mrb[184].mxu0  ;;  %v2975_v36 = vadd.f32 %v2959_v34, %v2878_v3  ;;  %v8058_v37 = vpop.f32.mrb[173].mxu1 }
 0x4e4   : > { %v8072_v38 = vpop.f32.mrb[185].mxu0  ;;  %v2962_v39 = vpop.f32.mrb[174].mxu1 }
 0x4e5   : > { %v3049_v40 = vpop.f32.mrb[186].mxu0  ;;  %v3062_v41 = vadd.f32 %v3046_v35, %v2975_v36  ;;  %v2976_v43 = vadd.f32 %v2962_v39, %v2881_v8  ;;  %v8059_v44 = vpop.f32.mrb[175].mxu1 }
 0x4e6   : > { %v8073_v45 = vpop.f32.mrb[187].mxu0 }
 0x4e7   : > { %v3063_v46 = vadd.f32 %v3049_v40, %v2976_v43 }
 0x4ea   : > { %v2967_v47 = vpop.f32.mrb[176].mxu1 }
 0x4eb   : > { %v3054_v48 = vpop.f32.mrb[188].mxu0  ;;  %v2977_v50 = vadd.f32 %v2967_v47, %v2886_v14  ;;  %v8062_v51 = vpop.f32.mrb[177].mxu1 }
 0x4ec   : > { %v8076_v52 = vpop.f32.mrb[189].mxu0  ;;  %v2970_v53 = vpop.f32.mrb[178].mxu1 }
 0x4ed   : > { %v3057_v54 = vpop.f32.mrb[190].mxu0  ;;  %v3064_v55 = vadd.f32 %v3054_v48, %v2977_v50  ;;  %v8063_v56 = vpop.f32.mrb[179].mxu1 }
 0x4ee   : > { %v8077_v57 = vpop.f32.mrb[191].mxu0 }
 0x4f2   : > { %v3125_v58 = vpop.f32.mrb[180].mxu1 }
 0x4f3   : > { %v3212_v60 = vpop.f32.mrb[192].mxu0  ;;  %v3147_v61 = vadd.f32 %v3125_v58, %v3060_v28  ;;  %v8082_v62 = vpop.f32.mrb[181].mxu1 }
 0x4f4   : > { %v8096_v63 = vpop.f32.mrb[193].mxu0  ;;  %v3128_v0 = vpop.f32.mrb[182].mxu1 }
 0x4f5   : > { %v3215_v2 = vpop.f32.mrb[194].mxu0  ;;  %v3234_v3 = vadd.f32 %v3212_v60, %v3147_v61  ;;  %v3148_v4 = vadd.f32 %v3128_v0, %v3061_v33  ;;  %v8083_v5 = vpop.f32.mrb[183].mxu1 }
 0x4f6   : > { %v8097_v6 = vpop.f32.mrb[195].mxu0 }
 0x4f7   : > { %v3235_v7 = vadd.f32 %v3215_v2, %v3148_v4 }
 0x4fa   : > { %v3133_v8 = vpop.f32.mrb[184].mxu1 }
 0x4fb   : > { %v3220_v9 = vpop.f32.mrb[196].mxu0  ;;  %v3149_v10 = vadd.f32 %v3133_v8, %v3062_v41  ;;  %v8086_v11 = vpop.f32.mrb[185].mxu1 }
 0x4fc   : > { %v8100_v13 = vpop.f32.mrb[197].mxu0  ;;  %v3136_v14 = vpop.f32.mrb[186].mxu1 }
 0x4fd   : > { %v3223_v15 = vpop.f32.mrb[198].mxu0  ;;  %v3236_v16 = vadd.f32 %v3220_v9, %v3149_v10  ;;  %v3150_v17 = vadd.f32 %v3136_v14, %v3063_v46  ;;  %v8087_v18 = vpop.f32.mrb[187].mxu1  ;;  %v7121_v10 = vld [vmem:[%s10152_s3 + $0x3] ss:$0 sm:$0xff] }
 0x4fe   : > { %v8101_v19 = vpop.f32.mrb[199].mxu0 }
 0x4ff   : > { %v3237_v20 = vadd.f32 %v3223_v15, %v3150_v17 }
 0x502   : > { %v3141_v21 = vpop.f32.mrb[188].mxu1 }
 0x503   : > { %v3228_v22 = vpop.f32.mrb[200].mxu0  ;;  %v3151_v23 = vadd.f32 %v3141_v21, %v3064_v55  ;;  %v8090_v24 = vpop.f32.mrb[189].mxu1 }
 0x504   : > { %v8104_v25 = vpop.f32.mrb[201].mxu0  ;;  %v3144_v26 = vpop.f32.mrb[190].mxu1 }
 0x505   : > { %v3231_v27 = vpop.f32.mrb[202].mxu0  ;;  %v3238_v28 = vadd.f32 %v3228_v22, %v3151_v23  ;;  %v8091_v29 = vpop.f32.mrb[191].mxu1 }
 0x506   : > { %v8105_v30 = vpop.f32.mrb[203].mxu0 }
 0x50a   : > { %v3299_v31 = vpop.f32.mrb[192].mxu1 }
 0x50b   : > { %v3386_v33 = vpop.f32.mrb[204].mxu0  ;;  %v3321_v34 = vadd.f32 %v3299_v31, %v3234_v3  ;;  %v8110_v35 = vpop.f32.mrb[193].mxu1 }
 0x50c   : > { %v8124_v36 = vpop.f32.mrb[205].mxu0  ;;  %v3302_v37 = vpop.f32.mrb[194].mxu1 }
 0x50d   : > { %v3389_v38 = vpop.f32.mrb[206].mxu0  ;;  %v3408_v39 = vadd.f32 %v3386_v33, %v3321_v34  ;;  %v3322_v40 = vadd.f32 %v3302_v37, %v3235_v7  ;;  %v8111_v41 = vpop.f32.mrb[195].mxu1  ;;  %v7119_v7 = vld [vmem:[%s10151_s2 + $0x3] ss:$0 sm:$0xff] }
 0x50e   : > { %v8125_v43 = vpop.f32.mrb[207].mxu0 }
 0x50f   : > { %v3409_v44 = vadd.f32 %v3389_v38, %v3322_v40  ;;  %v8705_v43 = vld [vmem:[%s10150_s1 + $0x130] sm:$0xff]  }
 0x512   : > { %v3307_v45 = vpop.f32.mrb[196].mxu1 }
 0x513   : > { %v3394_v46 = vpop.f32.mrb[208].mxu0  ;;  %v3323_v47 = vadd.f32 %v3307_v45, %v3236_v16  ;;  %v8114_v48 = vpop.f32.mrb[197].mxu1 }
 0x514   : > { %v8128_v50 = vpop.f32.mrb[209].mxu0  ;;  %v3310_v51 = vpop.f32.mrb[198].mxu1 }
 0x515   : > { %v3397_v52 = vpop.f32.mrb[210].mxu0  ;;  %v3410_v53 = vadd.f32 %v3394_v46, %v3323_v47  ;;  %v3324_v54 = vadd.f32 %v3310_v51, %v3237_v20  ;;  %v8115_v55 = vpop.f32.mrb[199].mxu1 }
 0x516   : > { %v8129_v56 = vpop.f32.mrb[211].mxu0 }
 0x517   : > { %v3411_v57 = vadd.f32 %v3397_v52, %v3324_v54 }
 0x51a   : > { %v3315_v58 = vpop.f32.mrb[200].mxu1 }
 0x51b   : > { %v3402_v60 = vpop.f32.mrb[212].mxu0  ;;  %v3325_v61 = vadd.f32 %v3315_v58, %v3238_v28  ;;  %v8118_v62 = vpop.f32.mrb[201].mxu1 }
 0x51c   : > { %v8132_v63 = vpop.f32.mrb[213].mxu0  ;;  %v3318_v0 = vpop.f32.mrb[202].mxu1 }
 0x51d   : > { %v3405_v2 = vpop.f32.mrb[214].mxu0  ;;  %v3412_v3 = vadd.f32 %v3402_v60, %v3325_v61  ;;  %v8119_v4 = vpop.f32.mrb[203].mxu1 }
 0x51e   : > { %v8133_v5 = vpop.f32.mrb[215].mxu0 }
 0x522   : > { %v3473_v6 = vpop.f32.mrb[204].mxu1 }
 0x523   : > { %v3495_v8 = vadd.f32 %v3473_v6, %v3408_v39  ;;  %v8138_v9 = vpop.f32.mrb[205].mxu1 }
 0x524   : > { %v3476_v11 = vpop.f32.mrb[206].mxu1  ;;  %v8707_v9 = vld [vmem:[%s10150_s1 + $0x140] sm:$0xff]  }
 0x525   : > { %v3508_v13 = vadd.f32 %v7119_v7, %v3495_v8  ;;  %v3496_v14 = vadd.f32 %v3476_v11, %v3409_v44  ;;  %v8139_v15 = vpop.f32.mrb[207].mxu1 }
 0x527   : > { %vm3513_vm5 = vcmp.ge.f32.partialorder %v3508_v13, 0.0  ;;  %v3526_v16 = vmul.f32 %v7121_v10, %v3508_v13  ;;  %v3509_v17 = vadd.f32 %v7119_v7, %v3496_v14 }
 0x529   : > { %v3531_v18 = vsel %vm3513_vm5, %v3508_v13, %v3526_v16  ;;  %vm3514_vm6 = vcmp.ge.f32.partialorder %v3509_v17, 0.0  ;;  %v3527_v19 = vmul.f32 %v7121_v10, %v3509_v17  ;;  %v8708_v13 = vld [vmem:[%s10150_s1 + $0x148] sm:$0xff]  }
 0x52a   : > { %v3536_v20 = vmul.f32 %v3531_v18, %v9047_v32  ;;  %v3481_v21 = vpop.f32.mrb[208].mxu1 }
 0x52b   : > { %v3532_v22 = vsel %vm3514_vm6, %v3509_v17, %v3527_v19  ;;  %v3497_v23 = vadd.f32 %v3481_v21, %v3410_v53  ;;  %v8142_v24 = vpop.f32.mrb[209].mxu1  ;;  %v8706_v53 = vld [vmem:[%s10150_s1 + $0x138] sm:$0xff]  }
 0x52c   : > { %3541 = vst.msk [vmem:[#allocation3 + $0x7] sm:$0xff] %vm226_vm1, %v3536_v20  ;;  %v3537_v25 = vmul.f32 %v3532_v22, %v9050_v42  ;;  %v3484_v26 = vpop.f32.mrb[210].mxu1 }
 0x52d   : > { %v3510_v27 = vadd.f32 %v7119_v7, %v3497_v23  ;;  %v3498_v28 = vadd.f32 %v3484_v26, %v3411_v57  ;;  %v8143_v29 = vpop.f32.mrb[211].mxu1  ;;  %v8709_v26 = vld [vmem:[%s10150_s1 + $0x150] sm:$0xff]  }
 0x52e   : > { %3542 = vst.msk [vmem:[#allocation3 + $0xf] sm:$0xff] %vm226_vm1, %v3537_v25  ;;  %v8710_v29 = vld [vmem:[%s10150_s1 + $0x158] sm:$0xff]  }
 0x52f   : > { %vm3515_vm7 = vcmp.ge.f32.partialorder %v3510_v27, 0.0  ;;  %v3528_v30 = vmul.f32 %v7121_v10, %v3510_v27  ;;  %v3511_v31 = vadd.f32 %v7119_v7, %v3498_v28 }
 0x531   : > { %v3533_v33 = vsel %vm3515_vm7, %v3510_v27, %v3528_v30  ;;  %vm3516_vm9 = vcmp.ge.f32.partialorder %v3511_v31, 0.0  ;;  %v3529_v34 = vmul.f32 %v7121_v10, %v3511_v31 }
 0x532   : > { %v3538_v35 = vmul.f32 %v3533_v33, %v9054_v49  ;;  %v3489_v36 = vpop.f32.mrb[212].mxu1 }
 0x533   : > { %v3534_v37 = vsel %vm3516_vm9, %v3511_v31, %v3529_v34  ;;  %v3499_v38 = vadd.f32 %v3489_v36, %v3412_v3  ;;  %v8146_v39 = vpop.f32.mrb[213].mxu1  ;;  %v3557_v41 = vld [vmem:[#allocation3 + $0x1] sm:$0xff] }
 0x534   : > { %3543 = vst.msk [vmem:[#allocation3 + $0x17] sm:$0xff] %vm226_vm1, %v3538_v35  ;;  %v3539_v40 = vmul.f32 %v3534_v37, %v9058_v59  ;;  %v3492_v44 = vpop.f32.mrb[214].mxu1  ;;  %v3546_v47 = vld [vmem:[#allocation3] sm:$0xff] }
 0x535   : > { %v3512_v45 = vadd.f32 %v7119_v7, %v3499_v38  ;;  %v3558_v46 = vld [vmem:[#allocation3 + $0x9] sm:$0xff]  ;;  %v8147_v50 = vpop.f32.mrb[215].mxu1 }
 0x536   : > { %v9526_v48 = vld [vmem:[#allocation3 + $0x8] sm:$0xff]  ;;  %3544 = vst.msk [vmem:[#allocation3 + $0x1f] sm:$0xff] %vm226_vm1, %v3539_v40  ;;  %v3562_v51 = vpack.c.bf16 %v3558_v46, %v3557_v41 }
 0x537   : > { %v3551_v52 = vpack.c.bf16 %v9526_v48, %v3546_v47  ;;  %vm3517_vm10 = vcmp.ge.f32.partialorder %v3512_v45, 0.0  ;;  %v3530_v54 = vmul.f32 %v7121_v10, %v3512_v45  ;;  %v3711_v5 = vld [vmem:[#allocation3 + $0xa] sm:$0xff]  ;;  %v3710_v7 = vld [vmem:[#allocation3 + $0x2] sm:$0xff] }
 0x538   : > { %8151 = vmatmul.mubr.msk.bf16.vlgmr.msra.gmra.mrb[216].mxu0 %vm226_vm1, %v3562_v51  ;;  %v9558_v6 = vld [vmem:[#allocation3 + $0xe] sm:$0xff]  ;;  %v3797_v8 = vld [vmem:[#allocation3 + $0x6] sm:$0xff]  ;;  %v3715_v10 = vpack.c.bf16 %v3711_v5, %v3710_v7 }
 0x539   : > { %8165 = vmatmul.mubr.msk.bf16.vlgmr.msra.gmra.mrb[216].mxu1 %vm226_vm1, %v3551_v52  ;;  %v3535_v55 = vsel %vm3517_vm10, %v3512_v45, %v3530_v54  ;;  %8177 = vmatpush3.bf16.msra.mxu0 %v8705_v43  ;;  %v3802_v11 = vpack.c.bf16 %v9558_v6, %v3797_v8  ;;  %v3885_v24 = vld [vmem:[#allocation3 + $0xf] sm:$0xff]  ;;  %v3884_v25 = vld [vmem:[#allocation3 + $0x7] sm:$0xff] }
 0x53a   : > { %8154 = vmatprep.mubr.msk.bf16.mxu0 %vm8748_vm0, %v8747_v1  ;;  %v3540_v56 = vmul.f32 %v3535_v55, %v9074_v12  ;;  %8168 = vmatprep.mubr.msk.bf16.mxu1 %vm8748_vm0, %v8747_v1  ;;  %v3889_v27 = vpack.c.bf16 %v3885_v24, %v3884_v25  ;;  %v4058_v43 = vld [vmem:[#allocation3 + $0xc] sm:$0xff] }
 0x53b   : > { %8191 = vmatpush3.bf16.msra.mxu1 %v8706_v53  ;;  %8204 = vmatprep.subr.bf16.mxu0 %v8747_v1  ;;  %v3559_v57 = vld [vmem:[#allocation3 + $0x11] sm:$0xff]  ;;  %v8711_v45 = vld [vmem:[%s10150_s1 + $0x160] sm:$0xff]  }
 0x53c   : > { %8218 = vmatprep.subr.bf16.mxu1 %v8747_v1  ;;  %3545 = vst.msk [vmem:[#allocation3 + $0x27] sm:$0xf] %vm1087_vm8, %v3540_v56  ;;  %v3548_v60 = vld [vmem:[#allocation3 + $0x10] sm:$0xff]  ;;  %v4062_v55 = vld [vmem:[#allocation3 + $0x2c] sm:$0xf] }
 0x53d   : > { %v3560_v58 = vld [vmem:[#allocation3 + $0x19] sm:$0xff]  ;;  %v3561_v0 = vld [vmem:[#allocation3 + $0x21] sm:$0xf]  ;;  %v3976_v28 = vpack.c.bf16 %v3548_v60, %v9526_v48  ;;  %v4145_v44 = vld [vmem:[#allocation3 + $0xd] sm:$0xff] }
 0x53e   : > { %v9543_v61 = vld [vmem:[#allocation3 + $0x18] sm:$0xff]  ;;  %v3563_v62 = vpack.c.bf16 %v3560_v58, %v3559_v57  ;;  %v3550_v2 = vld [vmem:[#allocation3 + $0x20] sm:$0xf]  ;;  %v3564_v3 = vpack.c.bf16 %v3561_v0, %v3561_v0  ;;  %v4149_v56 = vld [vmem:[#allocation3 + $0x2d] sm:$0xf]  ;;  %v4065_v57 = vpack.c.bf16 %v4062_v55, %v4062_v55 }
 0x53f   : > { %v3552_v63 = vpack.c.bf16 %v9543_v61, %v3548_v60  ;;  %v3553_v4 = vpack.c.bf16 %v3550_v2, %v3550_v2  ;;  %v3713_v14 = vld [vmem:[#allocation3 + $0x1a] sm:$0xff]  ;;  %v3712_v16 = vld [vmem:[#allocation3 + $0x12] sm:$0xff]  ;;  %v3714_v20 = vld [vmem:[#allocation3 + $0x22] sm:$0xf]  ;;  %v4152_v58 = vpack.c.bf16 %v4149_v56, %v4149_v56 }
 0x540   : > { %8155 = vmatmul.mubr.msk.bf16.gmra.mrb[220].mxu0 %vm226_vm1, %v3563_v62  ;;  %v9573_v15 = vld [vmem:[#allocation3 + $0x1e] sm:$0xff]  ;;  %v9577_v17 = vld [vmem:[#allocation3 + $0x16] sm:$0xff]  ;;  %v3716_v18 = vpack.c.bf16 %v3713_v14, %v3712_v16  ;;  %v3717_v22 = vpack.c.bf16 %v3714_v20, %v3714_v20 }
 0x541   : > { %8169 = vmatmul.mubr.msk.bf16.gmra.mrb[220].mxu1 %vm226_vm1, %v3552_v63  ;;  %8158 = vmatprep.mubr.msk.bf16.mxu0 %vm8748_vm0, %v8747_v1  ;;  %v3803_v19 = vpack.c.bf16 %v9573_v15, %v9577_v17  ;;  %v3887_v30 = vld [vmem:[#allocation3 + $0x1f] sm:$0xff]  ;;  %v3886_v33 = vld [vmem:[#allocation3 + $0x17] sm:$0xff]  ;;  %v4237_v60 = vpack.c.bf16 %v9577_v17, %v9558_v6  ;;  %v4236_v63 = vld [vmem:[#allocation3 + $0x2e] sm:$0xf] }
 0x542   : > { %8172 = vmatprep.mubr.msk.bf16.mxu1 %vm8748_vm0, %v8747_v1  ;;  %v3890_v34 = vpack.c.bf16 %v3887_v30, %v3886_v33  ;;  %v4059_v40 = vld [vmem:[#allocation3 + $0x14] sm:$0xff]  ;;  %v4060_v51 = vld [vmem:[#allocation3 + $0x1c] sm:$0xff]  ;;  %v4239_v0 = vpack.c.bf16 %v4236_v63, %v4236_v63 }
 0x543   : > { %v3801_v21 = vld [vmem:[#allocation3 + $0x26] sm:$0xf]  ;;  %v4146_v41 = vld [vmem:[#allocation3 + $0x15] sm:$0xff]  ;;  %v4063_v46 = vpack.c.bf16 %v4059_v40, %v4058_v43  ;;  %v4147_v52 = vld [vmem:[#allocation3 + $0x1d] sm:$0xff] }
 0x544   : > { %v3804_v23 = vpack.c.bf16 %v3801_v21, %v3801_v21  ;;  %v3974_v31 = vld [vmem:[#allocation3 + $0x20] sm:$0xff]  ;;  %v3975_v37 = vld [vmem:[#allocation3 + $0x28] sm:$0xf]  ;;  %v4150_v47 = vpack.c.bf16 %v4146_v41, %v4145_v44  ;;  %v8712_v2 = vld [vmem:[%s10150_s1 + $0x170] sm:$0xff]  }
 0x545   : > { %v3977_v35 = vpack.c.bf16 %v3974_v31, %v9543_v61  ;;  %v3888_v36 = vld [vmem:[#allocation3 + $0x27] sm:$0xf]  ;;  %v3978_v39 = vpack.c.bf16 %v3975_v37, %v3975_v37 }
 0x546   : > { %v3891_v38 = vpack.c.bf16 %v3888_v36, %v3888_v36  ;;  %v4061_v48 = vld [vmem:[#allocation3 + $0x24] sm:$0xff] }
 0x547   : > { %v4148_v50 = vld [vmem:[#allocation3 + $0x25] sm:$0xff]  ;;  %v4064_v53 = vpack.c.bf16 %v4061_v48, %v4060_v51 }
 0x548   : > { %8159 = vmatmul.mubr.msk.bf16.gmra.mrb[224].mxu0 %vm226_vm1, %v3564_v3  ;;  %v4151_v54 = vpack.c.bf16 %v4148_v50, %v4147_v52  ;;  %v4235_v61 = vld [vmem:[#allocation3 + $0x26] sm:$0xff]  ;;  %v8713_v3 = vld [vmem:[%s10150_s1 + $0x168] sm:$0xff]  }
 0x549   : > { %8173 = vmatmul.mubr.msk.bf16.gmra.mrb[224].mxu1 %vm226_vm1, %v3553_v4  ;;  %8178 = vmatprep.mubr.msk.bf16.mxu0 %vm8748_vm0, %v8747_v1  ;;  %v4238_v62 = vpack.c.bf16 %v4235_v61, %v9573_v15 }
 0x54a   : > { %8192 = vmatprep.mubr.msk.bf16.mxu1 %vm8748_vm0, %v8747_v1 }
 0x550   : > { %8179 = vmatmul.mubr.msk.bf16.vlgmr.msra.gmra.mrb[228].mxu0 %vm226_vm1, %v3715_v10 }
 0x551   : > { %8193 = vmatmul.mubr.msk.bf16.vlgmr.msra.gmra.mrb[228].mxu1 %vm226_vm1, %v3802_v11  ;;  %8205 = vmatpush3.bf16.msra.mxu0 %v8707_v9 }
 0x552   : > { %8182 = vmatprep.mubr.msk.bf16.mxu0 %vm8748_vm0, %v8747_v1  ;;  %8196 = vmatprep.mubr.msk.bf16.mxu1 %vm8748_vm0, %v8747_v1 }
 0x553   : > { %8219 = vmatpush3.bf16.msra.mxu1 %v8708_v13  ;;  %8232 = vmatprep.subr.bf16.mxu0 %v8747_v1 }
 0x554   : > { %8246 = vmatprep.subr.bf16.mxu1 %v8747_v1 }
 0x558   : > { %8183 = vmatmul.mubr.msk.bf16.gmra.mrb[232].mxu0 %vm226_vm1, %v3716_v18 }
 0x559   : > { %8197 = vmatmul.mubr.msk.bf16.gmra.mrb[232].mxu1 %vm226_vm1, %v3803_v19  ;;  %8186 = vmatprep.mubr.msk.bf16.mxu0 %vm8748_vm0, %v8747_v1 }
 0x55a   : > { %8200 = vmatprep.mubr.msk.bf16.mxu1 %vm8748_vm0, %v8747_v1 }
 0x560   : > { %8187 = vmatmul.mubr.msk.bf16.gmra.mrb[236].mxu0 %vm226_vm1, %v3717_v22 }
 0x561   : > { %8201 = vmatmul.mubr.msk.bf16.gmra.mrb[236].mxu1 %vm226_vm1, %v3804_v23  ;;  %8206 = vmatprep.mubr.msk.bf16.mxu0 %vm8748_vm0, %v8747_v1 }
 0x562   : > { %8220 = vmatprep.mubr.msk.bf16.mxu1 %vm8748_vm0, %v8747_v1 }
 0x568   : > { %8207 = vmatmul.mubr.msk.bf16.vlgmr.msra.gmra.mrb[240].mxu0 %vm226_vm1, %v3889_v27 }
 0x569   : > { %8221 = vmatmul.mubr.msk.bf16.vlgmr.msra.gmra.mrb[240].mxu1 %vm226_vm1, %v3976_v28  ;;  %8233 = vmatpush3.bf16.msra.mxu0 %v8709_v26 }
 0x56a   : > { %8210 = vmatprep.mubr.msk.bf16.mxu0 %vm8748_vm0, %v8747_v1  ;;  %8224 = vmatprep.mubr.msk.bf16.mxu1 %vm8748_vm0, %v8747_v1 }
 0x56b   : > { %8247 = vmatpush3.bf16.msra.mxu1 %v8710_v29  ;;  %8260 = vmatprep.subr.bf16.mxu0 %v8747_v1 }
 0x56c   : > { %8274 = vmatprep.subr.bf16.mxu1 %v8747_v1 }
 0x570   : > { %8211 = vmatmul.mubr.msk.bf16.gmra.mrb[244].mxu0 %vm226_vm1, %v3890_v34 }
 0x571   : > { %8225 = vmatmul.mubr.msk.bf16.gmra.mrb[244].mxu1 %vm226_vm1, %v3977_v35  ;;  %8214 = vmatprep.mubr.msk.bf16.mxu0 %vm8748_vm0, %v8747_v1 }
 0x572   : > { %8228 = vmatprep.mubr.msk.bf16.mxu1 %vm8748_vm0, %v8747_v1 }
 0x578   : > { %8215 = vmatmul.mubr.msk.bf16.gmra.mrb[248].mxu0 %vm226_vm1, %v3891_v38 }
 0x579   : > { %8229 = vmatmul.mubr.msk.bf16.gmra.mrb[248].mxu1 %vm226_vm1, %v3978_v39  ;;  %8234 = vmatprep.mubr.msk.bf16.mxu0 %vm8748_vm0, %v8747_v1 }
 0x57a   : > { %8248 = vmatprep.mubr.msk.bf16.mxu1 %vm8748_vm0, %v8747_v1 }
 0x580   : > { %8235 = vmatmul.mubr.msk.bf16.vlgmr.msra.gmra.mrb[252].mxu0 %vm226_vm1, %v4063_v46 }
 0x581   : > { %8249 = vmatmul.mubr.msk.bf16.vlgmr.msra.gmra.mrb[252].mxu1 %vm226_vm1, %v4150_v47  ;;  %8261 = vmatpush3.bf16.msra.mxu0 %v8711_v45 }
 0x582   : > { %8238 = vmatprep.mubr.msk.bf16.mxu0 %vm8748_vm0, %v8747_v1  ;;  %8252 = vmatprep.mubr.msk.bf16.mxu1 %vm8748_vm0, %v8747_v1 }
 0x583   : > { %8288 = vmatprep.subr.bf16.mxu0 %v8747_v1  ;;  %8275 = vmatpush3.bf16.msra.mxu1 %v8712_v2 }
 0x584   : > { %8302 = vmatprep.subr.bf16.mxu1 %v8747_v1 }
 0x588   : > { %8239 = vmatmul.mubr.msk.bf16.gmra.mrb[0].mxu0 %vm226_vm1, %v4064_v53 }
 0x589   : > { %8253 = vmatmul.mubr.msk.bf16.gmra.mrb[0].mxu1 %vm226_vm1, %v4151_v54  ;;  %8242 = vmatprep.mubr.msk.bf16.mxu0 %vm8748_vm0, %v8747_v1 }
 0x58a   : > { %8256 = vmatprep.mubr.msk.bf16.mxu1 %vm8748_vm0, %v8747_v1 }
 0x590   : > { %8243 = vmatmul.mubr.msk.bf16.gmra.mrb[4].mxu0 %vm226_vm1, %v4065_v57 }
 0x591   : > { %8257 = vmatmul.mubr.msk.bf16.gmra.mrb[4].mxu1 %vm226_vm1, %v4152_v58  ;;  %8262 = vmatprep.mubr.msk.bf16.mxu0 %vm8748_vm0, %v8747_v1 }
 0x592   : > { %8276 = vmatprep.mubr.msk.bf16.mxu1 %vm8748_vm0, %v8747_v1 }
 0x598   : > { %8263 = vmatmul.mubr.msk.bf16.vlgmr.msra.gmra.mrb[8].mxu0 %vm226_vm1, %v4237_v60 }
 0x599   : > { %8266 = vmatprep.mubr.msk.bf16.mxu0 %vm8748_vm0, %v8747_v1  ;;  %8289 = vmatpush3.bf16.msra.mxu0 %v8713_v3 }
 0x59a   : > { %8316 = vmatprep.subr.bf16.mxu0 %v8747_v1 }
 0x5a0   : > { %8267 = vmatmul.mubr.msk.bf16.gmra.mrb[12].mxu0 %vm226_vm1, %v4238_v62 }
 0x5a1   : > { %8270 = vmatprep.mubr.msk.bf16.mxu0 %vm8748_vm0, %v8747_v1 }
 0x5a8   : > { %8271 = vmatmul.mubr.msk.bf16.gmra.mrb[16].mxu0 %vm226_vm1, %v4239_v0 }
 0x5a9   : > { %8290 = vmatprep.mubr.msk.bf16.mxu0 %vm8748_vm0, %v8747_v1 }
 0x60b   : > { %v3617_v4 = vpop.f32.mrb[216].mxu0 }
 0x60c   : > { %v3688_v5 = vpop.f32.mrb[216].mxu1  ;;  %v8152_v7 = vpop.f32.mrb[217].mxu0 }
 0x60d   : > { %v3689_v6 = vadd.f32 %v3688_v5, %v3617_v4  ;;  %v8166_v8 = vpop.f32.mrb[217].mxu1  ;;  %v3620_v9 = vpop.f32.mrb[218].mxu0 }
 0x60e   : > { %v3691_v10 = vpop.f32.mrb[218].mxu1  ;;  %v8153_v13 = vpop.f32.mrb[219].mxu0 }
 0x60f   : > { %v3692_v11 = vadd.f32 %v3691_v10, %v3620_v9  ;;  %v8167_v14 = vpop.f32.mrb[219].mxu1 }
 0x613   : > { %v3625_v15 = vpop.f32.mrb[220].mxu0 }
 0x614   : > { %v3696_v16 = vpop.f32.mrb[220].mxu1  ;;  %v8156_v18 = vpop.f32.mrb[221].mxu0 }
 0x615   : > { %v3697_v17 = vadd.f32 %v3696_v16, %v3625_v15  ;;  %v8170_v19 = vpop.f32.mrb[221].mxu1  ;;  %v3628_v20 = vpop.f32.mrb[222].mxu0 }
 0x616   : > { %v3699_v21 = vpop.f32.mrb[222].mxu1  ;;  %v8157_v23 = vpop.f32.mrb[223].mxu0 }
 0x617   : > { %v3700_v22 = vadd.f32 %v3699_v21, %v3628_v20  ;;  %v8171_v24 = vpop.f32.mrb[223].mxu1 }
 0x61b   : > { %v3633_v25 = vpop.f32.mrb[224].mxu0 }
 0x61c   : > { %v3704_v26 = vpop.f32.mrb[224].mxu1  ;;  %v8160_v28 = vpop.f32.mrb[225].mxu0 }
 0x61d   : > { %v3705_v27 = vadd.f32 %v3704_v26, %v3633_v25  ;;  %v8174_v29 = vpop.f32.mrb[225].mxu1  ;;  %v3636_v30 = vpop.f32.mrb[226].mxu0 }
 0x61e   : > { %v3707_v31 = vpop.f32.mrb[226].mxu1  ;;  %v8161_v33 = vpop.f32.mrb[227].mxu0 }
 0x61f   : > { %v8175_v34 = vpop.f32.mrb[227].mxu1 }
 0x623   : > { %v3770_v35 = vpop.f32.mrb[228].mxu0 }
 0x624   : > { %v3857_v36 = vpop.f32.mrb[228].mxu1  ;;  %v3792_v37 = vadd.f32 %v3770_v35, %v3689_v6  ;;  %v8180_v38 = vpop.f32.mrb[229].mxu0 }
 0x625   : > { %v8194_v39 = vpop.f32.mrb[229].mxu1  ;;  %v3773_v40 = vpop.f32.mrb[230].mxu0 }
 0x626   : > { %v3860_v41 = vpop.f32.mrb[230].mxu1  ;;  %v3879_v43 = vadd.f32 %v3857_v36, %v3792_v37  ;;  %v3793_v44 = vadd.f32 %v3773_v40, %v3692_v11  ;;  %v8181_v45 = vpop.f32.mrb[231].mxu0 }
 0x627   : > { %v8195_v46 = vpop.f32.mrb[231].mxu1 }
 0x628   : > { %v3880_v47 = vadd.f32 %v3860_v41, %v3793_v44 }
 0x62b   : > { %v3778_v48 = vpop.f32.mrb[232].mxu0 }
 0x62c   : > { %v3865_v50 = vpop.f32.mrb[232].mxu1  ;;  %v3794_v51 = vadd.f32 %v3778_v48, %v3697_v17  ;;  %v8184_v52 = vpop.f32.mrb[233].mxu0 }
 0x62d   : > { %v8198_v53 = vpop.f32.mrb[233].mxu1  ;;  %v3781_v54 = vpop.f32.mrb[234].mxu0 }
 0x62e   : > { %v3868_v55 = vpop.f32.mrb[234].mxu1  ;;  %v3881_v56 = vadd.f32 %v3865_v50, %v3794_v51  ;;  %v3795_v57 = vadd.f32 %v3781_v54, %v3700_v22  ;;  %v8185_v58 = vpop.f32.mrb[235].mxu0 }
 0x62f   : > { %v8199_v60 = vpop.f32.mrb[235].mxu1 }
 0x630   : > { %v3882_v61 = vadd.f32 %v3868_v55, %v3795_v57 }
 0x633   : > { %v3786_v62 = vpop.f32.mrb[236].mxu0 }
 0x634   : > { %v3873_v63 = vpop.f32.mrb[236].mxu1  ;;  %v3796_v0 = vadd.f32 %v3786_v62, %v3705_v27  ;;  %v8188_v2 = vpop.f32.mrb[237].mxu0 }
 0x635   : > { %v8202_v3 = vpop.f32.mrb[237].mxu1  ;;  %v3789_v4 = vpop.f32.mrb[238].mxu0 }
 0x636   : > { %v3876_v5 = vpop.f32.mrb[238].mxu1  ;;  %v3883_v6 = vadd.f32 %v3873_v63, %v3796_v0  ;;  %v8189_v7 = vpop.f32.mrb[239].mxu0 }
 0x637   : > { %v8203_v8 = vpop.f32.mrb[239].mxu1 }
 0x63b   : > { %v3944_v9 = vpop.f32.mrb[240].mxu0 }
 0x63c   : > { %v4031_v10 = vpop.f32.mrb[240].mxu1  ;;  %v3966_v11 = vadd.f32 %v3944_v9, %v3879_v43  ;;  %v8208_v13 = vpop.f32.mrb[241].mxu0 }
 0x63d   : > { %v8222_v14 = vpop.f32.mrb[241].mxu1  ;;  %v3947_v15 = vpop.f32.mrb[242].mxu0 }
 0x63e   : > { %v4034_v16 = vpop.f32.mrb[242].mxu1  ;;  %v4053_v17 = vadd.f32 %v4031_v10, %v3966_v11  ;;  %v3967_v18 = vadd.f32 %v3947_v15, %v3880_v47  ;;  %v8209_v19 = vpop.f32.mrb[243].mxu0 }
 0x63f   : > { %v8223_v20 = vpop.f32.mrb[243].mxu1 }
 0x640   : > { %v4054_v21 = vadd.f32 %v4034_v16, %v3967_v18 }
 0x643   : > { %v3952_v22 = vpop.f32.mrb[244].mxu0 }
 0x644   : > { %v4039_v23 = vpop.f32.mrb[244].mxu1  ;;  %v3968_v24 = vadd.f32 %v3952_v22, %v3881_v56  ;;  %v8212_v25 = vpop.f32.mrb[245].mxu0 }
 0x645   : > { %v8226_v26 = vpop.f32.mrb[245].mxu1  ;;  %v3955_v27 = vpop.f32.mrb[246].mxu0 }
 0x646   : > { %v4042_v28 = vpop.f32.mrb[246].mxu1  ;;  %v4055_v29 = vadd.f32 %v4039_v23, %v3968_v24  ;;  %v3969_v30 = vadd.f32 %v3955_v27, %v3882_v61  ;;  %v8213_v31 = vpop.f32.mrb[247].mxu0  ;;  %v7179_v24 = vld [vmem:[%s10152_s3 + $0x4] ss:$0 sm:$0xff] }
 0x647   : > { %v8227_v33 = vpop.f32.mrb[247].mxu1 }
 0x648   : > { %v4056_v34 = vadd.f32 %v4042_v28, %v3969_v30 }
 0x64b   : > { %v3960_v35 = vpop.f32.mrb[248].mxu0 }
 0x64c   : > { %v4047_v36 = vpop.f32.mrb[248].mxu1  ;;  %v3970_v37 = vadd.f32 %v3960_v35, %v3883_v6  ;;  %v8216_v38 = vpop.f32.mrb[249].mxu0 }
 0x64d   : > { %v8230_v39 = vpop.f32.mrb[249].mxu1  ;;  %v3963_v40 = vpop.f32.mrb[250].mxu0 }
 0x64e   : > { %v4050_v41 = vpop.f32.mrb[250].mxu1  ;;  %v4057_v43 = vadd.f32 %v4047_v36, %v3970_v37  ;;  %v8217_v44 = vpop.f32.mrb[251].mxu0 }
 0x64f   : > { %v8231_v45 = vpop.f32.mrb[251].mxu1 }
 0x653   : > { %v4118_v46 = vpop.f32.mrb[252].mxu0 }
 0x654   : > { %v4205_v47 = vpop.f32.mrb[252].mxu1  ;;  %v4140_v48 = vadd.f32 %v4118_v46, %v4053_v17  ;;  %v8236_v50 = vpop.f32.mrb[253].mxu0 }
 0x655   : > { %v8250_v51 = vpop.f32.mrb[253].mxu1  ;;  %v4121_v52 = vpop.f32.mrb[254].mxu0 }
 0x656   : > { %v4208_v53 = vpop.f32.mrb[254].mxu1  ;;  %v4227_v54 = vadd.f32 %v4205_v47, %v4140_v48  ;;  %v4141_v55 = vadd.f32 %v4121_v52, %v4054_v21  ;;  %v8237_v56 = vpop.f32.mrb[255].mxu0  ;;  %v7177_v21 = vld [vmem:[%s10151_s2 + $0x4] ss:$0 sm:$0xff] }
 0x657   : > { %v8251_v57 = vpop.f32.mrb[255].mxu1 }
 0x658   : > { %v4228_v58 = vadd.f32 %v4208_v53, %v4141_v55  ;;  %v8714_v57 = vld [vmem:[%s10150_s1 + $0x178] sm:$0xff]  }
 0x65b   : > { %v4126_v60 = vpop.f32.mrb[0].mxu0 }
 0x65c   : > { %v4213_v61 = vpop.f32.mrb[0].mxu1  ;;  %v4142_v62 = vadd.f32 %v4126_v60, %v4055_v29  ;;  %v8240_v63 = vpop.f32.mrb[1].mxu0 }
 0x65d   : > { %v8254_v0 = vpop.f32.mrb[1].mxu1  ;;  %v4129_v2 = vpop.f32.mrb[2].mxu0 }
 0x65e   : > { %v4216_v3 = vpop.f32.mrb[2].mxu1  ;;  %v4229_v4 = vadd.f32 %v4213_v61, %v4142_v62  ;;  %v4143_v5 = vadd.f32 %v4129_v2, %v4056_v34  ;;  %v8241_v6 = vpop.f32.mrb[3].mxu0 }
 0x65f   : > { %v8255_v7 = vpop.f32.mrb[3].mxu1 }
 0x660   : > { %v4230_v8 = vadd.f32 %v4216_v3, %v4143_v5 }
 0x663   : > { %v4134_v9 = vpop.f32.mrb[4].mxu0 }
 0x664   : > { %v4221_v10 = vpop.f32.mrb[4].mxu1  ;;  %v4144_v11 = vadd.f32 %v4134_v9, %v4057_v43  ;;  %v8244_v13 = vpop.f32.mrb[5].mxu0 }
 0x665   : > { %v8258_v14 = vpop.f32.mrb[5].mxu1  ;;  %v4137_v15 = vpop.f32.mrb[6].mxu0 }
 0x666   : > { %v4224_v16 = vpop.f32.mrb[6].mxu1  ;;  %v4231_v17 = vadd.f32 %v4221_v10, %v4144_v11  ;;  %v8245_v18 = vpop.f32.mrb[7].mxu0 }
 0x667   : > { %v8259_v19 = vpop.f32.mrb[7].mxu1 }
 0x66b   : > { %v4292_v20 = vpop.f32.mrb[8].mxu0 }
 0x66c   : > { %v4314_v22 = vadd.f32 %v4292_v20, %v4227_v54  ;;  %v8264_v23 = vpop.f32.mrb[9].mxu0 }
 0x66d   : > { %v4295_v25 = vpop.f32.mrb[10].mxu0  ;;  %v8716_v23 = vld [vmem:[%s10150_s1 + $0x188] sm:$0xff]  }
 0x66e   : > { %v4327_v26 = vadd.f32 %v7177_v21, %v4314_v22  ;;  %v4315_v27 = vadd.f32 %v4295_v25, %v4228_v58  ;;  %v8265_v28 = vpop.f32.mrb[11].mxu0 }
 0x670   : > { %vm4332_vm11 = vcmp.ge.f32.partialorder %v4327_v26, 0.0  ;;  %v4345_v29 = vmul.f32 %v7179_v24, %v4327_v26  ;;  %v4328_v30 = vadd.f32 %v7177_v21, %v4315_v27 }
 0x672   : > { %v4350_v31 = vsel %vm4332_vm11, %v4327_v26, %v4345_v29  ;;  %vm4333_vm12 = vcmp.ge.f32.partialorder %v4328_v30, 0.0  ;;  %v4346_v33 = vmul.f32 %v7179_v24, %v4328_v30  ;;  %v8717_v26 = vld [vmem:[%s10150_s1 + $0x190] sm:$0xff]  }
 0x673   : > { %v4355_v34 = vmul.f32 %v4350_v31, %v9047_v32  ;;  %v4300_v35 = vpop.f32.mrb[12].mxu0 }
 0x674   : > { %v4351_v36 = vsel %vm4333_vm12, %v4328_v30, %v4346_v33  ;;  %v4316_v37 = vadd.f32 %v4300_v35, %v4229_v4  ;;  %v8268_v38 = vpop.f32.mrb[13].mxu0  ;;  %v8715_v4 = vld [vmem:[%s10150_s1 + $0x180] sm:$0xff]  }
 0x675   : > { %4360 = vst.msk [vmem:[#allocation2 + $0x7] sm:$0xff] %vm226_vm1, %v4355_v34  ;;  %v4356_v39 = vmul.f32 %v4351_v36, %v9050_v42  ;;  %v4303_v40 = vpop.f32.mrb[14].mxu0 }
 0x676   : > { %v4329_v41 = vadd.f32 %v7177_v21, %v4316_v37  ;;  %v4317_v43 = vadd.f32 %v4303_v40, %v4230_v8  ;;  %v8269_v44 = vpop.f32.mrb[15].mxu0  ;;  %v8718_v40 = vld [vmem:[%s10150_s1 + $0x198] sm:$0xff]  }
 0x677   : > { %4361 = vst.msk [vmem:[#allocation2 + $0xf] sm:$0xff] %vm226_vm1, %v4356_v39  ;;  %v8719_v44 = vld [vmem:[%s10150_s1 + $0x1a0] sm:$0xff]  }
 0x678   : > { %vm4334_vm13 = vcmp.ge.f32.partialorder %v4329_v41, 0.0  ;;  %v4347_v45 = vmul.f32 %v7179_v24, %v4329_v41  ;;  %v4330_v46 = vadd.f32 %v7177_v21, %v4317_v43 }
 0x67a   : > { %v4352_v47 = vsel %vm4334_vm13, %v4329_v41, %v4347_v45  ;;  %vm4335_vm14 = vcmp.ge.f32.partialorder %v4330_v46, 0.0  ;;  %v4348_v48 = vmul.f32 %v7179_v24, %v4330_v46 }
 0x67b   : > { %v4357_v50 = vmul.f32 %v4352_v47, %v9054_v49  ;;  %v4308_v51 = vpop.f32.mrb[16].mxu0 }
 0x67c   : > { %v4353_v52 = vsel %vm4335_vm14, %v4330_v46, %v4348_v48  ;;  %v4318_v53 = vadd.f32 %v4308_v51, %v4231_v17  ;;  %v8272_v54 = vpop.f32.mrb[17].mxu0  ;;  %v4376_v56 = vld [vmem:[#allocation2 + $0x1] sm:$0xff] }
 0x67d   : > { %4362 = vst.msk [vmem:[#allocation2 + $0x17] sm:$0xff] %vm226_vm1, %v4357_v50  ;;  %v4358_v55 = vmul.f32 %v4353_v52, %v9058_v59  ;;  %v4311_v58 = vpop.f32.mrb[18].mxu0  ;;  %v4365_v62 = vld [vmem:[#allocation2] sm:$0xff] }
 0x67e   : > { %v4331_v60 = vadd.f32 %v7177_v21, %v4318_v53  ;;  %v4377_v61 = vld [vmem:[#allocation2 + $0x9] sm:$0xff]  ;;  %v8273_v0 = vpop.f32.mrb[19].mxu0 }
 0x67f   : > { %v9679_v63 = vld [vmem:[#allocation2 + $0x8] sm:$0xff]  ;;  %4363 = vst.msk [vmem:[#allocation2 + $0x1f] sm:$0xff] %vm226_vm1, %v4358_v55  ;;  %v4381_v2 = vpack.c.bf16 %v4377_v61, %v4376_v56 }
 0x680   : > { %v4370_v3 = vpack.c.bf16 %v9679_v63, %v4365_v62  ;;  %vm4336_vm15 = vcmp.ge.f32.partialorder %v4331_v60, 0.0  ;;  %v4349_v5 = vmul.f32 %v7179_v24, %v4331_v60  ;;  %v4530_v19 = vld [vmem:[#allocation2 + $0xa] sm:$0xff]  ;;  %v4529_v21 = vld [vmem:[#allocation2 + $0x2] sm:$0xff] }
 0x681   : > { %8277 = vmatmul.mubr.msk.bf16.vlgmr.msra.gmra.mrb[8].mxu1 %vm226_vm1, %v4381_v2  ;;  %v9711_v20 = vld [vmem:[#allocation2 + $0xe] sm:$0xff]  ;;  %v4616_v22 = vld [vmem:[#allocation2 + $0x6] sm:$0xff]  ;;  %v4534_v24 = vpack.c.bf16 %v4530_v19, %v4529_v21 }
 0x682   : > { %8291 = vmatmul.mubr.msk.bf16.vlgmr.msra.gmra.mrb[20].mxu0 %vm226_vm1, %v4370_v3  ;;  %v4354_v6 = vsel %vm4336_vm15, %v4331_v60, %v4349_v5  ;;  %8303 = vmatpush3.bf16.msra.mxu1 %v8714_v57  ;;  %v4621_v25 = vpack.c.bf16 %v9711_v20, %v4616_v22  ;;  %v4704_v38 = vld [vmem:[#allocation2 + $0xf] sm:$0xff]  ;;  %v4703_v39 = vld [vmem:[#allocation2 + $0x7] sm:$0xff] }
 0x683   : > { %8280 = vmatprep.mubr.msk.bf16.mxu1 %vm8748_vm0, %v8747_v1  ;;  %v4359_v7 = vmul.f32 %v4354_v6, %v9074_v12  ;;  %8294 = vmatprep.mubr.msk.bf16.mxu0 %vm8748_vm0, %v8747_v1  ;;  %v4708_v41 = vpack.c.bf16 %v4704_v38, %v4703_v39  ;;  %v4877_v57 = vld [vmem:[#allocation2 + $0xc] sm:$0xff] }
 0x684   : > { %8317 = vmatpush3.bf16.msra.mxu0 %v8715_v4  ;;  %8330 = vmatprep.subr.bf16.mxu1 %v8747_v1  ;;  %v4378_v8 = vld [vmem:[#allocation2 + $0x11] sm:$0xff]  ;;  %v8720_v60 = vld [vmem:[%s10150_s1 + $0x1a8] sm:$0xff]  }
 0x685   : > { %8344 = vmatprep.subr.bf16.mxu0 %v8747_v1  ;;  %4364 = vst.msk [vmem:[#allocation2 + $0x27] sm:$0xf] %vm1087_vm8, %v4359_v7  ;;  %v4367_v10 = vld [vmem:[#allocation2 + $0x10] sm:$0xff]  ;;  %v4881_v6 = vld [vmem:[#allocation2 + $0x2c] sm:$0xf] }
 0x686   : > { %v4379_v9 = vld [vmem:[#allocation2 + $0x19] sm:$0xff]  ;;  %v4380_v15 = vld [vmem:[#allocation2 + $0x21] sm:$0xf]  ;;  %v4795_v43 = vpack.c.bf16 %v4367_v10, %v9679_v63  ;;  %v4964_v58 = vld [vmem:[#allocation2 + $0xd] sm:$0xff] }
 0x687   : > { %v9696_v11 = vld [vmem:[#allocation2 + $0x18] sm:$0xff]  ;;  %v4382_v13 = vpack.c.bf16 %v4379_v9, %v4378_v8  ;;  %v4369_v16 = vld [vmem:[#allocation2 + $0x20] sm:$0xf]  ;;  %v4383_v17 = vpack.c.bf16 %v4380_v15, %v4380_v15  ;;  %v4968_v7 = vld [vmem:[#allocation2 + $0x2d] sm:$0xf]  ;;  %v4884_v8 = vpack.c.bf16 %v4881_v6, %v4881_v6 }
 0x688   : > { %v4371_v14 = vpack.c.bf16 %v9696_v11, %v4367_v10  ;;  %v4372_v18 = vpack.c.bf16 %v4369_v16, %v4369_v16  ;;  %v4532_v27 = vld [vmem:[#allocation2 + $0x1a] sm:$0xff]  ;;  %v4531_v29 = vld [vmem:[#allocation2 + $0x12] sm:$0xff]  ;;  %v4533_v34 = vld [vmem:[#allocation2 + $0x22] sm:$0xf]  ;;  %v4971_v9 = vpack.c.bf16 %v4968_v7, %v4968_v7 }
 0x689   : > { %8281 = vmatmul.mubr.msk.bf16.gmra.mrb[12].mxu1 %vm226_vm1, %v4382_v13  ;;  %v9726_v28 = vld [vmem:[#allocation2 + $0x1e] sm:$0xff]  ;;  %v9730_v30 = vld [vmem:[#allocation2 + $0x16] sm:$0xff]  ;;  %v4535_v31 = vpack.c.bf16 %v4532_v27, %v4531_v29  ;;  %v4536_v36 = vpack.c.bf16 %v4533_v34, %v4533_v34 }
 0x68a   : > { %8295 = vmatmul.mubr.msk.bf16.gmra.mrb[24].mxu0 %vm226_vm1, %v4371_v14  ;;  %8284 = vmatprep.mubr.msk.bf16.mxu1 %vm8748_vm0, %v8747_v1  ;;  %v4622_v33 = vpack.c.bf16 %v9726_v28, %v9730_v30  ;;  %v4706_v45 = vld [vmem:[#allocation2 + $0x1f] sm:$0xff]  ;;  %v4705_v47 = vld [vmem:[#allocation2 + $0x17] sm:$0xff]  ;;  %v5056_v10 = vpack.c.bf16 %v9730_v30, %v9711_v20  ;;  %v5055_v14 = vld [vmem:[#allocation2 + $0x2e] sm:$0xf] }
 0x68b   : > { %8298 = vmatprep.mubr.msk.bf16.mxu0 %vm8748_vm0, %v8747_v1  ;;  %v4709_v48 = vpack.c.bf16 %v4706_v45, %v4705_v47  ;;  %v4878_v55 = vld [vmem:[#allocation2 + $0x14] sm:$0xff]  ;;  %v4879_v2 = vld [vmem:[#allocation2 + $0x1c] sm:$0xff]  ;;  %v5058_v15 = vpack.c.bf16 %v5055_v14, %v5055_v14 }
 0x68c   : > { %v4620_v35 = vld [vmem:[#allocation2 + $0x26] sm:$0xf]  ;;  %v4965_v56 = vld [vmem:[#allocation2 + $0x15] sm:$0xff]  ;;  %v4882_v61 = vpack.c.bf16 %v4878_v55, %v4877_v57  ;;  %v4966_v3 = vld [vmem:[#allocation2 + $0x1d] sm:$0xff] }
 0x68d   : > { %v4623_v37 = vpack.c.bf16 %v4620_v35, %v4620_v35  ;;  %v4793_v46 = vld [vmem:[#allocation2 + $0x20] sm:$0xff]  ;;  %v4794_v52 = vld [vmem:[#allocation2 + $0x28] sm:$0xf]  ;;  %v4969_v62 = vpack.c.bf16 %v4965_v56, %v4964_v58  ;;  %v8721_v16 = vld [vmem:[%s10150_s1 + $0x1b8] sm:$0xff]  }
 0x68e   : > { %v4796_v50 = vpack.c.bf16 %v4793_v46, %v9696_v11  ;;  %v4707_v51 = vld [vmem:[#allocation2 + $0x27] sm:$0xf]  ;;  %v4797_v54 = vpack.c.bf16 %v4794_v52, %v4794_v52 }
 0x68f   : > { %v4710_v53 = vpack.c.bf16 %v4707_v51, %v4707_v51  ;;  %v4880_v63 = vld [vmem:[#allocation2 + $0x24] sm:$0xff] }
 0x690   : > { %v4967_v0 = vld [vmem:[#allocation2 + $0x25] sm:$0xff]  ;;  %v4883_v4 = vpack.c.bf16 %v4880_v63, %v4879_v2 }
 0x691   : > { %8285 = vmatmul.mubr.msk.bf16.gmra.mrb[16].mxu1 %vm226_vm1, %v4383_v17  ;;  %v4970_v5 = vpack.c.bf16 %v4967_v0, %v4966_v3  ;;  %v5054_v11 = vld [vmem:[#allocation2 + $0x26] sm:$0xff]  ;;  %v8722_v17 = vld [vmem:[%s10150_s1 + $0x1b0] sm:$0xff]  }
 0x692   : > { %8299 = vmatmul.mubr.msk.bf16.gmra.mrb[28].mxu0 %vm226_vm1, %v4372_v18  ;;  %8304 = vmatprep.mubr.msk.bf16.mxu1 %vm8748_vm0, %v8747_v1  ;;  %v5057_v13 = vpack.c.bf16 %v5054_v11, %v9726_v28 }
 0x693   : > { %8318 = vmatprep.mubr.msk.bf16.mxu0 %vm8748_vm0, %v8747_v1 }
 0x699   : > { %8305 = vmatmul.mubr.msk.bf16.vlgmr.msra.gmra.mrb[20].mxu1 %vm226_vm1, %v4534_v24 }
 0x69a   : > { %8319 = vmatmul.mubr.msk.bf16.vlgmr.msra.gmra.mrb[32].mxu0 %vm226_vm1, %v4621_v25  ;;  %8331 = vmatpush3.bf16.msra.mxu1 %v8716_v23 }
 0x69b   : > { %8308 = vmatprep.mubr.msk.bf16.mxu1 %vm8748_vm0, %v8747_v1  ;;  %8322 = vmatprep.mubr.msk.bf16.mxu0 %vm8748_vm0, %v8747_v1 }
 0x69c   : > { %8345 = vmatpush3.bf16.msra.mxu0 %v8717_v26  ;;  %8358 = vmatprep.subr.bf16.mxu1 %v8747_v1 }
 0x69d   : > { %8372 = vmatprep.subr.bf16.mxu0 %v8747_v1 }
 0x6a1   : > { %8309 = vmatmul.mubr.msk.bf16.gmra.mrb[24].mxu1 %vm226_vm1, %v4535_v31 }
 0x6a2   : > { %8323 = vmatmul.mubr.msk.bf16.gmra.mrb[36].mxu0 %vm226_vm1, %v4622_v33  ;;  %8312 = vmatprep.mubr.msk.bf16.mxu1 %vm8748_vm0, %v8747_v1 }
 0x6a3   : > { %8326 = vmatprep.mubr.msk.bf16.mxu0 %vm8748_vm0, %v8747_v1 }
 0x6a9   : > { %8313 = vmatmul.mubr.msk.bf16.gmra.mrb[28].mxu1 %vm226_vm1, %v4536_v36 }
 0x6aa   : > { %8327 = vmatmul.mubr.msk.bf16.gmra.mrb[40].mxu0 %vm226_vm1, %v4623_v37  ;;  %8332 = vmatprep.mubr.msk.bf16.mxu1 %vm8748_vm0, %v8747_v1 }
 0x6ab   : > { %8346 = vmatprep.mubr.msk.bf16.mxu0 %vm8748_vm0, %v8747_v1 }
 0x6b1   : > { %8333 = vmatmul.mubr.msk.bf16.vlgmr.msra.gmra.mrb[32].mxu1 %vm226_vm1, %v4708_v41 }
 0x6b2   : > { %8347 = vmatmul.mubr.msk.bf16.vlgmr.msra.gmra.mrb[44].mxu0 %vm226_vm1, %v4795_v43  ;;  %8359 = vmatpush3.bf16.msra.mxu1 %v8718_v40 }
 0x6b3   : > { %8336 = vmatprep.mubr.msk.bf16.mxu1 %vm8748_vm0, %v8747_v1  ;;  %8350 = vmatprep.mubr.msk.bf16.mxu0 %vm8748_vm0, %v8747_v1 }
 0x6b4   : > { %8373 = vmatpush3.bf16.msra.mxu0 %v8719_v44  ;;  %8386 = vmatprep.subr.bf16.mxu1 %v8747_v1 }
 0x6b5   : > { %8400 = vmatprep.subr.bf16.mxu0 %v8747_v1 }
 0x6b9   : > { %8337 = vmatmul.mubr.msk.bf16.gmra.mrb[36].mxu1 %vm226_vm1, %v4709_v48 }
 0x6ba   : > { %8351 = vmatmul.mubr.msk.bf16.gmra.mrb[48].mxu0 %vm226_vm1, %v4796_v50  ;;  %8340 = vmatprep.mubr.msk.bf16.mxu1 %vm8748_vm0, %v8747_v1 }
 0x6bb   : > { %8354 = vmatprep.mubr.msk.bf16.mxu0 %vm8748_vm0, %v8747_v1 }
 0x6c1   : > { %8341 = vmatmul.mubr.msk.bf16.gmra.mrb[40].mxu1 %vm226_vm1, %v4710_v53 }
 0x6c2   : > { %8355 = vmatmul.mubr.msk.bf16.gmra.mrb[52].mxu0 %vm226_vm1, %v4797_v54  ;;  %8360 = vmatprep.mubr.msk.bf16.mxu1 %vm8748_vm0, %v8747_v1 }
 0x6c3   : > { %8374 = vmatprep.mubr.msk.bf16.mxu0 %vm8748_vm0, %v8747_v1 }
 0x6c9   : > { %8361 = vmatmul.mubr.msk.bf16.vlgmr.msra.gmra.mrb[44].mxu1 %vm226_vm1, %v4882_v61 }
 0x6ca   : > { %8375 = vmatmul.mubr.msk.bf16.vlgmr.msra.gmra.mrb[56].mxu0 %vm226_vm1, %v4969_v62  ;;  %8387 = vmatpush3.bf16.msra.mxu1 %v8720_v60 }
 0x6cb   : > { %8364 = vmatprep.mubr.msk.bf16.mxu1 %vm8748_vm0, %v8747_v1  ;;  %8378 = vmatprep.mubr.msk.bf16.mxu0 %vm8748_vm0, %v8747_v1 }
 0x6cc   : > { %8414 = vmatprep.subr.bf16.mxu1 %v8747_v1  ;;  %8401 = vmatpush3.bf16.msra.mxu0 %v8721_v16 }
 0x6cd   : > { %8428 = vmatprep.subr.bf16.mxu0 %v8747_v1 }
 0x6d1   : > { %8365 = vmatmul.mubr.msk.bf16.gmra.mrb[48].mxu1 %vm226_vm1, %v4883_v4 }
 0x6d2   : > { %8379 = vmatmul.mubr.msk.bf16.gmra.mrb[60].mxu0 %vm226_vm1, %v4970_v5  ;;  %8368 = vmatprep.mubr.msk.bf16.mxu1 %vm8748_vm0, %v8747_v1 }
 0x6d3   : > { %8382 = vmatprep.mubr.msk.bf16.mxu0 %vm8748_vm0, %v8747_v1 }
 0x6d9   : > { %8369 = vmatmul.mubr.msk.bf16.gmra.mrb[52].mxu1 %vm226_vm1, %v4884_v8 }
 0x6da   : > { %8383 = vmatmul.mubr.msk.bf16.gmra.mrb[64].mxu0 %vm226_vm1, %v4971_v9  ;;  %8388 = vmatprep.mubr.msk.bf16.mxu1 %vm8748_vm0, %v8747_v1 }
 0x6db   : > { %8402 = vmatprep.mubr.msk.bf16.mxu0 %vm8748_vm0, %v8747_v1 }
 0x6e1   : > { %8389 = vmatmul.mubr.msk.bf16.vlgmr.msra.gmra.mrb[56].mxu1 %vm226_vm1, %v5056_v10 }
 0x6e2   : > { %8392 = vmatprep.mubr.msk.bf16.mxu1 %vm8748_vm0, %v8747_v1  ;;  %8415 = vmatpush3.bf16.msra.mxu1 %v8722_v17 }
 0x6e3   : > { %8442 = vmatprep.subr.bf16.mxu1 %v8747_v1 }
 0x6e9   : > { %8393 = vmatmul.mubr.msk.bf16.gmra.mrb[60].mxu1 %vm226_vm1, %v5057_v13 }
 0x6ea   : > { %8396 = vmatprep.mubr.msk.bf16.mxu1 %vm8748_vm0, %v8747_v1 }
 0x6f1   : > { %8397 = vmatmul.mubr.msk.bf16.gmra.mrb[64].mxu1 %vm226_vm1, %v5058_v15 }
 0x6f2   : > { %8416 = vmatprep.mubr.msk.bf16.mxu1 %vm8748_vm0, %v8747_v1 }
 0x754   : > { %v4436_v18 = vpop.f32.mrb[8].mxu1 }
 0x755   : > { %v4507_v19 = vpop.f32.mrb[20].mxu0  ;;  %v8278_v21 = vpop.f32.mrb[9].mxu1 }
 0x756   : > { %v4508_v20 = vadd.f32 %v4507_v19, %v4436_v18  ;;  %v8292_v22 = vpop.f32.mrb[21].mxu0  ;;  %v4439_v23 = vpop.f32.mrb[10].mxu1 }
 0x757   : > { %v4510_v24 = vpop.f32.mrb[22].mxu0  ;;  %v8279_v26 = vpop.f32.mrb[11].mxu1 }
 0x758   : > { %v4511_v25 = vadd.f32 %v4510_v24, %v4439_v23  ;;  %v8293_v27 = vpop.f32.mrb[23].mxu0 }
 0x75c   : > { %v4444_v28 = vpop.f32.mrb[12].mxu1 }
 0x75d   : > { %v4515_v29 = vpop.f32.mrb[24].mxu0  ;;  %v8282_v31 = vpop.f32.mrb[13].mxu1 }
 0x75e   : > { %v4516_v30 = vadd.f32 %v4515_v29, %v4444_v28  ;;  %v8296_v33 = vpop.f32.mrb[25].mxu0  ;;  %v4447_v34 = vpop.f32.mrb[14].mxu1 }
 0x75f   : > { %v4518_v35 = vpop.f32.mrb[26].mxu0  ;;  %v8283_v37 = vpop.f32.mrb[15].mxu1 }
 0x760   : > { %v4519_v36 = vadd.f32 %v4518_v35, %v4447_v34  ;;  %v8297_v38 = vpop.f32.mrb[27].mxu0 }
 0x764   : > { %v4452_v39 = vpop.f32.mrb[16].mxu1 }
 0x765   : > { %v4523_v40 = vpop.f32.mrb[28].mxu0  ;;  %v8286_v43 = vpop.f32.mrb[17].mxu1 }
 0x766   : > { %v4524_v41 = vadd.f32 %v4523_v40, %v4452_v39  ;;  %v8300_v44 = vpop.f32.mrb[29].mxu0  ;;  %v4455_v45 = vpop.f32.mrb[18].mxu1 }
 0x767   : > { %v4526_v46 = vpop.f32.mrb[30].mxu0  ;;  %v8287_v47 = vpop.f32.mrb[19].mxu1 }
 0x768   : > { %v8301_v48 = vpop.f32.mrb[31].mxu0 }
 0x76c   : > { %v4589_v50 = vpop.f32.mrb[20].mxu1 }
 0x76d   : > { %v4676_v51 = vpop.f32.mrb[32].mxu0  ;;  %v4611_v52 = vadd.f32 %v4589_v50, %v4508_v20  ;;  %v8306_v53 = vpop.f32.mrb[21].mxu1 }
 0x76e   : > { %v8320_v54 = vpop.f32.mrb[33].mxu0  ;;  %v4592_v55 = vpop.f32.mrb[22].mxu1 }
 0x76f   : > { %v4679_v56 = vpop.f32.mrb[34].mxu0  ;;  %v4698_v57 = vadd.f32 %v4676_v51, %v4611_v52  ;;  %v4612_v58 = vadd.f32 %v4592_v55, %v4511_v25  ;;  %v8307_v60 = vpop.f32.mrb[23].mxu1 }
 0x770   : > { %v8321_v61 = vpop.f32.mrb[35].mxu0 }
 0x771   : > { %v4699_v62 = vadd.f32 %v4679_v56, %v4612_v58 }
 0x774   : > { %v4597_v63 = vpop.f32.mrb[24].mxu1 }
 0x775   : > { %v4684_v0 = vpop.f32.mrb[36].mxu0  ;;  %v4613_v2 = vadd.f32 %v4597_v63, %v4516_v30  ;;  %v8310_v3 = vpop.f32.mrb[25].mxu1 }
 0x776   : > { %v8324_v4 = vpop.f32.mrb[37].mxu0  ;;  %v4600_v5 = vpop.f32.mrb[26].mxu1 }
 0x777   : > { %v4687_v6 = vpop.f32.mrb[38].mxu0  ;;  %v4700_v7 = vadd.f32 %v4684_v0, %v4613_v2  ;;  %v4614_v8 = vadd.f32 %v4600_v5, %v4519_v36  ;;  %v8311_v9 = vpop.f32.mrb[27].mxu1 }
 0x778   : > { %v8325_v10 = vpop.f32.mrb[39].mxu0 }
 0x779   : > { %v4701_v11 = vadd.f32 %v4687_v6, %v4614_v8 }
 0x77c   : > { %v4605_v13 = vpop.f32.mrb[28].mxu1 }
 0x77d   : > { %v4692_v14 = vpop.f32.mrb[40].mxu0  ;;  %v4615_v15 = vadd.f32 %v4605_v13, %v4524_v41  ;;  %v8314_v16 = vpop.f32.mrb[29].mxu1 }
 0x77e   : > { %v8328_v17 = vpop.f32.mrb[41].mxu0  ;;  %v4608_v18 = vpop.f32.mrb[30].mxu1 }
 0x77f   : > { %v4695_v19 = vpop.f32.mrb[42].mxu0  ;;  %v4702_v20 = vadd.f32 %v4692_v14, %v4615_v15  ;;  %v8315_v21 = vpop.f32.mrb[31].mxu1 }
 0x780   : > { %v8329_v22 = vpop.f32.mrb[43].mxu0 }
 0x784   : > { %v4763_v23 = vpop.f32.mrb[32].mxu1 }
 0x785   : > { %v4850_v24 = vpop.f32.mrb[44].mxu0  ;;  %v4785_v25 = vadd.f32 %v4763_v23, %v4698_v57  ;;  %v8334_v26 = vpop.f32.mrb[33].mxu1 }
 0x786   : > { %v8348_v27 = vpop.f32.mrb[45].mxu0  ;;  %v4766_v28 = vpop.f32.mrb[34].mxu1 }
 0x787   : > { %v4853_v29 = vpop.f32.mrb[46].mxu0  ;;  %v4872_v30 = vadd.f32 %v4850_v24, %v4785_v25  ;;  %v4786_v31 = vadd.f32 %v4766_v28, %v4699_v62  ;;  %v8335_v33 = vpop.f32.mrb[35].mxu1 }
 0x788   : > { %v8349_v34 = vpop.f32.mrb[47].mxu0 }
 0x789   : > { %v4873_v35 = vadd.f32 %v4853_v29, %v4786_v31 }
 0x78c   : > { %v4771_v36 = vpop.f32.mrb[36].mxu1 }
 0x78d   : > { %v4858_v37 = vpop.f32.mrb[48].mxu0  ;;  %v4787_v38 = vadd.f32 %v4771_v36, %v4700_v7  ;;  %v8338_v39 = vpop.f32.mrb[37].mxu1 }
 0x78e   : > { %v8352_v40 = vpop.f32.mrb[49].mxu0  ;;  %v4774_v41 = vpop.f32.mrb[38].mxu1 }
 0x78f   : > { %v4861_v43 = vpop.f32.mrb[50].mxu0  ;;  %v4874_v44 = vadd.f32 %v4858_v37, %v4787_v38  ;;  %v4788_v45 = vadd.f32 %v4774_v41, %v4701_v11  ;;  %v8339_v46 = vpop.f32.mrb[39].mxu1  ;;  %v7237_v38 = vld [vmem:[%s10152_s3 + $0x5] ss:$0 sm:$0xff] }
 0x790   : > { %v8353_v47 = vpop.f32.mrb[51].mxu0 }
 0x791   : > { %v4875_v48 = vadd.f32 %v4861_v43, %v4788_v45 }
 0x794   : > { %v4779_v50 = vpop.f32.mrb[40].mxu1 }
 0x795   : > { %v4866_v51 = vpop.f32.mrb[52].mxu0  ;;  %v4789_v52 = vadd.f32 %v4779_v50, %v4702_v20  ;;  %v8342_v53 = vpop.f32.mrb[41].mxu1 }
 0x796   : > { %v8356_v54 = vpop.f32.mrb[53].mxu0  ;;  %v4782_v55 = vpop.f32.mrb[42].mxu1 }
 0x797   : > { %v4869_v56 = vpop.f32.mrb[54].mxu0  ;;  %v4876_v57 = vadd.f32 %v4866_v51, %v4789_v52  ;;  %v8343_v58 = vpop.f32.mrb[43].mxu1 }
 0x798   : > { %v8357_v60 = vpop.f32.mrb[55].mxu0 }
 0x79c   : > { %v4937_v61 = vpop.f32.mrb[44].mxu1 }
 0x79d   : > { %v5024_v62 = vpop.f32.mrb[56].mxu0  ;;  %v4959_v63 = vadd.f32 %v4937_v61, %v4872_v30  ;;  %v8362_v0 = vpop.f32.mrb[45].mxu1 }
 0x79e   : > { %v8376_v2 = vpop.f32.mrb[57].mxu0  ;;  %v4940_v3 = vpop.f32.mrb[46].mxu1 }
 0x79f   : > { %v5027_v4 = vpop.f32.mrb[58].mxu0  ;;  %v5046_v5 = vadd.f32 %v5024_v62, %v4959_v63  ;;  %v4960_v6 = vadd.f32 %v4940_v3, %v4873_v35  ;;  %v8363_v7 = vpop.f32.mrb[47].mxu1  ;;  %v7235_v35 = vld [vmem:[%s10151_s2 + $0x5] ss:$0 sm:$0xff] }
 0x7a0   : > { %v8377_v8 = vpop.f32.mrb[59].mxu0 }
 0x7a1   : > { %v5047_v9 = vadd.f32 %v5027_v4, %v4960_v6  ;;  %v8723_v8 = vld [vmem:[%s10150_s1 + $0x1c0] sm:$0xff]  }
 0x7a4   : > { %v4945_v10 = vpop.f32.mrb[48].mxu1 }
 0x7a5   : > { %v5032_v11 = vpop.f32.mrb[60].mxu0  ;;  %v4961_v13 = vadd.f32 %v4945_v10, %v4874_v44  ;;  %v8366_v14 = vpop.f32.mrb[49].mxu1 }
 0x7a6   : > { %v8380_v15 = vpop.f32.mrb[61].mxu0  ;;  %v4948_v16 = vpop.f32.mrb[50].mxu1 }
 0x7a7   : > { %v5035_v17 = vpop.f32.mrb[62].mxu0  ;;  %v5048_v18 = vadd.f32 %v5032_v11, %v4961_v13  ;;  %v4962_v19 = vadd.f32 %v4948_v16, %v4875_v48  ;;  %v8367_v20 = vpop.f32.mrb[51].mxu1 }
 0x7a8   : > { %v8381_v21 = vpop.f32.mrb[63].mxu0 }
 0x7a9   : > { %v5049_v22 = vadd.f32 %v5035_v17, %v4962_v19 }
 0x7ac   : > { %v4953_v23 = vpop.f32.mrb[52].mxu1 }
 0x7ad   : > { %v5040_v24 = vpop.f32.mrb[64].mxu0  ;;  %v4963_v25 = vadd.f32 %v4953_v23, %v4876_v57  ;;  %v8370_v26 = vpop.f32.mrb[53].mxu1 }
 0x7ae   : > { %v8384_v27 = vpop.f32.mrb[65].mxu0  ;;  %v4956_v28 = vpop.f32.mrb[54].mxu1 }
 0x7af   : > { %v5043_v29 = vpop.f32.mrb[66].mxu0  ;;  %v5050_v30 = vadd.f32 %v5040_v24, %v4963_v25  ;;  %v8371_v31 = vpop.f32.mrb[55].mxu1 }
 0x7b0   : > { %v8385_v33 = vpop.f32.mrb[67].mxu0 }
 0x7b4   : > { %v5111_v34 = vpop.f32.mrb[56].mxu1 }
 0x7b5   : > { %v5133_v36 = vadd.f32 %v5111_v34, %v5046_v5  ;;  %v8390_v37 = vpop.f32.mrb[57].mxu1 }
 0x7b6   : > { %v5114_v39 = vpop.f32.mrb[58].mxu1 }
 0x7b7   : > { %v5146_v40 = vadd.f32 %v7235_v35, %v5133_v36  ;;  %v5134_v41 = vadd.f32 %v5114_v39, %v5047_v9  ;;  %v8391_v43 = vpop.f32.mrb[59].mxu1  ;;  %v8725_v39 = vld [vmem:[%s10150_s1 + $0x1d0] sm:$0xff]  }
 0x7b8   : > { %v8726_v43 = vld [vmem:[%s10150_s1 + $0x1d8] sm:$0xff]  }
 0x7b9   : > { %vm5151_vm2 = vcmp.ge.f32.partialorder %v5146_v40, 0.0  ;;  %v5164_v44 = vmul.f32 %v7237_v38, %v5146_v40  ;;  %v5147_v45 = vadd.f32 %v7235_v35, %v5134_v41 }
 0x7bb   : > { %v5169_v46 = vsel %vm5151_vm2, %v5146_v40, %v5164_v44  ;;  %vm5152_vm3 = vcmp.ge.f32.partialorder %v5147_v45, 0.0  ;;  %v5165_v47 = vmul.f32 %v7237_v38, %v5147_v45 }
 0x7bc   : > { %v5174_v48 = vmul.f32 %v5169_v46, %v9047_v32  ;;  %v5119_v50 = vpop.f32.mrb[60].mxu1 }
 0x7bd   : > { %v5170_v51 = vsel %vm5152_vm3, %v5147_v45, %v5165_v47  ;;  %v5135_v52 = vadd.f32 %v5119_v50, %v5048_v18  ;;  %v8394_v53 = vpop.f32.mrb[61].mxu1  ;;  %v8724_v18 = vld [vmem:[%s10150_s1 + $0x1c8] sm:$0xff]  }
 0x7be   : > { %5179 = vst.msk [vmem:[#allocation3 + $0x7] sm:$0xff] %vm226_vm1, %v5174_v48  ;;  %v5175_v54 = vmul.f32 %v5170_v51, %v9050_v42  ;;  %v5122_v55 = vpop.f32.mrb[62].mxu1 }
 0x7bf   : > { %v5148_v56 = vadd.f32 %v7235_v35, %v5135_v52  ;;  %v5136_v57 = vadd.f32 %v5122_v55, %v5049_v22  ;;  %v8395_v58 = vpop.f32.mrb[63].mxu1 }
 0x7c0   : > { %5180 = vst.msk [vmem:[#allocation3 + $0xf] sm:$0xff] %vm226_vm1, %v5175_v54 }
 0x7c1   : > { %vm5153_vm4 = vcmp.ge.f32.partialorder %v5148_v56, 0.0  ;;  %v5166_v60 = vmul.f32 %v7237_v38, %v5148_v56  ;;  %v5149_v61 = vadd.f32 %v7235_v35, %v5136_v57 }
 0x7c3   : > { %v5171_v62 = vsel %vm5153_vm4, %v5148_v56, %v5166_v60  ;;  %vm5154_vm5 = vcmp.ge.f32.partialorder %v5149_v61, 0.0  ;;  %v5167_v63 = vmul.f32 %v7237_v38, %v5149_v61  ;;  %v8727_v56 = vld [vmem:[%s10150_s1 + $0x1e0] sm:$0xff]   ;;  %v8728_v60 = vld [vmem:[%s10150_s1 + $0x1e8] sm:$0xff]  }
 0x7c4   : > { %v5176_v0 = vmul.f32 %v5171_v62, %v9054_v49  ;;  %v5127_v2 = vpop.f32.mrb[64].mxu1 }
 0x7c5   : > { %v5172_v3 = vsel %vm5154_vm5, %v5149_v61, %v5167_v63  ;;  %v5137_v4 = vadd.f32 %v5127_v2, %v5050_v30  ;;  %v8398_v5 = vpop.f32.mrb[65].mxu1  ;;  %v5195_v7 = vld [vmem:[#allocation3 + $0x1] sm:$0xff] }
 0x7c6   : > { %5181 = vst.msk [vmem:[#allocation3 + $0x17] sm:$0xff] %vm226_vm1, %v5176_v0  ;;  %v5177_v6 = vmul.f32 %v5172_v3, %v9058_v59  ;;  %v5130_v9 = vpop.f32.mrb[66].mxu1  ;;  %v5184_v13 = vld [vmem:[#allocation3] sm:$0xff] }
 0x7c7   : > { %v5150_v10 = vadd.f32 %v7235_v35, %v5137_v4  ;;  %v5196_v11 = vld [vmem:[#allocation3 + $0x9] sm:$0xff]  ;;  %v8399_v15 = vpop.f32.mrb[67].mxu1 }
 0x7c8   : > { %v9832_v14 = vld [vmem:[#allocation3 + $0x8] sm:$0xff]  ;;  %5182 = vst.msk [vmem:[#allocation3 + $0x1f] sm:$0xff] %vm226_vm1, %v5177_v6  ;;  %v5200_v16 = vpack.c.bf16 %v5196_v11, %v5195_v7  ;;  %v8729_v11 = vld [vmem:[%s10150_s1 + $0x1f0] sm:$0xff]  }
 0x7c9   : > { %v5189_v17 = vpack.c.bf16 %v9832_v14, %v5184_v13  ;;  %vm5155_vm6 = vcmp.ge.f32.partialorder %v5150_v10, 0.0  ;;  %v5168_v19 = vmul.f32 %v7237_v38, %v5150_v10  ;;  %v9849_v23 = vld [vmem:[#allocation3 + $0xe] sm:$0xff]  ;;  %v5348_v37 = vld [vmem:[#allocation3 + $0x2] sm:$0xff] }
 0x7ca   : > { %8403 = vmatmul.mubr.msk.bf16.vlgmr.msra.gmra.mrb[68].mxu0 %vm226_vm1, %v5200_v16  ;;  %v5349_v36 = vld [vmem:[#allocation3 + $0xa] sm:$0xff] }
 0x7cb   : > { %8417 = vmatmul.mubr.msk.bf16.vlgmr.msra.gmra.mrb[68].mxu1 %vm226_vm1, %v5189_v17  ;;  %v5173_v20 = vsel %vm5155_vm6, %v5150_v10, %v5168_v19  ;;  %8429 = vmatpush3.bf16.msra.mxu0 %v8723_v8  ;;  %v5435_v38 = vld [vmem:[#allocation3 + $0x6] sm:$0xff]  ;;  %v5353_v40 = vpack.c.bf16 %v5349_v36, %v5348_v37  ;;  %v5523_v54 = vld [vmem:[#allocation3 + $0xf] sm:$0xff] }
 0x7cc   : > { %8406 = vmatprep.mubr.msk.bf16.mxu0 %vm8748_vm0, %v8747_v1  ;;  %v5178_v21 = vmul.f32 %v5173_v20, %v9074_v12  ;;  %8420 = vmatprep.mubr.msk.bf16.mxu1 %vm8748_vm0, %v8747_v1  ;;  %v5440_v41 = vpack.c.bf16 %v9849_v23, %v5435_v38  ;;  %v5522_v55 = vld [vmem:[#allocation3 + $0x7] sm:$0xff] }
 0x7cd   : > { %8443 = vmatpush3.bf16.msra.mxu1 %v8724_v18  ;;  %8456 = vmatprep.subr.bf16.mxu0 %v8747_v1  ;;  %v5197_v22 = vld [vmem:[#allocation3 + $0x11] sm:$0xff]  ;;  %v5527_v57 = vpack.c.bf16 %v5523_v54, %v5522_v55 }
 0x7ce   : > { %8470 = vmatprep.subr.bf16.mxu1 %v8747_v1  ;;  %5183 = vst.msk [vmem:[#allocation3 + $0x27] sm:$0xf] %vm1087_vm8, %v5178_v21  ;;  %v9851_v24 = vld [vmem:[#allocation3 + $0x16] sm:$0xff]  ;;  %v5696_v9 = vld [vmem:[#allocation3 + $0xc] sm:$0xff] }
 0x7cf   : > { %v5198_v25 = vld [vmem:[#allocation3 + $0x19] sm:$0xff]  ;;  %v5186_v26 = vld [vmem:[#allocation3 + $0x10] sm:$0xff]  ;;  %v5875_v28 = vpack.c.bf16 %v9851_v24, %v9849_v23  ;;  %v5199_v31 = vld [vmem:[#allocation3 + $0x21] sm:$0xf] }
 0x7d0   : > { %v9853_v27 = vld [vmem:[#allocation3 + $0x18] sm:$0xff]  ;;  %v5201_v29 = vpack.c.bf16 %v5198_v25, %v5197_v22  ;;  %v5188_v33 = vld [vmem:[#allocation3 + $0x20] sm:$0xf]  ;;  %v5202_v34 = vpack.c.bf16 %v5199_v31, %v5199_v31  ;;  %v5614_v58 = vpack.c.bf16 %v5186_v26, %v9832_v14  ;;  %v5783_v10 = vld [vmem:[#allocation3 + $0xd] sm:$0xff] }
 0x7d1   : > { %v5190_v30 = vpack.c.bf16 %v9853_v27, %v5186_v26  ;;  %v5191_v35 = vpack.c.bf16 %v5188_v33, %v5188_v33  ;;  %v5351_v44 = vld [vmem:[#allocation3 + $0x1a] sm:$0xff]  ;;  %v5350_v46 = vld [vmem:[#allocation3 + $0x12] sm:$0xff]  ;;  %v5352_v50 = vld [vmem:[#allocation3 + $0x22] sm:$0xf] }
 0x7d2   : > { %8407 = vmatmul.mubr.msk.bf16.gmra.mrb[72].mxu0 %vm226_vm1, %v5201_v29  ;;  %v9883_v45 = vld [vmem:[#allocation3 + $0x1e] sm:$0xff]  ;;  %v5354_v47 = vpack.c.bf16 %v5351_v44, %v5350_v46  ;;  %v5355_v52 = vpack.c.bf16 %v5352_v50, %v5352_v50  ;;  %v5697_v7 = vld [vmem:[#allocation3 + $0x14] sm:$0xff]  ;;  %v5700_v21 = vld [vmem:[#allocation3 + $0x2c] sm:$0xf] }
 0x7d3   : > { %8421 = vmatmul.mubr.msk.bf16.gmra.mrb[72].mxu1 %vm226_vm1, %v5190_v30  ;;  %8410 = vmatprep.mubr.msk.bf16.mxu0 %vm8748_vm0, %v8747_v1  ;;  %v5441_v48 = vpack.c.bf16 %v9883_v45, %v9851_v24  ;;  %v5525_v61 = vld [vmem:[#allocation3 + $0x1f] sm:$0xff]  ;;  %v5524_v63 = vld [vmem:[#allocation3 + $0x17] sm:$0xff]  ;;  %v5701_v13 = vpack.c.bf16 %v5697_v7, %v5696_v9  ;;  %v5787_v22 = vld [vmem:[#allocation3 + $0x2d] sm:$0xf]  ;;  %v5703_v25 = vpack.c.bf16 %v5700_v21, %v5700_v21 }
 0x7d4   : > { %8424 = vmatprep.mubr.msk.bf16.mxu1 %vm8748_vm0, %v8747_v1  ;;  %v5528_v0 = vpack.c.bf16 %v5525_v61, %v5524_v63  ;;  %v5784_v8 = vld [vmem:[#allocation3 + $0x15] sm:$0xff]  ;;  %v5785_v18 = vld [vmem:[#allocation3 + $0x1d] sm:$0xff]  ;;  %v5790_v26 = vpack.c.bf16 %v5787_v22, %v5787_v22  ;;  %v5874_v30 = vld [vmem:[#allocation3 + $0x2e] sm:$0xf] }
 0x7d5   : > { %v5439_v51 = vld [vmem:[#allocation3 + $0x26] sm:$0xf]  ;;  %v5788_v14 = vpack.c.bf16 %v5784_v8, %v5783_v10  ;;  %v5698_v17 = vld [vmem:[#allocation3 + $0x1c] sm:$0xff]  ;;  %v5877_v31 = vpack.c.bf16 %v5874_v30, %v5874_v30 }
 0x7d6   : > { %v5442_v53 = vpack.c.bf16 %v5439_v51, %v5439_v51  ;;  %v5612_v62 = vld [vmem:[#allocation3 + $0x20] sm:$0xff]  ;;  %v5613_v4 = vld [vmem:[#allocation3 + $0x28] sm:$0xf] }
 0x7d7   : > { %v5615_v2 = vpack.c.bf16 %v5612_v62, %v9853_v27  ;;  %v5526_v3 = vld [vmem:[#allocation3 + $0x27] sm:$0xf]  ;;  %v5616_v6 = vpack.c.bf16 %v5613_v4, %v5613_v4 }
 0x7d8   : > { %v5529_v5 = vpack.c.bf16 %v5526_v3, %v5526_v3  ;;  %v5699_v15 = vld [vmem:[#allocation3 + $0x24] sm:$0xff] }
 0x7d9   : > { %v5786_v16 = vld [vmem:[#allocation3 + $0x25] sm:$0xff]  ;;  %v5702_v19 = vpack.c.bf16 %v5699_v15, %v5698_v17 }
 0x7da   : > { %8411 = vmatmul.mubr.msk.bf16.gmra.mrb[76].mxu0 %vm226_vm1, %v5202_v34  ;;  %v5789_v20 = vpack.c.bf16 %v5786_v16, %v5785_v18  ;;  %v5873_v27 = vld [vmem:[#allocation3 + $0x26] sm:$0xff] }
 0x7db   : > { %8425 = vmatmul.mubr.msk.bf16.gmra.mrb[76].mxu1 %vm226_vm1, %v5191_v35  ;;  %8430 = vmatprep.mubr.msk.bf16.mxu0 %vm8748_vm0, %v8747_v1  ;;  %v5876_v29 = vpack.c.bf16 %v5873_v27, %v9883_v45  ;;  %v8730_v23 = vld [vmem:[%s10150_s1 + $0x200] sm:$0xff]   ;;  %v8731_v24 = vld [vmem:[%s10150_s1 + $0x1f8] sm:$0xff]  }
 0x7dc   : > { %8444 = vmatprep.mubr.msk.bf16.mxu1 %vm8748_vm0, %v8747_v1 }
 0x7e2   : > { %8431 = vmatmul.mubr.msk.bf16.vlgmr.msra.gmra.mrb[80].mxu0 %vm226_vm1, %v5353_v40 }
 0x7e3   : > { %8445 = vmatmul.mubr.msk.bf16.vlgmr.msra.gmra.mrb[80].mxu1 %vm226_vm1, %v5440_v41  ;;  %8457 = vmatpush3.bf16.msra.mxu0 %v8725_v39 }
 0x7e4   : > { %8434 = vmatprep.mubr.msk.bf16.mxu0 %vm8748_vm0, %v8747_v1  ;;  %8448 = vmatprep.mubr.msk.bf16.mxu1 %vm8748_vm0, %v8747_v1 }
 0x7e5   : > { %8471 = vmatpush3.bf16.msra.mxu1 %v8726_v43  ;;  %8484 = vmatprep.subr.bf16.mxu0 %v8747_v1 }
 0x7e6   : > { %8498 = vmatprep.subr.bf16.mxu1 %v8747_v1 }
 0x7ea   : > { %8435 = vmatmul.mubr.msk.bf16.gmra.mrb[84].mxu0 %vm226_vm1, %v5354_v47 }
 0x7eb   : > { %8449 = vmatmul.mubr.msk.bf16.gmra.mrb[84].mxu1 %vm226_vm1, %v5441_v48  ;;  %8438 = vmatprep.mubr.msk.bf16.mxu0 %vm8748_vm0, %v8747_v1 }
 0x7ec   : > { %8452 = vmatprep.mubr.msk.bf16.mxu1 %vm8748_vm0, %v8747_v1 }
 0x7f2   : > { %8439 = vmatmul.mubr.msk.bf16.gmra.mrb[88].mxu0 %vm226_vm1, %v5355_v52 }
 0x7f3   : > { %8453 = vmatmul.mubr.msk.bf16.gmra.mrb[88].mxu1 %vm226_vm1, %v5442_v53  ;;  %8458 = vmatprep.mubr.msk.bf16.mxu0 %vm8748_vm0, %v8747_v1 }
 0x7f4   : > { %8472 = vmatprep.mubr.msk.bf16.mxu1 %vm8748_vm0, %v8747_v1 }
 0x7fa   : > { %8459 = vmatmul.mubr.msk.bf16.vlgmr.msra.gmra.mrb[92].mxu0 %vm226_vm1, %v5527_v57 }
 0x7fb   : > { %8473 = vmatmul.mubr.msk.bf16.vlgmr.msra.gmra.mrb[92].mxu1 %vm226_vm1, %v5614_v58  ;;  %8485 = vmatpush3.bf16.msra.mxu0 %v8727_v56 }
 0x7fc   : > { %8462 = vmatprep.mubr.msk.bf16.mxu0 %vm8748_vm0, %v8747_v1  ;;  %8476 = vmatprep.mubr.msk.bf16.mxu1 %vm8748_vm0, %v8747_v1 }
 0x7fd   : > { %8499 = vmatpush3.bf16.msra.mxu1 %v8728_v60  ;;  %8512 = vmatprep.subr.bf16.mxu0 %v8747_v1 }
 0x7fe   : > { %8526 = vmatprep.subr.bf16.mxu1 %v8747_v1 }
 0x802   : > { %8463 = vmatmul.mubr.msk.bf16.gmra.mrb[96].mxu0 %vm226_vm1, %v5528_v0 }
 0x803   : > { %8477 = vmatmul.mubr.msk.bf16.gmra.mrb[96].mxu1 %vm226_vm1, %v5615_v2  ;;  %8466 = vmatprep.mubr.msk.bf16.mxu0 %vm8748_vm0, %v8747_v1 }
 0x804   : > { %8480 = vmatprep.mubr.msk.bf16.mxu1 %vm8748_vm0, %v8747_v1 }
 0x80a   : > { %8467 = vmatmul.mubr.msk.bf16.gmra.mrb[100].mxu0 %vm226_vm1, %v5529_v5 }
 0x80b   : > { %8481 = vmatmul.mubr.msk.bf16.gmra.mrb[100].mxu1 %vm226_vm1, %v5616_v6  ;;  %8486 = vmatprep.mubr.msk.bf16.mxu0 %vm8748_vm0, %v8747_v1 }
 0x80c   : > { %8500 = vmatprep.mubr.msk.bf16.mxu1 %vm8748_vm0, %v8747_v1 }
 0x812   : > { %8487 = vmatmul.mubr.msk.bf16.vlgmr.msra.gmra.mrb[104].mxu0 %vm226_vm1, %v5701_v13 }
 0x813   : > { %8501 = vmatmul.mubr.msk.bf16.vlgmr.msra.gmra.mrb[104].mxu1 %vm226_vm1, %v5788_v14  ;;  %8513 = vmatpush3.bf16.msra.mxu0 %v8729_v11 }
 0x814   : > { %8490 = vmatprep.mubr.msk.bf16.mxu0 %vm8748_vm0, %v8747_v1  ;;  %8504 = vmatprep.mubr.msk.bf16.mxu1 %vm8748_vm0, %v8747_v1 }
 0x815   : > { %8540 = vmatprep.subr.bf16.mxu0 %v8747_v1  ;;  %8527 = vmatpush3.bf16.msra.mxu1 %v8730_v23 }
 0x816   : > { %8554 = vmatprep.subr.bf16.mxu1 %v8747_v1 }
 0x81a   : > { %8491 = vmatmul.mubr.msk.bf16.gmra.mrb[108].mxu0 %vm226_vm1, %v5702_v19 }
 0x81b   : > { %8505 = vmatmul.mubr.msk.bf16.gmra.mrb[108].mxu1 %vm226_vm1, %v5789_v20  ;;  %8494 = vmatprep.mubr.msk.bf16.mxu0 %vm8748_vm0, %v8747_v1 }
 0x81c   : > { %8508 = vmatprep.mubr.msk.bf16.mxu1 %vm8748_vm0, %v8747_v1 }
 0x822   : > { %8495 = vmatmul.mubr.msk.bf16.gmra.mrb[112].mxu0 %vm226_vm1, %v5703_v25 }
 0x823   : > { %8509 = vmatmul.mubr.msk.bf16.gmra.mrb[112].mxu1 %vm226_vm1, %v5790_v26  ;;  %8514 = vmatprep.mubr.msk.bf16.mxu0 %vm8748_vm0, %v8747_v1 }
 0x824   : > { %8528 = vmatprep.mubr.msk.bf16.mxu1 %vm8748_vm0, %v8747_v1 }
 0x82a   : > { %8515 = vmatmul.mubr.msk.bf16.vlgmr.msra.gmra.mrb[116].mxu0 %vm226_vm1, %v5875_v28 }
 0x82b   : > { %8518 = vmatprep.mubr.msk.bf16.mxu0 %vm8748_vm0, %v8747_v1  ;;  %8541 = vmatpush3.bf16.msra.mxu0 %v8731_v24 }
 0x82c   : > { %8568 = vmatprep.subr.bf16.mxu0 %v8747_v1 }
 0x832   : > { %8519 = vmatmul.mubr.msk.bf16.gmra.mrb[120].mxu0 %vm226_vm1, %v5876_v29 }
 0x833   : > { %8522 = vmatprep.mubr.msk.bf16.mxu0 %vm8748_vm0, %v8747_v1 }
 0x83a   : > { %8523 = vmatmul.mubr.msk.bf16.gmra.mrb[124].mxu0 %vm226_vm1, %v5877_v31 }
 0x83b   : > { %8542 = vmatprep.mubr.msk.bf16.mxu0 %vm8748_vm0, %v8747_v1 }
 0x89d   : > { %v5255_v28 = vpop.f32.mrb[68].mxu0 }
 0x89e   : > { %v5326_v33 = vpop.f32.mrb[68].mxu1  ;;  %v8404_v35 = vpop.f32.mrb[69].mxu0 }
 0x89f   : > { %v5327_v34 = vadd.f32 %v5326_v33, %v5255_v28  ;;  %v8418_v36 = vpop.f32.mrb[69].mxu1  ;;  %v5258_v37 = vpop.f32.mrb[70].mxu0 }
 0x8a0   : > { %v5329_v38 = vpop.f32.mrb[70].mxu1  ;;  %v8405_v40 = vpop.f32.mrb[71].mxu0 }
 0x8a1   : > { %v5330_v39 = vadd.f32 %v5329_v38, %v5258_v37  ;;  %v8419_v41 = vpop.f32.mrb[71].mxu1 }
 0x8a5   : > { %v5263_v43 = vpop.f32.mrb[72].mxu0 }
 0x8a6   : > { %v5334_v44 = vpop.f32.mrb[72].mxu1  ;;  %v8408_v46 = vpop.f32.mrb[73].mxu0 }
 0x8a7   : > { %v5335_v45 = vadd.f32 %v5334_v44, %v5263_v43  ;;  %v8422_v47 = vpop.f32.mrb[73].mxu1  ;;  %v5266_v48 = vpop.f32.mrb[74].mxu0 }
 0x8a8   : > { %v5337_v50 = vpop.f32.mrb[74].mxu1  ;;  %v8409_v52 = vpop.f32.mrb[75].mxu0 }
 0x8a9   : > { %v5338_v51 = vadd.f32 %v5337_v50, %v5266_v48  ;;  %v8423_v53 = vpop.f32.mrb[75].mxu1 }
 0x8ad   : > { %v5271_v54 = vpop.f32.mrb[76].mxu0 }
 0x8ae   : > { %v5342_v55 = vpop.f32.mrb[76].mxu1  ;;  %v8412_v57 = vpop.f32.mrb[77].mxu0 }
 0x8af   : > { %v5343_v56 = vadd.f32 %v5342_v55, %v5271_v54  ;;  %v8426_v58 = vpop.f32.mrb[77].mxu1  ;;  %v5274_v60 = vpop.f32.mrb[78].mxu0 }
 0x8b0   : > { %v5345_v61 = vpop.f32.mrb[78].mxu1  ;;  %v8413_v62 = vpop.f32.mrb[79].mxu0 }
 0x8b1   : > { %v8427_v63 = vpop.f32.mrb[79].mxu1 }
 0x8b5   : > { %v5408_v0 = vpop.f32.mrb[80].mxu0 }
 0x8b6   : > { %v5495_v2 = vpop.f32.mrb[80].mxu1  ;;  %v5430_v3 = vadd.f32 %v5408_v0, %v5327_v34  ;;  %v8432_v4 = vpop.f32.mrb[81].mxu0 }
 0x8b7   : > { %v8446_v5 = vpop.f32.mrb[81].mxu1  ;;  %v5411_v6 = vpop.f32.mrb[82].mxu0 }
 0x8b8   : > { %v5498_v7 = vpop.f32.mrb[82].mxu1  ;;  %v5517_v8 = vadd.f32 %v5495_v2, %v5430_v3  ;;  %v5431_v9 = vadd.f32 %v5411_v6, %v5330_v39  ;;  %v8433_v10 = vpop.f32.mrb[83].mxu0 }
 0x8b9   : > { %v8447_v11 = vpop.f32.mrb[83].mxu1 }
 0x8ba   : > { %v5518_v13 = vadd.f32 %v5498_v7, %v5431_v9 }
 0x8bd   : > { %v5416_v14 = vpop.f32.mrb[84].mxu0 }
 0x8be   : > { %v5503_v15 = vpop.f32.mrb[84].mxu1  ;;  %v5432_v16 = vadd.f32 %v5416_v14, %v5335_v45  ;;  %v8436_v17 = vpop.f32.mrb[85].mxu0 }
 0x8bf   : > { %v8450_v18 = vpop.f32.mrb[85].mxu1  ;;  %v5419_v19 = vpop.f32.mrb[86].mxu0 }
 0x8c0   : > { %v5506_v20 = vpop.f32.mrb[86].mxu1  ;;  %v5519_v21 = vadd.f32 %v5503_v15, %v5432_v16  ;;  %v5433_v22 = vadd.f32 %v5419_v19, %v5338_v51  ;;  %v8437_v25 = vpop.f32.mrb[87].mxu0 }
 0x8c1   : > { %v8451_v26 = vpop.f32.mrb[87].mxu1 }
 0x8c2   : > { %v5520_v27 = vadd.f32 %v5506_v20, %v5433_v22 }
 0x8c5   : > { %v5424_v29 = vpop.f32.mrb[88].mxu0 }
 0x8c6   : > { %v5511_v30 = vpop.f32.mrb[88].mxu1  ;;  %v5434_v31 = vadd.f32 %v5424_v29, %v5343_v56  ;;  %v8440_v23 = vpop.f32.mrb[89].mxu0 }
 0x8c7   : > { %v8454_v24 = vpop.f32.mrb[89].mxu1  ;;  %v5427_v28 = vpop.f32.mrb[90].mxu0 }
 0x8c8   : > { %v5514_v33 = vpop.f32.mrb[90].mxu1  ;;  %v5521_v34 = vadd.f32 %v5511_v30, %v5434_v31  ;;  %v8441_v35 = vpop.f32.mrb[91].mxu0 }
 0x8c9   : > { %v8455_v36 = vpop.f32.mrb[91].mxu1 }
 0x8cd   : > { %v5582_v37 = vpop.f32.mrb[92].mxu0 }
 0x8ce   : > { %v5669_v38 = vpop.f32.mrb[92].mxu1  ;;  %v5604_v39 = vadd.f32 %v5582_v37, %v5517_v8  ;;  %v8460_v40 = vpop.f32.mrb[93].mxu0 }
 0x8cf   : > { %v8474_v41 = vpop.f32.mrb[93].mxu1  ;;  %v5585_v43 = vpop.f32.mrb[94].mxu0 }
 0x8d0   : > { %v5672_v44 = vpop.f32.mrb[94].mxu1  ;;  %v5691_v45 = vadd.f32 %v5669_v38, %v5604_v39  ;;  %v5605_v46 = vadd.f32 %v5585_v43, %v5518_v13  ;;  %v8461_v47 = vpop.f32.mrb[95].mxu0 }
 0x8d1   : > { %v8475_v48 = vpop.f32.mrb[95].mxu1 }
 0x8d2   : > { %v5692_v50 = vadd.f32 %v5672_v44, %v5605_v46 }
 0x8d5   : > { %v5590_v51 = vpop.f32.mrb[96].mxu0 }
 0x8d6   : > { %v5677_v52 = vpop.f32.mrb[96].mxu1  ;;  %v5606_v53 = vadd.f32 %v5590_v51, %v5519_v21  ;;  %v8464_v54 = vpop.f32.mrb[97].mxu0 }
 0x8d7   : > { %v8478_v55 = vpop.f32.mrb[97].mxu1  ;;  %v5593_v56 = vpop.f32.mrb[98].mxu0 }
 0x8d8   : > { %v5680_v57 = vpop.f32.mrb[98].mxu1  ;;  %v5693_v58 = vadd.f32 %v5677_v52, %v5606_v53  ;;  %v5607_v60 = vadd.f32 %v5593_v56, %v5520_v27  ;;  %v8465_v61 = vpop.f32.mrb[99].mxu0  ;;  %v7295_v53 = vld [vmem:[%s10152_s3 + $0x6] ss:$0 sm:$0xff] }
 0x8d9   : > { %v8479_v62 = vpop.f32.mrb[99].mxu1 }
 0x8da   : > { %v5694_v63 = vadd.f32 %v5680_v57, %v5607_v60 }
 0x8dd   : > { %v5598_v0 = vpop.f32.mrb[100].mxu0 }
 0x8de   : > { %v5685_v2 = vpop.f32.mrb[100].mxu1  ;;  %v5608_v3 = vadd.f32 %v5598_v0, %v5521_v34  ;;  %v8468_v4 = vpop.f32.mrb[101].mxu0 }
 0x8df   : > { %v8482_v5 = vpop.f32.mrb[101].mxu1  ;;  %v5601_v6 = vpop.f32.mrb[102].mxu0 }
 0x8e0   : > { %v5688_v7 = vpop.f32.mrb[102].mxu1  ;;  %v5695_v8 = vadd.f32 %v5685_v2, %v5608_v3  ;;  %v8469_v9 = vpop.f32.mrb[103].mxu0 }
 0x8e1   : > { %v8483_v10 = vpop.f32.mrb[103].mxu1 }
 0x8e5   : > { %v5756_v11 = vpop.f32.mrb[104].mxu0 }
 0x8e6   : > { %v5843_v13 = vpop.f32.mrb[104].mxu1  ;;  %v5778_v14 = vadd.f32 %v5756_v11, %v5691_v45  ;;  %v8488_v15 = vpop.f32.mrb[105].mxu0 }
 0x8e7   : > { %v8502_v16 = vpop.f32.mrb[105].mxu1  ;;  %v5759_v17 = vpop.f32.mrb[106].mxu0 }
 0x8e8   : > { %v5846_v18 = vpop.f32.mrb[106].mxu1  ;;  %v5865_v19 = vadd.f32 %v5843_v13, %v5778_v14  ;;  %v5779_v20 = vadd.f32 %v5759_v17, %v5692_v50  ;;  %v8489_v21 = vpop.f32.mrb[107].mxu0  ;;  %v7293_v50 = vld [vmem:[%s10151_s2 + $0x6] ss:$0 sm:$0xff] }
 0x8e9   : > { %v8503_v22 = vpop.f32.mrb[107].mxu1 }
 0x8ea   : > { %v5866_v25 = vadd.f32 %v5846_v18, %v5779_v20  ;;  %v8732_v22 = vld [vmem:[%s10150_s1 + $0x208] sm:$0xff]  }
 0x8ed   : > { %v5764_v26 = vpop.f32.mrb[108].mxu0 }
 0x8ee   : > { %v5851_v27 = vpop.f32.mrb[108].mxu1  ;;  %v5780_v29 = vadd.f32 %v5764_v26, %v5693_v58  ;;  %v8492_v30 = vpop.f32.mrb[109].mxu0 }
 0x8ef   : > { %v8506_v31 = vpop.f32.mrb[109].mxu1  ;;  %v5767_v23 = vpop.f32.mrb[110].mxu0 }
 0x8f0   : > { %v5854_v24 = vpop.f32.mrb[110].mxu1  ;;  %v5867_v28 = vadd.f32 %v5851_v27, %v5780_v29  ;;  %v5781_v33 = vadd.f32 %v5767_v23, %v5694_v63  ;;  %v8493_v34 = vpop.f32.mrb[111].mxu0 }
 0x8f1   : > { %v8507_v35 = vpop.f32.mrb[111].mxu1 }
 0x8f2   : > { %v5868_v36 = vadd.f32 %v5854_v24, %v5781_v33 }
 0x8f5   : > { %v5772_v37 = vpop.f32.mrb[112].mxu0 }
 0x8f6   : > { %v5859_v38 = vpop.f32.mrb[112].mxu1  ;;  %v5782_v39 = vadd.f32 %v5772_v37, %v5695_v8  ;;  %v8496_v40 = vpop.f32.mrb[113].mxu0 }
 0x8f7   : > { %v8510_v41 = vpop.f32.mrb[113].mxu1  ;;  %v5775_v43 = vpop.f32.mrb[114].mxu0 }
 0x8f8   : > { %v5862_v44 = vpop.f32.mrb[114].mxu1  ;;  %v5869_v45 = vadd.f32 %v5859_v38, %v5782_v39  ;;  %v8497_v46 = vpop.f32.mrb[115].mxu0 }
 0x8f9   : > { %v8511_v47 = vpop.f32.mrb[115].mxu1 }
 0x8fd   : > { %v5930_v48 = vpop.f32.mrb[116].mxu0 }
 0x8fe   : > { %v5952_v51 = vadd.f32 %v5930_v48, %v5865_v19  ;;  %v8516_v52 = vpop.f32.mrb[117].mxu0 }
 0x8ff   : > { %v5933_v54 = vpop.f32.mrb[118].mxu0 }
 0x900   : > { %v5965_v55 = vadd.f32 %v7293_v50, %v5952_v51  ;;  %v5953_v56 = vadd.f32 %v5933_v54, %v5866_v25  ;;  %v8517_v57 = vpop.f32.mrb[119].mxu0  ;;  %v8734_v54 = vld [vmem:[%s10150_s1 + $0x218] sm:$0xff]  }
 0x901   : > { %v8735_v57 = vld [vmem:[%s10150_s1 + $0x220] sm:$0xff]  }
 0x902   : > { %vm5970_vm7 = vcmp.ge.f32.partialorder %v5965_v55, 0.0  ;;  %v5983_v58 = vmul.f32 %v7295_v53, %v5965_v55  ;;  %v5966_v60 = vadd.f32 %v7293_v50, %v5953_v56 }
 0x904   : > { %v5988_v61 = vsel %vm5970_vm7, %v5965_v55, %v5983_v58  ;;  %vm5971_vm9 = vcmp.ge.f32.partialorder %v5966_v60, 0.0  ;;  %v5984_v62 = vmul.f32 %v7295_v53, %v5966_v60 }
 0x905   : > { %v5993_v63 = vmul.f32 %v5988_v61, %v9047_v32  ;;  %v5938_v0 = vpop.f32.mrb[120].mxu0 }
 0x906   : > { %v5989_v2 = vsel %vm5971_vm9, %v5966_v60, %v5984_v62  ;;  %v5954_v3 = vadd.f32 %v5938_v0, %v5867_v28  ;;  %v8520_v4 = vpop.f32.mrb[121].mxu0  ;;  %v8733_v28 = vld [vmem:[%s10150_s1 + $0x210] sm:$0xff]  }
 0x907   : > { %5998 = vst.msk [vmem:[#allocation2 + $0x7] sm:$0xff] %vm226_vm1, %v5993_v63  ;;  %v5994_v5 = vmul.f32 %v5989_v2, %v9050_v42  ;;  %v5941_v6 = vpop.f32.mrb[122].mxu0 }
 0x908   : > { %v5967_v7 = vadd.f32 %v7293_v50, %v5954_v3  ;;  %v5955_v8 = vadd.f32 %v5941_v6, %v5868_v36  ;;  %v8521_v9 = vpop.f32.mrb[123].mxu0 }
 0x909   : > { %5999 = vst.msk [vmem:[#allocation2 + $0xf] sm:$0xff] %vm226_vm1, %v5994_v5 }
 0x90a   : > { %vm5972_vm10 = vcmp.ge.f32.partialorder %v5967_v7, 0.0  ;;  %v5985_v10 = vmul.f32 %v7295_v53, %v5967_v7  ;;  %v5968_v11 = vadd.f32 %v7293_v50, %v5955_v8 }
 0x90c   : > { %v5990_v13 = vsel %vm5972_vm10, %v5967_v7, %v5985_v10  ;;  %vm5973_vm11 = vcmp.ge.f32.partialorder %v5968_v11, 0.0  ;;  %v5986_v14 = vmul.f32 %v7295_v53, %v5968_v11  ;;  %v8736_v7 = vld [vmem:[%s10150_s1 + $0x228] sm:$0xff]   ;;  %v8737_v10 = vld [vmem:[%s10150_s1 + $0x230] sm:$0xff]  }
 0x90d   : > { %v5995_v15 = vmul.f32 %v5990_v13, %v9054_v49  ;;  %v5946_v16 = vpop.f32.mrb[124].mxu0 }
 0x90e   : > { %v5991_v17 = vsel %vm5973_vm11, %v5968_v11, %v5986_v14  ;;  %v5956_v18 = vadd.f32 %v5946_v16, %v5869_v45  ;;  %v8524_v19 = vpop.f32.mrb[125].mxu0  ;;  %v6014_v21 = vld [vmem:[#allocation2 + $0x1] sm:$0xff] }
 0x90f   : > { %6000 = vst.msk [vmem:[#allocation2 + $0x17] sm:$0xff] %vm226_vm1, %v5995_v15  ;;  %v5996_v20 = vmul.f32 %v5991_v17, %v9058_v59  ;;  %v5949_v25 = vpop.f32.mrb[126].mxu0  ;;  %v6003_v29 = vld [vmem:[#allocation2] sm:$0xff] }
 0x910   : > { %v5969_v26 = vadd.f32 %v7293_v50, %v5956_v18  ;;  %v6015_v27 = vld [vmem:[#allocation2 + $0x9] sm:$0xff]  ;;  %v8525_v31 = vpop.f32.mrb[127].mxu0 }
 0x911   : > { %v9988_v30 = vld [vmem:[#allocation2 + $0x8] sm:$0xff]  ;;  %6001 = vst.msk [vmem:[#allocation2 + $0x1f] sm:$0xff] %vm226_vm1, %v5996_v20  ;;  %v6019_v23 = vpack.c.bf16 %v6015_v27, %v6014_v21  ;;  %v8738_v27 = vld [vmem:[%s10150_s1 + $0x238] sm:$0xff]  }
 0x912   : > { %v6008_v24 = vpack.c.bf16 %v9988_v30, %v6003_v29  ;;  %vm5974_vm12 = vcmp.ge.f32.partialorder %v5969_v26, 0.0  ;;  %v5987_v33 = vmul.f32 %v7295_v53, %v5969_v26  ;;  %v10005_v37 = vld [vmem:[#allocation2 + $0xe] sm:$0xff]  ;;  %v6167_v52 = vld [vmem:[#allocation2 + $0x2] sm:$0xff] }
 0x913   : > { %8529 = vmatmul.mubr.msk.bf16.vlgmr.msra.gmra.mrb[116].mxu1 %vm226_vm1, %v6019_v23  ;;  %v6168_v51 = vld [vmem:[#allocation2 + $0xa] sm:$0xff] }
 0x914   : > { %8543 = vmatmul.mubr.msk.bf16.vlgmr.msra.gmra.mrb[128].mxu0 %vm226_vm1, %v6008_v24  ;;  %v5992_v34 = vsel %vm5974_vm12, %v5969_v26, %v5987_v33  ;;  %8555 = vmatpush3.bf16.msra.mxu1 %v8732_v22  ;;  %v6254_v53 = vld [vmem:[#allocation2 + $0x6] sm:$0xff]  ;;  %v6172_v55 = vpack.c.bf16 %v6168_v51, %v6167_v52  ;;  %v6342_v5 = vld [vmem:[#allocation2 + $0xf] sm:$0xff] }
 0x915   : > { %8532 = vmatprep.mubr.msk.bf16.mxu1 %vm8748_vm0, %v8747_v1  ;;  %v5997_v35 = vmul.f32 %v5992_v34, %v9074_v12  ;;  %8546 = vmatprep.mubr.msk.bf16.mxu0 %vm8748_vm0, %v8747_v1  ;;  %v6259_v56 = vpack.c.bf16 %v10005_v37, %v6254_v53  ;;  %v6341_v6 = vld [vmem:[#allocation2 + $0x7] sm:$0xff] }
 0x916   : > { %8569 = vmatpush3.bf16.msra.mxu0 %v8733_v28  ;;  %8582 = vmatprep.subr.bf16.mxu1 %v8747_v1  ;;  %v6016_v36 = vld [vmem:[#allocation2 + $0x11] sm:$0xff]  ;;  %v6346_v8 = vpack.c.bf16 %v6342_v5, %v6341_v6 }
 0x917   : > { %8596 = vmatprep.subr.bf16.mxu0 %v8747_v1  ;;  %6002 = vst.msk [vmem:[#allocation2 + $0x27] sm:$0xf] %vm1087_vm8, %v5997_v35  ;;  %v10007_v38 = vld [vmem:[#allocation2 + $0x16] sm:$0xff]  ;;  %v6515_v25 = vld [vmem:[#allocation2 + $0xc] sm:$0xff] }
 0x918   : > { %v6017_v39 = vld [vmem:[#allocation2 + $0x19] sm:$0xff]  ;;  %v6005_v40 = vld [vmem:[#allocation2 + $0x10] sm:$0xff]  ;;  %v6694_v43 = vpack.c.bf16 %v10007_v38, %v10005_v37  ;;  %v6018_v46 = vld [vmem:[#allocation2 + $0x21] sm:$0xf] }
 0x919   : > { %v10009_v41 = vld [vmem:[#allocation2 + $0x18] sm:$0xff]  ;;  %v6020_v44 = vpack.c.bf16 %v6017_v39, %v6016_v36  ;;  %v6007_v47 = vld [vmem:[#allocation2 + $0x20] sm:$0xf]  ;;  %v6021_v48 = vpack.c.bf16 %v6018_v46, %v6018_v46  ;;  %v6433_v9 = vpack.c.bf16 %v6005_v40, %v9988_v30  ;;  %v6602_v26 = vld [vmem:[#allocation2 + $0xd] sm:$0xff] }
 0x91a   : > { %v6009_v45 = vpack.c.bf16 %v10009_v41, %v6005_v40  ;;  %v6010_v50 = vpack.c.bf16 %v6007_v47, %v6007_v47  ;;  %v6170_v58 = vld [vmem:[#allocation2 + $0x1a] sm:$0xff]  ;;  %v6169_v61 = vld [vmem:[#allocation2 + $0x12] sm:$0xff]  ;;  %v6171_v0 = vld [vmem:[#allocation2 + $0x22] sm:$0xf] }
 0x91b   : > { %8533 = vmatmul.mubr.msk.bf16.gmra.mrb[120].mxu1 %vm226_vm1, %v6020_v44  ;;  %v10039_v60 = vld [vmem:[#allocation2 + $0x1e] sm:$0xff]  ;;  %v6173_v62 = vpack.c.bf16 %v6170_v58, %v6169_v61  ;;  %v6174_v3 = vpack.c.bf16 %v6171_v0, %v6171_v0  ;;  %v6516_v21 = vld [vmem:[#allocation2 + $0x14] sm:$0xff]  ;;  %v6519_v35 = vld [vmem:[#allocation2 + $0x2c] sm:$0xf] }
 0x91c   : > { %8547 = vmatmul.mubr.msk.bf16.gmra.mrb[132].mxu0 %vm226_vm1, %v6009_v45  ;;  %8536 = vmatprep.mubr.msk.bf16.mxu1 %vm8748_vm0, %v8747_v1  ;;  %v6260_v63 = vpack.c.bf16 %v10039_v60, %v10007_v38  ;;  %v6344_v11 = vld [vmem:[#allocation2 + $0x1f] sm:$0xff]  ;;  %v6343_v14 = vld [vmem:[#allocation2 + $0x17] sm:$0xff]  ;;  %v6520_v29 = vpack.c.bf16 %v6516_v21, %v6515_v25  ;;  %v6606_v36 = vld [vmem:[#allocation2 + $0x2d] sm:$0xf]  ;;  %v6522_v39 = vpack.c.bf16 %v6519_v35, %v6519_v35 }
 0x91d   : > { %8550 = vmatprep.mubr.msk.bf16.mxu0 %vm8748_vm0, %v8747_v1  ;;  %v6347_v15 = vpack.c.bf16 %v6344_v11, %v6343_v14  ;;  %v6603_v22 = vld [vmem:[#allocation2 + $0x15] sm:$0xff]  ;;  %v6604_v28 = vld [vmem:[#allocation2 + $0x1d] sm:$0xff]  ;;  %v6609_v40 = vpack.c.bf16 %v6606_v36, %v6606_v36  ;;  %v6693_v45 = vld [vmem:[#allocation2 + $0x2e] sm:$0xf] }
 0x91e   : > { %v6258_v2 = vld [vmem:[#allocation2 + $0x26] sm:$0xf]  ;;  %v6607_v30 = vpack.c.bf16 %v6603_v22, %v6602_v26  ;;  %v6517_v24 = vld [vmem:[#allocation2 + $0x1c] sm:$0xff]  ;;  %v6696_v46 = vpack.c.bf16 %v6693_v45, %v6693_v45 }
 0x91f   : > { %v6261_v4 = vpack.c.bf16 %v6258_v2, %v6258_v2  ;;  %v6431_v13 = vld [vmem:[#allocation2 + $0x20] sm:$0xff]  ;;  %v6432_v18 = vld [vmem:[#allocation2 + $0x28] sm:$0xf] }
 0x920   : > { %v6434_v16 = vpack.c.bf16 %v6431_v13, %v10009_v41  ;;  %v6345_v17 = vld [vmem:[#allocation2 + $0x27] sm:$0xf]  ;;  %v6435_v20 = vpack.c.bf16 %v6432_v18, %v6432_v18 }
 0x921   : > { %v6348_v19 = vpack.c.bf16 %v6345_v17, %v6345_v17  ;;  %v6518_v31 = vld [vmem:[#allocation2 + $0x24] sm:$0xff] }
 0x922   : > { %v6605_v23 = vld [vmem:[#allocation2 + $0x25] sm:$0xff]  ;;  %v6521_v33 = vpack.c.bf16 %v6518_v31, %v6517_v24 }
 0x923   : > { %8537 = vmatmul.mubr.msk.bf16.gmra.mrb[124].mxu1 %vm226_vm1, %v6021_v48  ;;  %v6608_v34 = vpack.c.bf16 %v6605_v23, %v6604_v28  ;;  %v6692_v41 = vld [vmem:[#allocation2 + $0x26] sm:$0xff] }
 0x924   : > { %8551 = vmatmul.mubr.msk.bf16.gmra.mrb[136].mxu0 %vm226_vm1, %v6010_v50  ;;  %8556 = vmatprep.mubr.msk.bf16.mxu1 %vm8748_vm0, %v8747_v1  ;;  %v6695_v44 = vpack.c.bf16 %v6692_v41, %v10039_v60 }
 0x925   : > { %8570 = vmatprep.mubr.msk.bf16.mxu0 %vm8748_vm0, %v8747_v1 }
 0x92b   : > { %8557 = vmatmul.mubr.msk.bf16.vlgmr.msra.gmra.mrb[128].mxu1 %vm226_vm1, %v6172_v55 }
 0x92c   : > { %8571 = vmatmul.mubr.msk.bf16.vlgmr.msra.gmra.mrb[140].mxu0 %vm226_vm1, %v6259_v56  ;;  %8583 = vmatpush3.bf16.msra.mxu1 %v8734_v54 }
 0x92d   : > { %8560 = vmatprep.mubr.msk.bf16.mxu1 %vm8748_vm0, %v8747_v1  ;;  %8574 = vmatprep.mubr.msk.bf16.mxu0 %vm8748_vm0, %v8747_v1 }
 0x92e   : > { %8597 = vmatpush3.bf16.msra.mxu0 %v8735_v57  ;;  %8610 = vmatprep.subr.bf16.mxu1 %v8747_v1 }
 0x92f   : > { %8624 = vmatprep.subr.bf16.mxu0 %v8747_v1 }
 0x933   : > { %8561 = vmatmul.mubr.msk.bf16.gmra.mrb[132].mxu1 %vm226_vm1, %v6173_v62 }
 0x934   : > { %8575 = vmatmul.mubr.msk.bf16.gmra.mrb[144].mxu0 %vm226_vm1, %v6260_v63  ;;  %8564 = vmatprep.mubr.msk.bf16.mxu1 %vm8748_vm0, %v8747_v1 }
 0x935   : > { %8578 = vmatprep.mubr.msk.bf16.mxu0 %vm8748_vm0, %v8747_v1 }
 0x93b   : > { %8565 = vmatmul.mubr.msk.bf16.gmra.mrb[136].mxu1 %vm226_vm1, %v6174_v3 }
 0x93c   : > { %8579 = vmatmul.mubr.msk.bf16.gmra.mrb[148].mxu0 %vm226_vm1, %v6261_v4  ;;  %8584 = vmatprep.mubr.msk.bf16.mxu1 %vm8748_vm0, %v8747_v1 }
 0x93d   : > { %8598 = vmatprep.mubr.msk.bf16.mxu0 %vm8748_vm0, %v8747_v1 }
 0x943   : > { %8585 = vmatmul.mubr.msk.bf16.vlgmr.msra.gmra.mrb[140].mxu1 %vm226_vm1, %v6346_v8 }
 0x944   : > { %8599 = vmatmul.mubr.msk.bf16.vlgmr.msra.gmra.mrb[152].mxu0 %vm226_vm1, %v6433_v9  ;;  %8611 = vmatpush3.bf16.msra.mxu1 %v8736_v7 }
 0x945   : > { %8588 = vmatprep.mubr.msk.bf16.mxu1 %vm8748_vm0, %v8747_v1  ;;  %8602 = vmatprep.mubr.msk.bf16.mxu0 %vm8748_vm0, %v8747_v1 }
 0x946   : > { %8625 = vmatpush3.bf16.msra.mxu0 %v8737_v10  ;;  %8638 = vmatprep.subr.bf16.mxu1 %v8747_v1 }
 0x94b   : > { %8589 = vmatmul.mubr.msk.bf16.gmra.mrb[144].mxu1 %vm226_vm1, %v6347_v15 }
 0x94c   : > { %8603 = vmatmul.mubr.msk.bf16.gmra.mrb[156].mxu0 %vm226_vm1, %v6434_v16  ;;  %8592 = vmatprep.mubr.msk.bf16.mxu1 %vm8748_vm0, %v8747_v1 }
 0x94d   : > { %8606 = vmatprep.mubr.msk.bf16.mxu0 %vm8748_vm0, %v8747_v1 }
 0x953   : > { %8593 = vmatmul.mubr.msk.bf16.gmra.mrb[148].mxu1 %vm226_vm1, %v6348_v19 }
 0x954   : > { %8607 = vmatmul.mubr.msk.bf16.gmra.mrb[160].mxu0 %vm226_vm1, %v6435_v20  ;;  %8612 = vmatprep.mubr.msk.bf16.mxu1 %vm8748_vm0, %v8747_v1 }
 0x955   : > { %8626 = vmatprep.mubr.msk.bf16.mxu0 %vm8748_vm0, %v8747_v1 }
 0x95b   : > { %8613 = vmatmul.mubr.msk.bf16.vlgmr.msra.gmra.mrb[152].mxu1 %vm226_vm1, %v6520_v29 }
 0x95c   : > { %8627 = vmatmul.mubr.msk.bf16.vlgmr.msra.gmra.mrb[164].mxu0 %vm226_vm1, %v6607_v30  ;;  %8639 = vmatpush3.bf16.msra.mxu1 %v8738_v27 }
 0x95d   : > { %8616 = vmatprep.mubr.msk.bf16.mxu1 %vm8748_vm0, %v8747_v1  ;;  %8630 = vmatprep.mubr.msk.bf16.mxu0 %vm8748_vm0, %v8747_v1 }
 0x963   : > { %8617 = vmatmul.mubr.msk.bf16.gmra.mrb[156].mxu1 %vm226_vm1, %v6521_v33 }
 0x964   : > { %8631 = vmatmul.mubr.msk.bf16.gmra.mrb[168].mxu0 %vm226_vm1, %v6608_v34  ;;  %8620 = vmatprep.mubr.msk.bf16.mxu1 %vm8748_vm0, %v8747_v1 }
 0x965   : > { %8634 = vmatprep.mubr.msk.bf16.mxu0 %vm8748_vm0, %v8747_v1 }
 0x96b   : > { %8621 = vmatmul.mubr.msk.bf16.gmra.mrb[160].mxu1 %vm226_vm1, %v6522_v39 }
 0x96c   : > { %8635 = vmatmul.mubr.msk.bf16.gmra.mrb[172].mxu0 %vm226_vm1, %v6609_v40  ;;  %8640 = vmatprep.mubr.msk.bf16.mxu1 %vm8748_vm0, %v8747_v1 }
 0x973   : > { %8641 = vmatmul.mubr.msk.bf16.vlgmr.msra.gmra.mrb[164].mxu1 %vm226_vm1, %v6694_v43 }
 0x974   : > { %8644 = vmatprep.mubr.msk.bf16.mxu1 %vm8748_vm0, %v8747_v1 }
 0x97b   : > { %8645 = vmatmul.mubr.msk.bf16.gmra.mrb[168].mxu1 %vm226_vm1, %v6695_v44 }
 0x97c   : > { %8648 = vmatprep.mubr.msk.bf16.mxu1 %vm8748_vm0, %v8747_v1 }
 0x983   : > { %8649 = vmatmul.mubr.msk.bf16.gmra.mrb[172].mxu1 %vm226_vm1, %v6696_v46 }
 0x9e6   : > { %v6074_v47 = vpop.f32.mrb[116].mxu1 }
 0x9e7   : > { %v6145_v48 = vpop.f32.mrb[128].mxu0  ;;  %v8530_v38 = vpop.f32.mrb[117].mxu1 }
 0x9e8   : > { %v6146_v37 = vadd.f32 %v6145_v48, %v6074_v47  ;;  %v8544_v43 = vpop.f32.mrb[129].mxu0  ;;  %v6077_v50 = vpop.f32.mrb[118].mxu1 }
 0x9e9   : > { %v6148_v51 = vpop.f32.mrb[130].mxu0  ;;  %v8531_v53 = vpop.f32.mrb[119].mxu1 }
 0x9ea   : > { %v6149_v52 = vadd.f32 %v6148_v51, %v6077_v50  ;;  %v8545_v54 = vpop.f32.mrb[131].mxu0 }
 0x9ee   : > { %v6082_v55 = vpop.f32.mrb[120].mxu1 }
 0x9ef   : > { %v6153_v56 = vpop.f32.mrb[132].mxu0  ;;  %v8534_v58 = vpop.f32.mrb[121].mxu1 }
 0x9f0   : > { %v6154_v57 = vadd.f32 %v6153_v56, %v6082_v55  ;;  %v8548_v60 = vpop.f32.mrb[133].mxu0  ;;  %v6085_v1 = vpop.f32.mrb[122].mxu1 }
 0x9f1   : > { %v6156_v61 = vpop.f32.mrb[134].mxu0  ;;  %v8535_v63 = vpop.f32.mrb[123].mxu1 }
 0x9f2   : > { %v6157_v62 = vadd.f32 %v6156_v61, %v6085_v1  ;;  %v8549_v0 = vpop.f32.mrb[135].mxu0 }
 0x9f6   : > { %v6090_v2 = vpop.f32.mrb[124].mxu1 }
 0x9f7   : > { %v6161_v3 = vpop.f32.mrb[136].mxu0  ;;  %v8538_v5 = vpop.f32.mrb[125].mxu1 }
 0x9f8   : > { %v6162_v4 = vadd.f32 %v6161_v3, %v6090_v2  ;;  %v8552_v6 = vpop.f32.mrb[137].mxu0  ;;  %v6093_v7 = vpop.f32.mrb[126].mxu1 }
 0x9f9   : > { %v6164_v8 = vpop.f32.mrb[138].mxu0  ;;  %v8539_v9 = vpop.f32.mrb[127].mxu1 }
 0x9fa   : > { %v8553_v10 = vpop.f32.mrb[139].mxu0 }
 0x9fe   : > { %v6227_v11 = vpop.f32.mrb[128].mxu1 }
 0x9ff   : > { %v6314_v13 = vpop.f32.mrb[140].mxu0  ;;  %v6249_v14 = vadd.f32 %v6227_v11, %v6146_v37  ;;  %v8558_v15 = vpop.f32.mrb[129].mxu1 }
 0xa00   : > { %v8572_v16 = vpop.f32.mrb[141].mxu0  ;;  %v6230_v17 = vpop.f32.mrb[130].mxu1 }
 0xa01   : > { %v6317_v18 = vpop.f32.mrb[142].mxu0  ;;  %v6336_v19 = vadd.f32 %v6314_v13, %v6249_v14  ;;  %v6250_v20 = vadd.f32 %v6230_v17, %v6149_v52  ;;  %v8559_v21 = vpop.f32.mrb[131].mxu1 }
 0xa02   : > { %v8573_v22 = vpop.f32.mrb[143].mxu0 }
 0xa03   : > { %v6337_v25 = vadd.f32 %v6317_v18, %v6250_v20 }
 0xa06   : > { %v6235_v26 = vpop.f32.mrb[132].mxu1 }
 0xa07   : > { %v6322_v27 = vpop.f32.mrb[144].mxu0  ;;  %v6251_v29 = vadd.f32 %v6235_v26, %v6154_v57  ;;  %v8562_v30 = vpop.f32.mrb[133].mxu1 }
 0xa08   : > { %v8576_v31 = vpop.f32.mrb[145].mxu0  ;;  %v6238_v23 = vpop.f32.mrb[134].mxu1 }
 0xa09   : > { %v6325_v24 = vpop.f32.mrb[146].mxu0  ;;  %v6338_v28 = vadd.f32 %v6322_v27, %v6251_v29  ;;  %v6252_v33 = vadd.f32 %v6238_v23, %v6157_v62  ;;  %v8563_v34 = vpop.f32.mrb[135].mxu1 }
 0xa0a   : > { %v8577_v35 = vpop.f32.mrb[147].mxu0 }
 0xa0b   : > { %v6339_v36 = vadd.f32 %v6325_v24, %v6252_v33 }
 0xa0e   : > { %v6243_v39 = vpop.f32.mrb[136].mxu1 }
 0xa0f   : > { %v6330_v40 = vpop.f32.mrb[148].mxu0  ;;  %v6253_v41 = vadd.f32 %v6243_v39, %v6162_v4  ;;  %v8566_v44 = vpop.f32.mrb[137].mxu1 }
 0xa10   : > { %v8580_v45 = vpop.f32.mrb[149].mxu0  ;;  %v6246_v46 = vpop.f32.mrb[138].mxu1 }
 0xa11   : > { %v6333_v47 = vpop.f32.mrb[150].mxu0  ;;  %v6340_v48 = vadd.f32 %v6330_v40, %v6253_v41  ;;  %v8567_v37 = vpop.f32.mrb[139].mxu1 }
 0xa12   : > { %v8581_v38 = vpop.f32.mrb[151].mxu0 }
 0xa16   : > { %v6401_v43 = vpop.f32.mrb[140].mxu1 }
 0xa17   : > { %v6488_v50 = vpop.f32.mrb[152].mxu0  ;;  %v6423_v51 = vadd.f32 %v6401_v43, %v6336_v19  ;;  %v8586_v52 = vpop.f32.mrb[141].mxu1 }
 0xa18   : > { %v8600_v53 = vpop.f32.mrb[153].mxu0  ;;  %v6404_v54 = vpop.f32.mrb[142].mxu1 }
 0xa19   : > { %v6491_v55 = vpop.f32.mrb[154].mxu0  ;;  %v6510_v56 = vadd.f32 %v6488_v50, %v6423_v51  ;;  %v6424_v57 = vadd.f32 %v6404_v54, %v6337_v25  ;;  %v8587_v58 = vpop.f32.mrb[143].mxu1 }
 0xa1a   : > { %v8601_v60 = vpop.f32.mrb[155].mxu0 }
 0xa1b   : > { %v6511_v1 = vadd.f32 %v6491_v55, %v6424_v57  ;;  %v7351_v60 = vld [vmem:[%s10151_s2 + $0x7] ss:$0 sm:$0xff] }
 0xa1e   : > { %v6409_v61 = vpop.f32.mrb[144].mxu1 }
 0xa1f   : > { %v6496_v62 = vpop.f32.mrb[156].mxu0  ;;  %v6425_v63 = vadd.f32 %v6409_v61, %v6338_v28  ;;  %v8590_v0 = vpop.f32.mrb[145].mxu1 }
 0xa20   : > { %v8604_v2 = vpop.f32.mrb[157].mxu0  ;;  %v6412_v3 = vpop.f32.mrb[146].mxu1 }
 0xa21   : > { %v6499_v4 = vpop.f32.mrb[158].mxu0  ;;  %v6512_v5 = vadd.f32 %v6496_v62, %v6425_v63  ;;  %v6426_v6 = vadd.f32 %v6412_v3, %v6339_v36  ;;  %v8591_v7 = vpop.f32.mrb[147].mxu1  ;;  %v7353_v62 = vld [vmem:[%s10152_s3 + $0x7] ss:$0 sm:$0xff] }
 0xa22   : > { %v8605_v8 = vpop.f32.mrb[159].mxu0  ;;  %v6817_v7 = vld [vmem:[%s8842_s28 + $0x7] sm:$0xff] }
 0xa23   : > { %v6513_v9 = vadd.f32 %v6499_v4, %v6426_v6 }
 0xa26   : > { %v6417_v10 = vpop.f32.mrb[148].mxu1 }
 0xa27   : > { %v6504_v11 = vpop.f32.mrb[160].mxu0  ;;  %v6427_v13 = vadd.f32 %v6417_v10, %v6340_v48  ;;  %v8594_v14 = vpop.f32.mrb[149].mxu1 }
 0xa28   : > { %v8608_v15 = vpop.f32.mrb[161].mxu0  ;;  %v6420_v16 = vpop.f32.mrb[150].mxu1 }
 0xa29   : > { %v6507_v17 = vpop.f32.mrb[162].mxu0  ;;  %v6514_v18 = vadd.f32 %v6504_v11, %v6427_v13  ;;  %v8595_v19 = vpop.f32.mrb[151].mxu1  ;;  %v6818_v13 = vld [vmem:[%s8842_s28 + $0xf] sm:$0xff] }
 0xa2a   : > { %v8609_v20 = vpop.f32.mrb[163].mxu0 }
 0xa2e   : > { %v6575_v21 = vpop.f32.mrb[152].mxu1 }
 0xa2f   : > { %v6662_v22 = vpop.f32.mrb[164].mxu0  ;;  %v6597_v25 = vadd.f32 %v6575_v21, %v6510_v56  ;;  %v8614_v26 = vpop.f32.mrb[153].mxu1 }
 0xa30   : > { %v8628_v27 = vpop.f32.mrb[165].mxu0  ;;  %v6578_v29 = vpop.f32.mrb[154].mxu1 }
 0xa31   : > { %v6665_v30 = vpop.f32.mrb[166].mxu0  ;;  %v6684_v31 = vadd.f32 %v6662_v22, %v6597_v25  ;;  %v6598_v23 = vadd.f32 %v6578_v29, %v6511_v1  ;;  %v8615_v24 = vpop.f32.mrb[155].mxu1  ;;  %v6819_v27 = vld [vmem:[%s8842_s28 + $0x17] sm:$0xff] }
 0xa32   : > { %v8629_v28 = vpop.f32.mrb[167].mxu0 }
 0xa33   : > { %v6685_v33 = vadd.f32 %v6665_v30, %v6598_v23  ;;  %v6820_v23 = vld [vmem:[%s8842_s28 + $0x1f] sm:$0xff] }
 0xa36   : > { %v6583_v34 = vpop.f32.mrb[156].mxu1 }
 0xa37   : > { %v6670_v35 = vpop.f32.mrb[168].mxu0  ;;  %v6599_v36 = vadd.f32 %v6583_v34, %v6512_v5  ;;  %v8618_v39 = vpop.f32.mrb[157].mxu1 }
 0xa38   : > { %v8632_v40 = vpop.f32.mrb[169].mxu0  ;;  %v6586_v41 = vpop.f32.mrb[158].mxu1 }
 0xa39   : > { %v6673_v44 = vpop.f32.mrb[170].mxu0  ;;  %v6686_v45 = vadd.f32 %v6670_v35, %v6599_v36  ;;  %v6600_v46 = vadd.f32 %v6586_v41, %v6513_v9  ;;  %v8619_v47 = vpop.f32.mrb[159].mxu1 }
 0xa3a   : > { %v8633_v48 = vpop.f32.mrb[171].mxu0 }
 0xa3b   : > { %v6687_v37 = vadd.f32 %v6673_v44, %v6600_v46  ;;  %v6821_v44 = vld [vmem:[%s8842_s28 + $0x27] sm:$0xf] }
 0xa3e   : > { %v6591_v38 = vpop.f32.mrb[160].mxu1 }
 0xa3f   : > { %v6678_v43 = vpop.f32.mrb[172].mxu0  ;;  %v6601_v50 = vadd.f32 %v6591_v38, %v6514_v18  ;;  %v8622_v51 = vpop.f32.mrb[161].mxu1 }
 0xa40   : > { %v8636_v52 = vpop.f32.mrb[173].mxu0  ;;  %v6594_v53 = vpop.f32.mrb[162].mxu1 }
 0xa41   : > { %v6681_v54 = vpop.f32.mrb[174].mxu0  ;;  %v6688_v55 = vadd.f32 %v6678_v43, %v6601_v50  ;;  %v8623_v56 = vpop.f32.mrb[163].mxu1 }
 0xa42   : > { %v8637_v57 = vpop.f32.mrb[175].mxu0 }
 0xa46   : > { %v6749_v58 = vpop.f32.mrb[164].mxu1 }
 0xa47   : > { %v6771_v1 = vadd.f32 %v6749_v58, %v6684_v31  ;;  %v8642_v61 = vpop.f32.mrb[165].mxu1 }
 0xa48   : > { %v6752_v63 = vpop.f32.mrb[166].mxu1 }
 0xa49   : > { %v6784_v0 = vadd.f32 %v7351_v60, %v6771_v1  ;;  %v6772_v2 = vadd.f32 %v6752_v63, %v6685_v33  ;;  %v8643_v3 = vpop.f32.mrb[167].mxu1 }
 0xa4b   : > { %vm6789_vm0 = vcmp.ge.f32.partialorder %v6784_v0, 0.0  ;;  %v6802_v4 = vmul.f32 %v7353_v62, %v6784_v0  ;;  %v6785_v5 = vadd.f32 %v7351_v60, %v6772_v2 }
 0xa4d   : > { %v6807_v6 = vsel %vm6789_vm0, %v6784_v0, %v6802_v4  ;;  %vm6790_vm13 = vcmp.ge.f32.partialorder %v6785_v5, 0.0  ;;  %v6803_v8 = vmul.f32 %v7353_v62, %v6785_v5 }
 0xa4e   : > { %v6812_v9 = vmul.f32 %v6807_v6, %v9047_v32  ;;  %v6757_v10 = vpop.f32.mrb[168].mxu1 }
 0xa4f   : > { %v6808_v11 = vsel %vm6790_vm13, %v6785_v5, %v6803_v8  ;;  %v6773_v14 = vadd.f32 %v6757_v10, %v6686_v45  ;;  %v8646_v15 = vpop.f32.mrb[169].mxu1 }
 0xa50   : > { %v6822_v16 = vadd.f32 %v6817_v7, %v6812_v9  ;;  %v6813_v17 = vmul.f32 %v6808_v11, %v9050_v42  ;;  %v6760_v18 = vpop.f32.mrb[170].mxu1 }
 0xa51   : > { %v6786_v19 = vadd.f32 %v7351_v60, %v6773_v14  ;;  %v6774_v32 = vadd.f32 %v6760_v18, %v6687_v37  ;;  %v8647_v20 = vpop.f32.mrb[171].mxu1 }
 0xa52   : > { %6827 = vst.msk [vmem:[%s10126_s13] sm:$0xff] %vm226_vm1, %v6822_v16  ;;  %v6823_v21 = vadd.f32 %v6818_v13, %v6813_v17 }
 0xa53   : > { %vm6791_vm14 = vcmp.ge.f32.partialorder %v6786_v19, 0.0  ;;  %v6804_v22 = vmul.f32 %v7353_v62, %v6786_v19  ;;  %v6787_v25 = vadd.f32 %v7351_v60, %v6774_v32 }
 0xa54   : > { %6828 = vst.msk [vmem:[%s10126_s13 + $0x8] sm:$0xff] %vm226_vm1, %v6823_v21 }
 0xa55   : > { %v6809_v26 = vsel %vm6791_vm14, %v6786_v19, %v6804_v22  ;;  %vm6792_vm15 = vcmp.ge.f32.partialorder %v6787_v25, 0.0  ;;  %v6805_v29 = vmul.f32 %v7353_v62, %v6787_v25 }
 0xa56   : > { %v6814_v42 = vmul.f32 %v6809_v26, %v9054_v49  ;;  %v6765_v30 = vpop.f32.mrb[172].mxu1 }
 0xa57   : > { %v6810_v31 = vsel %vm6792_vm15, %v6787_v25, %v6805_v29  ;;  %v6775_v24 = vadd.f32 %v6765_v30, %v6688_v55  ;;  %v8650_v28 = vpop.f32.mrb[173].mxu1 }
 0xa58   : > { %v6824_v33 = vadd.f32 %v6819_v27, %v6814_v42  ;;  %v6815_v34 = vmul.f32 %v6810_v31, %v9058_v59  ;;  %v6768_v35 = vpop.f32.mrb[174].mxu1 }
 0xa59   : > { %v6788_v36 = vadd.f32 %v7351_v60, %v6775_v24  ;;  %v8651_v39 = vpop.f32.mrb[175].mxu1 }
 0xa5a   : > { %6829 = vst.msk [vmem:[%s10126_s13 + $0x10] sm:$0xff] %vm226_vm1, %v6824_v33  ;;  %v6825_v40 = vadd.f32 %v6820_v23, %v6815_v34 }
 0xa5b   : > { %vm6793_vm2 = vcmp.ge.f32.partialorder %v6788_v36, 0.0  ;;  %v6806_v41 = vmul.f32 %v7353_v62, %v6788_v36 }
 0xa5c   : > { %6830 = vst.msk [vmem:[%s10126_s13 + $0x18] sm:$0xff] %vm226_vm1, %v6825_v40 }
 0xa5d   : > { %v6811_v49 = vsel %vm6793_vm2, %v6788_v36, %v6806_v41 }
 0xa5e   : > { %v6816_v45 = vmul.f32 %v6811_v49, %v9074_v12 }
 0xa60   : > { %v6826_v46 = vadd.f32 %v6821_v44, %v6816_v45 }
 0xa62   : > { %6831 = vst.msk [vmem:[%s10126_s13 + $0x20] sm:$0xf] %vm1087_vm8, %v6826_v46 }
 0xa63 PF: > { %s15_s18 = sadd.s32 1, %s8745_s18  }
 0xa64   : > { %p12_p4 = scmp.ge.s32.totalorder %s15_s18, 4  }
 0xa66   :  { %14 = sbr.rel (!%p12_p4) target bundleno = 1 (0x1), region = 155 }

</bundles_post_ra>
